<compile_context>
chip_gen: v7x
topology: tpu7x:2x2x1
jax: 0.10.0
libtpu: 0.0.40
codegen_flags: <defaults>
</compile_context>

<pallas_src>
import functools

import jax
import jax.numpy as jnp
from jax.experimental import pallas as pl
from jax.experimental.pallas import tpu as pltpu

_BN_EPS = 1e-5
_LRELU_SLOPE = 0.2
_K = 4  # Conv3d kernel size
_S = 2  # Conv3d stride
_P = 1  # Conv3d padding


def _round_up(x, m):
    return (x + m - 1) // m * m


def _largest_divisor(n, limit):
    limit = max(1, min(n, limit))
    for t in range(limit, 0, -1):
        if n % t == 0:
            return t
    return 1


def _row_tile(m_total, target=2048):
    """Largest row tile <= target that divides m_total and keeps (8,128) legal."""
    if m_total <= target:
        return m_total
    for t in range(target, 7, -1):
        if m_total % t == 0 and t % 8 == 0:
            return t
    return m_total  # single (possibly large) block fallback


# ---------------------------------------------------------------------------
# Pallas kernels
# ---------------------------------------------------------------------------
def _conv_stats_kernel(x_lo_ref, x_hi_ref, w_ref, y_ref, st_ref,
                       *, tdo, hw, groups, inv_rows):
    """Shifted-window Conv3d GEMM for one (sample, depth-slab) grid step.

    x_lo_ref: [1, tdo, R, KC] bf16   window tensor rows for this depth slab
    x_hi_ref: [1, 1,   R, KC] bf16   +1 halo row along the depth-block axis
    w_ref:    [G, KC, CP]     bf16   offset-grouped conv weights (resident)
    y_ref:    [1, tdo, HW, CP] bf16  pre-BN conv output
    st_ref:   [1, 1, 2, CP]    f32   row 0: channel sum, row 1: centered M2
    """
    accs = []
    ssum = None
    for dd in range(tdo):
        acc = None
        for g, (a, row0) in enumerate(groups):
            if dd + a < tdo:
                xw = x_lo_ref[0, dd + a, row0:row0 + hw, :]
            else:
                xw = x_hi_ref[0, 0, row0:row0 + hw, :]
            part = jnp.dot(xw, w_ref[g], preferred_element_type=jnp.float32)
            acc = part if acc is None else acc + part
        y_ref[0, dd] = acc.astype(y_ref.dtype)
        accs.append(acc)
        s = jnp.sum(acc, axis=0, keepdims=True)
        ssum = s if ssum is None else ssum + s

    # Two-pass (per-step centered) BN partial statistics from the f32 accs.
    mean = ssum * inv_rows
    m2 = None
    for acc in accs:
        d = acc - mean
        v = jnp.sum(d * d, axis=0, keepdims=True)
        m2 = v if m2 is None else m2 + v
    st_ref[0, 0, 0:1, :] = ssum
    st_ref[0, 0, 1:2, :] = m2


def _bn_lrelu_kernel(y_ref, scale_ref, shift_ref, o_ref):
    """BN scale/shift + LeakyReLU(0.2); bf16 in, f32 math, bf16 out."""
    z = y_ref[...].astype(jnp.float32) * scale_ref[...] + shift_ref[...]
    o_ref[...] = jnp.where(z >= 0, z, _LRELU_SLOPE * z).astype(o_ref.dtype)


def _linear_sigmoid_kernel(x_ref, w_ref, b_ref, o_ref):
    """Final Linear(F,1)+Sigmoid in a single block (row-vector weight)."""
    x = x_ref[...].astype(jnp.float32)
    w = w_ref[...].astype(jnp.float32)
    acc = jnp.sum(x * w, axis=1, keepdims=True)          # [N, 1]
    o_ref[...] = 1.0 / (1.0 + jnp.exp(-(acc + b_ref[...])))


# ---------------------------------------------------------------------------
# JAX-side window / weight preprocessing (cheap, ~2-4x input traffic)
# ---------------------------------------------------------------------------
def _build_windows_std(ap, wo):
    """X[n, do+a, (ho+b)*Wo + ow, (pd,ph,kw,ci)] = padded input at
    (2(do+a)+pd, 2(ho+b)+ph, 2ow+kw, ci).  Shape [N, Do+1, (Ho+1)*Wo, 16*C]."""
    n, dp, hp, _, c = ap.shape
    aw = jnp.stack([ap[:, :, :, kw:kw + 2 * wo:2, :] for kw in range(4)], axis=4)
    x = aw.reshape(n, dp // 2, 2, hp // 2, 2, wo, 4, c)
    x = x.transpose(0, 1, 3, 5, 2, 4, 6, 7)   # [N, Db, Hb, Wo, pd, ph, kw, C]
    return x.reshape(n, dp // 2, (hp // 2) * wo, 16 * c)


def _build_windows_fold_h(ap, ho, wo):
    """H taps folded into K too (used when Cin is tiny, e.g. layer 1).
    Shape [N, Do+1, Ho*Wo, 32*C], K order (pd, kh, kw, ci)."""
    n, dp, _, _, c = ap.shape
    ah = jnp.stack([ap[:, :, kh:kh + 2 * ho:2, :, :] for kh in range(4)], axis=3)
    aw = jnp.stack([ah[:, :, :, :, kw:kw + 2 * wo:2, :] for kw in range(4)], axis=5)
    x = aw.reshape(n, dp // 2, 2, ho, 4, wo, 4, c)
    x = x.transpose(0, 1, 3, 5, 2, 4, 6, 7)   # [N, Db, Ho, Wo, pd, kh, kw, C]
    return x.reshape(n, dp // 2, ho * wo, 32 * c)


def _build_weight_groups(w, fold_h, cp):
    """Reorder torch Conv3d weight [Cout,Cin,4,4,4] into offset-grouped GEMM
    weights [G, K, cp] matching the X tensor's K ordering."""
    cout, cin = w.shape[0], w.shape[1]
    if fold_h:
        wr = w.reshape(cout, cin, 2, 2, 4, 4)        # (Cout,Cin,a,pd,kh,kw)
        wr = wr.transpose(2, 3, 4, 5, 1, 0)          # (a,pd,kh,kw,Cin,Cout)
        wg = wr.reshape(2, 32 * cin, cout)
    else:
        wr = w.reshape(cout, cin, 2, 2, 2, 2, 4)     # (Cout,Cin,a,pd,b,ph,kw)
        wr = wr.transpose(2, 4, 3, 5, 6, 1, 0)       # (a,b,pd,ph,kw,Cin,Cout)
        wg = wr.reshape(4, 16 * cin, cout)
    wg = jnp.pad(wg, ((0, 0), (0, 0), (0, cp - cout)))
    return wg.astype(jnp.bfloat16)


def _conv_vmem_bytes(tdo, r, kc, hw, cp, g):
    x_lo = tdo * r * kc * 2
    x_hi = r * kc * 2
    wgt = g * kc * cp * 2
    y = tdo * hw * cp * 2
    st = 2 * cp * 4
    acc = tdo * hw * cp * 4
    est = 2 * (x_lo + x_hi + y + st) + 2 * wgt + acc
    return max(est + (6 << 20), 24 << 20)


# ---------------------------------------------------------------------------
# One Conv3d(k4,s2,p1,bias=False) + BatchNorm3d(train stats) + LeakyReLU(0.2)
# ---------------------------------------------------------------------------
def _conv_bn_lrelu(a, w, gamma, beta):
    """a: [N, D, H, W, Cin] bf16 channels-last. Returns [N, Do, Ho, Wo, Cout] bf16."""
    n, d, h, wdim, cin = a.shape
    cout = w.shape[0]
    do, ho, wo = d // _S, h // _S, wdim // _S
    hw = ho * wo
    cp = _round_up(cout, 128)

    fold_h = (16 * cin) < 128           # tiny Cin (layer 1): fold H taps into K
    ap = jnp.pad(a, ((0, 0), (_P, _P), (_P, _P), (_P, _P), (0, 0)))
    if fold_h:
        x = _build_windows_fold_h(ap, ho, wo)
        kc = 32 * cin
        groups = ((0, 0), (1, 0))                       # (depth offset, row start)
        r = hw
    else:
        x = _build_windows_std(ap, wo)
        kc = 16 * cin
        groups = ((0, 0), (0, wo), (1, 0), (1, wo))
        r = (ho + 1) * wo
    g = len(groups)
    wg = _build_weight_groups(w, fold_h, cp)             # [G, KC, cp] bf16

    tdo = _largest_divisor(do, max(1, 1024 // hw))       # rows/step ~<= 1024
    n_db = do // tdo
    rows_step = tdo * hw

    kern = functools.partial(_conv_stats_kernel, tdo=tdo, hw=hw,
                             groups=groups, inv_rows=1.0 / rows_step)

    y, stats = pl.pallas_call(
        kern,
        out_shape=(jax.ShapeDtypeStruct((n, do, hw, cp), jnp.bfloat16),
                   jax.ShapeDtypeStruct((n, n_db, 2, cp), jnp.float32)),
        grid=(n, n_db),
        in_specs=[
            pl.BlockSpec((1, tdo, r, kc), lambda i, j: (i, j, 0, 0)),
            pl.BlockSpec((1, 1, r, kc), lambda i, j: (i, j * tdo + tdo, 0, 0)),
            pl.BlockSpec((g, kc, cp), lambda i, j: (0, 0, 0)),
        ],
        out_specs=(
            pl.BlockSpec((1, tdo, hw, cp), lambda i, j: (i, j, 0, 0)),
            pl.BlockSpec((1, 1, 2, cp), lambda i, j: (i, j, 0, 0)),
        ),
        compiler_params=pltpu.CompilerParams(
            dimension_semantics=("parallel", "parallel"),
            vmem_limit_bytes=_conv_vmem_bytes(tdo, r, kc, hw, cp, g)),
        cost_estimate=pl.CostEstimate(
            flops=2 * n * do * hw * kc * cp * g,
            transcendentals=0,
            bytes_accessed=(n * (do + n_db) * r * kc * 2
                            + g * kc * cp * 2
                            + n * do * hw * cp * 2
                            + n * n_db * 2 * cp * 4)),
    )(x, x, wg)

    # --- BatchNorm batch statistics over the FULL output (training mode) ---
    m_total = n * do * hw
    st = stats.reshape(n * n_db, 2, cp)
    sums, m2s = st[:, 0, :], st[:, 1, :]
    mean = jnp.sum(sums, axis=0) / m_total
    mean_t = sums / rows_step
    m2 = jnp.sum(m2s, axis=0) + rows_step * jnp.sum((mean_t - mean) ** 2, axis=0)
    var = jnp.maximum(m2 / m_total, 0.0)
    inv = jax.lax.rsqrt(var + _BN_EPS)
    gp = jnp.pad(gamma, (0, cp - cout))   # zero gamma on padded channels -> 0 out
    bp = jnp.pad(beta, (0, cp - cout))
    scale = (gp * inv).reshape(1, cp).astype(jnp.float32)
    shift = (bp - mean * gp * inv).reshape(1, cp).astype(jnp.float32)

    # --- BN scale/shift + LeakyReLU: bf16 streaming with large row tiles ---
    y2 = y.reshape(m_total, cp)
    tr = _row_tile(m_total, 2048)
    act = pl.pallas_call(
        _bn_lrelu_kernel,
        out_shape=jax.ShapeDtypeStruct((m_total, cp), jnp.bfloat16),
        grid=(m_total // tr,),
        in_specs=[
            pl.BlockSpec((tr, cp), lambda i: (i, 0)),
            pl.BlockSpec((1, cp), lambda i: (0, 0)),
            pl.BlockSpec((1, cp), lambda i: (0, 0)),
        ],
        out_specs=pl.BlockSpec((tr, cp), lambda i: (i, 0)),
        compiler_params=pltpu.CompilerParams(
            dimension_semantics=("parallel",),
            vmem_limit_bytes=32 << 20),
        cost_estimate=pl.CostEstimate(
            flops=4 * m_total * cp,
            transcendentals=0,
            bytes_accessed=2 * m_total * cp * 2 + 2 * cp * 4),
    )(y2, scale, shift)

    act = act.reshape(n, do, ho, wo, cp)
    if cp != cout:
        act = act[..., :cout]
    return act


def _out_block(x_flat, w, b):
    """Final Linear(F, 1) + Sigmoid in one block (x: [N,F] bf16, w: [1,F])."""
    n, f = x_flat.shape
    xm = x_flat.astype(jnp.bfloat16)
    wm = w.reshape(1, f).astype(jnp.bfloat16)
    bm = b.reshape(1, 1).astype(jnp.float32)
    return pl.pallas_call(
        _linear_sigmoid_kernel,
        out_shape=jax.ShapeDtypeStruct((n, 1), jnp.float32),
        grid=(1,),
        in_specs=[
            pl.BlockSpec((n, f), lambda i: (0, 0)),
            pl.BlockSpec((1, f), lambda i: (0, 0)),
            pl.BlockSpec((1, 1), lambda i: (0, 0)),
        ],
        out_specs=pl.BlockSpec((n, 1), lambda i: (0, 0)),
        compiler_params=pltpu.CompilerParams(
            dimension_semantics=("arbitrary",),
            vmem_limit_bytes=32 << 20),
        cost_estimate=pl.CostEstimate(
            flops=2 * n * f, transcendentals=n,
            bytes_accessed=n * f * 2 + f * 2 + n * 4),
    )(xm, wm, bm)


# ---------------------------------------------------------------------------
# Model: parameters + forward
# ---------------------------------------------------------------------------
def init_params(key, in_channels=1, dim=64, out_conv_channels=512):
    c1 = out_conv_channels // 8
    c2 = out_conv_channels // 4
    c3 = out_conv_channels // 2
    c4 = out_conv_channels
    out_dim = dim // 16
    feat = c4 * out_dim * out_dim * out_dim

    keys = jax.random.split(key, 6)
    p = {
        "w1": 0.05 * jax.random.normal(keys[0], (c1, in_channels, _K, _K, _K), jnp.float32),
        "w2": 0.05 * jax.random.normal(keys[1], (c2, c1, _K, _K, _K), jnp.float32),
        "w3": 0.05 * jax.random.normal(keys[2], (c3, c2, _K, _K, _K), jnp.float32),
        "w4": 0.05 * jax.random.normal(keys[3], (c4, c3, _K, _K, _K), jnp.float32),
        "g1": jnp.ones((c1,), jnp.float32), "b1": jnp.zeros((c1,), jnp.float32),
        "g2": jnp.ones((c2,), jnp.float32), "b2": jnp.zeros((c2,), jnp.float32),
        "g3": jnp.ones((c3,), jnp.float32), "b3": jnp.zeros((c3,), jnp.float32),
        "g4": jnp.ones((c4,), jnp.float32), "b4": jnp.zeros((c4,), jnp.float32),
        "wo": 0.05 * jax.random.normal(keys[4], (1, feat), jnp.float32),
        "bo": 0.05 * jax.random.normal(keys[5], (1,), jnp.float32),
    }
    return p, (out_conv_channels, out_dim)


@functools.partial(jax.jit, static_argnums=(2, 3))
def discriminator_forward(x, params, out_conv_channels, out_dim):
    # x: [N, Cin, D, H, W] (NCDHW, matching PyTorch). One transpose to
    # channels-last; all inter-layer activations stay channels-last bf16.
    a = x.transpose(0, 2, 3, 4, 1).astype(jnp.bfloat16)
    a = _conv_bn_lrelu(a, params["w1"], params["g1"], params["b1"])
    a = _conv_bn_lrelu(a, params["w2"], params["g2"], params["b2"])
    a = _conv_bn_lrelu(a, params["w3"], params["g3"], params["b3"])
    a = _conv_bn_lrelu(a, params["w4"], params["g4"], params["b4"])

    n = a.shape[0]
    c, od = out_conv_channels, out_dim
    feat = c * od * od * od
    # Torch flattens NCDHW as (C, d, h, w); we keep activations channels-last
    # and permute the Linear weight once to (d, h, w, C) column order instead.
    x_flat = a.reshape(n, feat)
    wo = params["wo"].reshape(1, c, od, od, od).transpose(0, 2, 3, 4, 1).reshape(1, feat)
    return _out_block(x_flat, wo, params["bo"])


if __name__ == "__main__":
    # Small config consistent with the module: dim=16 -> out_dim=1,
    # out_conv_channels=32 -> conv channels (4, 8, 16, 32).
    batch, in_channels, dim, out_conv_channels = 2, 1, 16, 32

    key = jax.random.PRNGKey(0)
    k_x, k_p = jax.random.split(key)
    x = jax.random.normal(k_x, (batch, in_channels, dim, dim, dim), jnp.float32)

    params, (occ, od) = init_params(
        k_p, in_channels=in_channels, dim=dim, out_conv_channels=out_conv_channels)

    out = discriminator_forward(x, params, occ, od)
    out = jax.block_until_ready(out)

    assert out.shape == (batch, 1), out.shape
    assert bool(jnp.all(jnp.isfinite(out)))
    assert bool(jnp.all((out >= 0.0) & (out <= 1.0)))
    print("KERNEL_OK")
</pallas_src>

<mosaic_0001>
module attributes {stable_mosaic.version = 11 : i64} {
  func.func @_conv_stats_kernel(%arg0: i32, %arg1: i32, %arg2: memref<1x8x64x32xbf16, #tpu.memory_space<vmem>>, %arg3: memref<1x1x64x32xbf16, #tpu.memory_space<vmem>>, %arg4: memref<2x32x128xbf16, #tpu.memory_space<vmem>>, %arg5: memref<1x8x64x128xbf16, #tpu.memory_space<vmem>>, %arg6: memref<1x1x2x128xf32, #tpu.memory_space<vmem>>) attributes {dimension_semantics = [#tpu.dimension_semantics<parallel>, #tpu.dimension_semantics<parallel>], iteration_bounds = array<i64: 2, 1>, scalar_prefetch = 0 : i64, scratch_operands = 0 : i64, tpu.core_type = #tpu.core_type<tc>, window_params = [{transform_indices = @transform_0, window_bounds = array<i64: 1, 8, 64, 32>}, {transform_indices = @transform_1, window_bounds = array<i64: 1, 1, 64, 32>}, {pipeline_mode = #tpu.pipeline_mode<synchronous>, transform_indices = @transform_2, window_bounds = array<i64: 2, 32, 128>}, {transform_indices = @transform_3, window_bounds = array<i64: 1, 8, 64, 128>}, {transform_indices = @transform_4, window_bounds = array<i64: 1, 1, 2, 128>}]} {
    %c0 = arith.constant 0 : index
    %c0_0 = arith.constant 0 : index
    %c0_1 = arith.constant 0 : index
    %c0_2 = arith.constant 0 : index
    %0 = vector.load %arg2[%c0, %c0_0, %c0_1, %c0_2] : memref<1x8x64x32xbf16, #tpu.memory_space<vmem>>, vector<1x1x64x32xbf16>
    %1 = vector.shape_cast %0 : vector<1x1x64x32xbf16> to vector<64x32xbf16>
    %c0_3 = arith.constant 0 : index
    %c0_4 = arith.constant 0 : index
    %c0_5 = arith.constant 0 : index
    %2 = vector.load %arg4[%c0_3, %c0_4, %c0_5] : memref<2x32x128xbf16, #tpu.memory_space<vmem>>, vector<1x32x128xbf16>
    %3 = vector.shape_cast %2 : vector<1x32x128xbf16> to vector<32x128xbf16>
    %cst = arith.constant dense<0.000000e+00> : vector<64x128xf32>
    %4 = tpu.matmul %1, %3, %cst {dimension_numbers = #tpu.dot_dimension_numbers<[1], [0], [0], [1], [0, 0, 1, 1], [], []>} : vector<64x32xbf16>, vector<32x128xbf16>, vector<64x128xf32> -> vector<64x128xf32>
    %c0_6 = arith.constant 0 : index
    %c1 = arith.constant 1 : index
    %c0_7 = arith.constant 0 : index
    %c0_8 = arith.constant 0 : index
    %5 = vector.load %arg2[%c0_6, %c1, %c0_7, %c0_8] : memref<1x8x64x32xbf16, #tpu.memory_space<vmem>>, vector<1x1x64x32xbf16>
    %6 = vector.shape_cast %5 : vector<1x1x64x32xbf16> to vector<64x32xbf16>
    %c1_9 = arith.constant 1 : index
    %c0_10 = arith.constant 0 : index
    %c0_11 = arith.constant 0 : index
    %7 = vector.load %arg4[%c1_9, %c0_10, %c0_11] : memref<2x32x128xbf16, #tpu.memory_space<vmem>>, vector<1x32x128xbf16>
    %8 = vector.shape_cast %7 : vector<1x32x128xbf16> to vector<32x128xbf16>
    %cst_12 = arith.constant dense<0.000000e+00> : vector<64x128xf32>
    %9 = tpu.matmul %6, %8, %cst_12 {dimension_numbers = #tpu.dot_dimension_numbers<[1], [0], [0], [1], [0, 0, 1, 1], [], []>} : vector<64x32xbf16>, vector<32x128xbf16>, vector<64x128xf32> -> vector<64x128xf32>
    %10 = arith.addf %4, %9 : vector<64x128xf32>
    %11 = arith.truncf %10 : vector<64x128xf32> to vector<64x128xbf16>
    %c0_13 = arith.constant 0 : index
    %c0_14 = arith.constant 0 : index
    %c0_15 = arith.constant 0 : index
    %c0_16 = arith.constant 0 : index
    %12 = vector.load %arg5[%c0_13, %c0_14, %c0_15, %c0_16] : memref<1x8x64x128xbf16, #tpu.memory_space<vmem>>, vector<1x1x64x128xbf16>
    %13 = vector.shape_cast %12 : vector<1x1x64x128xbf16> to vector<64x128xbf16>
    %14 = vector.shape_cast %11 : vector<64x128xbf16> to vector<1x1x64x128xbf16>
    tpu.vector_store %arg5[%c0_13, %c0_14, %c0_15, %c0_16], %14 {strides = array<i32>} : memref<1x8x64x128xbf16, #tpu.memory_space<vmem>>, vector<1x1x64x128xbf16>,
    %cst_17 = arith.constant dense<0.000000e+00> : vector<128xf32>
    %15 = vector.multi_reduction <add>, %10, %cst_17 [0] : vector<64x128xf32> to vector<128xf32>
    %16 = vector.shape_cast %15 : vector<128xf32> to vector<1x128xf32>
    %c0_18 = arith.constant 0 : index
    %c1_19 = arith.constant 1 : index
    %c0_20 = arith.constant 0 : index
    %c0_21 = arith.constant 0 : index
    %17 = vector.load %arg2[%c0_18, %c1_19, %c0_20, %c0_21] : memref<1x8x64x32xbf16, #tpu.memory_space<vmem>>, vector<1x1x64x32xbf16>
    %18 = vector.shape_cast %17 : vector<1x1x64x32xbf16> to vector<64x32xbf16>
    %c0_22 = arith.constant 0 : index
    %c0_23 = arith.constant 0 : index
    %c0_24 = arith.constant 0 : index
    %19 = vector.load %arg4[%c0_22, %c0_23, %c0_24] : memref<2x32x128xbf16, #tpu.memory_space<vmem>>, vector<1x32x128xbf16>
    %20 = vector.shape_cast %19 : vector<1x32x128xbf16> to vector<32x128xbf16>
    %cst_25 = arith.constant dense<0.000000e+00> : vector<64x128xf32>
    %21 = tpu.matmul %18, %20, %cst_25 {dimension_numbers = #tpu.dot_dimension_numbers<[1], [0], [0], [1], [0, 0, 1, 1], [], []>} : vector<64x32xbf16>, vector<32x128xbf16>, vector<64x128xf32> -> vector<64x128xf32>
    %c0_26 = arith.constant 0 : index
    %c2 = arith.constant 2 : index
    %c0_27 = arith.constant 0 : index
    %c0_28 = arith.constant 0 : index
    %22 = vector.load %arg2[%c0_26, %c2, %c0_27, %c0_28] : memref<1x8x64x32xbf16, #tpu.memory_space<vmem>>, vector<1x1x64x32xbf16>
    %23 = vector.shape_cast %22 : vector<1x1x64x32xbf16> to vector<64x32xbf16>
    %c1_29 = arith.constant 1 : index
    %c0_30 = arith.constant 0 : index
    %c0_31 = arith.constant 0 : index
    %24 = vector.load %arg4[%c1_29, %c0_30, %c0_31] : memref<2x32x128xbf16, #tpu.memory_space<vmem>>, vector<1x32x128xbf16>
    %25 = vector.shape_cast %24 : vector<1x32x128xbf16> to vector<32x128xbf16>
    %cst_32 = arith.constant dense<0.000000e+00> : vector<64x128xf32>
    %26 = tpu.matmul %23, %25, %cst_32 {dimension_numbers = #tpu.dot_dimension_numbers<[1], [0], [0], [1], [0, 0, 1, 1], [], []>} : vector<64x32xbf16>, vector<32x128xbf16>, vector<64x128xf32> -> vector<64x128xf32>
    %27 = arith.addf %21, %26 : vector<64x128xf32>
    %28 = arith.truncf %27 : vector<64x128xf32> to vector<64x128xbf16>
    %c0_33 = arith.constant 0 : index
    %c1_34 = arith.constant 1 : index
    %c0_35 = arith.constant 0 : index
    %c0_36 = arith.constant 0 : index
    %29 = vector.load %arg5[%c0_33, %c1_34, %c0_35, %c0_36] : memref<1x8x64x128xbf16, #tpu.memory_space<vmem>>, vector<1x1x64x128xbf16>
    %30 = vector.shape_cast %29 : vector<1x1x64x128xbf16> to vector<64x128xbf16>
    %31 = vector.shape_cast %28 : vector<64x128xbf16> to vector<1x1x64x128xbf16>
    tpu.vector_store %arg5[%c0_33, %c1_34, %c0_35, %c0_36], %31 {strides = array<i32>} : memref<1x8x64x128xbf16, #tpu.memory_space<vmem>>, vector<1x1x64x128xbf16>,
    %cst_37 = arith.constant dense<0.000000e+00> : vector<128xf32>
    %32 = vector.multi_reduction <add>, %27, %cst_37 [0] : vector<64x128xf32> to vector<128xf32>
    %33 = vector.shape_cast %32 : vector<128xf32> to vector<1x128xf32>
    %34 = arith.addf %16, %33 : vector<1x128xf32>
    %c0_38 = arith.constant 0 : index
    %c2_39 = arith.constant 2 : index
    %c0_40 = arith.constant 0 : index
    %c0_41 = arith.constant 0 : index
    %35 = vector.load %arg2[%c0_38, %c2_39, %c0_40, %c0_41] : memref<1x8x64x32xbf16, #tpu.memory_space<vmem>>, vector<1x1x64x32xbf16>
    %36 = vector.shape_cast %35 : vector<1x1x64x32xbf16> to vector<64x32xbf16>
    %c0_42 = arith.constant 0 : index
    %c0_43 = arith.constant 0 : index
    %c0_44 = arith.constant 0 : index
    %37 = vector.load %arg4[%c0_42, %c0_43, %c0_44] : memref<2x32x128xbf16, #tpu.memory_space<vmem>>, vector<1x32x128xbf16>
    %38 = vector.shape_cast %37 : vector<1x32x128xbf16> to vector<32x128xbf16>
    %cst_45 = arith.constant dense<0.000000e+00> : vector<64x128xf32>
    %39 = tpu.matmul %36, %38, %cst_45 {dimension_numbers = #tpu.dot_dimension_numbers<[1], [0], [0], [1], [0, 0, 1, 1], [], []>} : vector<64x32xbf16>, vector<32x128xbf16>, vector<64x128xf32> -> vector<64x128xf32>
    %c0_46 = arith.constant 0 : index
    %c3 = arith.constant 3 : index
    %c0_47 = arith.constant 0 : index
    %c0_48 = arith.constant 0 : index
    %40 = vector.load %arg2[%c0_46, %c3, %c0_47, %c0_48] : memref<1x8x64x32xbf16, #tpu.memory_space<vmem>>, vector<1x1x64x32xbf16>
    %41 = vector.shape_cast %40 : vector<1x1x64x32xbf16> to vector<64x32xbf16>
    %c1_49 = arith.constant 1 : index
    %c0_50 = arith.constant 0 : index
    %c0_51 = arith.constant 0 : index
    %42 = vector.load %arg4[%c1_49, %c0_50, %c0_51] : memref<2x32x128xbf16, #tpu.memory_space<vmem>>, vector<1x32x128xbf16>
    %43 = vector.shape_cast %42 : vector<1x32x128xbf16> to vector<32x128xbf16>
    %cst_52 = arith.constant dense<0.000000e+00> : vector<64x128xf32>
    %44 = tpu.matmul %41, %43, %cst_52 {dimension_numbers = #tpu.dot_dimension_numbers<[1], [0], [0], [1], [0, 0, 1, 1], [], []>} : vector<64x32xbf16>, vector<32x128xbf16>, vector<64x128xf32> -> vector<64x128xf32>
    %45 = arith.addf %39, %44 : vector<64x128xf32>
    %46 = arith.truncf %45 : vector<64x128xf32> to vector<64x128xbf16>
    %c0_53 = arith.constant 0 : index
    %c2_54 = arith.constant 2 : index
    %c0_55 = arith.constant 0 : index
    %c0_56 = arith.constant 0 : index
    %47 = vector.load %arg5[%c0_53, %c2_54, %c0_55, %c0_56] : memref<1x8x64x128xbf16, #tpu.memory_space<vmem>>, vector<1x1x64x128xbf16>
    %48 = vector.shape_cast %47 : vector<1x1x64x128xbf16> to vector<64x128xbf16>
    %49 = vector.shape_cast %46 : vector<64x128xbf16> to vector<1x1x64x128xbf16>
    tpu.vector_store %arg5[%c0_53, %c2_54, %c0_55, %c0_56], %49 {strides = array<i32>} : memref<1x8x64x128xbf16, #tpu.memory_space<vmem>>, vector<1x1x64x128xbf16>,
    %cst_57 = arith.constant dense<0.000000e+00> : vector<128xf32>
    %50 = vector.multi_reduction <add>, %45, %cst_57 [0] : vector<64x128xf32> to vector<128xf32>
    %51 = vector.shape_cast %50 : vector<128xf32> to vector<1x128xf32>
    %52 = arith.addf %34, %51 : vector<1x128xf32>
    %c0_58 = arith.constant 0 : index
    %c3_59 = arith.constant 3 : index
    %c0_60 = arith.constant 0 : index
    %c0_61 = arith.constant 0 : index
    %53 = vector.load %arg2[%c0_58, %c3_59, %c0_60, %c0_61] : memref<1x8x64x32xbf16, #tpu.memory_space<vmem>>, vector<1x1x64x32xbf16>
    %54 = vector.shape_cast %53 : vector<1x1x64x32xbf16> to vector<64x32xbf16>
    %c0_62 = arith.constant 0 : index
    %c0_63 = arith.constant 0 : index
    %c0_64 = arith.constant 0 : index
    %55 = vector.load %arg4[%c0_62, %c0_63, %c0_64] : memref<2x32x128xbf16, #tpu.memory_space<vmem>>, vector<1x32x128xbf16>
    %56 = vector.shape_cast %55 : vector<1x32x128xbf16> to vector<32x128xbf16>
    %cst_65 = arith.constant dense<0.000000e+00> : vector<64x128xf32>
    %57 = tpu.matmul %54, %56, %cst_65 {dimension_numbers = #tpu.dot_dimension_numbers<[1], [0], [0], [1], [0, 0, 1, 1], [], []>} : vector<64x32xbf16>, vector<32x128xbf16>, vector<64x128xf32> -> vector<64x128xf32>
    %c0_66 = arith.constant 0 : index
    %c4 = arith.constant 4 : index
    %c0_67 = arith.constant 0 : index
    %c0_68 = arith.constant 0 : index
    %58 = vector.load %arg2[%c0_66, %c4, %c0_67, %c0_68] : memref<1x8x64x32xbf16, #tpu.memory_space<vmem>>, vector<1x1x64x32xbf16>
    %59 = vector.shape_cast %58 : vector<1x1x64x32xbf16> to vector<64x32xbf16>
    %c1_69 = arith.constant 1 : index
    %c0_70 = arith.constant 0 : index
    %c0_71 = arith.constant 0 : index
    %60 = vector.load %arg4[%c1_69, %c0_70, %c0_71] : memref<2x32x128xbf16, #tpu.memory_space<vmem>>, vector<1x32x128xbf16>
    %61 = vector.shape_cast %60 : vector<1x32x128xbf16> to vector<32x128xbf16>
    %cst_72 = arith.constant dense<0.000000e+00> : vector<64x128xf32>
    %62 = tpu.matmul %59, %61, %cst_72 {dimension_numbers = #tpu.dot_dimension_numbers<[1], [0], [0], [1], [0, 0, 1, 1], [], []>} : vector<64x32xbf16>, vector<32x128xbf16>, vector<64x128xf32> -> vector<64x128xf32>
    %63 = arith.addf %57, %62 : vector<64x128xf32>
    %64 = arith.truncf %63 : vector<64x128xf32> to vector<64x128xbf16>
    %c0_73 = arith.constant 0 : index
    %c3_74 = arith.constant 3 : index
    %c0_75 = arith.constant 0 : index
    %c0_76 = arith.constant 0 : index
    %65 = vector.load %arg5[%c0_73, %c3_74, %c0_75, %c0_76] : memref<1x8x64x128xbf16, #tpu.memory_space<vmem>>, vector<1x1x64x128xbf16>
    %66 = vector.shape_cast %65 : vector<1x1x64x128xbf16> to vector<64x128xbf16>
    %67 = vector.shape_cast %64 : vector<64x128xbf16> to vector<1x1x64x128xbf16>
    tpu.vector_store %arg5[%c0_73, %c3_74, %c0_75, %c0_76], %67 {strides = array<i32>} : memref<1x8x64x128xbf16, #tpu.memory_space<vmem>>, vector<1x1x64x128xbf16>,
    %cst_77 = arith.constant dense<0.000000e+00> : vector<128xf32>
    %68 = vector.multi_reduction <add>, %63, %cst_77 [0] : vector<64x128xf32> to vector<128xf32>
    %69 = vector.shape_cast %68 : vector<128xf32> to vector<1x128xf32>
    %70 = arith.addf %52, %69 : vector<1x128xf32>
    %c0_78 = arith.constant 0 : index
    %c4_79 = arith.constant 4 : index
    %c0_80 = arith.constant 0 : index
    %c0_81 = arith.constant 0 : index
    %71 = vector.load %arg2[%c0_78, %c4_79, %c0_80, %c0_81] : memref<1x8x64x32xbf16, #tpu.memory_space<vmem>>, vector<1x1x64x32xbf16>
    %72 = vector.shape_cast %71 : vector<1x1x64x32xbf16> to vector<64x32xbf16>
    %c0_82 = arith.constant 0 : index
    %c0_83 = arith.constant 0 : index
    %c0_84 = arith.constant 0 : index
    %73 = vector.load %arg4[%c0_82, %c0_83, %c0_84] : memref<2x32x128xbf16, #tpu.memory_space<vmem>>, vector<1x32x128xbf16>
    %74 = vector.shape_cast %73 : vector<1x32x128xbf16> to vector<32x128xbf16>
    %cst_85 = arith.constant dense<0.000000e+00> : vector<64x128xf32>
    %75 = tpu.matmul %72, %74, %cst_85 {dimension_numbers = #tpu.dot_dimension_numbers<[1], [0], [0], [1], [0, 0, 1, 1], [], []>} : vector<64x32xbf16>, vector<32x128xbf16>, vector<64x128xf32> -> vector<64x128xf32>
    %c0_86 = arith.constant 0 : index
    %c5 = arith.constant 5 : index
    %c0_87 = arith.constant 0 : index
    %c0_88 = arith.constant 0 : index
    %76 = vector.load %arg2[%c0_86, %c5, %c0_87, %c0_88] : memref<1x8x64x32xbf16, #tpu.memory_space<vmem>>, vector<1x1x64x32xbf16>
    %77 = vector.shape_cast %76 : vector<1x1x64x32xbf16> to vector<64x32xbf16>
    %c1_89 = arith.constant 1 : index
    %c0_90 = arith.constant 0 : index
    %c0_91 = arith.constant 0 : index
    %78 = vector.load %arg4[%c1_89, %c0_90, %c0_91] : memref<2x32x128xbf16, #tpu.memory_space<vmem>>, vector<1x32x128xbf16>
    %79 = vector.shape_cast %78 : vector<1x32x128xbf16> to vector<32x128xbf16>
    %cst_92 = arith.constant dense<0.000000e+00> : vector<64x128xf32>
    %80 = tpu.matmul %77, %79, %cst_92 {dimension_numbers = #tpu.dot_dimension_numbers<[1], [0], [0], [1], [0, 0, 1, 1], [], []>} : vector<64x32xbf16>, vector<32x128xbf16>, vector<64x128xf32> -> vector<64x128xf32>
    %81 = arith.addf %75, %80 : vector<64x128xf32>
    %82 = arith.truncf %81 : vector<64x128xf32> to vector<64x128xbf16>
    %c0_93 = arith.constant 0 : index
    %c4_94 = arith.constant 4 : index
    %c0_95 = arith.constant 0 : index
    %c0_96 = arith.constant 0 : index
    %83 = vector.load %arg5[%c0_93, %c4_94, %c0_95, %c0_96] : memref<1x8x64x128xbf16, #tpu.memory_space<vmem>>, vector<1x1x64x128xbf16>
    %84 = vector.shape_cast %83 : vector<1x1x64x128xbf16> to vector<64x128xbf16>
    %85 = vector.shape_cast %82 : vector<64x128xbf16> to vector<1x1x64x128xbf16>
    tpu.vector_store %arg5[%c0_93, %c4_94, %c0_95, %c0_96], %85 {strides = array<i32>} : memref<1x8x64x128xbf16, #tpu.memory_space<vmem>>, vector<1x1x64x128xbf16>,
    %cst_97 = arith.constant dense<0.000000e+00> : vector<128xf32>
    %86 = vector.multi_reduction <add>, %81, %cst_97 [0] : vector<64x128xf32> to vector<128xf32>
    %87 = vector.shape_cast %86 : vector<128xf32> to vector<1x128xf32>
    %88 = arith.addf %70, %87 : vector<1x128xf32>
    %c0_98 = arith.constant 0 : index
    %c5_99 = arith.constant 5 : index
    %c0_100 = arith.constant 0 : index
    %c0_101 = arith.constant 0 : index
    %89 = vector.load %arg2[%c0_98, %c5_99, %c0_100, %c0_101] : memref<1x8x64x32xbf16, #tpu.memory_space<vmem>>, vector<1x1x64x32xbf16>
    %90 = vector.shape_cast %89 : vector<1x1x64x32xbf16> to vector<64x32xbf16>
    %c0_102 = arith.constant 0 : index
    %c0_103 = arith.constant 0 : index
    %c0_104 = arith.constant 0 : index
    %91 = vector.load %arg4[%c0_102, %c0_103, %c0_104] : memref<2x32x128xbf16, #tpu.memory_space<vmem>>, vector<1x32x128xbf16>
    %92 = vector.shape_cast %91 : vector<1x32x128xbf16> to vector<32x128xbf16>
    %cst_105 = arith.constant dense<0.000000e+00> : vector<64x128xf32>
    %93 = tpu.matmul %90, %92, %cst_105 {dimension_numbers = #tpu.dot_dimension_numbers<[1], [0], [0], [1], [0, 0, 1, 1], [], []>} : vector<64x32xbf16>, vector<32x128xbf16>, vector<64x128xf32> -> vector<64x128xf32>
    %c0_106 = arith.constant 0 : index
    %c6 = arith.constant 6 : index
    %c0_107 = arith.constant 0 : index
    %c0_108 = arith.constant 0 : index
    %94 = vector.load %arg2[%c0_106, %c6, %c0_107, %c0_108] : memref<1x8x64x32xbf16, #tpu.memory_space<vmem>>, vector<1x1x64x32xbf16>
    %95 = vector.shape_cast %94 : vector<1x1x64x32xbf16> to vector<64x32xbf16>
    %c1_109 = arith.constant 1 : index
    %c0_110 = arith.constant 0 : index
    %c0_111 = arith.constant 0 : index
    %96 = vector.load %arg4[%c1_109, %c0_110, %c0_111] : memref<2x32x128xbf16, #tpu.memory_space<vmem>>, vector<1x32x128xbf16>
    %97 = vector.shape_cast %96 : vector<1x32x128xbf16> to vector<32x128xbf16>
    %cst_112 = arith.constant dense<0.000000e+00> : vector<64x128xf32>
    %98 = tpu.matmul %95, %97, %cst_112 {dimension_numbers = #tpu.dot_dimension_numbers<[1], [0], [0], [1], [0, 0, 1, 1], [], []>} : vector<64x32xbf16>, vector<32x128xbf16>, vector<64x128xf32> -> vector<64x128xf32>
    %99 = arith.addf %93, %98 : vector<64x128xf32>
    %100 = arith.truncf %99 : vector<64x128xf32> to vector<64x128xbf16>
    %c0_113 = arith.constant 0 : index
    %c5_114 = arith.constant 5 : index
    %c0_115 = arith.constant 0 : index
    %c0_116 = arith.constant 0 : index
    %101 = vector.load %arg5[%c0_113, %c5_114, %c0_115, %c0_116] : memref<1x8x64x128xbf16, #tpu.memory_space<vmem>>, vector<1x1x64x128xbf16>
    %102 = vector.shape_cast %101 : vector<1x1x64x128xbf16> to vector<64x128xbf16>
    %103 = vector.shape_cast %100 : vector<64x128xbf16> to vector<1x1x64x128xbf16>
    tpu.vector_store %arg5[%c0_113, %c5_114, %c0_115, %c0_116], %103 {strides = array<i32>} : memref<1x8x64x128xbf16, #tpu.memory_space<vmem>>, vector<1x1x64x128xbf16>,
    %cst_117 = arith.constant dense<0.000000e+00> : vector<128xf32>
    %104 = vector.multi_reduction <add>, %99, %cst_117 [0] : vector<64x128xf32> to vector<128xf32>
    %105 = vector.shape_cast %104 : vector<128xf32> to vector<1x128xf32>
    %106 = arith.addf %88, %105 : vector<1x128xf32>
    %c0_118 = arith.constant 0 : index
    %c6_119 = arith.constant 6 : index
    %c0_120 = arith.constant 0 : index
    %c0_121 = arith.constant 0 : index
    %107 = vector.load %arg2[%c0_118, %c6_119, %c0_120, %c0_121] : memref<1x8x64x32xbf16, #tpu.memory_space<vmem>>, vector<1x1x64x32xbf16>
    %108 = vector.shape_cast %107 : vector<1x1x64x32xbf16> to vector<64x32xbf16>
    %c0_122 = arith.constant 0 : index
    %c0_123 = arith.constant 0 : index
    %c0_124 = arith.constant 0 : index
    %109 = vector.load %arg4[%c0_122, %c0_123, %c0_124] : memref<2x32x128xbf16, #tpu.memory_space<vmem>>, vector<1x32x128xbf16>
    %110 = vector.shape_cast %109 : vector<1x32x128xbf16> to vector<32x128xbf16>
    %cst_125 = arith.constant dense<0.000000e+00> : vector<64x128xf32>
    %111 = tpu.matmul %108, %110, %cst_125 {dimension_numbers = #tpu.dot_dimension_numbers<[1], [0], [0], [1], [0, 0, 1, 1], [], []>} : vector<64x32xbf16>, vector<32x128xbf16>, vector<64x128xf32> -> vector<64x128xf32>
    %c0_126 = arith.constant 0 : index
    %c7 = arith.constant 7 : index
    %c0_127 = arith.constant 0 : index
    %c0_128 = arith.constant 0 : index
    %112 = vector.load %arg2[%c0_126, %c7, %c0_127, %c0_128] : memref<1x8x64x32xbf16, #tpu.memory_space<vmem>>, vector<1x1x64x32xbf16>
    %113 = vector.shape_cast %112 : vector<1x1x64x32xbf16> to vector<64x32xbf16>
    %c1_129 = arith.constant 1 : index
    %c0_130 = arith.constant 0 : index
    %c0_131 = arith.constant 0 : index
    %114 = vector.load %arg4[%c1_129, %c0_130, %c0_131] : memref<2x32x128xbf16, #tpu.memory_space<vmem>>, vector<1x32x128xbf16>
    %115 = vector.shape_cast %114 : vector<1x32x128xbf16> to vector<32x128xbf16>
    %cst_132 = arith.constant dense<0.000000e+00> : vector<64x128xf32>
    %116 = tpu.matmul %113, %115, %cst_132 {dimension_numbers = #tpu.dot_dimension_numbers<[1], [0], [0], [1], [0, 0, 1, 1], [], []>} : vector<64x32xbf16>, vector<32x128xbf16>, vector<64x128xf32> -> vector<64x128xf32>
    %117 = arith.addf %111, %116 : vector<64x128xf32>
    %118 = arith.truncf %117 : vector<64x128xf32> to vector<64x128xbf16>
    %c0_133 = arith.constant 0 : index
    %c6_134 = arith.constant 6 : index
    %c0_135 = arith.constant 0 : index
    %c0_136 = arith.constant 0 : index
    %119 = vector.load %arg5[%c0_133, %c6_134, %c0_135, %c0_136] : memref<1x8x64x128xbf16, #tpu.memory_space<vmem>>, vector<1x1x64x128xbf16>
    %120 = vector.shape_cast %119 : vector<1x1x64x128xbf16> to vector<64x128xbf16>
    %121 = vector.shape_cast %118 : vector<64x128xbf16> to vector<1x1x64x128xbf16>
    tpu.vector_store %arg5[%c0_133, %c6_134, %c0_135, %c0_136], %121 {strides = array<i32>} : memref<1x8x64x128xbf16, #tpu.memory_space<vmem>>, vector<1x1x64x128xbf16>,
    %cst_137 = arith.constant dense<0.000000e+00> : vector<128xf32>
    %122 = vector.multi_reduction <add>, %117, %cst_137 [0] : vector<64x128xf32> to vector<128xf32>
    %123 = vector.shape_cast %122 : vector<128xf32> to vector<1x128xf32>
    %124 = arith.addf %106, %123 : vector<1x128xf32>
    %c0_138 = arith.constant 0 : index
    %c7_139 = arith.constant 7 : index
    %c0_140 = arith.constant 0 : index
    %c0_141 = arith.constant 0 : index
    %125 = vector.load %arg2[%c0_138, %c7_139, %c0_140, %c0_141] : memref<1x8x64x32xbf16, #tpu.memory_space<vmem>>, vector<1x1x64x32xbf16>
    %126 = vector.shape_cast %125 : vector<1x1x64x32xbf16> to vector<64x32xbf16>
    %c0_142 = arith.constant 0 : index
    %c0_143 = arith.constant 0 : index
    %c0_144 = arith.constant 0 : index
    %127 = vector.load %arg4[%c0_142, %c0_143, %c0_144] : memref<2x32x128xbf16, #tpu.memory_space<vmem>>, vector<1x32x128xbf16>
    %128 = vector.shape_cast %127 : vector<1x32x128xbf16> to vector<32x128xbf16>
    %cst_145 = arith.constant dense<0.000000e+00> : vector<64x128xf32>
    %129 = tpu.matmul %126, %128, %cst_145 {dimension_numbers = #tpu.dot_dimension_numbers<[1], [0], [0], [1], [0, 0, 1, 1], [], []>} : vector<64x32xbf16>, vector<32x128xbf16>, vector<64x128xf32> -> vector<64x128xf32>
    %c0_146 = arith.constant 0 : index
    %c0_147 = arith.constant 0 : index
    %c0_148 = arith.constant 0 : index
    %c0_149 = arith.constant 0 : index
    %130 = vector.load %arg3[%c0_146, %c0_147, %c0_148, %c0_149] : memref<1x1x64x32xbf16, #tpu.memory_space<vmem>>, vector<1x1x64x32xbf16>
    %131 = vector.shape_cast %130 : vector<1x1x64x32xbf16> to vector<64x32xbf16>
    %c1_150 = arith.constant 1 : index
    %c0_151 = arith.constant 0 : index
    %c0_152 = arith.constant 0 : index
    %132 = vector.load %arg4[%c1_150, %c0_151, %c0_152] : memref<2x32x128xbf16, #tpu.memory_space<vmem>>, vector<1x32x128xbf16>
    %133 = vector.shape_cast %132 : vector<1x32x128xbf16> to vector<32x128xbf16>
    %cst_153 = arith.constant dense<0.000000e+00> : vector<64x128xf32>
    %134 = tpu.matmul %131, %133, %cst_153 {dimension_numbers = #tpu.dot_dimension_numbers<[1], [0], [0], [1], [0, 0, 1, 1], [], []>} : vector<64x32xbf16>, vector<32x128xbf16>, vector<64x128xf32> -> vector<64x128xf32>
    %135 = arith.addf %129, %134 : vector<64x128xf32>
    %136 = arith.truncf %135 : vector<64x128xf32> to vector<64x128xbf16>
    %c0_154 = arith.constant 0 : index
    %c7_155 = arith.constant 7 : index
    %c0_156 = arith.constant 0 : index
    %c0_157 = arith.constant 0 : index
    %137 = vector.load %arg5[%c0_154, %c7_155, %c0_156, %c0_157] : memref<1x8x64x128xbf16, #tpu.memory_space<vmem>>, vector<1x1x64x128xbf16>
    %138 = vector.shape_cast %137 : vector<1x1x64x128xbf16> to vector<64x128xbf16>
    %139 = vector.shape_cast %136 : vector<64x128xbf16> to vector<1x1x64x128xbf16>
    tpu.vector_store %arg5[%c0_154, %c7_155, %c0_156, %c0_157], %139 {strides = array<i32>} : memref<1x8x64x128xbf16, #tpu.memory_space<vmem>>, vector<1x1x64x128xbf16>,
    %cst_158 = arith.constant dense<0.000000e+00> : vector<128xf32>
    %140 = vector.multi_reduction <add>, %135, %cst_158 [0] : vector<64x128xf32> to vector<128xf32>
    %141 = vector.shape_cast %140 : vector<128xf32> to vector<1x128xf32>
    %142 = arith.addf %124, %141 : vector<1x128xf32>
    %cst_159 = arith.constant 0.001953125 : f32
    %143 = vector.broadcast %cst_159 : f32 to vector<1x128xf32>
    %144 = arith.mulf %142, %143 : vector<1x128xf32>
    %145 = vector.broadcast %144 : vector<1x128xf32> to vector<64x128xf32>
    %146 = arith.subf %10, %145 : vector<64x128xf32>
    %147 = arith.mulf %146, %146 : vector<64x128xf32>
    %cst_160 = arith.constant dense<0.000000e+00> : vector<128xf32>
    %148 = vector.multi_reduction <add>, %147, %cst_160 [0] : vector<64x128xf32> to vector<128xf32>
    %149 = vector.shape_cast %148 : vector<128xf32> to vector<1x128xf32>
    %150 = vector.broadcast %144 : vector<1x128xf32> to vector<64x128xf32>
    %151 = arith.subf %27, %150 : vector<64x128xf32>
    %152 = arith.mulf %151, %151 : vector<64x128xf32>
    %cst_161 = arith.constant dense<0.000000e+00> : vector<128xf32>
    %153 = vector.multi_reduction <add>, %152, %cst_161 [0] : vector<64x128xf32> to vector<128xf32>
    %154 = vector.shape_cast %153 : vector<128xf32> to vector<1x128xf32>
    %155 = arith.addf %149, %154 : vector<1x128xf32>
    %156 = vector.broadcast %144 : vector<1x128xf32> to vector<64x128xf32>
    %157 = arith.subf %45, %156 : vector<64x128xf32>
    %158 = arith.mulf %157, %157 : vector<64x128xf32>
    %cst_162 = arith.constant dense<0.000000e+00> : vector<128xf32>
    %159 = vector.multi_reduction <add>, %158, %cst_162 [0] : vector<64x128xf32> to vector<128xf32>
    %160 = vector.shape_cast %159 : vector<128xf32> to vector<1x128xf32>
    %161 = arith.addf %155, %160 : vector<1x128xf32>
    %162 = vector.broadcast %144 : vector<1x128xf32> to vector<64x128xf32>
    %163 = arith.subf %63, %162 : vector<64x128xf32>
    %164 = arith.mulf %163, %163 : vector<64x128xf32>
    %cst_163 = arith.constant dense<0.000000e+00> : vector<128xf32>
    %165 = vector.multi_reduction <add>, %164, %cst_163 [0] : vector<64x128xf32> to vector<128xf32>
    %166 = vector.shape_cast %165 : vector<128xf32> to vector<1x128xf32>
    %167 = arith.addf %161, %166 : vector<1x128xf32>
    %168 = vector.broadcast %144 : vector<1x128xf32> to vector<64x128xf32>
    %169 = arith.subf %81, %168 : vector<64x128xf32>
    %170 = arith.mulf %169, %169 : vector<64x128xf32>
    %cst_164 = arith.constant dense<0.000000e+00> : vector<128xf32>
    %171 = vector.multi_reduction <add>, %170, %cst_164 [0] : vector<64x128xf32> to vector<128xf32>
    %172 = vector.shape_cast %171 : vector<128xf32> to vector<1x128xf32>
    %173 = arith.addf %167, %172 : vector<1x128xf32>
    %174 = vector.broadcast %144 : vector<1x128xf32> to vector<64x128xf32>
    %175 = arith.subf %99, %174 : vector<64x128xf32>
    %176 = arith.mulf %175, %175 : vector<64x128xf32>
    %cst_165 = arith.constant dense<0.000000e+00> : vector<128xf32>
    %177 = vector.multi_reduction <add>, %176, %cst_165 [0] : vector<64x128xf32> to vector<128xf32>
    %178 = vector.shape_cast %177 : vector<128xf32> to vector<1x128xf32>
    %179 = arith.addf %173, %178 : vector<1x128xf32>
    %180 = vector.broadcast %144 : vector<1x128xf32> to vector<64x128xf32>
    %181 = arith.subf %117, %180 : vector<64x128xf32>
    %182 = arith.mulf %181, %181 : vector<64x128xf32>
    %cst_166 = arith.constant dense<0.000000e+00> : vector<128xf32>
    %183 = vector.multi_reduction <add>, %182, %cst_166 [0] : vector<64x128xf32> to vector<128xf32>
    %184 = vector.shape_cast %183 : vector<128xf32> to vector<1x128xf32>
    %185 = arith.addf %179, %184 : vector<1x128xf32>
    %186 = vector.broadcast %144 : vector<1x128xf32> to vector<64x128xf32>
    %187 = arith.subf %135, %186 : vector<64x128xf32>
    %188 = arith.mulf %187, %187 : vector<64x128xf32>
    %cst_167 = arith.constant dense<0.000000e+00> : vector<128xf32>
    %189 = vector.multi_reduction <add>, %188, %cst_167 [0] : vector<64x128xf32> to vector<128xf32>
    %190 = vector.shape_cast %189 : vector<128xf32> to vector<1x128xf32>
    %191 = arith.addf %185, %190 : vector<1x128xf32>
    %c0_168 = arith.constant 0 : index
    %c0_169 = arith.constant 0 : index
    %c0_170 = arith.constant 0 : index
    %c0_171 = arith.constant 0 : index
    %192 = vector.load %arg6[%c0_168, %c0_169, %c0_170, %c0_171] : memref<1x1x2x128xf32, #tpu.memory_space<vmem>>, vector<1x1x1x128xf32>
    %193 = vector.shape_cast %192 : vector<1x1x1x128xf32> to vector<1x128xf32>
    %194 = vector.shape_cast %142 : vector<1x128xf32> to vector<1x1x1x128xf32>
    tpu.vector_store %arg6[%c0_168, %c0_169, %c0_170, %c0_171], %194 {strides = array<i32>} : memref<1x1x2x128xf32, #tpu.memory_space<vmem>>, vector<1x1x1x128xf32>,
    %c0_172 = arith.constant 0 : index
    %c0_173 = arith.constant 0 : index
    %c1_174 = arith.constant 1 : index
    %c0_175 = arith.constant 0 : index
    %195 = vector.load %arg6[%c0_172, %c0_173, %c1_174, %c0_175] : memref<1x1x2x128xf32, #tpu.memory_space<vmem>>, vector<1x1x1x128xf32>
    %196 = vector.shape_cast %195 : vector<1x1x1x128xf32> to vector<1x128xf32>
    %197 = vector.shape_cast %191 : vector<1x128xf32> to vector<1x1x1x128xf32>
    tpu.vector_store %arg6[%c0_172, %c0_173, %c1_174, %c0_175], %197 {strides = array<i32>} : memref<1x1x2x128xf32, #tpu.memory_space<vmem>>, vector<1x1x1x128xf32>,
    return
  }
  func.func @transform_0(%arg0: i32, %arg1: i32) -> (i32, i32, i32, i32) {
    %c0_i32 = arith.constant 0 : i32
    %c0_i32_0 = arith.constant 0 : i32
    %c0_i32_1 = arith.constant 0 : i32
    return %arg0, %arg1, %c0_i32, %c0_i32_0 : i32, i32, i32, i32
  }
  func.func @transform_1(%arg0: i32, %arg1: i32) -> (i32, i32, i32, i32) {
    %c8_i32 = arith.constant 8 : i32
    %0 = arith.muli %arg1, %c8_i32 : i32
    %c8_i32_0 = arith.constant 8 : i32
    %1 = arith.addi %0, %c8_i32_0 : i32
    %c0_i32 = arith.constant 0 : i32
    %c0_i32_1 = arith.constant 0 : i32
    %c0_i32_2 = arith.constant 0 : i32
    return %arg0, %1, %c0_i32, %c0_i32_1 : i32, i32, i32, i32
  }
  func.func @transform_2(%arg0: i32, %arg1: i32) -> (i32, i32, i32) {
    %c0_i32 = arith.constant 0 : i32
    %c0_i32_0 = arith.constant 0 : i32
    %c0_i32_1 = arith.constant 0 : i32
    %c0_i32_2 = arith.constant 0 : i32
    return %c0_i32, %c0_i32_0, %c0_i32_1 : i32, i32, i32
  }
  func.func @transform_3(%arg0: i32, %arg1: i32) -> (i32, i32, i32, i32) {
    %c0_i32 = arith.constant 0 : i32
    %c0_i32_0 = arith.constant 0 : i32
    %c0_i32_1 = arith.constant 0 : i32
    return %arg0, %arg1, %c0_i32, %c0_i32_0 : i32, i32, i32, i32
  }
  func.func @transform_4(%arg0: i32, %arg1: i32) -> (i32, i32, i32, i32) {
    %c0_i32 = arith.constant 0 : i32
    %c0_i32_0 = arith.constant 0 : i32
    %c0_i32_1 = arith.constant 0 : i32
    return %arg0, %arg1, %c0_i32, %c0_i32_0 : i32, i32, i32, i32
  }
}

module attributes {stable_mosaic.version = 11 : i64} {
  func.func @_bn_lrelu_kernel(%arg0: i32, %arg1: memref<1024x128xbf16, #tpu.memory_space<vmem>>, %arg2: memref<1x128xf32, #tpu.memory_space<vmem>>, %arg3: memref<1x128xf32, #tpu.memory_space<vmem>>, %arg4: memref<1024x128xbf16, #tpu.memory_space<vmem>>) attributes {dimension_semantics = [#tpu.dimension_semantics<parallel>], iteration_bounds = array<i64: 1>, scalar_prefetch = 0 : i64, scratch_operands = 0 : i64, tpu.core_type = #tpu.core_type<tc>, window_params = [{transform_indices = @transform_0, window_bounds = array<i64: 1024, 128>}, {pipeline_mode = #tpu.pipeline_mode<synchronous>, transform_indices = @transform_1, window_bounds = array<i64: 1, 128>}, {pipeline_mode = #tpu.pipeline_mode<synchronous>, transform_indices = @transform_2, window_bounds = array<i64: 1, 128>}, {transform_indices = @transform_3, window_bounds = array<i64: 1024, 128>}]} {
    %c0 = arith.constant 0 : index
    %c0_0 = arith.constant 0 : index
    %0 = vector.load %arg1[%c0, %c0_0] : memref<1024x128xbf16, #tpu.memory_space<vmem>>, vector<1024x128xbf16>
    %1 = arith.extf %0 : vector<1024x128xbf16> to vector<1024x128xf32>
    %c0_1 = arith.constant 0 : index
    %c0_2 = arith.constant 0 : index
    %2 = vector.load %arg2[%c0_1, %c0_2] : memref<1x128xf32, #tpu.memory_space<vmem>>, vector<1x128xf32>
    %3 = vector.broadcast %2 : vector<1x128xf32> to vector<1024x128xf32>
    %4 = arith.mulf %1, %3 : vector<1024x128xf32>
    %c0_3 = arith.constant 0 : index
    %c0_4 = arith.constant 0 : index
    %5 = vector.load %arg3[%c0_3, %c0_4] : memref<1x128xf32, #tpu.memory_space<vmem>>, vector<1x128xf32>
    %6 = vector.broadcast %5 : vector<1x128xf32> to vector<1024x128xf32>
    %7 = arith.addf %4, %6 : vector<1024x128xf32>
    %cst = arith.constant 0.000000e+00 : f32
    %8 = vector.broadcast %cst : f32 to vector<1024x128xf32>
    %9 = arith.cmpf oge, %7, %8 : vector<1024x128xf32>
    %cst_5 = arith.constant 2.000000e-01 : f32
    %10 = vector.broadcast %cst_5 : f32 to vector<1024x128xf32>
    %11 = arith.mulf %10, %7 : vector<1024x128xf32>
    %12 = arith.select %9, %7, %11 : vector<1024x128xi1>, vector<1024x128xf32>
    %13 = arith.truncf %12 : vector<1024x128xf32> to vector<1024x128xbf16>
    %c0_6 = arith.constant 0 : index
    %c0_7 = arith.constant 0 : index
    %14 = vector.load %arg4[%c0_6, %c0_7] : memref<1024x128xbf16, #tpu.memory_space<vmem>>, vector<1024x128xbf16>
    tpu.vector_store %arg4[%c0_6, %c0_7], %13 {strides = array<i32>} : memref<1024x128xbf16, #tpu.memory_space<vmem>>, vector<1024x128xbf16>,
    return
  }
  func.func @transform_0(%arg0: i32) -> (i32, i32) {
    %c0_i32 = arith.constant 0 : i32
    %c0_i32_0 = arith.constant 0 : i32
    return %arg0, %c0_i32 : i32, i32
  }
  func.func @transform_1(%arg0: i32) -> (i32, i32) {
    %c0_i32 = arith.constant 0 : i32
    %c0_i32_0 = arith.constant 0 : i32
    %c0_i32_1 = arith.constant 0 : i32
    return %c0_i32, %c0_i32_0 : i32, i32
  }
  func.func @transform_2(%arg0: i32) -> (i32, i32) {
    %c0_i32 = arith.constant 0 : i32
    %c0_i32_0 = arith.constant 0 : i32
    %c0_i32_1 = arith.constant 0 : i32
    return %c0_i32, %c0_i32_0 : i32, i32
  }
  func.func @transform_3(%arg0: i32) -> (i32, i32) {
    %c0_i32 = arith.constant 0 : i32
    %c0_i32_0 = arith.constant 0 : i32
    return %arg0, %c0_i32 : i32, i32
  }
}

module attributes {stable_mosaic.version = 11 : i64} {
  func.func @_conv_stats_kernel(%arg0: i32, %arg1: i32, %arg2: memref<1x4x16x128xbf16, #tpu.memory_space<vmem>>, %arg3: memref<1x1x16x128xbf16, #tpu.memory_space<vmem>>, %arg4: memref<2x128x128xbf16, #tpu.memory_space<vmem>>, %arg5: memref<1x4x16x128xbf16, #tpu.memory_space<vmem>>, %arg6: memref<1x1x2x128xf32, #tpu.memory_space<vmem>>) attributes {dimension_semantics = [#tpu.dimension_semantics<parallel>, #tpu.dimension_semantics<parallel>], iteration_bounds = array<i64: 2, 1>, scalar_prefetch = 0 : i64, scratch_operands = 0 : i64, tpu.core_type = #tpu.core_type<tc>, window_params = [{transform_indices = @transform_0, window_bounds = array<i64: 1, 4, 16, 128>}, {transform_indices = @transform_1, window_bounds = array<i64: 1, 1, 16, 128>}, {pipeline_mode = #tpu.pipeline_mode<synchronous>, transform_indices = @transform_2, window_bounds = array<i64: 2, 128, 128>}, {transform_indices = @transform_3, window_bounds = array<i64: 1, 4, 16, 128>}, {transform_indices = @transform_4, window_bounds = array<i64: 1, 1, 2, 128>}]} {
    %c0 = arith.constant 0 : index
    %c0_0 = arith.constant 0 : index
    %c0_1 = arith.constant 0 : index
    %c0_2 = arith.constant 0 : index
    %0 = vector.load %arg2[%c0, %c0_0, %c0_1, %c0_2] : memref<1x4x16x128xbf16, #tpu.memory_space<vmem>>, vector<1x1x16x128xbf16>
    %1 = vector.shape_cast %0 : vector<1x1x16x128xbf16> to vector<16x128xbf16>
    %c0_3 = arith.constant 0 : index
    %c0_4 = arith.constant 0 : index
    %c0_5 = arith.constant 0 : index
    %2 = vector.load %arg4[%c0_3, %c0_4, %c0_5] : memref<2x128x128xbf16, #tpu.memory_space<vmem>>, vector<1x128x128xbf16>
    %3 = vector.shape_cast %2 : vector<1x128x128xbf16> to vector<128x128xbf16>
    %cst = arith.constant dense<0.000000e+00> : vector<16x128xf32>
    %4 = tpu.matmul %1, %3, %cst {dimension_numbers = #tpu.dot_dimension_numbers<[1], [0], [0], [1], [0, 0, 1, 1], [], []>} : vector<16x128xbf16>, vector<128x128xbf16>, vector<16x128xf32> -> vector<16x128xf32>
    %c0_6 = arith.constant 0 : index
    %c1 = arith.constant 1 : index
    %c0_7 = arith.constant 0 : index
    %c0_8 = arith.constant 0 : index
    %5 = vector.load %arg2[%c0_6, %c1, %c0_7, %c0_8] : memref<1x4x16x128xbf16, #tpu.memory_space<vmem>>, vector<1x1x16x128xbf16>
    %6 = vector.shape_cast %5 : vector<1x1x16x128xbf16> to vector<16x128xbf16>
    %c1_9 = arith.constant 1 : index
    %c0_10 = arith.constant 0 : index
    %c0_11 = arith.constant 0 : index
    %7 = vector.load %arg4[%c1_9, %c0_10, %c0_11] : memref<2x128x128xbf16, #tpu.memory_space<vmem>>, vector<1x128x128xbf16>
    %8 = vector.shape_cast %7 : vector<1x128x128xbf16> to vector<128x128xbf16>
    %cst_12 = arith.constant dense<0.000000e+00> : vector<16x128xf32>
    %9 = tpu.matmul %6, %8, %cst_12 {dimension_numbers = #tpu.dot_dimension_numbers<[1], [0], [0], [1], [0, 0, 1, 1], [], []>} : vector<16x128xbf16>, vector<128x128xbf16>, vector<16x128xf32> -> vector<16x128xf32>
    %10 = arith.addf %4, %9 : vector<16x128xf32>
    %11 = arith.truncf %10 : vector<16x128xf32> to vector<16x128xbf16>
    %c0_13 = arith.constant 0 : index
    %c0_14 = arith.constant 0 : index
    %c0_15 = arith.constant 0 : index
    %c0_16 = arith.constant 0 : index
    %12 = vector.load %arg5[%c0_13, %c0_14, %c0_15, %c0_16] : memref<1x4x16x128xbf16, #tpu.memory_space<vmem>>, vector<1x1x16x128xbf16>
    %13 = vector.shape_cast %12 : vector<1x1x16x128xbf16> to vector<16x128xbf16>
    %14 = vector.shape_cast %11 : vector<16x128xbf16> to vector<1x1x16x128xbf16>
    tpu.vector_store %arg5[%c0_13, %c0_14, %c0_15, %c0_16], %14 {strides = array<i32>} : memref<1x4x16x128xbf16, #tpu.memory_space<vmem>>, vector<1x1x16x128xbf16>,
    %cst_17 = arith.constant dense<0.000000e+00> : vector<128xf32>
    %15 = vector.multi_reduction <add>, %10, %cst_17 [0] : vector<16x128xf32> to vector<128xf32>
    %16 = vector.shape_cast %15 : vector<128xf32> to vector<1x128xf32>
    %c0_18 = arith.constant 0 : index
    %c1_19 = arith.constant 1 : index
    %c0_20 = arith.constant 0 : index
    %c0_21 = arith.constant 0 : index
    %17 = vector.load %arg2[%c0_18, %c1_19, %c0_20, %c0_21] : memref<1x4x16x128xbf16, #tpu.memory_space<vmem>>, vector<1x1x16x128xbf16>
    %18 = vector.shape_cast %17 : vector<1x1x16x128xbf16> to vector<16x128xbf16>
    %c0_22 = arith.constant 0 : index
    %c0_23 = arith.constant 0 : index
    %c0_24 = arith.constant 0 : index
    %19 = vector.load %arg4[%c0_22, %c0_23, %c0_24] : memref<2x128x128xbf16, #tpu.memory_space<vmem>>, vector<1x128x128xbf16>
    %20 = vector.shape_cast %19 : vector<1x128x128xbf16> to vector<128x128xbf16>
    %cst_25 = arith.constant dense<0.000000e+00> : vector<16x128xf32>
    %21 = tpu.matmul %18, %20, %cst_25 {dimension_numbers = #tpu.dot_dimension_numbers<[1], [0], [0], [1], [0, 0, 1, 1], [], []>} : vector<16x128xbf16>, vector<128x128xbf16>, vector<16x128xf32> -> vector<16x128xf32>
    %c0_26 = arith.constant 0 : index
    %c2 = arith.constant 2 : index
    %c0_27 = arith.constant 0 : index
    %c0_28 = arith.constant 0 : index
    %22 = vector.load %arg2[%c0_26, %c2, %c0_27, %c0_28] : memref<1x4x16x128xbf16, #tpu.memory_space<vmem>>, vector<1x1x16x128xbf16>
    %23 = vector.shape_cast %22 : vector<1x1x16x128xbf16> to vector<16x128xbf16>
    %c1_29 = arith.constant 1 : index
    %c0_30 = arith.constant 0 : index
    %c0_31 = arith.constant 0 : index
    %24 = vector.load %arg4[%c1_29, %c0_30, %c0_31] : memref<2x128x128xbf16, #tpu.memory_space<vmem>>, vector<1x128x128xbf16>
    %25 = vector.shape_cast %24 : vector<1x128x128xbf16> to vector<128x128xbf16>
    %cst_32 = arith.constant dense<0.000000e+00> : vector<16x128xf32>
    %26 = tpu.matmul %23, %25, %cst_32 {dimension_numbers = #tpu.dot_dimension_numbers<[1], [0], [0], [1], [0, 0, 1, 1], [], []>} : vector<16x128xbf16>, vector<128x128xbf16>, vector<16x128xf32> -> vector<16x128xf32>
    %27 = arith.addf %21, %26 : vector<16x128xf32>
    %28 = arith.truncf %27 : vector<16x128xf32> to vector<16x128xbf16>
    %c0_33 = arith.constant 0 : index
    %c1_34 = arith.constant 1 : index
    %c0_35 = arith.constant 0 : index
    %c0_36 = arith.constant 0 : index
    %29 = vector.load %arg5[%c0_33, %c1_34, %c0_35, %c0_36] : memref<1x4x16x128xbf16, #tpu.memory_space<vmem>>, vector<1x1x16x128xbf16>
    %30 = vector.shape_cast %29 : vector<1x1x16x128xbf16> to vector<16x128xbf16>
    %31 = vector.shape_cast %28 : vector<16x128xbf16> to vector<1x1x16x128xbf16>
    tpu.vector_store %arg5[%c0_33, %c1_34, %c0_35, %c0_36], %31 {strides = array<i32>} : memref<1x4x16x128xbf16, #tpu.memory_space<vmem>>, vector<1x1x16x128xbf16>,
    %cst_37 = arith.constant dense<0.000000e+00> : vector<128xf32>
    %32 = vector.multi_reduction <add>, %27, %cst_37 [0] : vector<16x128xf32> to vector<128xf32>
    %33 = vector.shape_cast %32 : vector<128xf32> to vector<1x128xf32>
    %34 = arith.addf %16, %33 : vector<1x128xf32>
    %c0_38 = arith.constant 0 : index
    %c2_39 = arith.constant 2 : index
    %c0_40 = arith.constant 0 : index
    %c0_41 = arith.constant 0 : index
    %35 = vector.load %arg2[%c0_38, %c2_39, %c0_40, %c0_41] : memref<1x4x16x128xbf16, #tpu.memory_space<vmem>>, vector<1x1x16x128xbf16>
    %36 = vector.shape_cast %35 : vector<1x1x16x128xbf16> to vector<16x128xbf16>
    %c0_42 = arith.constant 0 : index
    %c0_43 = arith.constant 0 : index
    %c0_44 = arith.constant 0 : index
    %37 = vector.load %arg4[%c0_42, %c0_43, %c0_44] : memref<2x128x128xbf16, #tpu.memory_space<vmem>>, vector<1x128x128xbf16>
    %38 = vector.shape_cast %37 : vector<1x128x128xbf16> to vector<128x128xbf16>
    %cst_45 = arith.constant dense<0.000000e+00> : vector<16x128xf32>
    %39 = tpu.matmul %36, %38, %cst_45 {dimension_numbers = #tpu.dot_dimension_numbers<[1], [0], [0], [1], [0, 0, 1, 1], [], []>} : vector<16x128xbf16>, vector<128x128xbf16>, vector<16x128xf32> -> vector<16x128xf32>
    %c0_46 = arith.constant 0 : index
    %c3 = arith.constant 3 : index
    %c0_47 = arith.constant 0 : index
    %c0_48 = arith.constant 0 : index
    %40 = vector.load %arg2[%c0_46, %c3, %c0_47, %c0_48] : memref<1x4x16x128xbf16, #tpu.memory_space<vmem>>, vector<1x1x16x128xbf16>
    %41 = vector.shape_cast %40 : vector<1x1x16x128xbf16> to vector<16x128xbf16>
    %c1_49 = arith.constant 1 : index
    %c0_50 = arith.constant 0 : index
    %c0_51 = arith.constant 0 : index
    %42 = vector.load %arg4[%c1_49, %c0_50, %c0_51] : memref<2x128x128xbf16, #tpu.memory_space<vmem>>, vector<1x128x128xbf16>
    %43 = vector.shape_cast %42 : vector<1x128x128xbf16> to vector<128x128xbf16>
    %cst_52 = arith.constant dense<0.000000e+00> : vector<16x128xf32>
    %44 = tpu.matmul %41, %43, %cst_52 {dimension_numbers = #tpu.dot_dimension_numbers<[1], [0], [0], [1], [0, 0, 1, 1], [], []>} : vector<16x128xbf16>, vector<128x128xbf16>, vector<16x128xf32> -> vector<16x128xf32>
    %45 = arith.addf %39, %44 : vector<16x128xf32>
    %46 = arith.truncf %45 : vector<16x128xf32> to vector<16x128xbf16>
    %c0_53 = arith.constant 0 : index
    %c2_54 = arith.constant 2 : index
    %c0_55 = arith.constant 0 : index
    %c0_56 = arith.constant 0 : index
    %47 = vector.load %arg5[%c0_53, %c2_54, %c0_55, %c0_56] : memref<1x4x16x128xbf16, #tpu.memory_space<vmem>>, vector<1x1x16x128xbf16>
    %48 = vector.shape_cast %47 : vector<1x1x16x128xbf16> to vector<16x128xbf16>
    %49 = vector.shape_cast %46 : vector<16x128xbf16> to vector<1x1x16x128xbf16>
    tpu.vector_store %arg5[%c0_53, %c2_54, %c0_55, %c0_56], %49 {strides = array<i32>} : memref<1x4x16x128xbf16, #tpu.memory_space<vmem>>, vector<1x1x16x128xbf16>,
    %cst_57 = arith.constant dense<0.000000e+00> : vector<128xf32>
    %50 = vector.multi_reduction <add>, %45, %cst_57 [0] : vector<16x128xf32> to vector<128xf32>
    %51 = vector.shape_cast %50 : vector<128xf32> to vector<1x128xf32>
    %52 = arith.addf %34, %51 : vector<1x128xf32>
    %c0_58 = arith.constant 0 : index
    %c3_59 = arith.constant 3 : index
    %c0_60 = arith.constant 0 : index
    %c0_61 = arith.constant 0 : index
    %53 = vector.load %arg2[%c0_58, %c3_59, %c0_60, %c0_61] : memref<1x4x16x128xbf16, #tpu.memory_space<vmem>>, vector<1x1x16x128xbf16>
    %54 = vector.shape_cast %53 : vector<1x1x16x128xbf16> to vector<16x128xbf16>
    %c0_62 = arith.constant 0 : index
    %c0_63 = arith.constant 0 : index
    %c0_64 = arith.constant 0 : index
    %55 = vector.load %arg4[%c0_62, %c0_63, %c0_64] : memref<2x128x128xbf16, #tpu.memory_space<vmem>>, vector<1x128x128xbf16>
    %56 = vector.shape_cast %55 : vector<1x128x128xbf16> to vector<128x128xbf16>
    %cst_65 = arith.constant dense<0.000000e+00> : vector<16x128xf32>
    %57 = tpu.matmul %54, %56, %cst_65 {dimension_numbers = #tpu.dot_dimension_numbers<[1], [0], [0], [1], [0, 0, 1, 1], [], []>} : vector<16x128xbf16>, vector<128x128xbf16>, vector<16x128xf32> -> vector<16x128xf32>
    %c0_66 = arith.constant 0 : index
    %c0_67 = arith.constant 0 : index
    %c0_68 = arith.constant 0 : index
    %c0_69 = arith.constant 0 : index
    %58 = vector.load %arg3[%c0_66, %c0_67, %c0_68, %c0_69] : memref<1x1x16x128xbf16, #tpu.memory_space<vmem>>, vector<1x1x16x128xbf16>
    %59 = vector.shape_cast %58 : vector<1x1x16x128xbf16> to vector<16x128xbf16>
    %c1_70 = arith.constant 1 : index
    %c0_71 = arith.constant 0 : index
    %c0_72 = arith.constant 0 : index
    %60 = vector.load %arg4[%c1_70, %c0_71, %c0_72] : memref<2x128x128xbf16, #tpu.memory_space<vmem>>, vector<1x128x128xbf16>
    %61 = vector.shape_cast %60 : vector<1x128x128xbf16> to vector<128x128xbf16>
    %cst_73 = arith.constant dense<0.000000e+00> : vector<16x128xf32>
    %62 = tpu.matmul %59, %61, %cst_73 {dimension_numbers = #tpu.dot_dimension_numbers<[1], [0], [0], [1], [0, 0, 1, 1], [], []>} : vector<16x128xbf16>, vector<128x128xbf16>, vector<16x128xf32> -> vector<16x128xf32>
    %63 = arith.addf %57, %62 : vector<16x128xf32>
    %64 = arith.truncf %63 : vector<16x128xf32> to vector<16x128xbf16>
    %c0_74 = arith.constant 0 : index
    %c3_75 = arith.constant 3 : index
    %c0_76 = arith.constant 0 : index
    %c0_77 = arith.constant 0 : index
    %65 = vector.load %arg5[%c0_74, %c3_75, %c0_76, %c0_77] : memref<1x4x16x128xbf16, #tpu.memory_space<vmem>>, vector<1x1x16x128xbf16>
    %66 = vector.shape_cast %65 : vector<1x1x16x128xbf16> to vector<16x128xbf16>
    %67 = vector.shape_cast %64 : vector<16x128xbf16> to vector<1x1x16x128xbf16>
    tpu.vector_store %arg5[%c0_74, %c3_75, %c0_76, %c0_77], %67 {strides = array<i32>} : memref<1x4x16x128xbf16, #tpu.memory_space<vmem>>, vector<1x1x16x128xbf16>,
    %cst_78 = arith.constant dense<0.000000e+00> : vector<128xf32>
    %68 = vector.multi_reduction <add>, %63, %cst_78 [0] : vector<16x128xf32> to vector<128xf32>
    %69 = vector.shape_cast %68 : vector<128xf32> to vector<1x128xf32>
    %70 = arith.addf %52, %69 : vector<1x128xf32>
    %cst_79 = arith.constant 1.562500e-02 : f32
    %71 = vector.broadcast %cst_79 : f32 to vector<1x128xf32>
    %72 = arith.mulf %70, %71 : vector<1x128xf32>
    %73 = vector.broadcast %72 : vector<1x128xf32> to vector<16x128xf32>
    %74 = arith.subf %10, %73 : vector<16x128xf32>
    %75 = arith.mulf %74, %74 : vector<16x128xf32>
    %cst_80 = arith.constant dense<0.000000e+00> : vector<128xf32>
    %76 = vector.multi_reduction <add>, %75, %cst_80 [0] : vector<16x128xf32> to vector<128xf32>
    %77 = vector.shape_cast %76 : vector<128xf32> to vector<1x128xf32>
    %78 = vector.broadcast %72 : vector<1x128xf32> to vector<16x128xf32>
    %79 = arith.subf %27, %78 : vector<16x128xf32>
    %80 = arith.mulf %79, %79 : vector<16x128xf32>
    %cst_81 = arith.constant dense<0.000000e+00> : vector<128xf32>
    %81 = vector.multi_reduction <add>, %80, %cst_81 [0] : vector<16x128xf32> to vector<128xf32>
    %82 = vector.shape_cast %81 : vector<128xf32> to vector<1x128xf32>
    %83 = arith.addf %77, %82 : vector<1x128xf32>
    %84 = vector.broadcast %72 : vector<1x128xf32> to vector<16x128xf32>
    %85 = arith.subf %45, %84 : vector<16x128xf32>
    %86 = arith.mulf %85, %85 : vector<16x128xf32>
    %cst_82 = arith.constant dense<0.000000e+00> : vector<128xf32>
    %87 = vector.multi_reduction <add>, %86, %cst_82 [0] : vector<16x128xf32> to vector<128xf32>
    %88 = vector.shape_cast %87 : vector<128xf32> to vector<1x128xf32>
    %89 = arith.addf %83, %88 : vector<1x128xf32>
    %90 = vector.broadcast %72 : vector<1x128xf32> to vector<16x128xf32>
    %91 = arith.subf %63, %90 : vector<16x128xf32>
    %92 = arith.mulf %91, %91 : vector<16x128xf32>
    %cst_83 = arith.constant dense<0.000000e+00> : vector<128xf32>
    %93 = vector.multi_reduction <add>, %92, %cst_83 [0] : vector<16x128xf32> to vector<128xf32>
    %94 = vector.shape_cast %93 : vector<128xf32> to vector<1x128xf32>
    %95 = arith.addf %89, %94 : vector<1x128xf32>
    %c0_84 = arith.constant 0 : index
    %c0_85 = arith.constant 0 : index
    %c0_86 = arith.constant 0 : index
    %c0_87 = arith.constant 0 : index
    %96 = vector.load %arg6[%c0_84, %c0_85, %c0_86, %c0_87] : memref<1x1x2x128xf32, #tpu.memory_space<vmem>>, vector<1x1x1x128xf32>
    %97 = vector.shape_cast %96 : vector<1x1x1x128xf32> to vector<1x128xf32>
    %98 = vector.shape_cast %70 : vector<1x128xf32> to vector<1x1x1x128xf32>
    tpu.vector_store %arg6[%c0_84, %c0_85, %c0_86, %c0_87], %98 {strides = array<i32>} : memref<1x1x2x128xf32, #tpu.memory_space<vmem>>, vector<1x1x1x128xf32>,
    %c0_88 = arith.constant 0 : index
    %c0_89 = arith.constant 0 : index
    %c1_90 = arith.constant 1 : index
    %c0_91 = arith.constant 0 : index
    %99 = vector.load %arg6[%c0_88, %c0_89, %c1_90, %c0_91] : memref<1x1x2x128xf32, #tpu.memory_space<vmem>>, vector<1x1x1x128xf32>
    %100 = vector.shape_cast %99 : vector<1x1x1x128xf32> to vector<1x128xf32>
    %101 = vector.shape_cast %95 : vector<1x128xf32> to vector<1x1x1x128xf32>
    tpu.vector_store %arg6[%c0_88, %c0_89, %c1_90, %c0_91], %101 {strides = array<i32>} : memref<1x1x2x128xf32, #tpu.memory_space<vmem>>, vector<1x1x1x128xf32>,
    return
  }
  func.func @transform_0(%arg0: i32, %arg1: i32) -> (i32, i32, i32, i32) {
    %c0_i32 = arith.constant 0 : i32
    %c0_i32_0 = arith.constant 0 : i32
    %c0_i32_1 = arith.constant 0 : i32
    return %arg0, %arg1, %c0_i32, %c0_i32_0 : i32, i32, i32, i32
  }
  func.func @transform_1(%arg0: i32, %arg1: i32) -> (i32, i32, i32, i32) {
    %c4_i32 = arith.constant 4 : i32
    %0 = arith.muli %arg1, %c4_i32 : i32
    %c4_i32_0 = arith.constant 4 : i32
    %1 = arith.addi %0, %c4_i32_0 : i32
    %c0_i32 = arith.constant 0 : i32
    %c0_i32_1 = arith.constant 0 : i32
    %c0_i32_2 = arith.constant 0 : i32
    return %arg0, %1, %c0_i32, %c0_i32_1 : i32, i32, i32, i32
  }
  func.func @transform_2(%arg0: i32, %arg1: i32) -> (i32, i32, i32) {
    %c0_i32 = arith.constant 0 : i32
    %c0_i32_0 = arith.constant 0 : i32
    %c0_i32_1 = arith.constant 0 : i32
    %c0_i32_2 = arith.constant 0 : i32
    return %c0_i32, %c0_i32_0, %c0_i32_1 : i32, i32, i32
  }
  func.func @transform_3(%arg0: i32, %arg1: i32) -> (i32, i32, i32, i32) {
    %c0_i32 = arith.constant 0 : i32
    %c0_i32_0 = arith.constant 0 : i32
    %c0_i32_1 = arith.constant 0 : i32
    return %arg0, %arg1, %c0_i32, %c0_i32_0 : i32, i32, i32, i32
  }
  func.func @transform_4(%arg0: i32, %arg1: i32) -> (i32, i32, i32, i32) {
    %c0_i32 = arith.constant 0 : i32
    %c0_i32_0 = arith.constant 0 : i32
    %c0_i32_1 = arith.constant 0 : i32
    return %arg0, %arg1, %c0_i32, %c0_i32_0 : i32, i32, i32, i32
  }
}

module attributes {stable_mosaic.version = 11 : i64} {
  func.func @_bn_lrelu_kernel(%arg0: i32, %arg1: memref<128x128xbf16, #tpu.memory_space<vmem>>, %arg2: memref<1x128xf32, #tpu.memory_space<vmem>>, %arg3: memref<1x128xf32, #tpu.memory_space<vmem>>, %arg4: memref<128x128xbf16, #tpu.memory_space<vmem>>) attributes {dimension_semantics = [#tpu.dimension_semantics<parallel>], iteration_bounds = array<i64: 1>, scalar_prefetch = 0 : i64, scratch_operands = 0 : i64, tpu.core_type = #tpu.core_type<tc>, window_params = [{transform_indices = @transform_0, window_bounds = array<i64: 128, 128>}, {pipeline_mode = #tpu.pipeline_mode<synchronous>, transform_indices = @transform_1, window_bounds = array<i64: 1, 128>}, {pipeline_mode = #tpu.pipeline_mode<synchronous>, transform_indices = @transform_2, window_bounds = array<i64: 1, 128>}, {transform_indices = @transform_3, window_bounds = array<i64: 128, 128>}]} {
    %c0 = arith.constant 0 : index
    %c0_0 = arith.constant 0 : index
    %0 = vector.load %arg1[%c0, %c0_0] : memref<128x128xbf16, #tpu.memory_space<vmem>>, vector<128x128xbf16>
    %1 = arith.extf %0 : vector<128x128xbf16> to vector<128x128xf32>
    %c0_1 = arith.constant 0 : index
    %c0_2 = arith.constant 0 : index
    %2 = vector.load %arg2[%c0_1, %c0_2] : memref<1x128xf32, #tpu.memory_space<vmem>>, vector<1x128xf32>
    %3 = vector.broadcast %2 : vector<1x128xf32> to vector<128x128xf32>
    %4 = arith.mulf %1, %3 : vector<128x128xf32>
    %c0_3 = arith.constant 0 : index
    %c0_4 = arith.constant 0 : index
    %5 = vector.load %arg3[%c0_3, %c0_4] : memref<1x128xf32, #tpu.memory_space<vmem>>, vector<1x128xf32>
    %6 = vector.broadcast %5 : vector<1x128xf32> to vector<128x128xf32>
    %7 = arith.addf %4, %6 : vector<128x128xf32>
    %cst = arith.constant 0.000000e+00 : f32
    %8 = vector.broadcast %cst : f32 to vector<128x128xf32>
    %9 = arith.cmpf oge, %7, %8 : vector<128x128xf32>
    %cst_5 = arith.constant 2.000000e-01 : f32
    %10 = vector.broadcast %cst_5 : f32 to vector<128x128xf32>
    %11 = arith.mulf %10, %7 : vector<128x128xf32>
    %12 = arith.select %9, %7, %11 : vector<128x128xi1>, vector<128x128xf32>
    %13 = arith.truncf %12 : vector<128x128xf32> to vector<128x128xbf16>
    %c0_6 = arith.constant 0 : index
    %c0_7 = arith.constant 0 : index
    %14 = vector.load %arg4[%c0_6, %c0_7] : memref<128x128xbf16, #tpu.memory_space<vmem>>, vector<128x128xbf16>
    tpu.vector_store %arg4[%c0_6, %c0_7], %13 {strides = array<i32>} : memref<128x128xbf16, #tpu.memory_space<vmem>>, vector<128x128xbf16>,
    return
  }
  func.func @transform_0(%arg0: i32) -> (i32, i32) {
    %c0_i32 = arith.constant 0 : i32
    %c0_i32_0 = arith.constant 0 : i32
    return %arg0, %c0_i32 : i32, i32
  }
  func.func @transform_1(%arg0: i32) -> (i32, i32) {
    %c0_i32 = arith.constant 0 : i32
    %c0_i32_0 = arith.constant 0 : i32
    %c0_i32_1 = arith.constant 0 : i32
    return %c0_i32, %c0_i32_0 : i32, i32
  }
  func.func @transform_2(%arg0: i32) -> (i32, i32) {
    %c0_i32 = arith.constant 0 : i32
    %c0_i32_0 = arith.constant 0 : i32
    %c0_i32_1 = arith.constant 0 : i32
    return %c0_i32, %c0_i32_0 : i32, i32
  }
  func.func @transform_3(%arg0: i32) -> (i32, i32) {
    %c0_i32 = arith.constant 0 : i32
    %c0_i32_0 = arith.constant 0 : i32
    return %arg0, %c0_i32 : i32, i32
  }
}

module attributes {stable_mosaic.version = 11 : i64} {
  func.func @_conv_stats_kernel(%arg0: i32, %arg1: i32, %arg2: memref<1x2x6x128xbf16, #tpu.memory_space<vmem>>, %arg3: memref<1x1x6x128xbf16, #tpu.memory_space<vmem>>, %arg4: memref<4x128x128xbf16, #tpu.memory_space<vmem>>, %arg5: memref<1x2x4x128xbf16, #tpu.memory_space<vmem>>, %arg6: memref<1x1x2x128xf32, #tpu.memory_space<vmem>>) attributes {dimension_semantics = [#tpu.dimension_semantics<parallel>, #tpu.dimension_semantics<parallel>], iteration_bounds = array<i64: 2, 1>, scalar_prefetch = 0 : i64, scratch_operands = 0 : i64, tpu.core_type = #tpu.core_type<tc>, window_params = [{transform_indices = @transform_0, window_bounds = array<i64: 1, 2, 6, 128>}, {transform_indices = @transform_1, window_bounds = array<i64: 1, 1, 6, 128>}, {pipeline_mode = #tpu.pipeline_mode<synchronous>, transform_indices = @transform_2, window_bounds = array<i64: 4, 128, 128>}, {transform_indices = @transform_3, window_bounds = array<i64: 1, 2, 4, 128>}, {transform_indices = @transform_4, window_bounds = array<i64: 1, 1, 2, 128>}]} {
    %c0 = arith.constant 0 : index
    %c0_0 = arith.constant 0 : index
    %c0_1 = arith.constant 0 : index
    %c0_2 = arith.constant 0 : index
    %0 = vector.load %arg2[%c0, %c0_0, %c0_1, %c0_2] : memref<1x2x6x128xbf16, #tpu.memory_space<vmem>>, vector<1x1x4x128xbf16>
    %1 = vector.shape_cast %0 : vector<1x1x4x128xbf16> to vector<4x128xbf16>
    %c0_3 = arith.constant 0 : index
    %c0_4 = arith.constant 0 : index
    %c0_5 = arith.constant 0 : index
    %2 = vector.load %arg4[%c0_3, %c0_4, %c0_5] : memref<4x128x128xbf16, #tpu.memory_space<vmem>>, vector<1x128x128xbf16>
    %3 = vector.shape_cast %2 : vector<1x128x128xbf16> to vector<128x128xbf16>
    %cst = arith.constant dense<0.000000e+00> : vector<4x128xf32>
    %4 = tpu.matmul %1, %3, %cst {dimension_numbers = #tpu.dot_dimension_numbers<[1], [0], [0], [1], [0, 0, 1, 1], [], []>} : vector<4x128xbf16>, vector<128x128xbf16>, vector<4x128xf32> -> vector<4x128xf32>
    %c0_6 = arith.constant 0 : index
    %c0_7 = arith.constant 0 : index
    %c2 = arith.constant 2 : index
    %c0_8 = arith.constant 0 : index
    %5 = vector.load %arg2[%c0_6, %c0_7, %c2, %c0_8] : memref<1x2x6x128xbf16, #tpu.memory_space<vmem>>, vector<1x1x4x128xbf16>
    %6 = vector.shape_cast %5 : vector<1x1x4x128xbf16> to vector<4x128xbf16>
    %c1 = arith.constant 1 : index
    %c0_9 = arith.constant 0 : index
    %c0_10 = arith.constant 0 : index
    %7 = vector.load %arg4[%c1, %c0_9, %c0_10] : memref<4x128x128xbf16, #tpu.memory_space<vmem>>, vector<1x128x128xbf16>
    %8 = vector.shape_cast %7 : vector<1x128x128xbf16> to vector<128x128xbf16>
    %cst_11 = arith.constant dense<0.000000e+00> : vector<4x128xf32>
    %9 = tpu.matmul %6, %8, %cst_11 {dimension_numbers = #tpu.dot_dimension_numbers<[1], [0], [0], [1], [0, 0, 1, 1], [], []>} : vector<4x128xbf16>, vector<128x128xbf16>, vector<4x128xf32> -> vector<4x128xf32>
    %10 = arith.addf %4, %9 : vector<4x128xf32>
    %c0_12 = arith.constant 0 : index
    %c1_13 = arith.constant 1 : index
    %c0_14 = arith.constant 0 : index
    %c0_15 = arith.constant 0 : index
    %11 = vector.load %arg2[%c0_12, %c1_13, %c0_14, %c0_15] : memref<1x2x6x128xbf16, #tpu.memory_space<vmem>>, vector<1x1x4x128xbf16>
    %12 = vector.shape_cast %11 : vector<1x1x4x128xbf16> to vector<4x128xbf16>
    %c2_16 = arith.constant 2 : index
    %c0_17 = arith.constant 0 : index
    %c0_18 = arith.constant 0 : index
    %13 = vector.load %arg4[%c2_16, %c0_17, %c0_18] : memref<4x128x128xbf16, #tpu.memory_space<vmem>>, vector<1x128x128xbf16>
    %14 = vector.shape_cast %13 : vector<1x128x128xbf16> to vector<128x128xbf16>
    %cst_19 = arith.constant dense<0.000000e+00> : vector<4x128xf32>
    %15 = tpu.matmul %12, %14, %cst_19 {dimension_numbers = #tpu.dot_dimension_numbers<[1], [0], [0], [1], [0, 0, 1, 1], [], []>} : vector<4x128xbf16>, vector<128x128xbf16>, vector<4x128xf32> -> vector<4x128xf32>
    %16 = arith.addf %10, %15 : vector<4x128xf32>
    %c0_20 = arith.constant 0 : index
    %c1_21 = arith.constant 1 : index
    %c2_22 = arith.constant 2 : index
    %c0_23 = arith.constant 0 : index
    %17 = vector.load %arg2[%c0_20, %c1_21, %c2_22, %c0_23] : memref<1x2x6x128xbf16, #tpu.memory_space<vmem>>, vector<1x1x4x128xbf16>
    %18 = vector.shape_cast %17 : vector<1x1x4x128xbf16> to vector<4x128xbf16>
    %c3 = arith.constant 3 : index
    %c0_24 = arith.constant 0 : index
    %c0_25 = arith.constant 0 : index
    %19 = vector.load %arg4[%c3, %c0_24, %c0_25] : memref<4x128x128xbf16, #tpu.memory_space<vmem>>, vector<1x128x128xbf16>
    %20 = vector.shape_cast %19 : vector<1x128x128xbf16> to vector<128x128xbf16>
    %cst_26 = arith.constant dense<0.000000e+00> : vector<4x128xf32>
    %21 = tpu.matmul %18, %20, %cst_26 {dimension_numbers = #tpu.dot_dimension_numbers<[1], [0], [0], [1], [0, 0, 1, 1], [], []>} : vector<4x128xbf16>, vector<128x128xbf16>, vector<4x128xf32> -> vector<4x128xf32>
    %22 = arith.addf %16, %21 : vector<4x128xf32>
    %23 = arith.truncf %22 : vector<4x128xf32> to vector<4x128xbf16>
    %c0_27 = arith.constant 0 : index
    %c0_28 = arith.constant 0 : index
    %c0_29 = arith.constant 0 : index
    %c0_30 = arith.constant 0 : index
    %24 = vector.load %arg5[%c0_27, %c0_28, %c0_29, %c0_30] : memref<1x2x4x128xbf16, #tpu.memory_space<vmem>>, vector<1x1x4x128xbf16>
    %25 = vector.shape_cast %24 : vector<1x1x4x128xbf16> to vector<4x128xbf16>
    %26 = vector.shape_cast %23 : vector<4x128xbf16> to vector<1x1x4x128xbf16>
    tpu.vector_store %arg5[%c0_27, %c0_28, %c0_29, %c0_30], %26 {strides = array<i32>} : memref<1x2x4x128xbf16, #tpu.memory_space<vmem>>, vector<1x1x4x128xbf16>,
    %cst_31 = arith.constant dense<0.000000e+00> : vector<128xf32>
    %27 = vector.multi_reduction <add>, %22, %cst_31 [0] : vector<4x128xf32> to vector<128xf32>
    %28 = vector.shape_cast %27 : vector<128xf32> to vector<1x128xf32>
    %c0_32 = arith.constant 0 : index
    %c1_33 = arith.constant 1 : index
    %c0_34 = arith.constant 0 : index
    %c0_35 = arith.constant 0 : index
    %29 = vector.load %arg2[%c0_32, %c1_33, %c0_34, %c0_35] : memref<1x2x6x128xbf16, #tpu.memory_space<vmem>>, vector<1x1x4x128xbf16>
    %30 = vector.shape_cast %29 : vector<1x1x4x128xbf16> to vector<4x128xbf16>
    %c0_36 = arith.constant 0 : index
    %c0_37 = arith.constant 0 : index
    %c0_38 = arith.constant 0 : index
    %31 = vector.load %arg4[%c0_36, %c0_37, %c0_38] : memref<4x128x128xbf16, #tpu.memory_space<vmem>>, vector<1x128x128xbf16>
    %32 = vector.shape_cast %31 : vector<1x128x128xbf16> to vector<128x128xbf16>
    %cst_39 = arith.constant dense<0.000000e+00> : vector<4x128xf32>
    %33 = tpu.matmul %30, %32, %cst_39 {dimension_numbers = #tpu.dot_dimension_numbers<[1], [0], [0], [1], [0, 0, 1, 1], [], []>} : vector<4x128xbf16>, vector<128x128xbf16>, vector<4x128xf32> -> vector<4x128xf32>
    %c0_40 = arith.constant 0 : index
    %c1_41 = arith.constant 1 : index
    %c2_42 = arith.constant 2 : index
    %c0_43 = arith.constant 0 : index
    %34 = vector.load %arg2[%c0_40, %c1_41, %c2_42, %c0_43] : memref<1x2x6x128xbf16, #tpu.memory_space<vmem>>, vector<1x1x4x128xbf16>
    %35 = vector.shape_cast %34 : vector<1x1x4x128xbf16> to vector<4x128xbf16>
    %c1_44 = arith.constant 1 : index
    %c0_45 = arith.constant 0 : index
    %c0_46 = arith.constant 0 : index
    %36 = vector.load %arg4[%c1_44, %c0_45, %c0_46] : memref<4x128x128xbf16, #tpu.memory_space<vmem>>, vector<1x128x128xbf16>
    %37 = vector.shape_cast %36 : vector<1x128x128xbf16> to vector<128x128xbf16>
    %cst_47 = arith.constant dense<0.000000e+00> : vector<4x128xf32>
    %38 = tpu.matmul %35, %37, %cst_47 {dimension_numbers = #tpu.dot_dimension_numbers<[1], [0], [0], [1], [0, 0, 1, 1], [], []>} : vector<4x128xbf16>, vector<128x128xbf16>, vector<4x128xf32> -> vector<4x128xf32>
    %39 = arith.addf %33, %38 : vector<4x128xf32>
    %c0_48 = arith.constant 0 : index
    %c0_49 = arith.constant 0 : index
    %c0_50 = arith.constant 0 : index
    %c0_51 = arith.constant 0 : index
    %40 = vector.load %arg3[%c0_48, %c0_49, %c0_50, %c0_51] : memref<1x1x6x128xbf16, #tpu.memory_space<vmem>>, vector<1x1x4x128xbf16>
    %41 = vector.shape_cast %40 : vector<1x1x4x128xbf16> to vector<4x128xbf16>
    %c2_52 = arith.constant 2 : index
    %c0_53 = arith.constant 0 : index
    %c0_54 = arith.constant 0 : index
    %42 = vector.load %arg4[%c2_52, %c0_53, %c0_54] : memref<4x128x128xbf16, #tpu.memory_space<vmem>>, vector<1x128x128xbf16>
    %43 = vector.shape_cast %42 : vector<1x128x128xbf16> to vector<128x128xbf16>
    %cst_55 = arith.constant dense<0.000000e+00> : vector<4x128xf32>
    %44 = tpu.matmul %41, %43, %cst_55 {dimension_numbers = #tpu.dot_dimension_numbers<[1], [0], [0], [1], [0, 0, 1, 1], [], []>} : vector<4x128xbf16>, vector<128x128xbf16>, vector<4x128xf32> -> vector<4x128xf32>
    %45 = arith.addf %39, %44 : vector<4x128xf32>
    %c0_56 = arith.constant 0 : index
    %c0_57 = arith.constant 0 : index
    %c2_58 = arith.constant 2 : index
    %c0_59 = arith.constant 0 : index
    %46 = vector.load %arg3[%c0_56, %c0_57, %c2_58, %c0_59] : memref<1x1x6x128xbf16, #tpu.memory_space<vmem>>, vector<1x1x4x128xbf16>
    %47 = vector.shape_cast %46 : vector<1x1x4x128xbf16> to vector<4x128xbf16>
    %c3_60 = arith.constant 3 : index
    %c0_61 = arith.constant 0 : index
    %c0_62 = arith.constant 0 : index
    %48 = vector.load %arg4[%c3_60, %c0_61, %c0_62] : memref<4x128x128xbf16, #tpu.memory_space<vmem>>, vector<1x128x128xbf16>
    %49 = vector.shape_cast %48 : vector<1x128x128xbf16> to vector<128x128xbf16>
    %cst_63 = arith.constant dense<0.000000e+00> : vector<4x128xf32>
    %50 = tpu.matmul %47, %49, %cst_63 {dimension_numbers = #tpu.dot_dimension_numbers<[1], [0], [0], [1], [0, 0, 1, 1], [], []>} : vector<4x128xbf16>, vector<128x128xbf16>, vector<4x128xf32> -> vector<4x128xf32>
    %51 = arith.addf %45, %50 : vector<4x128xf32>
    %52 = arith.truncf %51 : vector<4x128xf32> to vector<4x128xbf16>
    %c0_64 = arith.constant 0 : index
    %c1_65 = arith.constant 1 : index
    %c0_66 = arith.constant 0 : index
    %c0_67 = arith.constant 0 : index
    %53 = vector.load %arg5[%c0_64, %c1_65, %c0_66, %c0_67] : memref<1x2x4x128xbf16, #tpu.memory_space<vmem>>, vector<1x1x4x128xbf16>
    %54 = vector.shape_cast %53 : vector<1x1x4x128xbf16> to vector<4x128xbf16>
    %55 = vector.shape_cast %52 : vector<4x128xbf16> to vector<1x1x4x128xbf16>
    tpu.vector_store %arg5[%c0_64, %c1_65, %c0_66, %c0_67], %55 {strides = array<i32>} : memref<1x2x4x128xbf16, #tpu.memory_space<vmem>>, vector<1x1x4x128xbf16>,
    %cst_68 = arith.constant dense<0.000000e+00> : vector<128xf32>
    %56 = vector.multi_reduction <add>, %51, %cst_68 [0] : vector<4x128xf32> to vector<128xf32>
    %57 = vector.shape_cast %56 : vector<128xf32> to vector<1x128xf32>
    %58 = arith.addf %28, %57 : vector<1x128xf32>
    %cst_69 = arith.constant 1.250000e-01 : f32
    %59 = vector.broadcast %cst_69 : f32 to vector<1x128xf32>
    %60 = arith.mulf %58, %59 : vector<1x128xf32>
    %61 = vector.broadcast %60 : vector<1x128xf32> to vector<4x128xf32>
    %62 = arith.subf %22, %61 : vector<4x128xf32>
    %63 = arith.mulf %62, %62 : vector<4x128xf32>
    %cst_70 = arith.constant dense<0.000000e+00> : vector<128xf32>
    %64 = vector.multi_reduction <add>, %63, %cst_70 [0] : vector<4x128xf32> to vector<128xf32>
    %65 = vector.shape_cast %64 : vector<128xf32> to vector<1x128xf32>
    %66 = vector.broadcast %60 : vector<1x128xf32> to vector<4x128xf32>
    %67 = arith.subf %51, %66 : vector<4x128xf32>
    %68 = arith.mulf %67, %67 : vector<4x128xf32>
    %cst_71 = arith.constant dense<0.000000e+00> : vector<128xf32>
    %69 = vector.multi_reduction <add>, %68, %cst_71 [0] : vector<4x128xf32> to vector<128xf32>
    %70 = vector.shape_cast %69 : vector<128xf32> to vector<1x128xf32>
    %71 = arith.addf %65, %70 : vector<1x128xf32>
    %c0_72 = arith.constant 0 : index
    %c0_73 = arith.constant 0 : index
    %c0_74 = arith.constant 0 : index
    %c0_75 = arith.constant 0 : index
    %72 = vector.load %arg6[%c0_72, %c0_73, %c0_74, %c0_75] : memref<1x1x2x128xf32, #tpu.memory_space<vmem>>, vector<1x1x1x128xf32>
    %73 = vector.shape_cast %72 : vector<1x1x1x128xf32> to vector<1x128xf32>
    %74 = vector.shape_cast %58 : vector<1x128xf32> to vector<1x1x1x128xf32>
    tpu.vector_store %arg6[%c0_72, %c0_73, %c0_74, %c0_75], %74 {strides = array<i32>} : memref<1x1x2x128xf32, #tpu.memory_space<vmem>>, vector<1x1x1x128xf32>,
    %c0_76 = arith.constant 0 : index
    %c0_77 = arith.constant 0 : index
    %c1_78 = arith.constant 1 : index
    %c0_79 = arith.constant 0 : index
    %75 = vector.load %arg6[%c0_76, %c0_77, %c1_78, %c0_79] : memref<1x1x2x128xf32, #tpu.memory_space<vmem>>, vector<1x1x1x128xf32>
    %76 = vector.shape_cast %75 : vector<1x1x1x128xf32> to vector<1x128xf32>
    %77 = vector.shape_cast %71 : vector<1x128xf32> to vector<1x1x1x128xf32>
    tpu.vector_store %arg6[%c0_76, %c0_77, %c1_78, %c0_79], %77 {strides = array<i32>} : memref<1x1x2x128xf32, #tpu.memory_space<vmem>>, vector<1x1x1x128xf32>,
    return
  }
  func.func @transform_0(%arg0: i32, %arg1: i32) -> (i32, i32, i32, i32) {
    %c0_i32 = arith.constant 0 : i32
    %c0_i32_0 = arith.constant 0 : i32
    %c0_i32_1 = arith.constant 0 : i32
    return %arg0, %arg1, %c0_i32, %c0_i32_0 : i32, i32, i32, i32
  }
  func.func @transform_1(%arg0: i32, %arg1: i32) -> (i32, i32, i32, i32) {
    %c2_i32 = arith.constant 2 : i32
    %0 = arith.muli %arg1, %c2_i32 : i32
    %c2_i32_0 = arith.constant 2 : i32
    %1 = arith.addi %0, %c2_i32_0 : i32
    %c0_i32 = arith.constant 0 : i32
    %c0_i32_1 = arith.constant 0 : i32
    %c0_i32_2 = arith.constant 0 : i32
    return %arg0, %1, %c0_i32, %c0_i32_1 : i32, i32, i32, i32
  }
  func.func @transform_2(%arg0: i32, %arg1: i32) -> (i32, i32, i32) {
    %c0_i32 = arith.constant 0 : i32
    %c0_i32_0 = arith.constant 0 : i32
    %c0_i32_1 = arith.constant 0 : i32
    %c0_i32_2 = arith.constant 0 : i32
    return %c0_i32, %c0_i32_0, %c0_i32_1 : i32, i32, i32
  }
  func.func @transform_3(%arg0: i32, %arg1: i32) -> (i32, i32, i32, i32) {
    %c0_i32 = arith.constant 0 : i32
    %c0_i32_0 = arith.constant 0 : i32
    %c0_i32_1 = arith.constant 0 : i32
    return %arg0, %arg1, %c0_i32, %c0_i32_0 : i32, i32, i32, i32
  }
  func.func @transform_4(%arg0: i32, %arg1: i32) -> (i32, i32, i32, i32) {
    %c0_i32 = arith.constant 0 : i32
    %c0_i32_0 = arith.constant 0 : i32
    %c0_i32_1 = arith.constant 0 : i32
    return %arg0, %arg1, %c0_i32, %c0_i32_0 : i32, i32, i32, i32
  }
}

module attributes {stable_mosaic.version = 11 : i64} {
  func.func @_bn_lrelu_kernel(%arg0: i32, %arg1: memref<16x128xbf16, #tpu.memory_space<vmem>>, %arg2: memref<1x128xf32, #tpu.memory_space<vmem>>, %arg3: memref<1x128xf32, #tpu.memory_space<vmem>>, %arg4: memref<16x128xbf16, #tpu.memory_space<vmem>>) attributes {dimension_semantics = [#tpu.dimension_semantics<parallel>], iteration_bounds = array<i64: 1>, scalar_prefetch = 0 : i64, scratch_operands = 0 : i64, tpu.core_type = #tpu.core_type<tc>, window_params = [{transform_indices = @transform_0, window_bounds = array<i64: 16, 128>}, {pipeline_mode = #tpu.pipeline_mode<synchronous>, transform_indices = @transform_1, window_bounds = array<i64: 1, 128>}, {pipeline_mode = #tpu.pipeline_mode<synchronous>, transform_indices = @transform_2, window_bounds = array<i64: 1, 128>}, {transform_indices = @transform_3, window_bounds = array<i64: 16, 128>}]} {
    %c0 = arith.constant 0 : index
    %c0_0 = arith.constant 0 : index
    %0 = vector.load %arg1[%c0, %c0_0] : memref<16x128xbf16, #tpu.memory_space<vmem>>, vector<16x128xbf16>
    %1 = arith.extf %0 : vector<16x128xbf16> to vector<16x128xf32>
    %c0_1 = arith.constant 0 : index
    %c0_2 = arith.constant 0 : index
    %2 = vector.load %arg2[%c0_1, %c0_2] : memref<1x128xf32, #tpu.memory_space<vmem>>, vector<1x128xf32>
    %3 = vector.broadcast %2 : vector<1x128xf32> to vector<16x128xf32>
    %4 = arith.mulf %1, %3 : vector<16x128xf32>
    %c0_3 = arith.constant 0 : index
    %c0_4 = arith.constant 0 : index
    %5 = vector.load %arg3[%c0_3, %c0_4] : memref<1x128xf32, #tpu.memory_space<vmem>>, vector<1x128xf32>
    %6 = vector.broadcast %5 : vector<1x128xf32> to vector<16x128xf32>
    %7 = arith.addf %4, %6 : vector<16x128xf32>
    %cst = arith.constant 0.000000e+00 : f32
    %8 = vector.broadcast %cst : f32 to vector<16x128xf32>
    %9 = arith.cmpf oge, %7, %8 : vector<16x128xf32>
    %cst_5 = arith.constant 2.000000e-01 : f32
    %10 = vector.broadcast %cst_5 : f32 to vector<16x128xf32>
    %11 = arith.mulf %10, %7 : vector<16x128xf32>
    %12 = arith.select %9, %7, %11 : vector<16x128xi1>, vector<16x128xf32>
    %13 = arith.truncf %12 : vector<16x128xf32> to vector<16x128xbf16>
    %c0_6 = arith.constant 0 : index
    %c0_7 = arith.constant 0 : index
    %14 = vector.load %arg4[%c0_6, %c0_7] : memref<16x128xbf16, #tpu.memory_space<vmem>>, vector<16x128xbf16>
    tpu.vector_store %arg4[%c0_6, %c0_7], %13 {strides = array<i32>} : memref<16x128xbf16, #tpu.memory_space<vmem>>, vector<16x128xbf16>,
    return
  }
  func.func @transform_0(%arg0: i32) -> (i32, i32) {
    %c0_i32 = arith.constant 0 : i32
    %c0_i32_0 = arith.constant 0 : i32
    return %arg0, %c0_i32 : i32, i32
  }
  func.func @transform_1(%arg0: i32) -> (i32, i32) {
    %c0_i32 = arith.constant 0 : i32
    %c0_i32_0 = arith.constant 0 : i32
    %c0_i32_1 = arith.constant 0 : i32
    return %c0_i32, %c0_i32_0 : i32, i32
  }
  func.func @transform_2(%arg0: i32) -> (i32, i32) {
    %c0_i32 = arith.constant 0 : i32
    %c0_i32_0 = arith.constant 0 : i32
    %c0_i32_1 = arith.constant 0 : i32
    return %c0_i32, %c0_i32_0 : i32, i32
  }
  func.func @transform_3(%arg0: i32) -> (i32, i32) {
    %c0_i32 = arith.constant 0 : i32
    %c0_i32_0 = arith.constant 0 : i32
    return %arg0, %c0_i32 : i32, i32
  }
}

module attributes {stable_mosaic.version = 11 : i64} {
  func.func @_conv_stats_kernel(%arg0: i32, %arg1: i32, %arg2: memref<1x1x2x256xbf16, #tpu.memory_space<vmem>>, %arg3: memref<1x1x2x256xbf16, #tpu.memory_space<vmem>>, %arg4: memref<4x256x128xbf16, #tpu.memory_space<vmem>>, %arg5: memref<1x1x1x128xbf16, #tpu.memory_space<vmem>>, %arg6: memref<1x1x2x128xf32, #tpu.memory_space<vmem>>) attributes {dimension_semantics = [#tpu.dimension_semantics<parallel>, #tpu.dimension_semantics<parallel>], iteration_bounds = array<i64: 2, 1>, scalar_prefetch = 0 : i64, scratch_operands = 0 : i64, tpu.core_type = #tpu.core_type<tc>, window_params = [{transform_indices = @transform_0, window_bounds = array<i64: 1, 1, 2, 256>}, {transform_indices = @transform_1, window_bounds = array<i64: 1, 1, 2, 256>}, {pipeline_mode = #tpu.pipeline_mode<synchronous>, transform_indices = @transform_2, window_bounds = array<i64: 4, 256, 128>}, {transform_indices = @transform_3, window_bounds = array<i64: 1, 1, 1, 128>}, {transform_indices = @transform_4, window_bounds = array<i64: 1, 1, 2, 128>}]} {
    %c0 = arith.constant 0 : index
    %c0_0 = arith.constant 0 : index
    %c0_1 = arith.constant 0 : index
    %c0_2 = arith.constant 0 : index
    %0 = vector.load %arg2[%c0, %c0_0, %c0_1, %c0_2] : memref<1x1x2x256xbf16, #tpu.memory_space<vmem>>, vector<1x1x1x256xbf16>
    %1 = vector.shape_cast %0 : vector<1x1x1x256xbf16> to vector<1x256xbf16>
    %c0_3 = arith.constant 0 : index
    %c0_4 = arith.constant 0 : index
    %c0_5 = arith.constant 0 : index
    %2 = vector.load %arg4[%c0_3, %c0_4, %c0_5] : memref<4x256x128xbf16, #tpu.memory_space<vmem>>, vector<1x256x128xbf16>
    %3 = vector.shape_cast %2 : vector<1x256x128xbf16> to vector<256x128xbf16>
    %cst = arith.constant dense<0.000000e+00> : vector<1x128xf32>
    %4 = tpu.matmul %1, %3, %cst {dimension_numbers = #tpu.dot_dimension_numbers<[1], [0], [0], [1], [0, 0, 1, 1], [], []>} : vector<1x256xbf16>, vector<256x128xbf16>, vector<1x128xf32> -> vector<1x128xf32>
    %c0_6 = arith.constant 0 : index
    %c0_7 = arith.constant 0 : index
    %c1 = arith.constant 1 : index
    %c0_8 = arith.constant 0 : index
    %5 = vector.load %arg2[%c0_6, %c0_7, %c1, %c0_8] : memref<1x1x2x256xbf16, #tpu.memory_space<vmem>>, vector<1x1x1x256xbf16>
    %6 = vector.shape_cast %5 : vector<1x1x1x256xbf16> to vector<1x256xbf16>
    %c1_9 = arith.constant 1 : index
    %c0_10 = arith.constant 0 : index
    %c0_11 = arith.constant 0 : index
    %7 = vector.load %arg4[%c1_9, %c0_10, %c0_11] : memref<4x256x128xbf16, #tpu.memory_space<vmem>>, vector<1x256x128xbf16>
    %8 = vector.shape_cast %7 : vector<1x256x128xbf16> to vector<256x128xbf16>
    %cst_12 = arith.constant dense<0.000000e+00> : vector<1x128xf32>
    %9 = tpu.matmul %6, %8, %cst_12 {dimension_numbers = #tpu.dot_dimension_numbers<[1], [0], [0], [1], [0, 0, 1, 1], [], []>} : vector<1x256xbf16>, vector<256x128xbf16>, vector<1x128xf32> -> vector<1x128xf32>
    %10 = arith.addf %4, %9 : vector<1x128xf32>
    %c0_13 = arith.constant 0 : index
    %c0_14 = arith.constant 0 : index
    %c0_15 = arith.constant 0 : index
    %c0_16 = arith.constant 0 : index
    %11 = vector.load %arg3[%c0_13, %c0_14, %c0_15, %c0_16] : memref<1x1x2x256xbf16, #tpu.memory_space<vmem>>, vector<1x1x1x256xbf16>
    %12 = vector.shape_cast %11 : vector<1x1x1x256xbf16> to vector<1x256xbf16>
    %c2 = arith.constant 2 : index
    %c0_17 = arith.constant 0 : index
    %c0_18 = arith.constant 0 : index
    %13 = vector.load %arg4[%c2, %c0_17, %c0_18] : memref<4x256x128xbf16, #tpu.memory_space<vmem>>, vector<1x256x128xbf16>
    %14 = vector.shape_cast %13 : vector<1x256x128xbf16> to vector<256x128xbf16>
    %cst_19 = arith.constant dense<0.000000e+00> : vector<1x128xf32>
    %15 = tpu.matmul %12, %14, %cst_19 {dimension_numbers = #tpu.dot_dimension_numbers<[1], [0], [0], [1], [0, 0, 1, 1], [], []>} : vector<1x256xbf16>, vector<256x128xbf16>, vector<1x128xf32> -> vector<1x128xf32>
    %16 = arith.addf %10, %15 : vector<1x128xf32>
    %c0_20 = arith.constant 0 : index
    %c0_21 = arith.constant 0 : index
    %c1_22 = arith.constant 1 : index
    %c0_23 = arith.constant 0 : index
    %17 = vector.load %arg3[%c0_20, %c0_21, %c1_22, %c0_23] : memref<1x1x2x256xbf16, #tpu.memory_space<vmem>>, vector<1x1x1x256xbf16>
    %18 = vector.shape_cast %17 : vector<1x1x1x256xbf16> to vector<1x256xbf16>
    %c3 = arith.constant 3 : index
    %c0_24 = arith.constant 0 : index
    %c0_25 = arith.constant 0 : index
    %19 = vector.load %arg4[%c3, %c0_24, %c0_25] : memref<4x256x128xbf16, #tpu.memory_space<vmem>>, vector<1x256x128xbf16>
    %20 = vector.shape_cast %19 : vector<1x256x128xbf16> to vector<256x128xbf16>
    %cst_26 = arith.constant dense<0.000000e+00> : vector<1x128xf32>
    %21 = tpu.matmul %18, %20, %cst_26 {dimension_numbers = #tpu.dot_dimension_numbers<[1], [0], [0], [1], [0, 0, 1, 1], [], []>} : vector<1x256xbf16>, vector<256x128xbf16>, vector<1x128xf32> -> vector<1x128xf32>
    %22 = arith.addf %16, %21 : vector<1x128xf32>
    %23 = arith.truncf %22 : vector<1x128xf32> to vector<1x128xbf16>
    %c0_27 = arith.constant 0 : index
    %c0_28 = arith.constant 0 : index
    %c0_29 = arith.constant 0 : index
    %c0_30 = arith.constant 0 : index
    %24 = vector.load %arg5[%c0_27, %c0_28, %c0_29, %c0_30] : memref<1x1x1x128xbf16, #tpu.memory_space<vmem>>, vector<1x1x1x128xbf16>
    %25 = vector.shape_cast %24 : vector<1x1x1x128xbf16> to vector<1x128xbf16>
    %26 = vector.shape_cast %23 : vector<1x128xbf16> to vector<1x1x1x128xbf16>
    tpu.vector_store %arg5[%c0_27, %c0_28, %c0_29, %c0_30], %26 {strides = array<i32>} : memref<1x1x1x128xbf16, #tpu.memory_space<vmem>>, vector<1x1x1x128xbf16>,
    %cst_31 = arith.constant dense<0.000000e+00> : vector<128xf32>
    %27 = vector.multi_reduction <add>, %22, %cst_31 [0] : vector<1x128xf32> to vector<128xf32>
    %28 = vector.shape_cast %27 : vector<128xf32> to vector<1x128xf32>
    %cst_32 = arith.constant 1.000000e+00 : f32
    %29 = vector.broadcast %cst_32 : f32 to vector<1x128xf32>
    %30 = arith.mulf %28, %29 : vector<1x128xf32>
    %31 = arith.subf %22, %30 : vector<1x128xf32>
    %32 = arith.mulf %31, %31 : vector<1x128xf32>
    %cst_33 = arith.constant dense<0.000000e+00> : vector<128xf32>
    %33 = vector.multi_reduction <add>, %32, %cst_33 [0] : vector<1x128xf32> to vector<128xf32>
    %34 = vector.shape_cast %33 : vector<128xf32> to vector<1x128xf32>
    %c0_34 = arith.constant 0 : index
    %c0_35 = arith.constant 0 : index
    %c0_36 = arith.constant 0 : index
    %c0_37 = arith.constant 0 : index
    %35 = vector.load %arg6[%c0_34, %c0_35, %c0_36, %c0_37] : memref<1x1x2x128xf32, #tpu.memory_space<vmem>>, vector<1x1x1x128xf32>
    %36 = vector.shape_cast %35 : vector<1x1x1x128xf32> to vector<1x128xf32>
    %37 = vector.shape_cast %28 : vector<1x128xf32> to vector<1x1x1x128xf32>
    tpu.vector_store %arg6[%c0_34, %c0_35, %c0_36, %c0_37], %37 {strides = array<i32>} : memref<1x1x2x128xf32, #tpu.memory_space<vmem>>, vector<1x1x1x128xf32>,
    %c0_38 = arith.constant 0 : index
    %c0_39 = arith.constant 0 : index
    %c1_40 = arith.constant 1 : index
    %c0_41 = arith.constant 0 : index
    %38 = vector.load %arg6[%c0_38, %c0_39, %c1_40, %c0_41] : memref<1x1x2x128xf32, #tpu.memory_space<vmem>>, vector<1x1x1x128xf32>
    %39 = vector.shape_cast %38 : vector<1x1x1x128xf32> to vector<1x128xf32>
    %40 = vector.shape_cast %34 : vector<1x128xf32> to vector<1x1x1x128xf32>
    tpu.vector_store %arg6[%c0_38, %c0_39, %c1_40, %c0_41], %40 {strides = array<i32>} : memref<1x1x2x128xf32, #tpu.memory_space<vmem>>, vector<1x1x1x128xf32>,
    return
  }
  func.func @transform_0(%arg0: i32, %arg1: i32) -> (i32, i32, i32, i32) {
    %c0_i32 = arith.constant 0 : i32
    %c0_i32_0 = arith.constant 0 : i32
    %c0_i32_1 = arith.constant 0 : i32
    return %arg0, %arg1, %c0_i32, %c0_i32_0 : i32, i32, i32, i32
  }
  func.func @transform_1(%arg0: i32, %arg1: i32) -> (i32, i32, i32, i32) {
    %c1_i32 = arith.constant 1 : i32
    %0 = arith.muli %arg1, %c1_i32 : i32
    %c1_i32_0 = arith.constant 1 : i32
    %1 = arith.addi %0, %c1_i32_0 : i32
    %c0_i32 = arith.constant 0 : i32
    %c0_i32_1 = arith.constant 0 : i32
    %c0_i32_2 = arith.constant 0 : i32
    return %arg0, %1, %c0_i32, %c0_i32_1 : i32, i32, i32, i32
  }
  func.func @transform_2(%arg0: i32, %arg1: i32) -> (i32, i32, i32) {
    %c0_i32 = arith.constant 0 : i32
    %c0_i32_0 = arith.constant 0 : i32
    %c0_i32_1 = arith.constant 0 : i32
    %c0_i32_2 = arith.constant 0 : i32
    return %c0_i32, %c0_i32_0, %c0_i32_1 : i32, i32, i32
  }
  func.func @transform_3(%arg0: i32, %arg1: i32) -> (i32, i32, i32, i32) {
    %c0_i32 = arith.constant 0 : i32
    %c0_i32_0 = arith.constant 0 : i32
    %c0_i32_1 = arith.constant 0 : i32
    return %arg0, %arg1, %c0_i32, %c0_i32_0 : i32, i32, i32, i32
  }
  func.func @transform_4(%arg0: i32, %arg1: i32) -> (i32, i32, i32, i32) {
    %c0_i32 = arith.constant 0 : i32
    %c0_i32_0 = arith.constant 0 : i32
    %c0_i32_1 = arith.constant 0 : i32
    return %arg0, %arg1, %c0_i32, %c0_i32_0 : i32, i32, i32, i32
  }
}

module attributes {stable_mosaic.version = 11 : i64} {
  func.func @_bn_lrelu_kernel(%arg0: i32, %arg1: memref<2x128xbf16, #tpu.memory_space<vmem>>, %arg2: memref<1x128xf32, #tpu.memory_space<vmem>>, %arg3: memref<1x128xf32, #tpu.memory_space<vmem>>, %arg4: memref<2x128xbf16, #tpu.memory_space<vmem>>) attributes {dimension_semantics = [#tpu.dimension_semantics<parallel>], iteration_bounds = array<i64: 1>, scalar_prefetch = 0 : i64, scratch_operands = 0 : i64, tpu.core_type = #tpu.core_type<tc>, window_params = [{transform_indices = @transform_0, window_bounds = array<i64: 2, 128>}, {pipeline_mode = #tpu.pipeline_mode<synchronous>, transform_indices = @transform_1, window_bounds = array<i64: 1, 128>}, {pipeline_mode = #tpu.pipeline_mode<synchronous>, transform_indices = @transform_2, window_bounds = array<i64: 1, 128>}, {transform_indices = @transform_3, window_bounds = array<i64: 2, 128>}]} {
    %c0 = arith.constant 0 : index
    %c0_0 = arith.constant 0 : index
    %0 = vector.load %arg1[%c0, %c0_0] : memref<2x128xbf16, #tpu.memory_space<vmem>>, vector<2x128xbf16>
    %1 = arith.extf %0 : vector<2x128xbf16> to vector<2x128xf32>
    %c0_1 = arith.constant 0 : index
    %c0_2 = arith.constant 0 : index
    %2 = vector.load %arg2[%c0_1, %c0_2] : memref<1x128xf32, #tpu.memory_space<vmem>>, vector<1x128xf32>
    %3 = vector.broadcast %2 : vector<1x128xf32> to vector<2x128xf32>
    %4 = arith.mulf %1, %3 : vector<2x128xf32>
    %c0_3 = arith.constant 0 : index
    %c0_4 = arith.constant 0 : index
    %5 = vector.load %arg3[%c0_3, %c0_4] : memref<1x128xf32, #tpu.memory_space<vmem>>, vector<1x128xf32>
    %6 = vector.broadcast %5 : vector<1x128xf32> to vector<2x128xf32>
    %7 = arith.addf %4, %6 : vector<2x128xf32>
    %cst = arith.constant 0.000000e+00 : f32
    %8 = vector.broadcast %cst : f32 to vector<2x128xf32>
    %9 = arith.cmpf oge, %7, %8 : vector<2x128xf32>
    %cst_5 = arith.constant 2.000000e-01 : f32
    %10 = vector.broadcast %cst_5 : f32 to vector<2x128xf32>
    %11 = arith.mulf %10, %7 : vector<2x128xf32>
    %12 = arith.select %9, %7, %11 : vector<2x128xi1>, vector<2x128xf32>
    %13 = arith.truncf %12 : vector<2x128xf32> to vector<2x128xbf16>
    %c0_6 = arith.constant 0 : index
    %c0_7 = arith.constant 0 : index
    %14 = vector.load %arg4[%c0_6, %c0_7] : memref<2x128xbf16, #tpu.memory_space<vmem>>, vector<2x128xbf16>
    tpu.vector_store %arg4[%c0_6, %c0_7], %13 {strides = array<i32>} : memref<2x128xbf16, #tpu.memory_space<vmem>>, vector<2x128xbf16>,
    return
  }
  func.func @transform_0(%arg0: i32) -> (i32, i32) {
    %c0_i32 = arith.constant 0 : i32
    %c0_i32_0 = arith.constant 0 : i32
    return %arg0, %c0_i32 : i32, i32
  }
  func.func @transform_1(%arg0: i32) -> (i32, i32) {
    %c0_i32 = arith.constant 0 : i32
    %c0_i32_0 = arith.constant 0 : i32
    %c0_i32_1 = arith.constant 0 : i32
    return %c0_i32, %c0_i32_0 : i32, i32
  }
  func.func @transform_2(%arg0: i32) -> (i32, i32) {
    %c0_i32 = arith.constant 0 : i32
    %c0_i32_0 = arith.constant 0 : i32
    %c0_i32_1 = arith.constant 0 : i32
    return %c0_i32, %c0_i32_0 : i32, i32
  }
  func.func @transform_3(%arg0: i32) -> (i32, i32) {
    %c0_i32 = arith.constant 0 : i32
    %c0_i32_0 = arith.constant 0 : i32
    return %arg0, %c0_i32 : i32, i32
  }
}

module attributes {stable_mosaic.version = 11 : i64} {
  func.func @_linear_sigmoid_kernel(%arg0: i32, %arg1: memref<2x32xbf16, #tpu.memory_space<vmem>>, %arg2: memref<1x32xbf16, #tpu.memory_space<vmem>>, %arg3: memref<1x1xf32, #tpu.memory_space<vmem>>, %arg4: memref<2x1xf32, #tpu.memory_space<vmem>>) attributes {dimension_semantics = [#tpu.dimension_semantics<arbitrary>], iteration_bounds = array<i64: 1>, scalar_prefetch = 0 : i64, scratch_operands = 0 : i64, tpu.core_type = #tpu.core_type<tc>, window_params = [{pipeline_mode = #tpu.pipeline_mode<synchronous>, transform_indices = @transform_0, window_bounds = array<i64: 2, 32>}, {pipeline_mode = #tpu.pipeline_mode<synchronous>, transform_indices = @transform_1, window_bounds = array<i64: 1, 32>}, {pipeline_mode = #tpu.pipeline_mode<synchronous>, transform_indices = @transform_2, window_bounds = array<i64: 1, 1>}, {pipeline_mode = #tpu.pipeline_mode<synchronous>, transform_indices = @transform_3, window_bounds = array<i64: 2, 1>}]} {
    %c0 = arith.constant 0 : index
    %c0_0 = arith.constant 0 : index
    %0 = vector.load %arg1[%c0, %c0_0] : memref<2x32xbf16, #tpu.memory_space<vmem>>, vector<2x32xbf16>
    %1 = arith.extf %0 : vector<2x32xbf16> to vector<2x32xf32>
    %c0_1 = arith.constant 0 : index
    %c0_2 = arith.constant 0 : index
    %2 = vector.load %arg2[%c0_1, %c0_2] : memref<1x32xbf16, #tpu.memory_space<vmem>>, vector<1x32xbf16>
    %3 = arith.extf %2 : vector<1x32xbf16> to vector<1x32xf32>
    %4 = vector.broadcast %3 : vector<1x32xf32> to vector<2x32xf32>
    %5 = arith.mulf %1, %4 : vector<2x32xf32>
    %cst = arith.constant dense<0.000000e+00> : vector<2xf32>
    %6 = vector.multi_reduction <add>, %5, %cst [1] : vector<2x32xf32> to vector<2xf32>
    %7 = vector.shape_cast %6 : vector<2xf32> to vector<2x1xf32>
    %c0_3 = arith.constant 0 : index
    %c0_4 = arith.constant 0 : index
    %8 = vector.load %arg3[%c0_3, %c0_4] : memref<1x1xf32, #tpu.memory_space<vmem>>, vector<1x1xf32>
    %9 = vector.broadcast %8 : vector<1x1xf32> to vector<2x1xf32>
    %10 = arith.addf %7, %9 : vector<2x1xf32>
    %cst_5 = arith.constant 0.000000e+00 : f32
    %11 = vector.broadcast %cst_5 : f32 to vector<2x1xf32>
    %12 = arith.subf %11, %10 : vector<2x1xf32>
    %13 = math.exp %12 : vector<2x1xf32>
    %cst_6 = arith.constant 1.000000e+00 : f32
    %14 = vector.broadcast %cst_6 : f32 to vector<2x1xf32>
    %15 = arith.addf %14, %13 : vector<2x1xf32>
    %cst_7 = arith.constant 1.000000e+00 : f32
    %16 = vector.broadcast %cst_7 : f32 to vector<2x1xf32>
    %17 = arith.divf %16, %15 : vector<2x1xf32>
    %c0_8 = arith.constant 0 : index
    %c0_9 = arith.constant 0 : index
    %18 = vector.load %arg4[%c0_8, %c0_9] : memref<2x1xf32, #tpu.memory_space<vmem>>, vector<2x1xf32>
    tpu.vector_store %arg4[%c0_8, %c0_9], %17 {strides = array<i32>} : memref<2x1xf32, #tpu.memory_space<vmem>>, vector<2x1xf32>,
    return
  }
  func.func @transform_0(%arg0: i32) -> (i32, i32) {
    %c0_i32 = arith.constant 0 : i32
    %c0_i32_0 = arith.constant 0 : i32
    %c0_i32_1 = arith.constant 0 : i32
    return %c0_i32, %c0_i32_0 : i32, i32
  }
  func.func @transform_1(%arg0: i32) -> (i32, i32) {
    %c0_i32 = arith.constant 0 : i32
    %c0_i32_0 = arith.constant 0 : i32
    %c0_i32_1 = arith.constant 0 : i32
    return %c0_i32, %c0_i32_0 : i32, i32
  }
  func.func @transform_2(%arg0: i32) -> (i32, i32) {
    %c0_i32 = arith.constant 0 : i32
    %c0_i32_0 = arith.constant 0 : i32
    %c0_i32_1 = arith.constant 0 : i32
    return %c0_i32, %c0_i32_0 : i32, i32
  }
  func.func @transform_3(%arg0: i32) -> (i32, i32) {
    %c0_i32 = arith.constant 0 : i32
    %c0_i32_0 = arith.constant 0 : i32
    %c0_i32_1 = arith.constant 0 : i32
    return %c0_i32, %c0_i32_0 : i32, i32
  }
}

</mosaic_0001>

<bundles_post_ra>
// kernel: discriminator_forward.10
= control target key start
LH: loop header
LB: loop body
LE: loop exit
PB: predicated region body
PF: predicated region fallthrough
CT: control target
= control target key end

     0   :  { %s3211_s0 = inlined_call_operand.vmem [shape: bf16[1024,128], index: 0, kind: input, shape index: {}]   ;;  %s3212_s1 = inlined_call_operand.vmem [shape: f32[1,128], index: 1, kind: input, shape index: {}]   ;;  %s3213_s2 = inlined_call_operand.vmem [shape: f32[1,128], index: 2, kind: input, shape index: {}]   ;;  %s3214_s3 = inlined_call_operand.vmem [shape: bf16[1024,128], index: 3, kind: output, shape index: {}]  }
   0x1   :  { %v1827_v0 = vld [vmem:[%s3211_s0] sm:$0xff]   ;;  %v2402_v4 = vld [vmem:[%s3211_s0 + $0x8] sm:$0xff]   ;;  %v2403_v5 = vld [vmem:[%s3211_s0 + $0x10] sm:$0xff]  }
   0x2   :  { %v2556_v1 = vld [vmem:[%s3212_s1] ss:$0 sm:$0xff]  ;;  %v1828_v2 = vunpack.c.l.bf16 %v1827_v0  ;;  %v1829_v3 = vunpack.c.h.bf16 %v1827_v0  ;;  %v2404_v6 = vld [vmem:[%s3211_s0 + $0x18] sm:$0xff]   ;;  %v1832_v8 = vunpack.c.l.bf16 %v2402_v4  ;;  %v1833_v9 = vunpack.c.h.bf16 %v2402_v4  ;;  %v2406_v35 = vld [vmem:[%s3211_s0 + $0x28] sm:$0xff]  }
   0x3   :  { %v2570_v7 = vld [vmem:[%s3213_s2] ss:$0 sm:$0xff]  ;;  %v1836_v10 = vunpack.c.l.bf16 %v2403_v5  ;;  %v1837_v11 = vunpack.c.h.bf16 %v2403_v5  ;;  %v1840_v14 = vunpack.c.l.bf16 %v2404_v6  ;;  %v1841_v15 = vunpack.c.h.bf16 %v2404_v6  ;;  %v2407_v48 = vld [vmem:[%s3211_s0 + $0x30] sm:$0xff]   ;;  %v2408_v4 = vld [vmem:[%s3211_s0 + $0x38] sm:$0xff]  }
   0x4   :  { %v277_v12 = vmul.f32 %v1828_v2, %v2556_v1  ;;  %v278_v13 = vmul.f32 %v1829_v3, %v2556_v1  ;;  %v279_v16 = vmul.f32 %v1832_v8, %v2556_v1  ;;  %v280_v17 = vmul.f32 %v1833_v9, %v2556_v1  ;;  %v2405_v34 = vld [vmem:[%s3211_s0 + $0x20] sm:$0xff]  }
   0x5   :  { %v281_v18 = vmul.f32 %v1836_v10, %v2556_v1  ;;  %v282_v19 = vmul.f32 %v1837_v11, %v2556_v1  ;;  %v283_v22 = vmul.f32 %v1840_v14, %v2556_v1  ;;  %v284_v23 = vmul.f32 %v1841_v15, %v2556_v1  ;;  %v2409_v15 = vld [vmem:[%s3211_s0 + $0x40] sm:$0xff]  }
   0x6   :  { %v412_v20 = vadd.f32 %v2570_v7, %v277_v12  ;;  %v413_v21 = vadd.f32 %v2570_v7, %v278_v13  ;;  %v414_v24 = vadd.f32 %v2570_v7, %v279_v16  ;;  %v415_v25 = vadd.f32 %v2570_v7, %v280_v17 }
   0x7   :  { %v416_v26 = vadd.f32 %v2570_v7, %v281_v18  ;;  %v417_v27 = vadd.f32 %v2570_v7, %v282_v19  ;;  %v418_v42 = vadd.f32 %v2570_v7, %v283_v22  ;;  %v419_v43 = vadd.f32 %v2570_v7, %v284_v23 }
   0x8   :  { %vm540_vm0 = vcmp.ge.f32.partialorder %v412_v20, 0.0  ;;  %vm541_vm1 = vcmp.ge.f32.partialorder %v413_v21, 0.0  ;;  %v668_v28 = vmul.f32 0.2, %v412_v20  ;;  %v669_v29 = vmul.f32 0.2, %v413_v21 }
   0x9   :  { %vm542_vm2 = vcmp.ge.f32.partialorder %v414_v24, 0.0  ;;  %vm543_vm3 = vcmp.ge.f32.partialorder %v415_v25, 0.0  ;;  %v670_v30 = vmul.f32 0.2, %v414_v24  ;;  %v671_v31 = vmul.f32 0.2, %v415_v25 }
   0xa   :  { %v796_v32 = vsel %vm540_vm0, %v412_v20, %v668_v28  ;;  %v797_v33 = vsel %vm541_vm1, %v413_v21, %v669_v29  ;;  %vm544_vm4 = vcmp.ge.f32.partialorder %v416_v26, 0.0  ;;  %vm545_vm5 = vcmp.ge.f32.partialorder %v417_v27, 0.0 }
   0xb   :  { %v2085_v36 = vpack.c.bf16 %v797_v33, %v796_v32  ;;  %v798_v37 = vsel %vm542_vm2, %v414_v24, %v670_v30  ;;  %v799_v38 = vsel %vm543_vm3, %v415_v25, %v671_v31  ;;  %v672_v39 = vmul.f32 0.2, %v416_v26 }
   0xc   :  { %v2090_v40 = vpack.c.bf16 %v799_v38, %v798_v37  ;;  %v673_v41 = vmul.f32 0.2, %v417_v27  ;;  %v1844_v45 = vunpack.c.l.bf16 %v2405_v34  ;;  %v1845_v46 = vunpack.c.h.bf16 %v2405_v34 }
   0xd   :  { %2086 = vst [vmem:[%s3214_s3] sm:$0xff] %v2085_v36   ;;  %v800_v44 = vsel %vm544_vm4, %v416_v26, %v672_v39  ;;  %v1848_v47 = vunpack.c.l.bf16 %v2406_v35  ;;  %vm546_vm6 = vcmp.ge.f32.partialorder %v418_v42, 0.0  ;;  %vm547_vm7 = vcmp.ge.f32.partialorder %v419_v43, 0.0  ;;  %v2410_v26 = vld [vmem:[%s3211_s0 + $0x48] sm:$0xff]  }
   0xe   :  { %2465 = vst [vmem:[%s3214_s3 + $0x8] sm:$0xff] %v2090_v40   ;;  %v801_v49 = vsel %vm545_vm5, %v417_v27, %v673_v41  ;;  %v674_v50 = vmul.f32 0.2, %v418_v42  ;;  %v675_v52 = vmul.f32 0.2, %v419_v43  ;;  %v285_v53 = vmul.f32 %v1844_v45, %v2556_v1  ;;  %v2411_v27 = vld [vmem:[%s3211_s0 + $0x50] sm:$0xff]  }
   0xf   :  { %v2095_v51 = vpack.c.bf16 %v801_v49, %v800_v44  ;;  %v286_v54 = vmul.f32 %v1845_v46, %v2556_v1  ;;  %v1849_v56 = vunpack.c.h.bf16 %v2406_v35  ;;  %v287_v57 = vmul.f32 %v1848_v47, %v2556_v1 }
  0x10   :  { %v802_v55 = vsel %vm546_vm6, %v418_v42, %v674_v50  ;;  %v1852_v58 = vunpack.c.l.bf16 %v2407_v48  ;;  %v803_v59 = vsel %vm547_vm7, %v419_v43, %v675_v52  ;;  %v420_v60 = vadd.f32 %v2570_v7, %v285_v53 }
  0x11   :  { %2466 = vst [vmem:[%s3214_s3 + $0x10] sm:$0xff] %v2095_v51   ;;  %v421_v61 = vadd.f32 %v2570_v7, %v286_v54  ;;  %v1853_v62 = vunpack.c.h.bf16 %v2407_v48  ;;  %v2100_v63 = vpack.c.bf16 %v803_v59, %v802_v55  ;;  %v288_v0 = vmul.f32 %v1849_v56, %v2556_v1  ;;  %v2412_v55 = vld [vmem:[%s3211_s0 + $0x58] sm:$0xff]  }
  0x12   :  { %v422_v2 = vadd.f32 %v2570_v7, %v287_v57  ;;  %v289_v3 = vmul.f32 %v1852_v58, %v2556_v1  ;;  %vm548_vm8 = vcmp.ge.f32.partialorder %v420_v60, 0.0  ;;  %v676_v5 = vmul.f32 0.2, %v420_v60 }
  0x13   :  { %vm549_vm9 = vcmp.ge.f32.partialorder %v421_v61, 0.0  ;;  %v677_v6 = vmul.f32 0.2, %v421_v61  ;;  %2467 = vst [vmem:[%s3214_s3 + $0x18] sm:$0xff] %v2100_v63   ;;  %v423_v8 = vadd.f32 %v2570_v7, %v288_v0  ;;  %v290_v10 = vmul.f32 %v1853_v62, %v2556_v1 }
  0x14   :  { %vm550_vm10 = vcmp.ge.f32.partialorder %v422_v2, 0.0  ;;  %v678_v9 = vmul.f32 0.2, %v422_v2  ;;  %v804_v11 = vsel %vm548_vm8, %v420_v60, %v676_v5  ;;  %v424_v13 = vadd.f32 %v2570_v7, %v289_v3  ;;  %v2413_v60 = vld [vmem:[%s3211_s0 + $0x60] sm:$0xff]  }
  0x15   :  { %v805_v12 = vsel %vm549_vm9, %v421_v61, %v677_v6  ;;  %v1856_v14 = vunpack.c.l.bf16 %v2408_v4  ;;  %vm551_vm11 = vcmp.ge.f32.partialorder %v423_v8, 0.0  ;;  %v679_v17 = vmul.f32 0.2, %v423_v8 }
  0x16   :  { %v2105_v16 = vpack.c.bf16 %v805_v12, %v804_v11  ;;  %v806_v18 = vsel %vm550_vm10, %v422_v2, %v678_v9  ;;  %v425_v19 = vadd.f32 %v2570_v7, %v290_v10  ;;  %vm552_vm12 = vcmp.ge.f32.partialorder %v424_v13, 0.0  ;;  %v2414_v9 = vld [vmem:[%s3211_s0 + $0x68] sm:$0xff]  }
  0x17   :  { %v680_v20 = vmul.f32 0.2, %v424_v13  ;;  %v1857_v21 = vunpack.c.h.bf16 %v2408_v4  ;;  %v807_v22 = vsel %vm551_vm11, %v423_v8, %v679_v17  ;;  %v291_v23 = vmul.f32 %v1856_v14, %v2556_v1 }
  0x18   :  { %2468 = vst [vmem:[%s3214_s3 + $0x20] sm:$0xff] %v2105_v16   ;;  %v1860_v24 = vunpack.c.l.bf16 %v2409_v15  ;;  %v1861_v25 = vunpack.c.h.bf16 %v2409_v15  ;;  %v2110_v28 = vpack.c.bf16 %v807_v22, %v806_v18  ;;  %vm553_vm13 = vcmp.ge.f32.partialorder %v425_v19, 0.0 }
  0x19   :  { %v681_v29 = vmul.f32 0.2, %v425_v19  ;;  %v808_v30 = vsel %vm552_vm12, %v424_v13, %v680_v20  ;;  %v292_v31 = vmul.f32 %v1857_v21, %v2556_v1  ;;  %v426_v32 = vadd.f32 %v2570_v7, %v291_v23 }
  0x1a   :  { %v293_v33 = vmul.f32 %v1860_v24, %v2556_v1  ;;  %v294_v34 = vmul.f32 %v1861_v25, %v2556_v1  ;;  %2469 = vst [vmem:[%s3214_s3 + $0x28] sm:$0xff] %v2110_v28   ;;  %v1864_v36 = vunpack.c.l.bf16 %v2410_v26  ;;  %v1865_v37 = vunpack.c.h.bf16 %v2410_v26  ;;  %v2415_v28 = vld [vmem:[%s3211_s0 + $0x70] sm:$0xff]  }
  0x1b   :  { %v809_v35 = vsel %vm553_vm13, %v425_v19, %v681_v29  ;;  %v1868_v38 = vunpack.c.l.bf16 %v2411_v27  ;;  %v427_v40 = vadd.f32 %v2570_v7, %v292_v31  ;;  %vm554_vm14 = vcmp.ge.f32.partialorder %v426_v32, 0.0 }
  0x1c   :  { %v2115_v39 = vpack.c.bf16 %v809_v35, %v808_v30  ;;  %v682_v41 = vmul.f32 0.2, %v426_v32  ;;  %v428_v42 = vadd.f32 %v2570_v7, %v293_v33  ;;  %v429_v43 = vadd.f32 %v2570_v7, %v294_v34 }
  0x1d   :  { %v295_v44 = vmul.f32 %v1864_v36, %v2556_v1  ;;  %v296_v45 = vmul.f32 %v1865_v37, %v2556_v1  ;;  %vm555_vm15 = vcmp.ge.f32.partialorder %v427_v40, 0.0  ;;  %v683_v46 = vmul.f32 0.2, %v427_v40  ;;  %v2416_v37 = vld [vmem:[%s3211_s0 + $0x78] sm:$0xff]  }
  0x1e   :  { %2470 = vst [vmem:[%s3214_s3 + $0x30] sm:$0xff] %v2115_v39   ;;  %v810_v47 = vsel %vm554_vm14, %v426_v32, %v682_v41  ;;  %v1869_v48 = vunpack.c.h.bf16 %v2411_v27  ;;  %vm556_vm0 = vcmp.ge.f32.partialorder %v428_v42, 0.0  ;;  %vm557_vm1 = vcmp.ge.f32.partialorder %v429_v43, 0.0 }
  0x1f   :  { %v684_v49 = vmul.f32 0.2, %v428_v42  ;;  %v685_v50 = vmul.f32 0.2, %v429_v43  ;;  %v811_v51 = vsel %vm555_vm15, %v427_v40, %v683_v46  ;;  %v430_v52 = vadd.f32 %v2570_v7, %v295_v44 }
  0x20   :  { %v431_v53 = vadd.f32 %v2570_v7, %v296_v45  ;;  %v297_v54 = vmul.f32 %v1868_v38, %v2556_v1  ;;  %v2120_v56 = vpack.c.bf16 %v811_v51, %v810_v47  ;;  %v298_v59 = vmul.f32 %v1869_v48, %v2556_v1 }
  0x21   :  { %v812_v57 = vsel %vm556_vm0, %v428_v42, %v684_v49  ;;  %v813_v58 = vsel %vm557_vm1, %v429_v43, %v685_v50  ;;  %vm558_vm2 = vcmp.ge.f32.partialorder %v430_v52, 0.0  ;;  %v686_v62 = vmul.f32 0.2, %v430_v52  ;;  %v2417_v42 = vld [vmem:[%s3211_s0 + $0x80] sm:$0xff]   ;;  %v2418_v50 = vld [vmem:[%s3211_s0 + $0x88] sm:$0xff]  }
  0x22   :  { %v2125_v61 = vpack.c.bf16 %v813_v58, %v812_v57  ;;  %vm559_vm3 = vcmp.ge.f32.partialorder %v431_v53, 0.0  ;;  %2471 = vst [vmem:[%s3214_s3 + $0x38] sm:$0xff] %v2120_v56   ;;  %v687_v63 = vmul.f32 0.2, %v431_v53  ;;  %v432_v0 = vadd.f32 %v2570_v7, %v297_v54 }
  0x23   :  { %v433_v2 = vadd.f32 %v2570_v7, %v298_v59  ;;  %v1872_v3 = vunpack.c.l.bf16 %v2412_v55  ;;  %v814_v4 = vsel %vm558_vm2, %v430_v52, %v686_v62  ;;  %v1873_v5 = vunpack.c.h.bf16 %v2412_v55 }
  0x24   :  { %2472 = vst [vmem:[%s3214_s3 + $0x40] sm:$0xff] %v2125_v61   ;;  %v1876_v6 = vunpack.c.l.bf16 %v2413_v60  ;;  %v1877_v8 = vunpack.c.h.bf16 %v2413_v60  ;;  %v815_v10 = vsel %vm559_vm3, %v431_v53, %v687_v63  ;;  %vm560_vm4 = vcmp.ge.f32.partialorder %v432_v0, 0.0 }
  0x25   :  { %vm561_vm5 = vcmp.ge.f32.partialorder %v433_v2, 0.0  ;;  %v688_v11 = vmul.f32 0.2, %v432_v0  ;;  %v2130_v12 = vpack.c.bf16 %v815_v10, %v814_v4  ;;  %v689_v13 = vmul.f32 0.2, %v433_v2 }
  0x26   :  { %v299_v14 = vmul.f32 %v1872_v3, %v2556_v1  ;;  %v300_v15 = vmul.f32 %v1873_v5, %v2556_v1  ;;  %v301_v17 = vmul.f32 %v1876_v6, %v2556_v1  ;;  %v302_v18 = vmul.f32 %v1877_v8, %v2556_v1 }
  0x27   :  { %v816_v16 = vsel %vm560_vm4, %v432_v0, %v688_v11  ;;  %v1880_v19 = vunpack.c.l.bf16 %v2414_v9  ;;  %2473 = vst [vmem:[%s3214_s3 + $0x48] sm:$0xff] %v2130_v12   ;;  %v817_v20 = vsel %vm561_vm5, %v433_v2, %v689_v13  ;;  %v1881_v23 = vunpack.c.h.bf16 %v2414_v9 }
  0x28   :  { %v434_v21 = vadd.f32 %v2570_v7, %v299_v14  ;;  %v435_v22 = vadd.f32 %v2570_v7, %v300_v15  ;;  %v2135_v24 = vpack.c.bf16 %v817_v20, %v816_v16  ;;  %v436_v25 = vadd.f32 %v2570_v7, %v301_v17  ;;  %v2419_v15 = vld [vmem:[%s3211_s0 + $0x90] sm:$0xff]   ;;  %v2420_v20 = vld [vmem:[%s3211_s0 + $0x98] sm:$0xff]  }
  0x29   :  { %v437_v26 = vadd.f32 %v2570_v7, %v302_v18  ;;  %v303_v27 = vmul.f32 %v1880_v19, %v2556_v1  ;;  %v304_v35 = vmul.f32 %v1881_v23, %v2556_v1  ;;  %v1884_v41 = vunpack.c.l.bf16 %v2415_v28 }
  0x2a   :  { %vm562_vm6 = vcmp.ge.f32.partialorder %v434_v21, 0.0  ;;  %vm563_vm7 = vcmp.ge.f32.partialorder %v435_v22, 0.0  ;;  %v690_v29 = vmul.f32 0.2, %v434_v21  ;;  %v691_v30 = vmul.f32 0.2, %v435_v22 }
  0x2b   :  { %2474 = vst [vmem:[%s3214_s3 + $0x50] sm:$0xff] %v2135_v24   ;;  %vm564_vm8 = vcmp.ge.f32.partialorder %v436_v25, 0.0  ;;  %vm565_vm9 = vcmp.ge.f32.partialorder %v437_v26, 0.0  ;;  %v692_v31 = vmul.f32 0.2, %v436_v25  ;;  %v438_v36 = vadd.f32 %v2570_v7, %v303_v27 }
  0x2c   :  { %v693_v32 = vmul.f32 0.2, %v437_v26  ;;  %v818_v33 = vsel %vm562_vm6, %v434_v21, %v690_v29  ;;  %v819_v34 = vsel %vm563_vm7, %v435_v22, %v691_v30  ;;  %v439_v44 = vadd.f32 %v2570_v7, %v304_v35  ;;  %v2421_v21 = vld [vmem:[%s3211_s0 + $0xa0] sm:$0xff]  }
  0x2d   :  { %v2140_v38 = vpack.c.bf16 %v819_v34, %v818_v33  ;;  %v820_v39 = vsel %vm564_vm8, %v436_v25, %v692_v31  ;;  %vm566_vm10 = vcmp.ge.f32.partialorder %v438_v36, 0.0  ;;  %v694_v45 = vmul.f32 0.2, %v438_v36 }
  0x2e   :  { %v821_v40 = vsel %vm565_vm9, %v437_v26, %v693_v32  ;;  %v1885_v46 = vunpack.c.h.bf16 %v2415_v28  ;;  %v305_v47 = vmul.f32 %v1884_v41, %v2556_v1  ;;  %v1888_v48 = vunpack.c.l.bf16 %v2416_v37 }
  0x2f   :  { %v2145_v43 = vpack.c.bf16 %v821_v40, %v820_v39  ;;  %2475 = vst [vmem:[%s3214_s3 + $0x58] sm:$0xff] %v2140_v38   ;;  %v1889_v49 = vunpack.c.h.bf16 %v2416_v37  ;;  %vm567_vm11 = vcmp.ge.f32.partialorder %v439_v44, 0.0  ;;  %v695_v51 = vmul.f32 0.2, %v439_v44  ;;  %v2422_v40 = vld [vmem:[%s3211_s0 + $0xa8] sm:$0xff]  }
  0x30   :  { %v822_v52 = vsel %vm566_vm10, %v438_v36, %v694_v45  ;;  %v1892_v53 = vunpack.c.l.bf16 %v2417_v42  ;;  %v306_v54 = vmul.f32 %v1885_v46, %v2556_v1  ;;  %v440_v55 = vadd.f32 %v2570_v7, %v305_v47 }
  0x31   :  { %2476 = vst [vmem:[%s3214_s3 + $0x60] sm:$0xff] %v2145_v43   ;;  %v307_v56 = vmul.f32 %v1888_v48, %v2556_v1  ;;  %v308_v57 = vmul.f32 %v1889_v49, %v2556_v1  ;;  %v823_v58 = vsel %vm567_vm11, %v439_v44, %v695_v51  ;;  %v1893_v59 = vunpack.c.h.bf16 %v2417_v42 }
  0x32   :  { %v309_v60 = vmul.f32 %v1892_v53, %v2556_v1  ;;  %v1896_v61 = vunpack.c.l.bf16 %v2418_v50  ;;  %v2150_v62 = vpack.c.bf16 %v823_v58, %v822_v52  ;;  %v441_v63 = vadd.f32 %v2570_v7, %v306_v54 }
  0x33   :  { %vm568_vm12 = vcmp.ge.f32.partialorder %v440_v55, 0.0  ;;  %v696_v0 = vmul.f32 0.2, %v440_v55  ;;  %v442_v2 = vadd.f32 %v2570_v7, %v307_v56  ;;  %v443_v3 = vadd.f32 %v2570_v7, %v308_v57 }
  0x34   :  { %v310_v4 = vmul.f32 %v1893_v59, %v2556_v1  ;;  %v444_v5 = vadd.f32 %v2570_v7, %v309_v60  ;;  %2477 = vst [vmem:[%s3214_s3 + $0x68] sm:$0xff] %v2150_v62   ;;  %vm569_vm13 = vcmp.ge.f32.partialorder %v441_v63, 0.0  ;;  %v697_v6 = vmul.f32 0.2, %v441_v63 }
  0x35   :  { %v824_v8 = vsel %vm568_vm12, %v440_v55, %v696_v0  ;;  %v1897_v9 = vunpack.c.h.bf16 %v2418_v50  ;;  %vm570_vm14 = vcmp.ge.f32.partialorder %v442_v2, 0.0  ;;  %vm571_vm15 = vcmp.ge.f32.partialorder %v443_v3, 0.0  ;;  %v2423_v0 = vld [vmem:[%s3211_s0 + $0xb0] sm:$0xff]  }
  0x36   :  { %v698_v10 = vmul.f32 0.2, %v442_v2  ;;  %v699_v11 = vmul.f32 0.2, %v443_v3  ;;  %v825_v12 = vsel %vm569_vm13, %v441_v63, %v697_v6  ;;  %v445_v13 = vadd.f32 %v2570_v7, %v310_v4 }
  0x37   :  { %vm572_vm0 = vcmp.ge.f32.partialorder %v444_v5, 0.0  ;;  %v700_v14 = vmul.f32 0.2, %v444_v5  ;;  %v2155_v16 = vpack.c.bf16 %v825_v12, %v824_v8  ;;  %v311_v19 = vmul.f32 %v1896_v61, %v2556_v1 }
  0x38   :  { %v826_v17 = vsel %vm570_vm14, %v442_v2, %v698_v10  ;;  %v827_v18 = vsel %vm571_vm15, %v443_v3, %v699_v11  ;;  %vm573_vm1 = vcmp.ge.f32.partialorder %v445_v13, 0.0  ;;  %v701_v23 = vmul.f32 0.2, %v445_v13  ;;  %v2424_v2 = vld [vmem:[%s3211_s0 + $0xb8] sm:$0xff]  }
  0x39   :  { %v2160_v22 = vpack.c.bf16 %v827_v18, %v826_v17  ;;  %v828_v24 = vsel %vm572_vm0, %v444_v5, %v700_v14  ;;  %2478 = vst [vmem:[%s3214_s3 + $0x70] sm:$0xff] %v2155_v16   ;;  %v312_v25 = vmul.f32 %v1897_v9, %v2556_v1  ;;  %v446_v26 = vadd.f32 %v2570_v7, %v311_v19  ;;  %v2425_v18 = vld [vmem:[%s3211_s0 + $0xc0] sm:$0xff]  }
  0x3a   :  { %v1900_v27 = vunpack.c.l.bf16 %v2419_v15  ;;  %v1901_v28 = vunpack.c.h.bf16 %v2419_v15  ;;  %v829_v29 = vsel %vm573_vm1, %v445_v13, %v701_v23  ;;  %v1904_v30 = vunpack.c.l.bf16 %v2420_v20 }
  0x3b   :  { %2479 = vst [vmem:[%s3214_s3 + $0x78] sm:$0xff] %v2160_v22   ;;  %v1905_v31 = vunpack.c.h.bf16 %v2420_v20  ;;  %v1908_v32 = vunpack.c.l.bf16 %v2421_v21  ;;  %v2165_v33 = vpack.c.bf16 %v829_v29, %v828_v24  ;;  %v447_v34 = vadd.f32 %v2570_v7, %v312_v25 }
  0x3c   :  { %vm574_vm2 = vcmp.ge.f32.partialorder %v446_v26, 0.0  ;;  %v702_v35 = vmul.f32 0.2, %v446_v26  ;;  %v313_v36 = vmul.f32 %v1900_v27, %v2556_v1  ;;  %v314_v37 = vmul.f32 %v1901_v28, %v2556_v1 }
  0x3d   :  { %v315_v38 = vmul.f32 %v1904_v30, %v2556_v1  ;;  %v316_v39 = vmul.f32 %v1905_v31, %v2556_v1  ;;  %2480 = vst [vmem:[%s3214_s3 + $0x80] sm:$0xff] %v2165_v33   ;;  %vm575_vm3 = vcmp.ge.f32.partialorder %v447_v34, 0.0  ;;  %v703_v41 = vmul.f32 0.2, %v447_v34 }
  0x3e   :  { %v830_v42 = vsel %vm574_vm2, %v446_v26, %v702_v35  ;;  %v1909_v43 = vunpack.c.h.bf16 %v2421_v21  ;;  %v448_v44 = vadd.f32 %v2570_v7, %v313_v36  ;;  %v449_v45 = vadd.f32 %v2570_v7, %v314_v37  ;;  %v2426_v36 = vld [vmem:[%s3211_s0 + $0xc8] sm:$0xff]  }
  0x3f   :  { %v450_v46 = vadd.f32 %v2570_v7, %v315_v38  ;;  %v451_v47 = vadd.f32 %v2570_v7, %v316_v39  ;;  %v831_v48 = vsel %vm575_vm3, %v447_v34, %v703_v41  ;;  %v317_v49 = vmul.f32 %v1908_v32, %v2556_v1 }
  0x40   :  { %v318_v50 = vmul.f32 %v1909_v43, %v2556_v1  ;;  %v1912_v51 = vunpack.c.l.bf16 %v2422_v40  ;;  %v2170_v52 = vpack.c.bf16 %v831_v48, %v830_v42  ;;  %vm576_vm4 = vcmp.ge.f32.partialorder %v448_v44, 0.0  ;;  %v2427_v42 = vld [vmem:[%s3211_s0 + $0xd0] sm:$0xff]  }
  0x41   :  { %vm577_vm5 = vcmp.ge.f32.partialorder %v449_v45, 0.0  ;;  %v704_v53 = vmul.f32 0.2, %v448_v44  ;;  %v705_v54 = vmul.f32 0.2, %v449_v45  ;;  %vm578_vm6 = vcmp.ge.f32.partialorder %v450_v46, 0.0 }
  0x42   :  { %vm579_vm7 = vcmp.ge.f32.partialorder %v451_v47, 0.0  ;;  %v706_v55 = vmul.f32 0.2, %v450_v46  ;;  %2481 = vst [vmem:[%s3214_s3 + $0x88] sm:$0xff] %v2170_v52   ;;  %v707_v57 = vmul.f32 0.2, %v451_v47  ;;  %v452_v58 = vadd.f32 %v2570_v7, %v317_v49 }
  0x43   :  { %v832_v56 = vsel %vm576_vm4, %v448_v44, %v704_v53  ;;  %v453_v59 = vadd.f32 %v2570_v7, %v318_v50  ;;  %v833_v60 = vsel %vm577_vm5, %v449_v45, %v705_v54  ;;  %v1913_v62 = vunpack.c.h.bf16 %v2422_v40 }
  0x44   :  { %v834_v61 = vsel %vm578_vm6, %v450_v46, %v706_v55  ;;  %v319_v63 = vmul.f32 %v1912_v51, %v2556_v1  ;;  %v2175_v3 = vpack.c.bf16 %v833_v60, %v832_v56  ;;  %v835_v4 = vsel %vm579_vm7, %v451_v47, %v707_v57  ;;  %v2428_v55 = vld [vmem:[%s3211_s0 + $0xd8] sm:$0xff]  }
  0x45   :  { %vm580_vm8 = vcmp.ge.f32.partialorder %v452_v58, 0.0  ;;  %vm581_vm9 = vcmp.ge.f32.partialorder %v453_v59, 0.0  ;;  %v2180_v5 = vpack.c.bf16 %v835_v4, %v834_v61  ;;  %v708_v6 = vmul.f32 0.2, %v452_v58 }
  0x46   :  { %v709_v8 = vmul.f32 0.2, %v453_v59  ;;  %v320_v9 = vmul.f32 %v1913_v62, %v2556_v1  ;;  %2482 = vst [vmem:[%s3214_s3 + $0x90] sm:$0xff] %v2175_v3   ;;  %v454_v10 = vadd.f32 %v2570_v7, %v319_v63  ;;  %v1916_v11 = vunpack.c.l.bf16 %v2423_v0 }
  0x47   :  { %v1917_v12 = vunpack.c.h.bf16 %v2423_v0  ;;  %v1920_v13 = vunpack.c.l.bf16 %v2424_v2  ;;  %2483 = vst [vmem:[%s3214_s3 + $0x98] sm:$0xff] %v2180_v5   ;;  %v836_v14 = vsel %vm580_vm8, %v452_v58, %v708_v6  ;;  %v1921_v17 = vunpack.c.h.bf16 %v2424_v2 }
  0x48   :  { %v837_v15 = vsel %vm581_vm9, %v453_v59, %v709_v8  ;;  %v455_v16 = vadd.f32 %v2570_v7, %v320_v9  ;;  %vm582_vm10 = vcmp.ge.f32.partialorder %v454_v10, 0.0  ;;  %v710_v20 = vmul.f32 0.2, %v454_v10 }
  0x49   :  { %v2185_v19 = vpack.c.bf16 %v837_v15, %v836_v14  ;;  %v321_v21 = vmul.f32 %v1916_v11, %v2556_v1  ;;  %v322_v23 = vmul.f32 %v1917_v12, %v2556_v1  ;;  %v323_v24 = vmul.f32 %v1920_v13, %v2556_v1  ;;  %v2430_v14 = vld [vmem:[%s3211_s0 + $0xe8] sm:$0xff]  }
  0x4a   :  { %vm583_vm11 = vcmp.ge.f32.partialorder %v455_v16, 0.0  ;;  %v711_v22 = vmul.f32 0.2, %v455_v16  ;;  %v838_v25 = vsel %vm582_vm10, %v454_v10, %v710_v20  ;;  %v324_v27 = vmul.f32 %v1921_v17, %v2556_v1  ;;  %v2429_v10 = vld [vmem:[%s3211_s0 + $0xe0] sm:$0xff]  }
  0x4b   :  { %2484 = vst [vmem:[%s3214_s3 + $0xa0] sm:$0xff] %v2185_v19   ;;  %v456_v26 = vadd.f32 %v2570_v7, %v321_v21  ;;  %v1924_v28 = vunpack.c.l.bf16 %v2425_v18  ;;  %v457_v30 = vadd.f32 %v2570_v7, %v322_v23  ;;  %v458_v31 = vadd.f32 %v2570_v7, %v323_v24 }
  0x4c   :  { %v839_v29 = vsel %vm583_vm11, %v455_v16, %v711_v22  ;;  %v1925_v32 = vunpack.c.h.bf16 %v2425_v18  ;;  %v459_v35 = vadd.f32 %v2570_v7, %v324_v27  ;;  %v1928_v46 = vunpack.c.l.bf16 %v2426_v36 }
  0x4d   :  { %v2190_v33 = vpack.c.bf16 %v839_v29, %v838_v25  ;;  %vm584_vm12 = vcmp.ge.f32.partialorder %v456_v26, 0.0  ;;  %v712_v34 = vmul.f32 0.2, %v456_v26  ;;  %vm585_vm13 = vcmp.ge.f32.partialorder %v457_v30, 0.0 }
  0x4e   :  { %v713_v37 = vmul.f32 0.2, %v457_v30  ;;  %vm586_vm14 = vcmp.ge.f32.partialorder %v458_v31, 0.0  ;;  %v714_v38 = vmul.f32 0.2, %v458_v31  ;;  %vm587_vm15 = vcmp.ge.f32.partialorder %v459_v35, 0.0 }
  0x4f   :  { %2485 = vst [vmem:[%s3214_s3 + $0xa8] sm:$0xff] %v2190_v33   ;;  %v840_v39 = vsel %vm584_vm12, %v456_v26, %v712_v34  ;;  %v715_v40 = vmul.f32 0.2, %v459_v35  ;;  %v325_v41 = vmul.f32 %v1924_v28, %v2556_v1  ;;  %v326_v45 = vmul.f32 %v1925_v32, %v2556_v1 }
  0x50   :  { %v841_v43 = vsel %vm585_vm13, %v457_v30, %v713_v37  ;;  %v842_v44 = vsel %vm586_vm14, %v458_v31, %v714_v38  ;;  %v1929_v50 = vunpack.c.h.bf16 %v2426_v36  ;;  %v327_v53 = vmul.f32 %v1928_v46, %v2556_v1  ;;  %v2431_v30 = vld [vmem:[%s3211_s0 + $0xf0] sm:$0xff]  }
  0x51   :  { %v2195_v47 = vpack.c.bf16 %v841_v43, %v840_v39  ;;  %v843_v48 = vsel %vm587_vm15, %v459_v35, %v715_v40  ;;  %v460_v49 = vadd.f32 %v2570_v7, %v325_v41  ;;  %v461_v52 = vadd.f32 %v2570_v7, %v326_v45 }
  0x52   :  { %v2200_v51 = vpack.c.bf16 %v843_v48, %v842_v44  ;;  %v1932_v54 = vunpack.c.l.bf16 %v2427_v42  ;;  %v328_v57 = vmul.f32 %v1929_v50, %v2556_v1  ;;  %v1933_v58 = vunpack.c.h.bf16 %v2427_v42  ;;  %v2432_v44 = vld [vmem:[%s3211_s0 + $0xf8] sm:$0xff]  }
  0x53   :  { %2486 = vst [vmem:[%s3214_s3 + $0xb0] sm:$0xff] %v2195_v47   ;;  %vm588_vm0 = vcmp.ge.f32.partialorder %v460_v49, 0.0  ;;  %v716_v56 = vmul.f32 0.2, %v460_v49  ;;  %vm589_vm1 = vcmp.ge.f32.partialorder %v461_v52, 0.0  ;;  %v462_v60 = vadd.f32 %v2570_v7, %v327_v53 }
  0x54   :  { %2487 = vst [vmem:[%s3214_s3 + $0xb8] sm:$0xff] %v2200_v51   ;;  %v717_v59 = vmul.f32 0.2, %v461_v52  ;;  %v329_v61 = vmul.f32 %v1932_v54, %v2556_v1  ;;  %v463_v63 = vadd.f32 %v2570_v7, %v328_v57  ;;  %v330_v0 = vmul.f32 %v1933_v58, %v2556_v1  ;;  %v2433_v54 = vld [vmem:[%s3211_s0 + $0x100] sm:$0xff]  }
  0x55   :  { %v844_v62 = vsel %vm588_vm0, %v460_v49, %v716_v56  ;;  %v1936_v2 = vunpack.c.l.bf16 %v2428_v55  ;;  %vm590_vm2 = vcmp.ge.f32.partialorder %v462_v60, 0.0  ;;  %v718_v4 = vmul.f32 0.2, %v462_v60 }
  0x56   :  { %v845_v3 = vsel %vm589_vm1, %v461_v52, %v717_v59  ;;  %v464_v5 = vadd.f32 %v2570_v7, %v329_v61  ;;  %vm591_vm3 = vcmp.ge.f32.partialorder %v463_v63, 0.0  ;;  %v719_v8 = vmul.f32 0.2, %v463_v63 }
  0x57   :  { %v2205_v6 = vpack.c.bf16 %v845_v3, %v844_v62  ;;  %v465_v9 = vadd.f32 %v2570_v7, %v330_v0  ;;  %v846_v11 = vsel %vm590_vm2, %v462_v60, %v718_v4  ;;  %v1937_v13 = vunpack.c.h.bf16 %v2428_v55  ;;  %v2434_v55 = vld [vmem:[%s3211_s0 + $0x108] sm:$0xff]  }
  0x58   :  { %vm592_vm4 = vcmp.ge.f32.partialorder %v464_v5, 0.0  ;;  %v720_v12 = vmul.f32 0.2, %v464_v5  ;;  %v847_v15 = vsel %vm591_vm3, %v463_v63, %v719_v8  ;;  %v331_v17 = vmul.f32 %v1936_v2, %v2556_v1 }
  0x59   :  { %2488 = vst [vmem:[%s3214_s3 + $0xc0] sm:$0xff] %v2205_v6   ;;  %vm593_vm5 = vcmp.ge.f32.partialorder %v465_v9, 0.0  ;;  %v721_v16 = vmul.f32 0.2, %v465_v9  ;;  %v2210_v18 = vpack.c.bf16 %v847_v15, %v846_v11  ;;  %v332_v20 = vmul.f32 %v1937_v13, %v2556_v1 }
  0x5a   :  { %v848_v19 = vsel %vm592_vm4, %v464_v5, %v720_v12  ;;  %v1940_v21 = vunpack.c.l.bf16 %v2429_v10  ;;  %v466_v23 = vadd.f32 %v2570_v7, %v331_v17  ;;  %v1941_v24 = vunpack.c.h.bf16 %v2429_v10 }
  0x5b   :  { %v849_v22 = vsel %vm593_vm5, %v465_v9, %v721_v16  ;;  %v1944_v25 = vunpack.c.l.bf16 %v2430_v14  ;;  %2489 = vst [vmem:[%s3214_s3 + $0xc8] sm:$0xff] %v2210_v18   ;;  %v467_v27 = vadd.f32 %v2570_v7, %v332_v20  ;;  %v1945_v29 = vunpack.c.h.bf16 %v2430_v14 }
  0x5c   :  { %v2215_v26 = vpack.c.bf16 %v849_v22, %v848_v19  ;;  %v333_v28 = vmul.f32 %v1940_v21, %v2556_v1  ;;  %vm594_vm6 = vcmp.ge.f32.partialorder %v466_v23, 0.0  ;;  %v722_v31 = vmul.f32 0.2, %v466_v23  ;;  %v2435_v22 = vld [vmem:[%s3211_s0 + $0x110] sm:$0xff]  }
  0x5d   :  { %v334_v32 = vmul.f32 %v1941_v24, %v2556_v1  ;;  %v335_v33 = vmul.f32 %v1944_v25, %v2556_v1  ;;  %vm595_vm7 = vcmp.ge.f32.partialorder %v467_v27, 0.0  ;;  %v723_v34 = vmul.f32 0.2, %v467_v27 }
  0x5e   :  { %2490 = vst [vmem:[%s3214_s3 + $0xd0] sm:$0xff] %v2215_v26   ;;  %v468_v35 = vadd.f32 %v2570_v7, %v333_v28  ;;  %v336_v36 = vmul.f32 %v1945_v29, %v2556_v1  ;;  %v850_v37 = vsel %vm594_vm6, %v466_v23, %v722_v31  ;;  %v1948_v40 = vunpack.c.l.bf16 %v2431_v30  ;;  %v2436_v26 = vld [vmem:[%s3211_s0 + $0x118] sm:$0xff]  }
  0x5f   :  { %v469_v38 = vadd.f32 %v2570_v7, %v334_v32  ;;  %v470_v39 = vadd.f32 %v2570_v7, %v335_v33  ;;  %v851_v41 = vsel %vm595_vm7, %v467_v27, %v723_v34  ;;  %v1949_v51 = vunpack.c.h.bf16 %v2431_v30 }
  0x60   :  { %vm596_vm8 = vcmp.ge.f32.partialorder %v468_v35, 0.0  ;;  %v724_v42 = vmul.f32 0.2, %v468_v35  ;;  %v471_v43 = vadd.f32 %v2570_v7, %v336_v36  ;;  %v2220_v45 = vpack.c.bf16 %v851_v41, %v850_v37  ;;  %v2437_v37 = vld [vmem:[%s3211_s0 + $0x120] sm:$0xff]  }
  0x61   :  { %vm597_vm9 = vcmp.ge.f32.partialorder %v469_v38, 0.0  ;;  %v725_v46 = vmul.f32 0.2, %v469_v38  ;;  %vm598_vm10 = vcmp.ge.f32.partialorder %v470_v39, 0.0  ;;  %v726_v48 = vmul.f32 0.2, %v470_v39 }
  0x62   :  { %v852_v47 = vsel %vm596_vm8, %v468_v35, %v724_v42  ;;  %vm599_vm11 = vcmp.ge.f32.partialorder %v471_v43, 0.0  ;;  %v727_v49 = vmul.f32 0.2, %v471_v43  ;;  %2491 = vst [vmem:[%s3214_s3 + $0xd8] sm:$0xff] %v2220_v45   ;;  %v337_v52 = vmul.f32 %v1948_v40, %v2556_v1 }
  0x63   :  { %v853_v50 = vsel %vm597_vm9, %v469_v38, %v725_v46  ;;  %v1952_v53 = vunpack.c.l.bf16 %v2432_v44  ;;  %v854_v57 = vsel %vm598_vm10, %v470_v39, %v726_v48  ;;  %v1953_v59 = vunpack.c.h.bf16 %v2432_v44 }
  0x64   :  { %v2225_v56 = vpack.c.bf16 %v853_v50, %v852_v47  ;;  %v855_v58 = vsel %vm599_vm11, %v471_v43, %v727_v49  ;;  %v338_v61 = vmul.f32 %v1949_v51, %v2556_v1  ;;  %v472_v62 = vadd.f32 %v2570_v7, %v337_v52  ;;  %v2919_v49 = vld [vmem:[%s3213_s2] ss:$0 sm:$0xff] }
  0x65   :  { %v2230_v60 = vpack.c.bf16 %v855_v58, %v854_v57  ;;  %v339_v63 = vmul.f32 %v1952_v53, %v2556_v1  ;;  %v340_v0 = vmul.f32 %v1953_v59, %v2556_v1  ;;  %v1956_v2 = vunpack.c.l.bf16 %v2433_v54  ;;  %v2438_v57 = vld [vmem:[%s3211_s0 + $0x128] sm:$0xff]  }
  0x66   :  { %2492 = vst [vmem:[%s3214_s3 + $0xe0] sm:$0xff] %v2225_v56   ;;  %v1957_v3 = vunpack.c.h.bf16 %v2433_v54  ;;  %v1960_v4 = vunpack.c.l.bf16 %v2434_v55  ;;  %v473_v5 = vadd.f32 %v2570_v7, %v338_v61  ;;  %vm600_vm12 = vcmp.ge.f32.partialorder %v472_v62, 0.0 }
  0x67   :  { %2493 = vst [vmem:[%s3214_s3 + $0xe8] sm:$0xff] %v2230_v60   ;;  %v728_v6 = vmul.f32 0.2, %v472_v62  ;;  %v474_v8 = vadd.f32 %v2570_v7, %v339_v63  ;;  %v475_v9 = vadd.f32 %v2570_v7, %v340_v0  ;;  %v341_v10 = vmul.f32 %v1956_v2, %v2556_v1 }
  0x68   :  { %v342_v11 = vmul.f32 %v1957_v3, %v2556_v1  ;;  %v1961_v12 = vunpack.c.h.bf16 %v2434_v55  ;;  %vm601_vm13 = vcmp.ge.f32.partialorder %v473_v5, 0.0  ;;  %v729_v13 = vmul.f32 0.2, %v473_v5  ;;  %v2439_v3 = vld [vmem:[%s3211_s0 + $0x130] sm:$0xff]  }
  0x69   :  { %v856_v14 = vsel %vm600_vm12, %v472_v62, %v728_v6  ;;  %vm602_vm14 = vcmp.ge.f32.partialorder %v474_v8, 0.0  ;;  %vm603_vm15 = vcmp.ge.f32.partialorder %v475_v9, 0.0  ;;  %v730_v15 = vmul.f32 0.2, %v474_v8 }
  0x6a   :  { %v731_v16 = vmul.f32 0.2, %v475_v9  ;;  %v476_v17 = vadd.f32 %v2570_v7, %v341_v10  ;;  %v857_v18 = vsel %vm601_vm13, %v473_v5, %v729_v13  ;;  %v477_v19 = vadd.f32 %v2570_v7, %v342_v11 }
  0x6b   :  { %v343_v20 = vmul.f32 %v1960_v4, %v2556_v1  ;;  %v344_v21 = vmul.f32 %v1961_v12, %v2556_v1  ;;  %v2235_v23 = vpack.c.bf16 %v857_v18, %v856_v14  ;;  %v858_v24 = vsel %vm602_vm14, %v474_v8, %v730_v15 }
  0x6c   :  { %v859_v25 = vsel %vm603_vm15, %v475_v9, %v731_v16  ;;  %vm604_vm0 = vcmp.ge.f32.partialorder %v476_v17, 0.0  ;;  %vm605_vm1 = vcmp.ge.f32.partialorder %v477_v19, 0.0  ;;  %v732_v28 = vmul.f32 0.2, %v476_v17  ;;  %v2440_v9 = vld [vmem:[%s3211_s0 + $0x138] sm:$0xff]  }
  0x6d   :  { %v2240_v27 = vpack.c.bf16 %v859_v25, %v858_v24  ;;  %v733_v29 = vmul.f32 0.2, %v477_v19  ;;  %2494 = vst [vmem:[%s3214_s3 + $0xf0] sm:$0xff] %v2235_v23   ;;  %v478_v1 = vadd.f32 %v2570_v7, %v343_v20  ;;  %v479_v30 = vadd.f32 %v2570_v7, %v344_v21  ;;  %v2907_v7 = vld [vmem:[%s3212_s1] ss:$0 sm:$0xff] }
  0x6e   :  { %v1964_v31 = vunpack.c.l.bf16 %v2435_v22  ;;  %v1965_v32 = vunpack.c.h.bf16 %v2435_v22  ;;  %v860_v33 = vsel %vm604_vm0, %v476_v17, %v732_v28  ;;  %v1968_v35 = vunpack.c.l.bf16 %v2436_v26  ;;  %v2441_v24 = vld [vmem:[%s3211_s0 + $0x140] sm:$0xff]  }
  0x6f   :  { %2495 = vst [vmem:[%s3214_s3 + $0xf8] sm:$0xff] %v2240_v27   ;;  %v861_v34 = vsel %vm605_vm1, %v477_v19, %v733_v29  ;;  %v1969_v36 = vunpack.c.h.bf16 %v2436_v26  ;;  %vm606_vm2 = vcmp.ge.f32.partialorder %v478_v1, 0.0  ;;  %vm607_vm3 = vcmp.ge.f32.partialorder %v479_v30, 0.0 }
  0x70   :  { %v2245_v38 = vpack.c.bf16 %v861_v34, %v860_v33  ;;  %v734_v39 = vmul.f32 0.2, %v478_v1  ;;  %v735_v40 = vmul.f32 0.2, %v479_v30  ;;  %v345_v41 = vmul.f32 %v2907_v7, %v1964_v31 }
  0x71   :  { %v346_v42 = vmul.f32 %v2907_v7, %v1965_v32  ;;  %v347_v43 = vmul.f32 %v2907_v7, %v1968_v35  ;;  %v348_v45 = vmul.f32 %v2907_v7, %v1969_v36  ;;  %v1972_v46 = vunpack.c.l.bf16 %v2437_v37 }
  0x72   :  { %2496 = vst [vmem:[%s3214_s3 + $0x100] sm:$0xff] %v2245_v38   ;;  %v862_v44 = vsel %vm606_vm2, %v478_v1, %v734_v39  ;;  %v1973_v47 = vunpack.c.h.bf16 %v2437_v37  ;;  %v863_v48 = vsel %vm607_vm3, %v479_v30, %v735_v40  ;;  %v480_v50 = vadd.f32 %v2919_v49, %v345_v41 }
  0x73   :  { %v481_v51 = vadd.f32 %v2919_v49, %v346_v42  ;;  %v482_v52 = vadd.f32 %v2919_v49, %v347_v43  ;;  %v2250_v53 = vpack.c.bf16 %v863_v48, %v862_v44  ;;  %v483_v54 = vadd.f32 %v2919_v49, %v348_v45  ;;  %v2442_v42 = vld [vmem:[%s3211_s0 + $0x148] sm:$0xff]   ;;  %v2444_v48 = vld [vmem:[%s3211_s0 + $0x158] sm:$0xff]  }
  0x74   :  { %v349_v55 = vmul.f32 %v2907_v7, %v1972_v46  ;;  %v350_v56 = vmul.f32 %v2907_v7, %v1973_v47  ;;  %vm608_vm4 = vcmp.ge.f32.partialorder %v480_v50, 0.0  ;;  %v736_v58 = vmul.f32 0.2, %v480_v50  ;;  %v2443_v47 = vld [vmem:[%s3211_s0 + $0x150] sm:$0xff]  }
  0x75   :  { %vm609_vm5 = vcmp.ge.f32.partialorder %v481_v51, 0.0  ;;  %v737_v59 = vmul.f32 0.2, %v481_v51  ;;  %2497 = vst [vmem:[%s3214_s3 + $0x108] sm:$0xff] %v2250_v53   ;;  %vm610_vm6 = vcmp.ge.f32.partialorder %v482_v52, 0.0  ;;  %vm611_vm7 = vcmp.ge.f32.partialorder %v483_v54, 0.0 }
  0x76   :  { %v738_v60 = vmul.f32 0.2, %v482_v52  ;;  %v739_v61 = vmul.f32 0.2, %v483_v54  ;;  %v864_v62 = vsel %vm608_vm4, %v480_v50, %v736_v58  ;;  %v484_v0 = vadd.f32 %v2919_v49, %v349_v55 }
  0x77   :  { %v865_v63 = vsel %vm609_vm5, %v481_v51, %v737_v59  ;;  %v485_v2 = vadd.f32 %v2919_v49, %v350_v56  ;;  %v1976_v8 = vunpack.c.l.bf16 %v2438_v57  ;;  %v1977_v13 = vunpack.c.h.bf16 %v2438_v57 }
  0x78   :  { %v2255_v4 = vpack.c.bf16 %v865_v63, %v864_v62  ;;  %v866_v5 = vsel %vm610_vm6, %v482_v52, %v738_v60  ;;  %v867_v6 = vsel %vm611_vm7, %v483_v54, %v739_v61  ;;  %vm612_vm8 = vcmp.ge.f32.partialorder %v484_v0, 0.0 }
  0x79   :  { %v2260_v10 = vpack.c.bf16 %v867_v6, %v866_v5  ;;  %vm613_vm9 = vcmp.ge.f32.partialorder %v485_v2, 0.0  ;;  %v740_v11 = vmul.f32 0.2, %v484_v0  ;;  %v741_v12 = vmul.f32 0.2, %v485_v2 }
  0x7a   :  { %2498 = vst [vmem:[%s3214_s3 + $0x110] sm:$0xff] %v2255_v4   ;;  %v351_v14 = vmul.f32 %v2907_v7, %v1976_v8  ;;  %v1980_v15 = vunpack.c.l.bf16 %v2439_v3  ;;  %v1981_v17 = vunpack.c.h.bf16 %v2439_v3  ;;  %v1984_v18 = vunpack.c.l.bf16 %v2440_v9 }
  0x7b   :  { %2499 = vst [vmem:[%s3214_s3 + $0x118] sm:$0xff] %v2260_v10   ;;  %v868_v16 = vsel %vm612_vm8, %v484_v0, %v740_v11  ;;  %v1985_v19 = vunpack.c.h.bf16 %v2440_v9  ;;  %v869_v20 = vsel %vm613_vm9, %v485_v2, %v741_v12  ;;  %v352_v21 = vmul.f32 %v2907_v7, %v1977_v13 }
  0x7c   :  { %v486_v22 = vadd.f32 %v2919_v49, %v351_v14  ;;  %v353_v23 = vmul.f32 %v2907_v7, %v1980_v15  ;;  %v2265_v25 = vpack.c.bf16 %v869_v20, %v868_v16  ;;  %v354_v26 = vmul.f32 %v2907_v7, %v1981_v17  ;;  %v2445_v16 = vld [vmem:[%s3211_s0 + $0x160] sm:$0xff]  }
  0x7d   :  { %v355_v27 = vmul.f32 %v2907_v7, %v1984_v18  ;;  %v356_v28 = vmul.f32 %v2907_v7, %v1985_v19  ;;  %v487_v29 = vadd.f32 %v2919_v49, %v352_v21  ;;  %v1988_v34 = vunpack.c.l.bf16 %v2441_v24 }
  0x7e   :  { %vm614_vm10 = vcmp.ge.f32.partialorder %v486_v22, 0.0  ;;  %v742_v1 = vmul.f32 0.2, %v486_v22  ;;  %v488_v30 = vadd.f32 %v2919_v49, %v353_v23  ;;  %2500 = vst [vmem:[%s3214_s3 + $0x120] sm:$0xff] %v2265_v25   ;;  %v489_v31 = vadd.f32 %v2919_v49, %v354_v26 }
  0x7f   :  { %v490_v32 = vadd.f32 %v2919_v49, %v355_v27  ;;  %v491_v33 = vadd.f32 %v2919_v49, %v356_v28  ;;  %vm615_vm11 = vcmp.ge.f32.partialorder %v487_v29, 0.0  ;;  %v743_v35 = vmul.f32 0.2, %v487_v29  ;;  %v2446_v27 = vld [vmem:[%s3211_s0 + $0x168] sm:$0xff]  }
  0x80   :  { %v870_v36 = vsel %vm614_vm10, %v486_v22, %v742_v1  ;;  %vm616_vm12 = vcmp.ge.f32.partialorder %v488_v30, 0.0  ;;  %vm617_vm13 = vcmp.ge.f32.partialorder %v489_v31, 0.0  ;;  %v744_v37 = vmul.f32 0.2, %v488_v30 }
  0x81   :  { %v745_v38 = vmul.f32 0.2, %v489_v31  ;;  %vm618_vm14 = vcmp.ge.f32.partialorder %v490_v32, 0.0  ;;  %v871_v39 = vsel %vm615_vm11, %v487_v29, %v743_v35  ;;  %vm619_vm15 = vcmp.ge.f32.partialorder %v491_v33, 0.0 }
  0x82   :  { %v746_v40 = vmul.f32 0.2, %v490_v32  ;;  %v747_v41 = vmul.f32 0.2, %v491_v33  ;;  %v2270_v43 = vpack.c.bf16 %v871_v39, %v870_v36  ;;  %v872_v44 = vsel %vm616_vm12, %v488_v30, %v744_v37 }
  0x83   :  { %v873_v45 = vsel %vm617_vm13, %v489_v31, %v745_v38  ;;  %v1989_v46 = vunpack.c.h.bf16 %v2441_v24  ;;  %v357_v53 = vmul.f32 %v2907_v7, %v1988_v34  ;;  %v1992_v56 = vunpack.c.l.bf16 %v2442_v42  ;;  %v2447_v31 = vld [vmem:[%s3211_s0 + $0x170] sm:$0xff]  }
  0x84   :  { %v2275_v50 = vpack.c.bf16 %v873_v45, %v872_v44  ;;  %v874_v51 = vsel %vm618_vm14, %v490_v32, %v746_v40  ;;  %v875_v52 = vsel %vm619_vm15, %v491_v33, %v747_v41  ;;  %2501 = vst [vmem:[%s3214_s3 + $0x128] sm:$0xff] %v2270_v43   ;;  %v1993_v57 = vunpack.c.h.bf16 %v2442_v42 }
  0x85   :  { %v2280_v54 = vpack.c.bf16 %v875_v52, %v874_v51  ;;  %v358_v55 = vmul.f32 %v2907_v7, %v1989_v46  ;;  %v492_v58 = vadd.f32 %v2919_v49, %v357_v53  ;;  %v1996_v59 = vunpack.c.l.bf16 %v2443_v47  ;;  %v2448_v46 = vld [vmem:[%s3211_s0 + $0x178] sm:$0xff]  }
  0x86   :  { %2502 = vst [vmem:[%s3214_s3 + $0x130] sm:$0xff] %v2275_v50   ;;  %v1997_v60 = vunpack.c.h.bf16 %v2443_v47  ;;  %v2000_v61 = vunpack.c.l.bf16 %v2444_v48  ;;  %v359_v63 = vmul.f32 %v2907_v7, %v1992_v56  ;;  %v360_v0 = vmul.f32 %v2907_v7, %v1993_v57 }
  0x87   :  { %2503 = vst [vmem:[%s3214_s3 + $0x138] sm:$0xff] %v2280_v54   ;;  %v493_v62 = vadd.f32 %v2919_v49, %v358_v55  ;;  %v2001_v2 = vunpack.c.h.bf16 %v2444_v48  ;;  %vm620_vm0 = vcmp.ge.f32.partialorder %v492_v58, 0.0  ;;  %v748_v3 = vmul.f32 0.2, %v492_v58 }
  0x88   :  { %v361_v4 = vmul.f32 %v2907_v7, %v1996_v59  ;;  %v362_v5 = vmul.f32 %v2907_v7, %v1997_v60  ;;  %v494_v8 = vadd.f32 %v2919_v49, %v359_v63  ;;  %v495_v9 = vadd.f32 %v2919_v49, %v360_v0  ;;  %v2449_v0 = vld [vmem:[%s3211_s0 + $0x180] sm:$0xff]  }
  0x89   :  { %vm621_vm1 = vcmp.ge.f32.partialorder %v493_v62, 0.0  ;;  %v749_v6 = vmul.f32 0.2, %v493_v62  ;;  %v876_v10 = vsel %vm620_vm0, %v492_v58, %v748_v3  ;;  %v363_v13 = vmul.f32 %v2907_v7, %v2000_v61 }
  0x8a   :  { %v496_v11 = vadd.f32 %v2919_v49, %v361_v4  ;;  %v497_v12 = vadd.f32 %v2919_v49, %v362_v5  ;;  %vm622_vm2 = vcmp.ge.f32.partialorder %v494_v8, 0.0  ;;  %vm623_vm3 = vcmp.ge.f32.partialorder %v495_v9, 0.0  ;;  %v2450_v5 = vld [vmem:[%s3211_s0 + $0x188] sm:$0xff]  }
  0x8b   :  { %v877_v14 = vsel %vm621_vm1, %v493_v62, %v749_v6  ;;  %v750_v15 = vmul.f32 0.2, %v494_v8  ;;  %v751_v18 = vmul.f32 0.2, %v495_v9  ;;  %v364_v22 = vmul.f32 %v2907_v7, %v2001_v2 }
  0x8c   :  { %v2285_v17 = vpack.c.bf16 %v877_v14, %v876_v10  ;;  %vm624_vm4 = vcmp.ge.f32.partialorder %v496_v11, 0.0  ;;  %vm625_vm5 = vcmp.ge.f32.partialorder %v497_v12, 0.0  ;;  %v752_v20 = vmul.f32 0.2, %v496_v11 }
  0x8d   :  { %v878_v19 = vsel %vm622_vm2, %v494_v8, %v750_v15  ;;  %v753_v21 = vmul.f32 0.2, %v497_v12  ;;  %v879_v23 = vsel %vm623_vm3, %v495_v9, %v751_v18  ;;  %v498_v24 = vadd.f32 %v2919_v49, %v363_v13 }
  0x8e   :  { %2504 = vst [vmem:[%s3214_s3 + $0x140] sm:$0xff] %v2285_v17   ;;  %v2004_v25 = vunpack.c.l.bf16 %v2445_v16  ;;  %v2005_v26 = vunpack.c.h.bf16 %v2445_v16  ;;  %v2290_v28 = vpack.c.bf16 %v879_v23, %v878_v19  ;;  %v880_v29 = vsel %vm624_vm4, %v496_v11, %v752_v20 }
  0x8f   :  { %v881_v1 = vsel %vm625_vm5, %v497_v12, %v753_v21  ;;  %v499_v30 = vadd.f32 %v2919_v49, %v364_v22  ;;  %vm626_vm6 = vcmp.ge.f32.partialorder %v498_v24, 0.0  ;;  %v754_v33 = vmul.f32 0.2, %v498_v24  ;;  %v2451_v22 = vld [vmem:[%s3211_s0 + $0x190] sm:$0xff]  }
  0x90   :  { %v2295_v32 = vpack.c.bf16 %v881_v1, %v880_v29  ;;  %v365_v34 = vmul.f32 %v2907_v7, %v2004_v25  ;;  %2505 = vst [vmem:[%s3214_s3 + $0x148] sm:$0xff] %v2290_v28   ;;  %v366_v36 = vmul.f32 %v2907_v7, %v2005_v26  ;;  %v2008_v37 = vunpack.c.l.bf16 %v2446_v27 }
  0x91   :  { %vm627_vm7 = vcmp.ge.f32.partialorder %v499_v30, 0.0  ;;  %v755_v35 = vmul.f32 0.2, %v499_v30  ;;  %v882_v38 = vsel %vm626_vm6, %v498_v24, %v754_v33  ;;  %v2009_v40 = vunpack.c.h.bf16 %v2446_v27 }
  0x92   :  { %2506 = vst [vmem:[%s3214_s3 + $0x150] sm:$0xff] %v2295_v32   ;;  %v500_v39 = vadd.f32 %v2919_v49, %v365_v34  ;;  %v2012_v41 = vunpack.c.l.bf16 %v2447_v31  ;;  %v501_v43 = vadd.f32 %v2919_v49, %v366_v36  ;;  %v367_v44 = vmul.f32 %v2907_v7, %v2008_v37 }
  0x93   :  { %v883_v42 = vsel %vm627_vm7, %v499_v30, %v755_v35  ;;  %v2013_v45 = vunpack.c.h.bf16 %v2447_v31  ;;  %v368_v50 = vmul.f32 %v2907_v7, %v2009_v40  ;;  %v2016_v57 = vunpack.c.l.bf16 %v2448_v46  ;;  %v2452_v35 = vld [vmem:[%s3211_s0 + $0x198] sm:$0xff]  }
  0x94   :  { %v2300_v47 = vpack.c.bf16 %v883_v42, %v882_v38  ;;  %vm628_vm8 = vcmp.ge.f32.partialorder %v500_v39, 0.0  ;;  %v756_v48 = vmul.f32 0.2, %v500_v39  ;;  %vm629_vm9 = vcmp.ge.f32.partialorder %v501_v43, 0.0 }
  0x95   :  { %v757_v51 = vmul.f32 0.2, %v501_v43  ;;  %v502_v52 = vadd.f32 %v2919_v49, %v367_v44  ;;  %v369_v53 = vmul.f32 %v2907_v7, %v2012_v41  ;;  %v503_v55 = vadd.f32 %v2919_v49, %v368_v50 }
  0x96   :  { %2507 = vst [vmem:[%s3214_s3 + $0x158] sm:$0xff] %v2300_v47   ;;  %v884_v54 = vsel %vm628_vm8, %v500_v39, %v756_v48  ;;  %v370_v56 = vmul.f32 %v2907_v7, %v2013_v45  ;;  %v2017_v4 = vunpack.c.h.bf16 %v2448_v46  ;;  %v371_v9 = vmul.f32 %v2907_v7, %v2016_v57  ;;  %v2453_v45 = vld [vmem:[%s3211_s0 + $0x1a0] sm:$0xff]   ;;  %v2454_v46 = vld [vmem:[%s3211_s0 + $0x1a8] sm:$0xff]  }
  0x97   :  { %v885_v58 = vsel %vm629_vm9, %v501_v43, %v757_v51  ;;  %vm630_vm10 = vcmp.ge.f32.partialorder %v502_v52, 0.0  ;;  %v758_v59 = vmul.f32 0.2, %v502_v52  ;;  %v504_v60 = vadd.f32 %v2919_v49, %v369_v53 }
  0x98   :  { %v2305_v61 = vpack.c.bf16 %v885_v58, %v884_v54  ;;  %vm631_vm11 = vcmp.ge.f32.partialorder %v503_v55, 0.0  ;;  %v759_v62 = vmul.f32 0.2, %v503_v55  ;;  %v505_v63 = vadd.f32 %v2919_v49, %v370_v56 }
  0x99   :  { %v886_v2 = vsel %vm630_vm10, %v502_v52, %v758_v59  ;;  %vm632_vm12 = vcmp.ge.f32.partialorder %v504_v60, 0.0  ;;  %v760_v3 = vmul.f32 0.2, %v504_v60  ;;  %v372_v12 = vmul.f32 %v2907_v7, %v2017_v4 }
  0x9a   :  { %2508 = vst [vmem:[%s3214_s3 + $0x160] sm:$0xff] %v2305_v61   ;;  %v887_v6 = vsel %vm631_vm11, %v503_v55, %v759_v62  ;;  %vm633_vm13 = vcmp.ge.f32.partialorder %v505_v63, 0.0  ;;  %v761_v8 = vmul.f32 0.2, %v505_v63  ;;  %v2020_v13 = vunpack.c.l.bf16 %v2449_v0 }
  0x9b   :  { %v2310_v10 = vpack.c.bf16 %v887_v6, %v886_v2  ;;  %v888_v11 = vsel %vm632_vm12, %v504_v60, %v760_v3  ;;  %v506_v15 = vadd.f32 %v2919_v49, %v371_v9  ;;  %v2021_v16 = vunpack.c.h.bf16 %v2449_v0 }
  0x9c   :  { %v889_v14 = vsel %vm633_vm13, %v505_v63, %v761_v8  ;;  %v2024_v17 = vunpack.c.l.bf16 %v2450_v5  ;;  %v507_v19 = vadd.f32 %v2919_v49, %v372_v12  ;;  %v373_v20 = vmul.f32 %v2907_v7, %v2020_v13 }
  0x9d   :  { %2509 = vst [vmem:[%s3214_s3 + $0x168] sm:$0xff] %v2310_v10   ;;  %v2315_v18 = vpack.c.bf16 %v889_v14, %v888_v11  ;;  %v2025_v21 = vunpack.c.h.bf16 %v2450_v5  ;;  %vm634_vm14 = vcmp.ge.f32.partialorder %v506_v15, 0.0  ;;  %v762_v23 = vmul.f32 0.2, %v506_v15  ;;  %v2455_v14 = vld [vmem:[%s3211_s0 + $0x1b0] sm:$0xff]  }
  0x9e   :  { %v374_v24 = vmul.f32 %v2907_v7, %v2021_v16  ;;  %v375_v25 = vmul.f32 %v2907_v7, %v2024_v17  ;;  %vm635_vm15 = vcmp.ge.f32.partialorder %v507_v19, 0.0  ;;  %v763_v26 = vmul.f32 0.2, %v507_v19 }
  0x9f   :  { %2510 = vst [vmem:[%s3214_s3 + $0x170] sm:$0xff] %v2315_v18   ;;  %v508_v27 = vadd.f32 %v2919_v49, %v373_v20  ;;  %v376_v28 = vmul.f32 %v2907_v7, %v2025_v21  ;;  %v890_v29 = vsel %vm634_vm14, %v506_v15, %v762_v23  ;;  %v2028_v31 = vunpack.c.l.bf16 %v2451_v22  ;;  %v2456_v18 = vld [vmem:[%s3211_s0 + $0x1b8] sm:$0xff]  }
  0xa0   :  { %v509_v1 = vadd.f32 %v2919_v49, %v374_v24  ;;  %v510_v30 = vadd.f32 %v2919_v49, %v375_v25  ;;  %v891_v32 = vsel %vm635_vm15, %v507_v19, %v763_v26  ;;  %v2029_v42 = vunpack.c.h.bf16 %v2451_v22 }
  0xa1   :  { %vm636_vm0 = vcmp.ge.f32.partialorder %v508_v27, 0.0  ;;  %v764_v33 = vmul.f32 0.2, %v508_v27  ;;  %v511_v34 = vadd.f32 %v2919_v49, %v376_v28  ;;  %v2320_v36 = vpack.c.bf16 %v891_v32, %v890_v29 }
  0xa2   :  { %vm637_vm1 = vcmp.ge.f32.partialorder %v509_v1, 0.0  ;;  %v765_v37 = vmul.f32 0.2, %v509_v1  ;;  %vm638_vm2 = vcmp.ge.f32.partialorder %v510_v30, 0.0  ;;  %v766_v39 = vmul.f32 0.2, %v510_v30 }
  0xa3   :  { %v892_v38 = vsel %vm636_vm0, %v508_v27, %v764_v33  ;;  %vm639_vm3 = vcmp.ge.f32.partialorder %v511_v34, 0.0  ;;  %v767_v40 = vmul.f32 0.2, %v511_v34  ;;  %2511 = vst [vmem:[%s3214_s3 + $0x178] sm:$0xff] %v2320_v36   ;;  %v377_v43 = vmul.f32 %v2907_v7, %v2028_v31 }
  0xa4   :  { %v893_v41 = vsel %vm637_vm1, %v509_v1, %v765_v37  ;;  %v2032_v44 = vunpack.c.l.bf16 %v2452_v35  ;;  %v894_v48 = vsel %vm638_vm2, %v510_v30, %v766_v39  ;;  %v2033_v51 = vunpack.c.h.bf16 %v2452_v35  ;;  %v2457_v1 = vld [vmem:[%s3211_s0 + $0x1c0] sm:$0xff]  }
  0xa5   :  { %v2325_v47 = vpack.c.bf16 %v893_v41, %v892_v38  ;;  %v895_v50 = vsel %vm639_vm3, %v511_v34, %v767_v40  ;;  %v378_v53 = vmul.f32 %v2907_v7, %v2029_v42  ;;  %v512_v54 = vadd.f32 %v2919_v49, %v377_v43 }
  0xa6   :  { %v2330_v52 = vpack.c.bf16 %v895_v50, %v894_v48  ;;  %v379_v55 = vmul.f32 %v2907_v7, %v2032_v44  ;;  %v380_v56 = vmul.f32 %v2907_v7, %v2033_v51  ;;  %v2036_v57 = vunpack.c.l.bf16 %v2453_v45  ;;  %v2458_v48 = vld [vmem:[%s3211_s0 + $0x1c8] sm:$0xff]  }
  0xa7   :  { %2512 = vst [vmem:[%s3214_s3 + $0x180] sm:$0xff] %v2325_v47   ;;  %v2037_v58 = vunpack.c.h.bf16 %v2453_v45  ;;  %v2040_v59 = vunpack.c.l.bf16 %v2454_v46  ;;  %v513_v60 = vadd.f32 %v2919_v49, %v378_v53  ;;  %vm640_vm4 = vcmp.ge.f32.partialorder %v512_v54, 0.0 }
  0xa8   :  { %2513 = vst [vmem:[%s3214_s3 + $0x188] sm:$0xff] %v2330_v52   ;;  %v768_v61 = vmul.f32 0.2, %v512_v54  ;;  %v514_v62 = vadd.f32 %v2919_v49, %v379_v55  ;;  %v515_v63 = vadd.f32 %v2919_v49, %v380_v56  ;;  %v381_v0 = vmul.f32 %v2907_v7, %v2036_v57 }
  0xa9   :  { %v382_v2 = vmul.f32 %v2907_v7, %v2037_v58  ;;  %v2041_v3 = vunpack.c.h.bf16 %v2454_v46  ;;  %vm641_vm5 = vcmp.ge.f32.partialorder %v513_v60, 0.0  ;;  %v769_v4 = vmul.f32 0.2, %v513_v60  ;;  %v2459_v58 = vld [vmem:[%s3211_s0 + $0x1d0] sm:$0xff]  }
  0xaa   :  { %v896_v5 = vsel %vm640_vm4, %v512_v54, %v768_v61  ;;  %vm642_vm6 = vcmp.ge.f32.partialorder %v514_v62, 0.0  ;;  %vm643_vm7 = vcmp.ge.f32.partialorder %v515_v63, 0.0  ;;  %v770_v6 = vmul.f32 0.2, %v514_v62 }
  0xab   :  { %v771_v8 = vmul.f32 0.2, %v515_v63  ;;  %v516_v9 = vadd.f32 %v2919_v49, %v381_v0  ;;  %v897_v10 = vsel %vm641_vm5, %v513_v60, %v769_v4  ;;  %v517_v11 = vadd.f32 %v2919_v49, %v382_v2 }
  0xac   :  { %v383_v12 = vmul.f32 %v2907_v7, %v2040_v59  ;;  %v384_v13 = vmul.f32 %v2907_v7, %v2041_v3  ;;  %v2335_v15 = vpack.c.bf16 %v897_v10, %v896_v5  ;;  %v898_v16 = vsel %vm642_vm6, %v514_v62, %v770_v6 }
  0xad   :  { %v899_v17 = vsel %vm643_vm7, %v515_v63, %v771_v8  ;;  %vm644_vm8 = vcmp.ge.f32.partialorder %v516_v9, 0.0  ;;  %vm645_vm9 = vcmp.ge.f32.partialorder %v517_v11, 0.0  ;;  %v772_v20 = vmul.f32 0.2, %v516_v9  ;;  %v2460_v63 = vld [vmem:[%s3211_s0 + $0x1d8] sm:$0xff]  }
  0xae   :  { %v2340_v19 = vpack.c.bf16 %v899_v17, %v898_v16  ;;  %v773_v21 = vmul.f32 0.2, %v517_v11  ;;  %2514 = vst [vmem:[%s3214_s3 + $0x190] sm:$0xff] %v2335_v15   ;;  %v518_v22 = vadd.f32 %v2919_v49, %v383_v12  ;;  %v519_v23 = vadd.f32 %v2919_v49, %v384_v13  ;;  %v2461_v16 = vld [vmem:[%s3211_s0 + $0x1e0] sm:$0xff]  }
  0xaf   :  { %v2044_v24 = vunpack.c.l.bf16 %v2455_v14  ;;  %v2045_v25 = vunpack.c.h.bf16 %v2455_v14  ;;  %v900_v26 = vsel %vm644_vm8, %v516_v9, %v772_v20  ;;  %v2048_v28 = vunpack.c.l.bf16 %v2456_v18 }
  0xb0   :  { %2515 = vst [vmem:[%s3214_s3 + $0x198] sm:$0xff] %v2340_v19   ;;  %v901_v27 = vsel %vm645_vm9, %v517_v11, %v773_v21  ;;  %v2049_v29 = vunpack.c.h.bf16 %v2456_v18  ;;  %vm646_vm10 = vcmp.ge.f32.partialorder %v518_v22, 0.0  ;;  %vm647_vm11 = vcmp.ge.f32.partialorder %v519_v23, 0.0 }
  0xb1   :  { %v2345_v30 = vpack.c.bf16 %v901_v27, %v900_v26  ;;  %v774_v31 = vmul.f32 0.2, %v518_v22  ;;  %v775_v32 = vmul.f32 0.2, %v519_v23  ;;  %v385_v33 = vmul.f32 %v2907_v7, %v2044_v24 }
  0xb2   :  { %v386_v34 = vmul.f32 %v2907_v7, %v2045_v25  ;;  %v387_v35 = vmul.f32 %v2907_v7, %v2048_v28  ;;  %v388_v37 = vmul.f32 %v2907_v7, %v2049_v29  ;;  %v2052_v38 = vunpack.c.l.bf16 %v2457_v1 }
  0xb3   :  { %2516 = vst [vmem:[%s3214_s3 + $0x1a0] sm:$0xff] %v2345_v30   ;;  %v902_v36 = vsel %vm646_vm10, %v518_v22, %v774_v31  ;;  %v2053_v39 = vunpack.c.h.bf16 %v2457_v1  ;;  %v903_v40 = vsel %vm647_vm11, %v519_v23, %v775_v32  ;;  %v520_v41 = vadd.f32 %v2919_v49, %v385_v33 }
  0xb4   :  { %v521_v42 = vadd.f32 %v2919_v49, %v386_v34  ;;  %v522_v43 = vadd.f32 %v2919_v49, %v387_v35  ;;  %v2350_v44 = vpack.c.bf16 %v903_v40, %v902_v36  ;;  %v523_v45 = vadd.f32 %v2919_v49, %v388_v37  ;;  %v2462_v34 = vld [vmem:[%s3211_s0 + $0x1e8] sm:$0xff]   ;;  %v2464_v40 = vld [vmem:[%s3211_s0 + $0x1f8] sm:$0xff]  }
  0xb5   :  { %v389_v46 = vmul.f32 %v2907_v7, %v2052_v38  ;;  %v390_v47 = vmul.f32 %v2907_v7, %v2053_v39  ;;  %vm648_vm12 = vcmp.ge.f32.partialorder %v520_v41, 0.0  ;;  %v776_v50 = vmul.f32 0.2, %v520_v41  ;;  %v2463_v39 = vld [vmem:[%s3211_s0 + $0x1f0] sm:$0xff]  }
  0xb6   :  { %vm649_vm13 = vcmp.ge.f32.partialorder %v521_v42, 0.0  ;;  %v777_v51 = vmul.f32 0.2, %v521_v42  ;;  %2517 = vst [vmem:[%s3214_s3 + $0x1a8] sm:$0xff] %v2350_v44   ;;  %vm650_vm14 = vcmp.ge.f32.partialorder %v522_v43, 0.0  ;;  %vm651_vm15 = vcmp.ge.f32.partialorder %v523_v45, 0.0 }
  0xb7   :  { %v778_v52 = vmul.f32 0.2, %v522_v43  ;;  %v779_v53 = vmul.f32 0.2, %v523_v45  ;;  %v904_v54 = vsel %vm648_vm12, %v520_v41, %v776_v50  ;;  %v524_v56 = vadd.f32 %v2919_v49, %v389_v46 }
  0xb8   :  { %v905_v55 = vsel %vm649_vm13, %v521_v42, %v777_v51  ;;  %v525_v57 = vadd.f32 %v2919_v49, %v390_v47  ;;  %v2056_v62 = vunpack.c.l.bf16 %v2458_v48  ;;  %v2057_v4 = vunpack.c.h.bf16 %v2458_v48 }
  0xb9   :  { %v2355_v59 = vpack.c.bf16 %v905_v55, %v904_v54  ;;  %v906_v60 = vsel %vm650_vm14, %v522_v43, %v778_v52  ;;  %v907_v61 = vsel %vm651_vm15, %v523_v45, %v779_v53  ;;  %vm652_vm0 = vcmp.ge.f32.partialorder %v524_v56, 0.0 }
  0xba   :  { %v2360_v0 = vpack.c.bf16 %v907_v61, %v906_v60  ;;  %vm653_vm1 = vcmp.ge.f32.partialorder %v525_v57, 0.0  ;;  %v780_v2 = vmul.f32 0.2, %v524_v56  ;;  %v781_v3 = vmul.f32 0.2, %v525_v57 }
  0xbb   :  { %2518 = vst [vmem:[%s3214_s3 + $0x1b0] sm:$0xff] %v2355_v59   ;;  %v391_v5 = vmul.f32 %v2907_v7, %v2056_v62  ;;  %v2060_v6 = vunpack.c.l.bf16 %v2459_v58  ;;  %v2061_v9 = vunpack.c.h.bf16 %v2459_v58  ;;  %v2064_v10 = vunpack.c.l.bf16 %v2460_v63 }
  0xbc   :  { %2519 = vst [vmem:[%s3214_s3 + $0x1b8] sm:$0xff] %v2360_v0   ;;  %v908_v8 = vsel %vm652_vm0, %v524_v56, %v780_v2  ;;  %v2065_v11 = vunpack.c.h.bf16 %v2460_v63  ;;  %v909_v12 = vsel %vm653_vm1, %v525_v57, %v781_v3  ;;  %v392_v13 = vmul.f32 %v2907_v7, %v2057_v4 }
  0xbd   :  { %v526_v14 = vadd.f32 %v2919_v49, %v391_v5  ;;  %v393_v15 = vmul.f32 %v2907_v7, %v2060_v6  ;;  %v2365_v17 = vpack.c.bf16 %v909_v12, %v908_v8  ;;  %v394_v18 = vmul.f32 %v2907_v7, %v2061_v9 }
  0xbe   :  { %v395_v19 = vmul.f32 %v2907_v7, %v2064_v10  ;;  %v396_v20 = vmul.f32 %v2907_v7, %v2065_v11  ;;  %v527_v21 = vadd.f32 %v2919_v49, %v392_v13  ;;  %v2068_v27 = vunpack.c.l.bf16 %v2461_v16 }
  0xbf   :  { %vm654_vm2 = vcmp.ge.f32.partialorder %v526_v14, 0.0  ;;  %v782_v22 = vmul.f32 0.2, %v526_v14  ;;  %v528_v23 = vadd.f32 %v2919_v49, %v393_v15  ;;  %2520 = vst [vmem:[%s3214_s3 + $0x1c0] sm:$0xff] %v2365_v17   ;;  %v529_v24 = vadd.f32 %v2919_v49, %v394_v18 }
  0xc0   :  { %v530_v25 = vadd.f32 %v2919_v49, %v395_v19  ;;  %v531_v26 = vadd.f32 %v2919_v49, %v396_v20  ;;  %vm655_vm3 = vcmp.ge.f32.partialorder %v527_v21, 0.0  ;;  %v783_v28 = vmul.f32 0.2, %v527_v21 }
  0xc1   :  { %v910_v29 = vsel %vm654_vm2, %v526_v14, %v782_v22  ;;  %vm656_vm4 = vcmp.ge.f32.partialorder %v528_v23, 0.0  ;;  %vm657_vm5 = vcmp.ge.f32.partialorder %v529_v24, 0.0  ;;  %v784_v1 = vmul.f32 0.2, %v528_v23 }
  0xc2   :  { %v785_v30 = vmul.f32 0.2, %v529_v24  ;;  %vm658_vm6 = vcmp.ge.f32.partialorder %v530_v25, 0.0  ;;  %v911_v31 = vsel %vm655_vm3, %v527_v21, %v783_v28  ;;  %vm659_vm7 = vcmp.ge.f32.partialorder %v531_v26, 0.0 }
  0xc3   :  { %v786_v32 = vmul.f32 0.2, %v530_v25  ;;  %v787_v33 = vmul.f32 0.2, %v531_v26  ;;  %v2370_v35 = vpack.c.bf16 %v911_v31, %v910_v29  ;;  %v912_v36 = vsel %vm656_vm4, %v528_v23, %v784_v1 }
  0xc4   :  { %v913_v37 = vsel %vm657_vm5, %v529_v24, %v785_v30  ;;  %v2069_v38 = vunpack.c.h.bf16 %v2461_v16  ;;  %v397_v44 = vmul.f32 %v2907_v7, %v2068_v27  ;;  %v2072_v47 = vunpack.c.l.bf16 %v2462_v34 }
  0xc5   :  { %v2375_v41 = vpack.c.bf16 %v913_v37, %v912_v36  ;;  %v914_v42 = vsel %vm658_vm6, %v530_v25, %v786_v32  ;;  %v915_v43 = vsel %vm659_vm7, %v531_v26, %v787_v33  ;;  %2521 = vst [vmem:[%s3214_s3 + $0x1c8] sm:$0xff] %v2370_v35   ;;  %v2073_v48 = vunpack.c.h.bf16 %v2462_v34 }
  0xc6   :  { %v2380_v45 = vpack.c.bf16 %v915_v43, %v914_v42  ;;  %v398_v46 = vmul.f32 %v2907_v7, %v2069_v38  ;;  %v532_v50 = vadd.f32 %v2919_v49, %v397_v44  ;;  %v2076_v51 = vunpack.c.l.bf16 %v2463_v39 }
  0xc7   :  { %2522 = vst [vmem:[%s3214_s3 + $0x1d0] sm:$0xff] %v2375_v41   ;;  %v2077_v52 = vunpack.c.h.bf16 %v2463_v39  ;;  %v2080_v53 = vunpack.c.l.bf16 %v2464_v40  ;;  %v399_v55 = vmul.f32 %v2907_v7, %v2072_v47  ;;  %v400_v56 = vmul.f32 %v2907_v7, %v2073_v48 }
  0xc8   :  { %2523 = vst [vmem:[%s3214_s3 + $0x1d8] sm:$0xff] %v2380_v45   ;;  %v533_v54 = vadd.f32 %v2919_v49, %v398_v46  ;;  %v2081_v57 = vunpack.c.h.bf16 %v2464_v40  ;;  %vm660_vm8 = vcmp.ge.f32.partialorder %v532_v50, 0.0  ;;  %v788_v58 = vmul.f32 0.2, %v532_v50 }
  0xc9   :  { %v401_v59 = vmul.f32 %v2907_v7, %v2076_v51  ;;  %v402_v60 = vmul.f32 %v2907_v7, %v2077_v52  ;;  %v534_v62 = vadd.f32 %v2919_v49, %v399_v55  ;;  %v535_v63 = vadd.f32 %v2919_v49, %v400_v56 }
  0xca   :  { %vm661_vm9 = vcmp.ge.f32.partialorder %v533_v54, 0.0  ;;  %v789_v61 = vmul.f32 0.2, %v533_v54  ;;  %v916_v0 = vsel %vm660_vm8, %v532_v50, %v788_v58  ;;  %v403_v4 = vmul.f32 %v2907_v7, %v2080_v53 }
  0xcb   :  { %v536_v2 = vadd.f32 %v2919_v49, %v401_v59  ;;  %v537_v3 = vadd.f32 %v2919_v49, %v402_v60  ;;  %vm662_vm10 = vcmp.ge.f32.partialorder %v534_v62, 0.0  ;;  %vm663_vm11 = vcmp.ge.f32.partialorder %v535_v63, 0.0 }
  0xcc   :  { %v917_v5 = vsel %vm661_vm9, %v533_v54, %v789_v61  ;;  %v790_v6 = vmul.f32 0.2, %v534_v62  ;;  %v791_v9 = vmul.f32 0.2, %v535_v63  ;;  %v404_v13 = vmul.f32 %v2907_v7, %v2081_v57 }
  0xcd   :  { %v2385_v8 = vpack.c.bf16 %v917_v5, %v916_v0  ;;  %vm664_vm12 = vcmp.ge.f32.partialorder %v536_v2, 0.0  ;;  %vm665_vm13 = vcmp.ge.f32.partialorder %v537_v3, 0.0  ;;  %v792_v11 = vmul.f32 0.2, %v536_v2 }
  0xce   :  { %v918_v10 = vsel %vm662_vm10, %v534_v62, %v790_v6  ;;  %v793_v12 = vmul.f32 0.2, %v537_v3  ;;  %v919_v14 = vsel %vm663_vm11, %v535_v63, %v791_v9  ;;  %v538_v15 = vadd.f32 %v2919_v49, %v403_v4 }
  0xcf   :  { %2524 = vst [vmem:[%s3214_s3 + $0x1e0] sm:$0xff] %v2385_v8   ;;  %v2390_v16 = vpack.c.bf16 %v919_v14, %v918_v10  ;;  %v920_v17 = vsel %vm664_vm12, %v536_v2, %v792_v11  ;;  %v539_v19 = vadd.f32 %v2919_v49, %v404_v13 }
  0xd0   :  { %v921_v18 = vsel %vm665_vm13, %v537_v3, %v793_v12  ;;  %vm666_vm14 = vcmp.ge.f32.partialorder %v538_v15, 0.0  ;;  %v794_v21 = vmul.f32 0.2, %v538_v15 }
  0xd1   :  { %v2395_v20 = vpack.c.bf16 %v921_v18, %v920_v17  ;;  %2525 = vst [vmem:[%s3214_s3 + $0x1e8] sm:$0xff] %v2390_v16   ;;  %vm667_vm15 = vcmp.ge.f32.partialorder %v539_v19, 0.0  ;;  %v795_v7 = vmul.f32 0.2, %v539_v19 }
  0xd2   :  { %v922_v22 = vsel %vm666_vm14, %v538_v15, %v794_v21 }
  0xd3   :  { %2526 = vst [vmem:[%s3214_s3 + $0x1f0] sm:$0xff] %v2395_v20   ;;  %v923_v23 = vsel %vm667_vm15, %v539_v19, %v795_v7 }
  0xd4   :  { %v2400_v24 = vpack.c.bf16 %v923_v23, %v922_v22 }
  0xd6   :  { %2527 = vst [vmem:[%s3214_s3 + $0x1f8] sm:$0xff] %v2400_v24  }

// kernel: discriminator_forward.9
= control target key start
LH: loop header
LB: loop body
LE: loop exit
PB: predicated region body
PF: predicated region fallthrough
CT: control target
= control target key end

     0   :  { %s4336_s15 = smov 0   ;;  %s4338_s16 = smov 0   ;;  %s5036_s0 = inlined_call_operand.vmem [shape: bf16[2,9,64,32], index: 0, kind: input, shape index: {}, may-alias: {0,1}]   ;;  %s5037_s1 = inlined_call_operand.vmem [shape: bf16[2,9,64,32], index: 1, kind: input, shape index: {}, may-alias: {0,1}]   ;;  %s5038_s2 = inlined_call_operand.vmem [shape: bf16[2,32,128], index: 2, kind: input, shape index: {}]   ;;  %s5039_s3 = inlined_call_operand.vmem [shape: bf16[2,8,64,128], index: 3, kind: output, shape index: {0}]   ;;  %s5040_s4 = inlined_call_operand.vmem [shape: f32[2,1,2,128], index: 4, kind: output, shape index: {1}]  }
   0x1   :  { %s4340_s17 = smov 0  }
   0x2 LB: > { %s27_s18 = sadd.s32 1, %s4305_s16  ;;  %p3122_p0 = scmp.ge.s32.totalorder %s4309_s17, 1  ;;  %s4309_s17 = sphi %s4340_s17, %s15_s17   ;;  %s4305_s16 = sphi %s4338_s16, %s5099_s16   ;;  %s4301_s15 = sphi %s4336_s15, %s5098_s15  }
   0x3   : > { %p29_p1 = scmp.ge.s32.totalorder %s27_s18, 2  ;;  %p223_p2 = scmp.lt.s32.totalorder %s4309_s17, 3 }
   0x5   : > { %s5101_s18 = smov (%p29_p1, %s27_s18), 0  ;;  %p224_p3 = pnand %p3122_p0, %p223_p2 }
   0x7   : > { %227 = sbr.rel (%p224_p3) target bundleno = 461 (0x1cd), region = 32 }
   0xe   : > { %v4191_v0 = vld [vmem:[%s5038_s2 + $0x10] sm:$0xff]   ;;  %p288_p4 = scmp.lt.s32.totalorder %s4301_s15, 1  ;;  %v4193_v2 = vld [vmem:[%s5038_s2 + $0x18] sm:$0xff]   ;;  %v4198_v4 = vld [vmem:[%s5038_s2] sm:$0xff]   ;;  %vm393_vm0 = vcmask 261120  }
   0xf   : > { %v4192_v1 = vld [vmem:[%s5038_s2 + $0x10] sm:$0xff]   ;;  %3908 = vmatprep.subr.bf16.mxu0 %v4191_v0  ;;  %v4194_v3 = vld [vmem:[%s5038_s2 + $0x18] sm:$0xff]   ;;  %v4200_v5 = vld [vmem:[%s5038_s2] sm:$0xff]  }
  0x10   : > { %s5103_s15 = smov (!%p288_p4, %s4301_s15), 1  ;;  %3932 = vmatprep.subr.bf16.mxu1 %v4192_v1  ;;  %3909 = vmatpush3.bf16.msra.mxu0 %v4191_v0  ;;  %v4204_v8 = vld [vmem:[%s5038_s2 + $0x8] sm:$0xff]   ;;  %v4211_v18 = vld [vmem:[%s5038_s2 + $0x10] sm:$0xff]   ;;  %v4217_v24 = vld [vmem:[%s5038_s2 + $0x18] sm:$0xff]  }
  0x11   : > { %3933 = vmatpush3.bf16.msra.mxu1 %v4192_v1  ;;  %3910 = vmatprep.subr.bf16.mxu0 %v4193_v2  ;;  %s4164_s27 = smul.u32 288, %s5103_s15  ;;  %v4206_v15 = vld [vmem:[%s5038_s2 + $0x8] sm:$0xff]   ;;  %v4212_v19 = vld [vmem:[%s5038_s2 + $0x10] sm:$0xff]   ;;  %v4218_v25 = vld [vmem:[%s5038_s2 + $0x18] sm:$0xff]   ;;  %s3556_s29 = sshll.u32 %s5103_s15, 8 }
  0x12   : > { %3934 = vmatprep.subr.bf16.mxu1 %v4194_v3  ;;  %v4222_v29 = vld [vmem:[%s5038_s2] sm:$0xff]   ;;  %v4228_v36 = vld [vmem:[%s5038_s2 + $0x8] sm:$0xff]   ;;  %v4235_v39 = vld [vmem:[%s5038_s2 + $0x10] sm:$0xff]   ;;  %s4607_s6 = scalar_lea.vmem %s5039_s3, %s3556_s29 }
  0x13   : > { %s4380_s8 = scalar_lea.vmem %s5036_s0, %s4164_s27  ;;  %v4224_v31 = vld [vmem:[%s5038_s2] sm:$0xff]   ;;  %v4230_v37 = vld [vmem:[%s5038_s2 + $0x8] sm:$0xff]   ;;  %v4236_v40 = vld [vmem:[%s5038_s2 + $0x10] sm:$0xff]   ;;  %s3555_s25 = sadd.s32 256, %s4164_s27 }
  0x14   : > { %3911 = vmatpush3.bf16.msra.mxu0 %v4193_v2  ;;  %v4195_v6 = vld [vmem:[%s4380_s8 + $0x20] sm:$0xff]   ;;  %v4197_v9 = vld [vmem:[%s4380_s8 + $0x28] sm:$0xff]   ;;  %v4201_v11 = vld [vmem:[%s4380_s8 + $0x30] sm:$0xff]   ;;  %s4515_s7 = scalar_lea.vmem %s5037_s1, %s3555_s25 }
  0x15   : > { %3935 = vmatpush3.bf16.msra.mxu1 %v4194_v3  ;;  %v4196_v7 = vld [vmem:[%s4380_s8 + $0x40] sm:$0xff]   ;;  %3920 = vmatprep.subr.bf16.mxu0 %v4198_v4  ;;  %v4199_v10 = vld [vmem:[%s4380_s8 + $0x48] sm:$0xff]   ;;  %v4202_v12 = vld [vmem:[%s4380_s8 + $0x50] sm:$0xff]  }
  0x16   : > { %3912 = vmatprep.mubr.msk.bf16.mxu0 %vm393_vm0, %v4195_v6  ;;  %3944 = vmatprep.subr.bf16.mxu1 %v4200_v5  ;;  %v4203_v13 = vld [vmem:[%s4380_s8 + $0x38] sm:$0xff]   ;;  %v4207_v16 = vld [vmem:[%s4380_s8] sm:$0xff]   ;;  %v4209_v20 = vld [vmem:[%s4380_s8 + $0x8] sm:$0xff]  }
  0x17   : > { %3936 = vmatprep.mubr.msk.bf16.mxu1 %vm393_vm0, %v4196_v7  ;;  %3913 = vmatmul.mubr.msk.bf16.vlgmr.msra.gmra.mrb[0].mxu0 %vm393_vm0, %v4197_v9  ;;  %v4205_v14 = vld [vmem:[%s4380_s8 + $0x58] sm:$0xff]   ;;  %v4208_v17 = vld [vmem:[%s4380_s8 + $0x20] sm:$0xff]   ;;  %v4210_v21 = vld [vmem:[%s4380_s8 + $0x28] sm:$0xff]  }
  0x18   : > { %3937 = vmatmul.mubr.msk.bf16.vlgmr.msra.gmra.mrb[0].mxu1 %vm393_vm0, %v4199_v10  ;;  %3921 = vmatpush3.bf16.msra.mxu0 %v4198_v4  ;;  %v4213_v22 = vld [vmem:[%s4380_s8 + $0x10] sm:$0xff]   ;;  %v4215_v26 = vld [vmem:[%s4380_s8 + $0x18] sm:$0xff]   ;;  %v4219_v28 = vld [vmem:[%s4380_s8 + $0x60] sm:$0xff]  }
  0x19   : > { %3945 = vmatpush3.bf16.msra.mxu1 %v4200_v5  ;;  %3916 = vmatprep.mubr.msk.bf16.mxu0 %vm393_vm0, %v4201_v11  ;;  %v4214_v23 = vld [vmem:[%s4380_s8 + $0x30] sm:$0xff]   ;;  %v4216_v27 = vld [vmem:[%s4380_s8 + $0x38] sm:$0xff]   ;;  %v4220_v30 = vld [vmem:[%s4380_s8 + $0x80] sm:$0xff]  }
  0x1a   : > { %3940 = vmatprep.mubr.msk.bf16.mxu1 %vm393_vm0, %v4202_v12  ;;  %3922 = vmatprep.subr.bf16.mxu0 %v4204_v8  ;;  %v4221_v32 = vld [vmem:[%s4380_s8 + $0x68] sm:$0xff]   ;;  %v4225_v34 = vld [vmem:[%s4380_s8 + $0x70] sm:$0xff]   ;;  %v4227_v38 = vld [vmem:[%s4380_s8 + $0x78] sm:$0xff]  }
  0x1b   : > { %3946 = vmatprep.subr.bf16.mxu1 %v4206_v15  ;;  %v4223_v33 = vld [vmem:[%s4380_s8 + $0x88] sm:$0xff]   ;;  %v4226_v35 = vld [vmem:[%s4380_s8 + $0x90] sm:$0xff]   ;;  %v4229_v41 = vld [vmem:[%s4380_s8 + $0x98] sm:$0xff]  }
  0x1c   : > { %3923 = vmatpush3.bf16.msra.mxu0 %v4204_v8  ;;  %v4231_v42 = vld [vmem:[%s4380_s8 + $0x40] sm:$0xff]   ;;  %v4233_v44 = vld [vmem:[%s4380_s8 + $0x48] sm:$0xff]   ;;  %v4237_v46 = vld [vmem:[%s4380_s8 + $0x50] sm:$0xff]  }
  0x1d   : > { %3947 = vmatpush3.bf16.msra.mxu1 %v4206_v15  ;;  %3956 = vmatprep.subr.bf16.mxu0 %v4211_v18  ;;  %v4232_v43 = vld [vmem:[%s4380_s8 + $0x60] sm:$0xff]   ;;  %v4234_v45 = vld [vmem:[%s4380_s8 + $0x68] sm:$0xff]   ;;  %v4238_v47 = vld [vmem:[%s4380_s8 + $0x70] sm:$0xff]  }
  0x1e   : > { %3980 = vmatprep.subr.bf16.mxu1 %v4212_v19  ;;  %v4241_v48 = vld [vmem:[%s5038_s2 + $0x18] sm:$0xff]   ;;  %v4246_v51 = vld [vmem:[%s5038_s2] sm:$0xff]   ;;  %v4245_v56 = vld [vmem:[%s4380_s8 + $0xa8] sm:$0xff]  }
  0x1f   : > { %3917 = vmatmul.mubr.msk.bf16.gmra.mrb[4].mxu0 %vm393_vm0, %v4203_v13  ;;  %v4242_v49 = vld [vmem:[%s5038_s2 + $0x18] sm:$0xff]   ;;  %v4248_v52 = vld [vmem:[%s5038_s2] sm:$0xff]   ;;  %v4247_v57 = vld [vmem:[%s4380_s8 + $0xc8] sm:$0xff]  }
  0x20   : > { %3941 = vmatmul.mubr.msk.bf16.gmra.mrb[4].mxu1 %vm393_vm0, %v4205_v14  ;;  %3924 = vmatprep.mubr.msk.bf16.mxu0 %vm393_vm0, %v4207_v16  ;;  %v4239_v50 = vld [vmem:[%s4380_s8 + $0x58] sm:$0xff]   ;;  %v4243_v54 = vld [vmem:[%s4380_s8 + $0xa0] sm:$0xff]   ;;  %v4249_v58 = vld [vmem:[%s4380_s8 + $0xb0] sm:$0xff]  }
  0x21   : > { %3948 = vmatprep.mubr.msk.bf16.mxu1 %vm393_vm0, %v4208_v17  ;;  %v4240_v53 = vld [vmem:[%s4380_s8 + $0x78] sm:$0xff]   ;;  %v4244_v55 = vld [vmem:[%s4380_s8 + $0xc0] sm:$0xff]   ;;  %v4250_v59 = vld [vmem:[%s4380_s8 + $0xd0] sm:$0xff]  }
  0x22   : > { %v4252_v60 = vld [vmem:[%s5038_s2 + $0x8] sm:$0xff]   ;;  %v4251_v62 = vld [vmem:[%s4380_s8 + $0xb8] sm:$0xff]   ;;  %v4259_v63 = vld [vmem:[%s5038_s2 + $0x10] sm:$0xff]  }
  0x23   : > { %v4254_v61 = vld [vmem:[%s5038_s2 + $0x8] sm:$0xff]   ;;  %v4260_v0 = vld [vmem:[%s5038_s2 + $0x10] sm:$0xff]   ;;  %v4253_v1 = vld [vmem:[%s4380_s8 + $0xd8] sm:$0xff]  }
  0x24   : > { %v4255_v2 = vld [vmem:[%s4380_s8 + $0x80] sm:$0xff]   ;;  %v4257_v4 = vld [vmem:[%s4380_s8 + $0x88] sm:$0xff]   ;;  %v4261_v6 = vld [vmem:[%s4380_s8 + $0x90] sm:$0xff]  }
  0x25   : > { %v4256_v3 = vld [vmem:[%s4380_s8 + $0xa0] sm:$0xff]   ;;  %v4258_v5 = vld [vmem:[%s4380_s8 + $0xa8] sm:$0xff]   ;;  %v4262_v7 = vld [vmem:[%s4380_s8 + $0xb0] sm:$0xff]  }
  0x26   : > { %v4265_v8 = vld [vmem:[%s5038_s2 + $0x18] sm:$0xff]   ;;  %v4270_v10 = vld [vmem:[%s5038_s2] sm:$0xff]   ;;  %v4269_v16 = vld [vmem:[%s4380_s8 + $0xe8] sm:$0xff]  }
  0x27   : > { %3925 = vmatmul.mubr.msk.bf16.vlgmr.msra.gmra.mrb[0].mxu0 %vm393_vm0, %v4209_v20  ;;  %v4266_v9 = vld [vmem:[%s5038_s2 + $0x18] sm:$0xff]   ;;  %v4272_v11 = vld [vmem:[%s5038_s2] sm:$0xff]   ;;  %v4271_v17 = vld [vmem:[%s4515_s7 + $0x8] sm:$0xff]  }
  0x28   : > { %3949 = vmatmul.mubr.msk.bf16.vlgmr.msra.gmra.mrb[0].mxu1 %vm393_vm0, %v4210_v21  ;;  %3957 = vmatpush3.bf16.msra.mxu0 %v4211_v18  ;;  %v4263_v12 = vld [vmem:[%s4380_s8 + $0x98] sm:$0xff]   ;;  %v4267_v14 = vld [vmem:[%s4380_s8 + $0xe0] sm:$0xff]   ;;  %v4273_v18 = vld [vmem:[%s4380_s8 + $0xf0] sm:$0xff]  }
  0x29   : > { %3981 = vmatpush3.bf16.msra.mxu1 %v4212_v19  ;;  %3928 = vmatprep.mubr.msk.bf16.mxu0 %vm393_vm0, %v4213_v22  ;;  %v4264_v13 = vld [vmem:[%s4380_s8 + $0xb8] sm:$0xff]   ;;  %v4268_v15 = vld [vmem:[%s4515_s7] sm:$0xff]   ;;  %v4274_v19 = vld [vmem:[%s4515_s7 + $0x10] sm:$0xff]  }
  0x2a   : > { %3952 = vmatprep.mubr.msk.bf16.mxu1 %vm393_vm0, %v4214_v23  ;;  %3958 = vmatprep.subr.bf16.mxu0 %v4217_v24  ;;  %v4276_v20 = vld [vmem:[%s5038_s2 + $0x8] sm:$0xff]   ;;  %v4275_v22 = vld [vmem:[%s4380_s8 + $0xf8] sm:$0xff]  }
  0x2b   : > { %3982 = vmatprep.subr.bf16.mxu1 %v4218_v25  ;;  %v4278_v21 = vld [vmem:[%s5038_s2 + $0x8] sm:$0xff]   ;;  %v4277_v23 = vld [vmem:[%s4515_s7 + $0x18] sm:$0xff]  }
  0x2c   : > { %3959 = vmatpush3.bf16.msra.mxu0 %v4217_v24  ;;  %v4279_v24 = vld [vmem:[%s4380_s8 + $0xc0] sm:$0xff]  }
  0x2d   : > { %3983 = vmatpush3.bf16.msra.mxu1 %v4218_v25  ;;  %3968 = vmatprep.subr.bf16.mxu0 %v4222_v29  ;;  %v4280_v25 = vld [vmem:[%s4380_s8 + $0xe0] sm:$0xff]  }
  0x2e   : > { %3992 = vmatprep.subr.bf16.mxu1 %v4224_v31 }
  0x2f   : > { %3929 = vmatmul.mubr.msk.bf16.gmra.mrb[4].mxu0 %vm393_vm0, %v4215_v26  ;;  %v4281_v26 = vld [vmem:[%s4380_s8 + $0xc8] sm:$0xff]  }
  0x30   : > { %3953 = vmatmul.mubr.msk.bf16.gmra.mrb[4].mxu1 %vm393_vm0, %v4216_v27  ;;  %3960 = vmatprep.mubr.msk.bf16.mxu0 %vm393_vm0, %v4219_v28  ;;  %v4282_v27 = vld [vmem:[%s4380_s8 + $0xe8] sm:$0xff]   ;;  %v4283_v28 = vld [vmem:[%s4380_s8 + $0xd0] sm:$0xff]  }
  0x31   : > { %3984 = vmatprep.mubr.msk.bf16.mxu1 %vm393_vm0, %v4220_v30  ;;  %v4285_v30 = vld [vmem:[%s4380_s8 + $0xd8] sm:$0xff]  }
  0x37   : > { %3961 = vmatmul.mubr.msk.bf16.vlgmr.msra.gmra.mrb[8].mxu0 %vm393_vm0, %v4221_v32 }
  0x38   : > { %3985 = vmatmul.mubr.msk.bf16.vlgmr.msra.gmra.mrb[8].mxu1 %vm393_vm0, %v4223_v33  ;;  %3969 = vmatpush3.bf16.msra.mxu0 %v4222_v29  ;;  %v4284_v29 = vld [vmem:[%s4380_s8 + $0xf0] sm:$0xff]  }
  0x39   : > { %3993 = vmatpush3.bf16.msra.mxu1 %v4224_v31  ;;  %3964 = vmatprep.mubr.msk.bf16.mxu0 %vm393_vm0, %v4225_v34  ;;  %v4286_v31 = vld [vmem:[%s4380_s8 + $0xf8] sm:$0xff]   ;;  %s3127_s8 = sshll.u32 %s5103_s15, 1 }
  0x3a   : > { %3988 = vmatprep.mubr.msk.bf16.mxu1 %vm393_vm0, %v4226_v35  ;;  %3970 = vmatprep.subr.bf16.mxu0 %v4228_v36  ;;  %s4893_s9 = scalar_lea.vmem %s5040_s4, %s3127_s8 }
  0x3b   : > { %3994 = vmatprep.subr.bf16.mxu1 %v4230_v37 }
  0x3c   : > { %3971 = vmatpush3.bf16.msra.mxu0 %v4228_v36 }
  0x3d   : > { %3995 = vmatpush3.bf16.msra.mxu1 %v4230_v37  ;;  %4004 = vmatprep.subr.bf16.mxu0 %v4235_v39 }
  0x3e   : > { %4028 = vmatprep.subr.bf16.mxu1 %v4236_v40 }
  0x3f   : > { %3965 = vmatmul.mubr.msk.bf16.gmra.mrb[12].mxu0 %vm393_vm0, %v4227_v38 }
  0x40   : > { %3989 = vmatmul.mubr.msk.bf16.gmra.mrb[12].mxu1 %vm393_vm0, %v4229_v41  ;;  %3972 = vmatprep.mubr.msk.bf16.mxu0 %vm393_vm0, %v4231_v42 }
  0x41   : > { %3996 = vmatprep.mubr.msk.bf16.mxu1 %vm393_vm0, %v4232_v43 }
  0x47   : > { %3973 = vmatmul.mubr.msk.bf16.vlgmr.msra.gmra.mrb[8].mxu0 %vm393_vm0, %v4233_v44 }
  0x48   : > { %3997 = vmatmul.mubr.msk.bf16.vlgmr.msra.gmra.mrb[8].mxu1 %vm393_vm0, %v4234_v45  ;;  %4005 = vmatpush3.bf16.msra.mxu0 %v4235_v39 }
  0x49   : > { %4029 = vmatpush3.bf16.msra.mxu1 %v4236_v40  ;;  %3976 = vmatprep.mubr.msk.bf16.mxu0 %vm393_vm0, %v4237_v46 }
  0x4a   : > { %4000 = vmatprep.mubr.msk.bf16.mxu1 %vm393_vm0, %v4238_v47  ;;  %4006 = vmatprep.subr.bf16.mxu0 %v4241_v48 }
  0x4b   : > { %4030 = vmatprep.subr.bf16.mxu1 %v4242_v49 }
  0x4c   : > { %4007 = vmatpush3.bf16.msra.mxu0 %v4241_v48 }
  0x4d   : > { %4031 = vmatpush3.bf16.msra.mxu1 %v4242_v49  ;;  %4016 = vmatprep.subr.bf16.mxu0 %v4246_v51 }
  0x4e   : > { %4040 = vmatprep.subr.bf16.mxu1 %v4248_v52 }
  0x4f   : > { %3977 = vmatmul.mubr.msk.bf16.gmra.mrb[12].mxu0 %vm393_vm0, %v4239_v50 }
  0x50   : > { %4001 = vmatmul.mubr.msk.bf16.gmra.mrb[12].mxu1 %vm393_vm0, %v4240_v53  ;;  %4008 = vmatprep.mubr.msk.bf16.mxu0 %vm393_vm0, %v4243_v54 }
  0x51   : > { %4032 = vmatprep.mubr.msk.bf16.mxu1 %vm393_vm0, %v4244_v55 }
  0x57   : > { %4009 = vmatmul.mubr.msk.bf16.vlgmr.msra.gmra.mrb[16].mxu0 %vm393_vm0, %v4245_v56 }
  0x58   : > { %4033 = vmatmul.mubr.msk.bf16.vlgmr.msra.gmra.mrb[16].mxu1 %vm393_vm0, %v4247_v57  ;;  %4017 = vmatpush3.bf16.msra.mxu0 %v4246_v51 }
  0x59   : > { %4041 = vmatpush3.bf16.msra.mxu1 %v4248_v52  ;;  %4012 = vmatprep.mubr.msk.bf16.mxu0 %vm393_vm0, %v4249_v58 }
  0x5a   : > { %4036 = vmatprep.mubr.msk.bf16.mxu1 %vm393_vm0, %v4250_v59  ;;  %4018 = vmatprep.subr.bf16.mxu0 %v4252_v60 }
  0x5b   : > { %4042 = vmatprep.subr.bf16.mxu1 %v4254_v61 }
  0x5c   : > { %4019 = vmatpush3.bf16.msra.mxu0 %v4252_v60 }
  0x5d   : > { %4043 = vmatpush3.bf16.msra.mxu1 %v4254_v61  ;;  %4052 = vmatprep.subr.bf16.mxu0 %v4259_v63 }
  0x5e   : > { %4076 = vmatprep.subr.bf16.mxu1 %v4260_v0 }
  0x5f   : > { %4013 = vmatmul.mubr.msk.bf16.gmra.mrb[20].mxu0 %vm393_vm0, %v4251_v62 }
  0x60   : > { %4037 = vmatmul.mubr.msk.bf16.gmra.mrb[20].mxu1 %vm393_vm0, %v4253_v1  ;;  %4020 = vmatprep.mubr.msk.bf16.mxu0 %vm393_vm0, %v4255_v2 }
  0x61   : > { %4044 = vmatprep.mubr.msk.bf16.mxu1 %vm393_vm0, %v4256_v3 }
  0x67   : > { %4021 = vmatmul.mubr.msk.bf16.vlgmr.msra.gmra.mrb[16].mxu0 %vm393_vm0, %v4257_v4 }
  0x68   : > { %4045 = vmatmul.mubr.msk.bf16.vlgmr.msra.gmra.mrb[16].mxu1 %vm393_vm0, %v4258_v5  ;;  %4053 = vmatpush3.bf16.msra.mxu0 %v4259_v63 }
  0x69   : > { %4077 = vmatpush3.bf16.msra.mxu1 %v4260_v0  ;;  %4024 = vmatprep.mubr.msk.bf16.mxu0 %vm393_vm0, %v4261_v6 }
  0x6a   : > { %4048 = vmatprep.mubr.msk.bf16.mxu1 %vm393_vm0, %v4262_v7  ;;  %4054 = vmatprep.subr.bf16.mxu0 %v4265_v8 }
  0x6b   : > { %4078 = vmatprep.subr.bf16.mxu1 %v4266_v9 }
  0x6c   : > { %4055 = vmatpush3.bf16.msra.mxu0 %v4265_v8 }
  0x6d   : > { %4079 = vmatpush3.bf16.msra.mxu1 %v4266_v9  ;;  %4064 = vmatprep.subr.bf16.mxu0 %v4270_v10 }
  0x6e   : > { %4088 = vmatprep.subr.bf16.mxu1 %v4272_v11 }
  0x6f   : > { %4025 = vmatmul.mubr.msk.bf16.gmra.mrb[20].mxu0 %vm393_vm0, %v4263_v12 }
  0x70   : > { %4049 = vmatmul.mubr.msk.bf16.gmra.mrb[20].mxu1 %vm393_vm0, %v4264_v13  ;;  %4056 = vmatprep.mubr.msk.bf16.mxu0 %vm393_vm0, %v4267_v14 }
  0x71   : > { %4080 = vmatprep.mubr.msk.bf16.mxu1 %vm393_vm0, %v4268_v15 }
  0x77   : > { %4057 = vmatmul.mubr.msk.bf16.vlgmr.msra.gmra.mrb[24].mxu0 %vm393_vm0, %v4269_v16 }
  0x78   : > { %4081 = vmatmul.mubr.msk.bf16.vlgmr.msra.gmra.mrb[24].mxu1 %vm393_vm0, %v4271_v17  ;;  %4065 = vmatpush3.bf16.msra.mxu0 %v4270_v10 }
  0x79   : > { %4089 = vmatpush3.bf16.msra.mxu1 %v4272_v11  ;;  %4060 = vmatprep.mubr.msk.bf16.mxu0 %vm393_vm0, %v4273_v18 }
  0x7a   : > { %4084 = vmatprep.mubr.msk.bf16.mxu1 %vm393_vm0, %v4274_v19  ;;  %4066 = vmatprep.subr.bf16.mxu0 %v4276_v20 }
  0x7b   : > { %4090 = vmatprep.subr.bf16.mxu1 %v4278_v21 }
  0x7c   : > { %4067 = vmatpush3.bf16.msra.mxu0 %v4276_v20 }
  0x7d   : > { %4091 = vmatpush3.bf16.msra.mxu1 %v4278_v21 }
  0x7f   : > { %4061 = vmatmul.mubr.msk.bf16.gmra.mrb[28].mxu0 %vm393_vm0, %v4275_v22 }
  0x80   : > { %4085 = vmatmul.mubr.msk.bf16.gmra.mrb[28].mxu1 %vm393_vm0, %v4277_v23  ;;  %4068 = vmatprep.mubr.msk.bf16.mxu0 %vm393_vm0, %v4279_v24 }
  0x81   : > { %4092 = vmatprep.mubr.msk.bf16.mxu1 %vm393_vm0, %v4280_v25 }
  0x87   : > { %4069 = vmatmul.mubr.msk.bf16.vlgmr.msra.gmra.mrb[24].mxu0 %vm393_vm0, %v4281_v26 }
  0x88   : > { %4093 = vmatmul.mubr.msk.bf16.vlgmr.msra.gmra.mrb[24].mxu1 %vm393_vm0, %v4282_v27  ;;  %4072 = vmatprep.mubr.msk.bf16.mxu0 %vm393_vm0, %v4283_v28 }
  0x89   : > { %4096 = vmatprep.mubr.msk.bf16.mxu1 %vm393_vm0, %v4284_v29 }
  0x8f   : > { %4073 = vmatmul.mubr.msk.bf16.gmra.mrb[28].mxu0 %vm393_vm0, %v4285_v30 }
  0x90   : > { %4097 = vmatmul.mubr.msk.bf16.gmra.mrb[28].mxu1 %vm393_vm0, %v4286_v31 }
  0xfa   : > { %v4596_v32 = vpop.f32.mrb[0].mxu0 }
  0xfb   : > { %v4598_v33 = vpop.f32.mrb[0].mxu1  ;;  %v4600_v34 = vpop.f32.mrb[1].mxu0 }
  0xfc   : > { %v4602_v35 = vpop.f32.mrb[1].mxu1  ;;  %v4609_v36 = vpop.f32.mrb[2].mxu0 }
  0xfd   : > { %v3629_v37 = vpack.c.bf16 %v4609_v36, %v4596_v32  ;;  %v4613_v38 = vpop.f32.mrb[2].mxu1  ;;  %v4615_v39 = vpop.f32.mrb[3].mxu0 }
  0xfe   : > { %v3649_v40 = vpack.c.bf16 %v4613_v38, %v4598_v33  ;;  %v3624_v41 = vpack.c.bf16 %v4615_v39, %v4600_v34  ;;  %v620_v42 = vadd.f32 %v4615_v39, %v4600_v34  ;;  %v4623_v43 = vpop.f32.mrb[3].mxu1 }
  0xff   : > { %3781 = vst [vmem:[%s4607_s6 + $0x8] sm:$0xff] %v3629_v37   ;;  %v3644_v44 = vpack.c.bf16 %v4623_v43, %v4602_v35  ;;  %v917_v45 = vadd.f32 %v4623_v43, %v4602_v35 }
 0x100   : > { %3785 = vst [vmem:[%s4607_s6 + $0x28] sm:$0xff] %v3649_v40   ;;  %3625 = vst [vmem:[%s4607_s6] sm:$0xff] %v3624_v41   ;;  %v621_v46 = vadd.f32 %v4596_v32, %v620_v42 }
 0x101   : > { %3784 = vst [vmem:[%s4607_s6 + $0x20] sm:$0xff] %v3644_v44   ;;  %v918_v47 = vadd.f32 %v4598_v33, %v917_v45 }
 0x102   : > { %v4635_v48 = vpop.f32.mrb[4].mxu0  ;;  %v622_v49 = vadd.f32 %v4609_v36, %v621_v46 }
 0x103   : > { %v4638_v50 = vpop.f32.mrb[4].mxu1  ;;  %v4640_v51 = vpop.f32.mrb[5].mxu0  ;;  %v919_v52 = vadd.f32 %v4613_v38, %v918_v47 }
 0x104   : > { %v623_v53 = vadd.f32 %v622_v49, %v4640_v51  ;;  %v4644_v54 = vpop.f32.mrb[5].mxu1  ;;  %v4646_v55 = vpop.f32.mrb[6].mxu0 }
 0x105   : > { %v920_v56 = vadd.f32 %v919_v52, %v4644_v54  ;;  %v3639_v57 = vpack.c.bf16 %v4646_v55, %v4635_v48  ;;  %v4651_v58 = vpop.f32.mrb[6].mxu1  ;;  %v4653_v59 = vpop.f32.mrb[7].mxu0 }
 0x106   : > { %v3659_v60 = vpack.c.bf16 %v4651_v58, %v4638_v50  ;;  %v3634_v61 = vpack.c.bf16 %v4653_v59, %v4640_v51  ;;  %v624_v62 = vadd.f32 %v623_v53, %v4653_v59  ;;  %v4660_v63 = vpop.f32.mrb[7].mxu1 }
 0x107   : > { %3783 = vst [vmem:[%s4607_s6 + $0x18] sm:$0xff] %v3639_v57   ;;  %v3654_v0 = vpack.c.bf16 %v4660_v63, %v4644_v54  ;;  %v921_v1 = vadd.f32 %v920_v56, %v4660_v63 }
 0x108   : > { %3787 = vst [vmem:[%s4607_s6 + $0x38] sm:$0xff] %v3659_v60   ;;  %3782 = vst [vmem:[%s4607_s6 + $0x10] sm:$0xff] %v3634_v61   ;;  %v625_v2 = vadd.f32 %v4635_v48, %v624_v62 }
 0x109   : > { %3786 = vst [vmem:[%s4607_s6 + $0x30] sm:$0xff] %v3654_v0   ;;  %v922_v3 = vadd.f32 %v4638_v50, %v921_v1 }
 0x10a   : > { %v626_v4 = vadd.f32 %v4646_v55, %v625_v2 }
 0x10b   : > { %v923_v5 = vadd.f32 %v4651_v58, %v922_v3 }
 0x10c   : > { %v627_v6 = vrot.slane %v626_v4, 4 }
 0x10d   : > { %v924_v7 = vrot.slane %v923_v5, 4 }
 0x10e   : > { %v628_v8 = vadd.f32 %v627_v6, %v626_v4 }
 0x10f   : > { %v925_v9 = vadd.f32 %v924_v7, %v923_v5 }
 0x110   : > { %v629_v10 = vrot.slane %v628_v8, 2 }
 0x111   : > { %v926_v11 = vrot.slane %v925_v9, 2 }
 0x112   : > { %v630_v12 = vadd.f32 %v629_v10, %v628_v8 }
 0x113   : > { %v927_v13 = vadd.f32 %v926_v11, %v925_v9 }
 0x114   : > { %v631_v14 = vrot.slane %v630_v12, 1 }
 0x115   : > { %v928_v15 = vrot.slane %v927_v13, 1 }
 0x116   : > { %v632_v16 = vadd.f32 %v631_v14, %v630_v12 }
 0x117   : > { %v929_v17 = vadd.f32 %v928_v15, %v927_v13 }
 0x119   : > { %v930_v18 = vadd.f32 %v929_v17, %v632_v16 }
 0x11a   : > { %v4673_v19 = vpop.f32.mrb[8].mxu0 }
 0x11b   : > { %v4675_v20 = vpop.f32.mrb[8].mxu1  ;;  %v4677_v21 = vpop.f32.mrb[9].mxu0 }
 0x11c   : > { %v4679_v22 = vpop.f32.mrb[9].mxu1  ;;  %v4681_v23 = vpop.f32.mrb[10].mxu0 }
 0x11d   : > { %v3669_v24 = vpack.c.bf16 %v4681_v23, %v4673_v19  ;;  %v4685_v25 = vpop.f32.mrb[10].mxu1  ;;  %v4687_v26 = vpop.f32.mrb[11].mxu0 }
 0x11e   : > { %v3689_v27 = vpack.c.bf16 %v4685_v25, %v4675_v20  ;;  %v3664_v28 = vpack.c.bf16 %v4687_v26, %v4677_v21  ;;  %v1215_v29 = vadd.f32 %v4687_v26, %v4677_v21  ;;  %v4695_v30 = vpop.f32.mrb[11].mxu1 }
 0x11f   : > { %3789 = vst [vmem:[%s4607_s6 + $0x48] sm:$0xff] %v3669_v24   ;;  %v3684_v31 = vpack.c.bf16 %v4695_v30, %v4679_v22  ;;  %v1513_v37 = vadd.f32 %v4695_v30, %v4679_v22 }
 0x120   : > { %3793 = vst [vmem:[%s4607_s6 + $0x68] sm:$0xff] %v3689_v27   ;;  %3788 = vst [vmem:[%s4607_s6 + $0x40] sm:$0xff] %v3664_v28   ;;  %v1216_v40 = vadd.f32 %v4673_v19, %v1215_v29 }
 0x121   : > { %3792 = vst [vmem:[%s4607_s6 + $0x60] sm:$0xff] %v3684_v31   ;;  %v1514_v41 = vadd.f32 %v4675_v20, %v1513_v37 }
 0x122   : > { %v4707_v42 = vpop.f32.mrb[12].mxu0  ;;  %v1217_v44 = vadd.f32 %v4681_v23, %v1216_v40 }
 0x123   : > { %v4710_v45 = vpop.f32.mrb[12].mxu1  ;;  %v4712_v46 = vpop.f32.mrb[13].mxu0  ;;  %v1515_v47 = vadd.f32 %v4685_v25, %v1514_v41 }
 0x124   : > { %v1218_v49 = vadd.f32 %v1217_v44, %v4712_v46  ;;  %v4716_v52 = vpop.f32.mrb[13].mxu1  ;;  %v4718_v53 = vpop.f32.mrb[14].mxu0 }
 0x125   : > { %v1516_v56 = vadd.f32 %v1515_v47, %v4716_v52  ;;  %v3679_v57 = vpack.c.bf16 %v4718_v53, %v4707_v42  ;;  %v4723_v60 = vpop.f32.mrb[14].mxu1  ;;  %v4725_v61 = vpop.f32.mrb[15].mxu0 }
 0x126   : > { %v3699_v62 = vpack.c.bf16 %v4723_v60, %v4710_v45  ;;  %v3674_v0 = vpack.c.bf16 %v4725_v61, %v4712_v46  ;;  %v1219_v1 = vadd.f32 %v1218_v49, %v4725_v61  ;;  %v4732_v2 = vpop.f32.mrb[15].mxu1 }
 0x127   : > { %3791 = vst [vmem:[%s4607_s6 + $0x58] sm:$0xff] %v3679_v57   ;;  %v3694_v3 = vpack.c.bf16 %v4732_v2, %v4716_v52  ;;  %v1517_v4 = vadd.f32 %v1516_v56, %v4732_v2 }
 0x128   : > { %3795 = vst [vmem:[%s4607_s6 + $0x78] sm:$0xff] %v3699_v62   ;;  %3790 = vst [vmem:[%s4607_s6 + $0x50] sm:$0xff] %v3674_v0   ;;  %v1220_v5 = vadd.f32 %v4707_v42, %v1219_v1 }
 0x129   : > { %3794 = vst [vmem:[%s4607_s6 + $0x70] sm:$0xff] %v3694_v3   ;;  %v1518_v6 = vadd.f32 %v4710_v45, %v1517_v4 }
 0x12a   : > { %v1221_v7 = vadd.f32 %v4718_v53, %v1220_v5 }
 0x12b   : > { %v1519_v8 = vadd.f32 %v4723_v60, %v1518_v6 }
 0x12c   : > { %v1222_v9 = vrot.slane %v1221_v7, 4 }
 0x12d   : > { %v1520_v10 = vrot.slane %v1519_v8, 4 }
 0x12e   : > { %v1223_v11 = vadd.f32 %v1222_v9, %v1221_v7 }
 0x12f   : > { %v1521_v12 = vadd.f32 %v1520_v10, %v1519_v8 }
 0x130   : > { %v1224_v13 = vrot.slane %v1223_v11, 2 }
 0x131   : > { %v1522_v14 = vrot.slane %v1521_v12, 2 }
 0x132   : > { %v1225_v15 = vadd.f32 %v1224_v13, %v1223_v11 }
 0x133   : > { %v1523_v16 = vadd.f32 %v1522_v14, %v1521_v12 }
 0x134   : > { %v1226_v17 = vrot.slane %v1225_v15, 1 }
 0x135   : > { %v1524_v24 = vrot.slane %v1523_v16, 1 }
 0x136   : > { %v1227_v27 = vadd.f32 %v1226_v17, %v1225_v15 }
 0x137   : > { %v1525_v29 = vadd.f32 %v1524_v24, %v1523_v16 }
 0x138   : > { %v1228_v28 = vadd.f32 %v1227_v27, %v930_v18 }
 0x13a   : > { %v1526_v31 = vadd.f32 %v1525_v29, %v1228_v28  ;;  %v4745_v37 = vpop.f32.mrb[16].mxu0 }
 0x13b   : > { %v4747_v40 = vpop.f32.mrb[16].mxu1  ;;  %v4749_v41 = vpop.f32.mrb[17].mxu0 }
 0x13c   : > { %5060 = vst [vmem:[#allocation2_spill] sm:$0xff] %v4747_v40  ;;  %v4751_v44 = vpop.f32.mrb[17].mxu1  ;;  %v4753_v47 = vpop.f32.mrb[18].mxu0 }
 0x13d   : > { %v3709_v49 = vpack.c.bf16 %v4753_v47, %v4745_v37  ;;  %v4757_v56 = vpop.f32.mrb[18].mxu1  ;;  %v4759_v18 = vpop.f32.mrb[19].mxu0 }
 0x13e   : > { %5061 = vst [vmem:[#allocation3_spill] sm:$0xff] %v4757_v56  ;;  %v3729_v57 = vpack.c.bf16 %v4757_v56, %v4747_v40  ;;  %v3704_v62 = vpack.c.bf16 %v4759_v18, %v4749_v41  ;;  %v1811_v0 = vadd.f32 %v4759_v18, %v4749_v41  ;;  %v4767_v1 = vpop.f32.mrb[19].mxu1 }
 0x13f   : > { %5062 = vst [vmem:[#allocation4_spill] sm:$0xff] %v4767_v1  ;;  %3797 = vst [vmem:[%s4607_s6 + $0x88] sm:$0xff] %v3709_v49   ;;  %v3724_v3 = vpack.c.bf16 %v4767_v1, %v4751_v44  ;;  %v2109_v4 = vadd.f32 %v4767_v1, %v4751_v44 }
 0x140   : > { %3801 = vst [vmem:[%s4607_s6 + $0xa8] sm:$0xff] %v3729_v57   ;;  %3796 = vst [vmem:[%s4607_s6 + $0x80] sm:$0xff] %v3704_v62   ;;  %v1812_v5 = vadd.f32 %v4745_v37, %v1811_v0 }
 0x141   : > { %3800 = vst [vmem:[%s4607_s6 + $0xa0] sm:$0xff] %v3724_v3   ;;  %v2110_v6 = vadd.f32 %v4747_v40, %v2109_v4 }
 0x142   : > { %v4779_v7 = vpop.f32.mrb[20].mxu0  ;;  %v1813_v8 = vadd.f32 %v4753_v47, %v1812_v5 }
 0x143   : > { %v4782_v9 = vpop.f32.mrb[20].mxu1  ;;  %v4784_v10 = vpop.f32.mrb[21].mxu0  ;;  %v2111_v11 = vadd.f32 %v4757_v56, %v2110_v6 }
 0x144   : > { %5063 = vst [vmem:[#allocation5_spill] sm:$0xff] %v4782_v9  ;;  %v1814_v12 = vadd.f32 %v1813_v8, %v4784_v10  ;;  %v4788_v13 = vpop.f32.mrb[21].mxu1  ;;  %v4790_v14 = vpop.f32.mrb[22].mxu0 }
 0x145   : > { %5064 = vst [vmem:[#allocation6_spill] sm:$0xff] %v4788_v13  ;;  %v2112_v15 = vadd.f32 %v2111_v11, %v4788_v13  ;;  %v3719_v16 = vpack.c.bf16 %v4790_v14, %v4779_v7  ;;  %v4795_v17 = vpop.f32.mrb[22].mxu1  ;;  %v4797_v24 = vpop.f32.mrb[23].mxu0 }
 0x146   : > { %5065 = vst [vmem:[#allocation7_spill] sm:$0xff] %v4795_v17  ;;  %v3739_v27 = vpack.c.bf16 %v4795_v17, %v4782_v9  ;;  %v3714_v28 = vpack.c.bf16 %v4797_v24, %v4784_v10  ;;  %v1815_v29 = vadd.f32 %v1814_v12, %v4797_v24  ;;  %v4804_v49 = vpop.f32.mrb[23].mxu1 }
 0x147   : > { %5066 = vst [vmem:[#allocation8_spill] sm:$0xff] %v4804_v49  ;;  %3799 = vst [vmem:[%s4607_s6 + $0x98] sm:$0xff] %v3719_v16   ;;  %v3734_v57 = vpack.c.bf16 %v4804_v49, %v4788_v13  ;;  %v2113_v62 = vadd.f32 %v2112_v15, %v4804_v49 }
 0x148   : > { %3803 = vst [vmem:[%s4607_s6 + $0xb8] sm:$0xff] %v3739_v27   ;;  %3798 = vst [vmem:[%s4607_s6 + $0x90] sm:$0xff] %v3714_v28   ;;  %v1816_v0 = vadd.f32 %v4779_v7, %v1815_v29 }
 0x149   : > { %3802 = vst [vmem:[%s4607_s6 + $0xb0] sm:$0xff] %v3734_v57   ;;  %v2114_v3 = vadd.f32 %v4782_v9, %v2113_v62 }
 0x14a   : > { %v1817_v4 = vadd.f32 %v4790_v14, %v1816_v0 }
 0x14b   : > { %v2115_v5 = vadd.f32 %v4795_v17, %v2114_v3 }
 0x14c   : > { %v1818_v6 = vrot.slane %v1817_v4, 4 }
 0x14d   : > { %v2116_v8 = vrot.slane %v2115_v5, 4 }
 0x14e   : > { %v1819_v11 = vadd.f32 %v1818_v6, %v1817_v4 }
 0x14f   : > { %v2117_v12 = vadd.f32 %v2116_v8, %v2115_v5 }
 0x150   : > { %v1820_v16 = vrot.slane %v1819_v11, 2 }
 0x151   : > { %v2118_v56 = vrot.slane %v2117_v12, 2 }
 0x152   : > { %v1821_v13 = vadd.f32 %v1820_v16, %v1819_v11 }
 0x153   : > { %v2119_v40 = vadd.f32 %v2118_v56, %v2117_v12 }
 0x154   : > { %v1822_v15 = vrot.slane %v1821_v13, 1 }
 0x155   : > { %v2120_v27 = vrot.slane %v2119_v40, 1 }
 0x156   : > { %v1823_v28 = vadd.f32 %v1822_v15, %v1821_v13 }
 0x157   : > { %v2121_v57 = vadd.f32 %v2120_v27, %v2119_v40 }
 0x158   : > { %v1824_v29 = vadd.f32 %v1823_v28, %v1526_v31 }
 0x15a   : > { %v2122_v49 = vadd.f32 %v2121_v57, %v1824_v29  ;;  %v4817_v62 = vpop.f32.mrb[24].mxu0 }
 0x15b   : > { %5067 = vst [vmem:[#allocation9_spill] sm:$0xff] %v4817_v62  ;;  %v4819_v0 = vpop.f32.mrb[24].mxu1  ;;  %v4821_v3 = vpop.f32.mrb[25].mxu0 }
 0x15c   : > { %5068 = vst [vmem:[#allocation10_spill] sm:$0xff] %v4819_v0  ;;  %5069 = vst [vmem:[#allocation11_spill] sm:$0xff] %v4821_v3  ;;  %v4823_v4 = vpop.f32.mrb[25].mxu1  ;;  %v4825_v5 = vpop.f32.mrb[26].mxu0 }
 0x15d   : > { %5070 = vst [vmem:[#allocation12_spill] sm:$0xff] %v4823_v4  ;;  %5071 = vst [vmem:[#allocation13_spill] sm:$0xff] %v4825_v5  ;;  %v3749_v56 = vpack.c.bf16 %v4825_v5, %v4817_v62  ;;  %v4829_v13 = vpop.f32.mrb[26].mxu1  ;;  %v4831_v31 = vpop.f32.mrb[27].mxu0 }
 0x15e   : > { %5072 = vst [vmem:[#allocation14_spill] sm:$0xff] %v4829_v13  ;;  %5073 = vst [vmem:[#allocation15_spill] sm:$0xff] %v4831_v31  ;;  %v3769_v40 = vpack.c.bf16 %v4829_v13, %v4819_v0  ;;  %v3744_v6 = vpack.c.bf16 %v4831_v31, %v4821_v3  ;;  %v2407_v8 = vadd.f32 %v4831_v31, %v4821_v3  ;;  %v4839_v11 = vpop.f32.mrb[27].mxu1 }
 0x15f   : > { %5074 = vst [vmem:[#allocation16_spill] sm:$0xff] %v4839_v11  ;;  %3805 = vst [vmem:[%s4607_s6 + $0xc8] sm:$0xff] %v3749_v56   ;;  %v3764_v12 = vpack.c.bf16 %v4839_v11, %v4823_v4  ;;  %v2704_v16 = vadd.f32 %v4839_v11, %v4823_v4 }
 0x160   : > { %3809 = vst [vmem:[%s4607_s6 + $0xe8] sm:$0xff] %v3769_v40   ;;  %3804 = vst [vmem:[%s4607_s6 + $0xc0] sm:$0xff] %v3744_v6   ;;  %v2408_v15 = vadd.f32 %v4817_v62, %v2407_v8 }
 0x161   : > { %3808 = vst [vmem:[%s4607_s6 + $0xe0] sm:$0xff] %v3764_v12   ;;  %v2705_v27 = vadd.f32 %v4819_v0, %v2704_v16 }
 0x162   : > { %v4851_v28 = vpop.f32.mrb[28].mxu0  ;;  %v2409_v29 = vadd.f32 %v4825_v5, %v2408_v15 }
 0x163   : > { %v4854_v57 = vpop.f32.mrb[28].mxu1  ;;  %v4856_v56 = vpop.f32.mrb[29].mxu0  ;;  %v2706_v31 = vadd.f32 %v4829_v13, %v2705_v27 }
 0x164   : > { %5075 = vst [vmem:[#allocation17_spill] sm:$0xff] %v4856_v56  ;;  %v2410_v40 = vadd.f32 %v2409_v29, %v4856_v56  ;;  %v4860_v6 = vpop.f32.mrb[29].mxu1  ;;  %v4862_v8 = vpop.f32.mrb[30].mxu0 }
 0x165   : > { %5076 = vst [vmem:[#allocation18_spill] sm:$0xff] %v4860_v6  ;;  %v2707_v12 = vadd.f32 %v2706_v31, %v4860_v6  ;;  %v3759_v16 = vpack.c.bf16 %v4862_v8, %v4851_v28  ;;  %v4867_v15 = vpop.f32.mrb[30].mxu1  ;;  %v4869_v0 = vpop.f32.mrb[31].mxu0 }
 0x166   : > { %5077 = vst [vmem:[#allocation19_spill] sm:$0xff] %v4869_v0  ;;  %v3779_v27 = vpack.c.bf16 %v4867_v15, %v4854_v57  ;;  %v3754_v29 = vpack.c.bf16 %v4869_v0, %v4856_v56  ;;  %v2411_v13 = vadd.f32 %v2410_v40, %v4869_v0  ;;  %v4876_v11 = vpop.f32.mrb[31].mxu1 }
 0x167   : > { %5078 = vst [vmem:[#allocation20_spill] sm:$0xff] %v4876_v11  ;;  %3807 = vst [vmem:[%s4607_s6 + $0xd8] sm:$0xff] %v3759_v16   ;;  %v3774_v31 = vpack.c.bf16 %v4876_v11, %v4860_v6  ;;  %v2708_v4 = vadd.f32 %v2707_v12, %v4876_v11 }
 0x168   : > { %3811 = vst [vmem:[%s4607_s6 + $0xf8] sm:$0xff] %v3779_v27   ;;  %3806 = vst [vmem:[%s4607_s6 + $0xd0] sm:$0xff] %v3754_v29   ;;  %v2412_v5 = vadd.f32 %v4851_v28, %v2411_v13 }
 0x169   : > { %3810 = vst [vmem:[%s4607_s6 + $0xf0] sm:$0xff] %v3774_v31   ;;  %v2709_v62 = vadd.f32 %v4854_v57, %v2708_v4 }
 0x16a   : > { %v2413_v56 = vadd.f32 %v4862_v8, %v2412_v5 }
 0x16b   : > { %v2710_v40 = vadd.f32 %v4867_v15, %v2709_v62 }
 0x16c   : > { %v2414_v0 = vrot.slane %v2413_v56, 4 }
 0x16d   : > { %v2711_v3 = vrot.slane %v2710_v40, 4 }
 0x16e   : > { %v2415_v16 = vadd.f32 %v2414_v0, %v2413_v56 }
 0x16f   : > { %v2712_v17 = vadd.f32 %v2711_v3, %v2710_v40 }
 0x170   : > { %v2416_v9 = vrot.slane %v2415_v16, 2 }
 0x171   : > { %v2713_v6 = vrot.slane %v2712_v17, 2 }
 0x172   : > { %v2417_v1 = vadd.f32 %v2416_v9, %v2415_v16 }
 0x173   : > { %v2714_v12 = vadd.f32 %v2713_v6, %v2712_v17 }
 0x174   : > { %v2418_v27 = vrot.slane %v2417_v1, 1 }
 0x175   : > { %v2715_v29 = vrot.slane %v2714_v12, 1 }
 0x176   : > { %v2419_v11 = vadd.f32 %v2418_v27, %v2417_v1 }
 0x177   : > { %v2716_v31 = vadd.f32 %v2715_v29, %v2714_v12 }
 0x178   : > { %v2420_v13 = vadd.f32 %v2419_v11, %v2122_v49 }
 0x17a   : > { %v2717_v62 = vadd.f32 %v2716_v31, %v2420_v13 }
 0x17c   : > { %v4895_v4 = vmul.f32 0.001953125, %v2717_v62  ;;  %2958 = vst [vmem:[%s4893_s9] sm:$0x1] %v2717_v62 }
 0x17e   : > { %v2719_v9 = vsub.f32 %v4600_v34, %v4895_v4  ;;  %v2720_v17 = vsub.f32 %v4615_v39, %v4895_v4  ;;  %v2721_v1 = vsub.f32 %v4596_v32, %v4895_v4  ;;  %v2722_v49 = vsub.f32 %v4609_v36, %v4895_v4 }
 0x17f   : > { %v2723_v0 = vsub.f32 %v4640_v51, %v4895_v4  ;;  %v2724_v3 = vsub.f32 %v4653_v59, %v4895_v4  ;;  %v2725_v5 = vsub.f32 %v4635_v48, %v4895_v4  ;;  %v2726_v34 = vsub.f32 %v4646_v55, %v4895_v4 }
 0x180   : > { %v2727_v11 = vmul.f32 %v2719_v9, %v2719_v9  ;;  %v2728_v39 = vmul.f32 %v2720_v17, %v2720_v17  ;;  %v2729_v56 = vmul.f32 %v2721_v1, %v2721_v1  ;;  %v2730_v6 = vmul.f32 %v2722_v49, %v2722_v49 }
 0x181   : > { %v2731_v32 = vmul.f32 %v2723_v0, %v2723_v0  ;;  %v2748_v36 = vsub.f32 %v4602_v35, %v4895_v4  ;;  %v2749_v51 = vsub.f32 %v4623_v43, %v4895_v4  ;;  %v2750_v59 = vsub.f32 %v4598_v33, %v4895_v4 }
 0x182   : > { %v2735_v40 = vadd.f32 %v2728_v39, %v2727_v11  ;;  %v2751_v48 = vsub.f32 %v4613_v38, %v4895_v4  ;;  %v2752_v55 = vsub.f32 %v4644_v54, %v4895_v4  ;;  %v2753_v16 = vsub.f32 %v4660_v63, %v4895_v4 }
 0x183   : > { %v2754_v12 = vsub.f32 %v4638_v50, %v4895_v4  ;;  %v2755_v35 = vsub.f32 %v4651_v58, %v4895_v4  ;;  %v2756_v43 = vmul.f32 %v2748_v36, %v2748_v36  ;;  %v2757_v29 = vmul.f32 %v2749_v51, %v2749_v51 }
 0x184   : > { %v2736_v27 = vadd.f32 %v2735_v40, %v2729_v56  ;;  %v2732_v13 = vmul.f32 %v2724_v3, %v2724_v3  ;;  %v2733_v33 = vmul.f32 %v2725_v5, %v2725_v5  ;;  %v2734_v31 = vmul.f32 %v2726_v34, %v2726_v34 }
 0x185   : > { %v2758_v62 = vmul.f32 %v2750_v59, %v2750_v59  ;;  %v2759_v9 = vmul.f32 %v2751_v48, %v2751_v48  ;;  %v2760_v17 = vmul.f32 %v2752_v55, %v2752_v55  ;;  %v2764_v54 = vadd.f32 %v2757_v29, %v2756_v43 }
 0x186   : > { %v2737_v38 = vadd.f32 %v2736_v27, %v2730_v6  ;;  %v2778_v63 = vsub.f32 %v4677_v21, %v4895_v4  ;;  %v2779_v50 = vsub.f32 %v4687_v26, %v4895_v4  ;;  %v2780_v1 = vsub.f32 %v4673_v19, %v4895_v4 }
 0x187   : > { %v2781_v58 = vsub.f32 %v4681_v23, %v4895_v4  ;;  %v2765_v0 = vadd.f32 %v2764_v54, %v2758_v62  ;;  %v2782_v3 = vsub.f32 %v4712_v46, %v4895_v4  ;;  %v2783_v5 = vsub.f32 %v4725_v61, %v4895_v4 }
 0x188   : > { %v2738_v49 = vadd.f32 %v2737_v38, %v2731_v32  ;;  %v2784_v21 = vsub.f32 %v4707_v42, %v4895_v4  ;;  %v2785_v26 = vsub.f32 %v4718_v53, %v4895_v4  ;;  %v2786_v34 = vmul.f32 %v2778_v63, %v2778_v63 }
 0x189   : > { %v2787_v11 = vmul.f32 %v2779_v50, %v2779_v50  ;;  %v2761_v39 = vmul.f32 %v2753_v16, %v2753_v16  ;;  %v2762_v56 = vmul.f32 %v2754_v12, %v2754_v12  ;;  %v2766_v23 = vadd.f32 %v2765_v0, %v2759_v9 }
 0x18a   : > { %v2739_v19 = vadd.f32 %v2738_v49, %v2732_v13  ;;  %v2763_v6 = vmul.f32 %v2755_v35, %v2755_v35  ;;  %v2788_v32 = vmul.f32 %v2780_v1, %v2780_v1  ;;  %v2789_v40 = vmul.f32 %v2781_v58, %v2781_v58 }
 0x18b   : > { %v2790_v36 = vmul.f32 %v2782_v3, %v2782_v3  ;;  %v2767_v51 = vadd.f32 %v2766_v23, %v2760_v17  ;;  %v2794_v59 = vadd.f32 %v2787_v11, %v2786_v34  ;;  %v2808_v61 = vsub.f32 %v4679_v22, %v4895_v4 }
 0x18c   : > { %v2740_v46 = vadd.f32 %v2739_v19, %v2733_v33  ;;  %v2809_v42 = vsub.f32 %v4695_v30, %v4895_v4  ;;  %v2810_v53 = vsub.f32 %v4675_v20, %v4895_v4  ;;  %v2811_v48 = vsub.f32 %v4685_v25, %v4895_v4 }
 0x18d   : > { %v2812_v55 = vsub.f32 %v4716_v52, %v4895_v4  ;;  %v2768_v12 = vadd.f32 %v2767_v51, %v2761_v39  ;;  %v2795_v27 = vadd.f32 %v2794_v59, %v2788_v32  ;;  %v2813_v35 = vsub.f32 %v4732_v2, %v4895_v4 }
 0x18e   : > { %v2741_v16 = vadd.f32 %v2740_v46, %v2734_v31  ;;  %v2814_v22 = vsub.f32 %v4710_v45, %v4895_v4  ;;  %v2815_v30 = vsub.f32 %v4723_v60, %v4895_v4  ;;  %v2816_v43 = vmul.f32 %v2808_v61, %v2808_v61 }
 0x18f   : > { %v2817_v20 = vmul.f32 %v2809_v42, %v2809_v42  ;;  %v2769_v13 = vadd.f32 %v2768_v12, %v2762_v56  ;;  %v2791_v25 = vmul.f32 %v2783_v5, %v2783_v5  ;;  %v2796_v33 = vadd.f32 %v2795_v27, %v2789_v40  ;;  %v5080_v12 = vld [vmem:[#allocation2_spill] sm:$0xff] }
 0x190   : > { %v2742_v29 = vrot.slane %v2741_v16, 4  ;;  %v2792_v62 = vmul.f32 %v2784_v21, %v2784_v21  ;;  %v2793_v52 = vmul.f32 %v2785_v26, %v2785_v26  ;;  %v2818_v31 = vmul.f32 %v2810_v53, %v2810_v53  ;;  %v5079_v53 = vld [vmem:[#allocation4_spill] sm:$0xff] }
 0x191   : > { %v2819_v38 = vmul.f32 %v2811_v48, %v2811_v48  ;;  %v2770_v17 = vadd.f32 %v2769_v13, %v2763_v6  ;;  %v2797_v54 = vadd.f32 %v2796_v33, %v2790_v36  ;;  %v2820_v2 = vmul.f32 %v2812_v55, %v2812_v55  ;;  %v5083_v13 = vld [vmem:[#allocation8_spill] sm:$0xff] }
 0x192   : > { %v2743_v9 = vadd.f32 %v2742_v29, %v2741_v16  ;;  %v2824_v63 = vadd.f32 %v2817_v20, %v2816_v43  ;;  %v2838_v45 = vsub.f32 %v4749_v41, %v4895_v4  ;;  %v2839_v60 = vsub.f32 %v4759_v18, %v4895_v4  ;;  %v5082_v20 = vld [vmem:[#allocation6_spill] sm:$0xff] }
 0x193   : > { %v2840_v50 = vsub.f32 %v4745_v37, %v4895_v4  ;;  %v2771_v58 = vrot.slane %v2770_v17, 4  ;;  %v2798_v49 = vadd.f32 %v2797_v54, %v2791_v25  ;;  %v2841_v0 = vsub.f32 %v4753_v47, %v4895_v4 }
 0x194   : > { %v2744_v1 = vrot.slane %v2743_v9, 2  ;;  %v2825_v3 = vadd.f32 %v2824_v63, %v2818_v31  ;;  %v2842_v5 = vsub.f32 %v4784_v10, %v4895_v4  ;;  %v2843_v21 = vsub.f32 %v4797_v24, %v4895_v4  ;;  %v5085_v31 = vld [vmem:[#allocation7_spill] sm:$0xff] }
 0x195   : > { %v2844_v41 = vsub.f32 %v4779_v7, %v4895_v4  ;;  %v2772_v26 = vadd.f32 %v2771_v58, %v2770_v17  ;;  %v2799_v34 = vadd.f32 %v2798_v49, %v2792_v62  ;;  %v2845_v37 = vsub.f32 %v4790_v14, %v4895_v4  ;;  %v5084_v62 = vld [vmem:[#allocation5_spill] sm:$0xff] }
 0x196   : > { %v2745_v18 = vadd.f32 %v2744_v1, %v2743_v9  ;;  %v2821_v11 = vmul.f32 %v2813_v35, %v2813_v35  ;;  %v2826_v19 = vadd.f32 %v2825_v3, %v2819_v38  ;;  %v2846_v39 = vmul.f32 %v2838_v45, %v2838_v45  ;;  %v5081_v35 = vld [vmem:[#allocation3_spill] sm:$0xff] }
 0x197   : > { %v2847_v47 = vmul.f32 %v2839_v60, %v2839_v60  ;;  %v2773_v23 = vrot.slane %v2772_v26, 2  ;;  %v2800_v6 = vadd.f32 %v2799_v34, %v2793_v52  ;;  %v2822_v10 = vmul.f32 %v2814_v22, %v2814_v22 }
 0x198   : > { %v2746_v56 = vrot.slane %v2745_v18, 1  ;;  %v2823_v32 = vmul.f32 %v2815_v30, %v2815_v30  ;;  %v2827_v40 = vadd.f32 %v2826_v19, %v2820_v2  ;;  %v2848_v24 = vmul.f32 %v2840_v50, %v2840_v50  ;;  %v5086_v19 = vld [vmem:[#allocation11_spill] sm:$0xff] }
 0x199   : > { %v2849_v36 = vmul.f32 %v2841_v0, %v2841_v0  ;;  %v2774_v7 = vadd.f32 %v2773_v23, %v2772_v26  ;;  %v2801_v51 = vrot.slane %v2800_v6, 4  ;;  %v2850_v59 = vmul.f32 %v2842_v5, %v2842_v5 }
 0x19a   : > { %v2747_v46 = vadd.f32 %v2746_v56, %v2745_v18  ;;  %v2828_v61 = vadd.f32 %v2827_v40, %v2821_v11  ;;  %v2854_v42 = vadd.f32 %v2847_v47, %v2846_v39  ;;  %v2868_v14 = vsub.f32 %v4751_v44, %v4895_v4  ;;  %v5087_v47 = vld [vmem:[#allocation15_spill] sm:$0xff] }
 0x19b   : > { %v2869_v48 = vsub.f32 %v5079_v53, %v4895_v4  ;;  %v2775_v55 = vrot.slane %v2774_v7, 1  ;;  %v2802_v16 = vadd.f32 %v2801_v51, %v2800_v6  ;;  %v2870_v27 = vsub.f32 %v5080_v12, %v4895_v4 }
 0x19c   : > { %v2871_v22 = vsub.f32 %v5081_v35, %v4895_v4  ;;  %v2829_v30 = vadd.f32 %v2828_v61, %v2822_v10  ;;  %v2855_v43 = vadd.f32 %v2854_v42, %v2848_v24  ;;  %v2872_v29 = vsub.f32 %v5082_v20, %v4895_v4  ;;  %v5090_v24 = vld [vmem:[#allocation17_spill] sm:$0xff] }
 0x19d   : > { %v2873_v25 = vsub.f32 %v5083_v13, %v4895_v4  ;;  %v2776_v44 = vadd.f32 %v2775_v55, %v2774_v7  ;;  %v2803_v33 = vrot.slane %v2802_v16, 2  ;;  %v2874_v52 = vsub.f32 %v5084_v62, %v4895_v4 }
 0x19e   : > { %v2875_v38 = vsub.f32 %v5085_v31, %v4895_v4  ;;  %v2830_v9 = vadd.f32 %v2829_v30, %v2823_v32  ;;  %v2856_v17 = vadd.f32 %v2855_v43, %v2849_v36  ;;  %v2876_v54 = vmul.f32 %v2868_v14, %v2868_v14  ;;  %v5093_v31 = vld [vmem:[#allocation16_spill] sm:$0xff] }
 0x19f   : > { %v2877_v2 = vmul.f32 %v2869_v48, %v2869_v48  ;;  %v2777_v63 = vadd.f32 %v2776_v44, %v2747_v46  ;;  %v2804_v45 = vadd.f32 %v2803_v33, %v2802_v16  ;;  %v2851_v60 = vmul.f32 %v2843_v21, %v2843_v21  ;;  %v5088_v21 = vld [vmem:[#allocation9_spill] sm:$0xff]  ;;  %v5091_v46 = vld [vmem:[#allocation19_spill] sm:$0xff] }
 0x1a0   : > { %v2852_v50 = vmul.f32 %v2844_v41, %v2844_v41  ;;  %v2831_v1 = vrot.slane %v2830_v9, 4  ;;  %v2853_v58 = vmul.f32 %v2845_v37, %v2845_v37  ;;  %v2857_v49 = vadd.f32 %v2856_v17, %v2850_v59  ;;  %v5089_v37 = vld [vmem:[#allocation13_spill] sm:$0xff] }
 0x1a1   : > { %v2878_v0 = vmul.f32 %v2870_v27, %v2870_v27  ;;  %v2805_v3 = vrot.slane %v2804_v45, 1  ;;  %v2879_v5 = vmul.f32 %v2871_v22, %v2871_v22  ;;  %v2880_v18 = vmul.f32 %v2872_v29, %v2872_v29 }
 0x1a2   : > { %v2884_v26 = vadd.f32 %v2877_v2, %v2876_v54  ;;  %v2832_v34 = vadd.f32 %v2831_v1, %v2830_v9  ;;  %v2858_v11 = vadd.f32 %v2857_v49, %v2851_v60  ;;  %v2898_v39 = vsub.f32 %v5086_v19, %v4895_v4  ;;  %v5095_v54 = vld [vmem:[#allocation14_spill] sm:$0xff]  ;;  %v5097_v1 = vld [vmem:[#allocation20_spill] sm:$0xff] }
 0x1a3   : > { %v2899_v56 = vsub.f32 %v5087_v47, %v4895_v4  ;;  %v2806_v23 = vadd.f32 %v2805_v3, %v2804_v45  ;;  %v2900_v41 = vsub.f32 %v5088_v21, %v4895_v4  ;;  %v2901_v10 = vsub.f32 %v5089_v37, %v4895_v4 }
 0x1a4   : > { %v2885_v6 = vadd.f32 %v2884_v26, %v2878_v0  ;;  %v2833_v32 = vrot.slane %v2832_v34, 2  ;;  %v2859_v40 = vadd.f32 %v2858_v11, %v2852_v50  ;;  %v2902_v36 = vsub.f32 %v5090_v24, %v4895_v4 }
 0x1a5   : > { %v2903_v7 = vsub.f32 %v5091_v46, %v4895_v4  ;;  %v2807_v51 = vadd.f32 %v2806_v23, %v2777_v63  ;;  %v2904_v61 = vsub.f32 %v4851_v28, %v4895_v4  ;;  %v2905_v42 = vsub.f32 %v4862_v8, %v4895_v4  ;;  %v5092_v28 = vld [vmem:[#allocation12_spill] sm:$0xff]  ;;  %v5096_v63 = vld [vmem:[#allocation18_spill] sm:$0xff] }
 0x1a6   : > { %v2886_v59 = vadd.f32 %v2885_v6, %v2879_v5  ;;  %v2834_v14 = vadd.f32 %v2833_v32, %v2832_v34  ;;  %v2860_v53 = vadd.f32 %v2859_v40, %v2853_v58  ;;  %v2906_v48 = vmul.f32 %v2898_v39, %v2898_v39 }
 0x1a7   : > { %v2907_v55 = vmul.f32 %v2899_v56, %v2899_v56  ;;  %v2881_v16 = vmul.f32 %v2873_v25, %v2873_v25  ;;  %v2882_v12 = vmul.f32 %v2874_v52, %v2874_v52  ;;  %v2883_v27 = vmul.f32 %v2875_v38, %v2875_v38  ;;  %v5094_v25 = vld [vmem:[#allocation10_spill] sm:$0xff] }
 0x1a8   : > { %v2887_v35 = vadd.f32 %v2886_v59, %v2880_v18  ;;  %v2835_v22 = vrot.slane %v2834_v14, 1  ;;  %v2861_v30 = vrot.slane %v2860_v53, 4  ;;  %v2908_v43 = vmul.f32 %v2900_v41, %v2900_v41 }
 0x1a9   : > { %v2909_v20 = vmul.f32 %v2901_v10, %v2901_v10  ;;  %v2910_v13 = vmul.f32 %v2902_v36, %v2902_v36  ;;  %v2914_v44 = vadd.f32 %v2907_v55, %v2906_v48  ;;  %v2928_v33 = vsub.f32 %v5092_v28, %v4895_v4 }
 0x1aa   : > { %v2888_v29 = vadd.f32 %v2887_v35, %v2881_v16  ;;  %v2836_v62 = vadd.f32 %v2835_v22, %v2834_v14  ;;  %v2862_v8 = vadd.f32 %v2861_v30, %v2860_v53  ;;  %v2929_v9 = vsub.f32 %v5093_v31, %v4895_v4 }
 0x1ab   : > { %v2930_v52 = vsub.f32 %v5094_v25, %v4895_v4  ;;  %v2915_v17 = vadd.f32 %v2914_v44, %v2908_v43  ;;  %v2931_v2 = vsub.f32 %v5095_v54, %v4895_v4  ;;  %v2932_v45 = vsub.f32 %v5096_v63, %v4895_v4 }
 0x1ac   : > { %v2889_v38 = vadd.f32 %v2888_v29, %v2882_v12  ;;  %v2837_v60 = vadd.f32 %v2836_v62, %v2807_v51  ;;  %v2863_v50 = vrot.slane %v2862_v8, 2  ;;  %v2933_v58 = vsub.f32 %v5097_v1, %v4895_v4 }
 0x1ad   : > { %v2934_v49 = vsub.f32 %v4854_v57, %v4895_v4  ;;  %v2916_v3 = vadd.f32 %v2915_v17, %v2909_v20  ;;  %v2935_v5 = vsub.f32 %v4867_v15, %v4895_v4  ;;  %v2936_v18 = vmul.f32 %v2928_v33, %v2928_v33 }
 0x1ae   : > { %v2890_v0 = vadd.f32 %v2889_v38, %v2883_v27  ;;  %v2864_v26 = vadd.f32 %v2863_v50, %v2862_v8  ;;  %v2937_v34 = vmul.f32 %v2929_v9, %v2929_v9  ;;  %v2911_v19 = vmul.f32 %v2903_v7, %v2903_v7 }
 0x1af   : > { %v2917_v39 = vadd.f32 %v2916_v3, %v2910_v13  ;;  %v2938_v56 = vmul.f32 %v2930_v52, %v2930_v52  ;;  %v2912_v21 = vmul.f32 %v2904_v61, %v2904_v61  ;;  %v2939_v10 = vmul.f32 %v2931_v2, %v2931_v2 }
 0x1b0   : > { %v2891_v11 = vrot.slane %v2890_v0, 4  ;;  %v2865_v47 = vrot.slane %v2864_v26, 1  ;;  %v2944_v23 = vadd.f32 %v2937_v34, %v2936_v18  ;;  %v2913_v40 = vmul.f32 %v2905_v42, %v2905_v42 }
 0x1b1   : > { %v2918_v41 = vadd.f32 %v2917_v39, %v2911_v19  ;;  %v2940_v15 = vmul.f32 %v2932_v45, %v2932_v45  ;;  %v2941_v59 = vmul.f32 %v2933_v58, %v2933_v58  ;;  %v2942_v48 = vmul.f32 %v2934_v49, %v2934_v49 }
 0x1b2   : > { %v2892_v6 = vadd.f32 %v2891_v11, %v2890_v0  ;;  %v2866_v37 = vadd.f32 %v2865_v47, %v2864_v26  ;;  %v2945_v57 = vadd.f32 %v2944_v23, %v2938_v56  ;;  %v2943_v12 = vmul.f32 %v2935_v5, %v2935_v5 }
 0x1b3   : > { %v2919_v24 = vadd.f32 %v2918_v41, %v2912_v21 }
 0x1b4   : > { %v2893_v32 = vrot.slane %v2892_v6, 2  ;;  %v2867_v36 = vadd.f32 %v2866_v37, %v2837_v60  ;;  %v2946_v4 = vadd.f32 %v2945_v57, %v2939_v10 }
 0x1b5   : > { %v2920_v51 = vadd.f32 %v2919_v24, %v2913_v40 }
 0x1b6   : > { %v2894_v46 = vadd.f32 %v2893_v32, %v2892_v6  ;;  %v2947_v7 = vadd.f32 %v2946_v4, %v2940_v15 }
 0x1b7   : > { %v2921_v53 = vrot.slane %v2920_v51, 4 }
 0x1b8   : > { %v2895_v14 = vrot.slane %v2894_v46, 1  ;;  %v2948_v55 = vadd.f32 %v2947_v7, %v2941_v59 }
 0x1b9   : > { %v2922_v61 = vadd.f32 %v2921_v53, %v2920_v51 }
 0x1ba   : > { %v2896_v16 = vadd.f32 %v2895_v14, %v2894_v46  ;;  %v2949_v27 = vadd.f32 %v2948_v55, %v2942_v48 }
 0x1bb   : > { %v2923_v22 = vrot.slane %v2922_v61, 2 }
 0x1bc   : > { %v2897_v35 = vadd.f32 %v2896_v16, %v2867_v36  ;;  %v2950_v42 = vadd.f32 %v2949_v27, %v2943_v12 }
 0x1bd   : > { %v2924_v30 = vadd.f32 %v2923_v22, %v2922_v61 }
 0x1be   : > { %v2951_v43 = vrot.slane %v2950_v42, 4 }
 0x1bf   : > { %v2925_v20 = vrot.slane %v2924_v30, 1 }
 0x1c0   : > { %v2952_v29 = vadd.f32 %v2951_v43, %v2950_v42 }
 0x1c1   : > { %v2926_v13 = vadd.f32 %v2925_v20, %v2924_v30 }
 0x1c2   : > { %v2953_v44 = vrot.slane %v2952_v29, 2 }
 0x1c3   : > { %v2927_v28 = vadd.f32 %v2926_v13, %v2897_v35 }
 0x1c4   : > { %v2954_v33 = vadd.f32 %v2953_v44, %v2952_v29 }
 0x1c6   : > { %v2955_v62 = vrot.slane %v2954_v33, 1 }
 0x1c8   : > { %v2956_v8 = vadd.f32 %v2955_v62, %v2954_v33 }
 0x1ca   : > { %v2957_v31 = vadd.f32 %v2956_v8, %v2927_v28 }
 0x1cc   : > { %2959 = vst [vmem:[%s4893_s9 + $0x1] sm:$0x1] %v2957_v31 }
 0x1cd PF: > { %s15_s17 = sadd.s32 1, %s4309_s17   ;;  %s5098_s15 = smov %s4305_s16 }
 0x1ce   : > { %p12_p5 = scmp.ge.s32.totalorder %s15_s17, 4   ;;  %s5099_s16 = smov %s5101_s18 }
 0x1d0   :  { %14 = sbr.rel (!%p12_p5) target bundleno = 2 (0x2), region = 92 }

// kernel: discriminator_forward.11
= control target key start
LH: loop header
LB: loop body
LE: loop exit
PB: predicated region body
PF: predicated region fallthrough
CT: control target
= control target key end

     0   :  { %s2133_s15 = smov 0   ;;  %s2135_s16 = smov 0   ;;  %s2480_s0 = inlined_call_operand.vmem [shape: bf16[2,5,16,128], index: 0, kind: input, shape index: {}, may-alias: {0,1}]   ;;  %s2481_s1 = inlined_call_operand.vmem [shape: bf16[2,5,16,128], index: 1, kind: input, shape index: {}, may-alias: {0,1}]   ;;  %s2482_s2 = inlined_call_operand.vmem [shape: bf16[2,128,128], index: 2, kind: input, shape index: {}]   ;;  %s2483_s3 = inlined_call_operand.vmem [shape: bf16[2,4,16,128], index: 3, kind: output, shape index: {0}]   ;;  %s2484_s4 = inlined_call_operand.vmem [shape: f32[2,1,2,128], index: 4, kind: output, shape index: {1}]  }
   0x1   :  { %s2137_s17 = smov 0  }
   0x2 LB: > { %s27_s18 = sadd.s32 1, %s2100_s16  ;;  %p1529_p0 = scmp.ge.s32.totalorder %s2104_s17, 1  ;;  %s2104_s17 = sphi %s2137_s17, %s15_s17   ;;  %s2100_s16 = sphi %s2135_s16, %s2486_s16   ;;  %s2096_s15 = sphi %s2133_s15, %s2485_s15  }
   0x3   : > { %p29_p1 = scmp.ge.s32.totalorder %s27_s18, 2  ;;  %p223_p2 = scmp.lt.s32.totalorder %s2104_s17, 3 }
   0x5   : > { %s2488_s18 = smov (%p29_p1, %s27_s18), 0  ;;  %p224_p3 = pnand %p1529_p0, %p223_p2 }
   0x6   : > { %v2010_v0 = vld [vmem:[%s2482_s2 + $0x40] sm:$0xff] (!%p224_p3)   ;;  %v2106_v1 = vmov (!%p224_p3), 0.0   ;;  %v2012_v3 = vld [vmem:[%s2482_s2 + $0x48] sm:$0xff] (!%p224_p3)   ;;  %vm2107_vm0 = vmmov (!%p224_p3), 0   ;;  %p288_p4 = scmp.lt.s32.totalorder (!%p224_p3), %s2096_s15, 1  ;;  %v2014_v5 = vld [vmem:[%s2482_s2 + $0x50] sm:$0xff] (!%p224_p3)  }
   0x7   : > { %227 = sbr.rel (%p224_p3) target bundleno = 394 (0x18a), region = 32  ;;  %1805 = vmatprep.subr.bf16.mxu0 (!%p224_p3), %v2106_v1  ;;  %1845 = vmatprep.subr.bf16.mxu1 (!%p224_p3), %v2106_v1  ;;  %v2011_v2 = vld [vmem:[%s2482_s2 + $0x40] sm:$0xff] (!%p224_p3)   ;;  %v2013_v4 = vld [vmem:[%s2482_s2 + $0x48] sm:$0xff] (!%p224_p3)   ;;  %v2015_v6 = vld [vmem:[%s2482_s2 + $0x50] sm:$0xff] (!%p224_p3)  }
   0x8   : > { %1806 = vmatpush3.bf16.msra.mxu0 (!%p224_p3), %v2010_v0  ;;  %1821 = vmatprep.mubr.msk.bf16.mxu0 (!%p224_p3), %vm2107_vm0, %v2106_v1  ;;  %v2016_v7 = vld [vmem:[%s2482_s2 + $0x58] sm:$0xff] (!%p224_p3)   ;;  %v2018_v9 = vld [vmem:[%s2482_s2 + $0x60] sm:$0xff] (!%p224_p3)   ;;  %v2020_v11 = vld [vmem:[%s2482_s2 + $0x68] sm:$0xff] (!%p224_p3)  }
   0x9   : > { %1846 = vmatpush3.bf16.msra.mxu1 (!%p224_p3), %v2011_v2  ;;  %1807 = vmatprep.subr.bf16.mxu0 (!%p224_p3), %v2106_v1  ;;  %v2017_v8 = vld [vmem:[%s2482_s2 + $0x58] sm:$0xff] (!%p224_p3)   ;;  %v2019_v10 = vld [vmem:[%s2482_s2 + $0x60] sm:$0xff] (!%p224_p3)   ;;  %v2021_v12 = vld [vmem:[%s2482_s2 + $0x68] sm:$0xff] (!%p224_p3)  }
   0xa   : > { %1847 = vmatprep.subr.bf16.mxu1 (!%p224_p3), %v2106_v1  ;;  %1861 = vmatprep.mubr.msk.bf16.mxu1 (!%p224_p3), %vm2107_vm0, %v2106_v1  ;;  %v2022_v13 = vld [vmem:[%s2482_s2 + $0x70] sm:$0xff] (!%p224_p3)   ;;  %v2024_v15 = vld [vmem:[%s2482_s2 + $0x78] sm:$0xff] (!%p224_p3)   ;;  %v2027_v18 = vld [vmem:[%s2482_s2] sm:$0xff] (!%p224_p3)  }
   0xb   : > { %v2023_v14 = vld [vmem:[%s2482_s2 + $0x70] sm:$0xff] (!%p224_p3)   ;;  %v2025_v16 = vld [vmem:[%s2482_s2 + $0x78] sm:$0xff] (!%p224_p3)   ;;  %v2029_v20 = vld [vmem:[%s2482_s2] sm:$0xff] (!%p224_p3)  }
   0xc   : > { %1808 = vmatpush3.bf16.msra.mxu0 (!%p224_p3), %v2012_v3  ;;  %v2030_v21 = vld [vmem:[%s2482_s2 + $0x8] sm:$0xff] (!%p224_p3)   ;;  %v2032_v23 = vld [vmem:[%s2482_s2 + $0x10] sm:$0xff] (!%p224_p3)   ;;  %v2034_v25 = vld [vmem:[%s2482_s2 + $0x18] sm:$0xff] (!%p224_p3)  }
   0xd   : > { %1848 = vmatpush3.bf16.msra.mxu1 (!%p224_p3), %v2013_v4  ;;  %1809 = vmatprep.subr.bf16.mxu0 (!%p224_p3), %v2106_v1  ;;  %v2031_v22 = vld [vmem:[%s2482_s2 + $0x8] sm:$0xff] (!%p224_p3)   ;;  %v2033_v24 = vld [vmem:[%s2482_s2 + $0x10] sm:$0xff] (!%p224_p3)   ;;  %v2035_v26 = vld [vmem:[%s2482_s2 + $0x18] sm:$0xff] (!%p224_p3)  }
   0xe   : > { %s2490_s15 = smov (!%p288_p4, %s2096_s15), 1  ;;  %1849 = vmatprep.subr.bf16.mxu1 %v2106_v1  ;;  %v2036_v27 = vld [vmem:[%s2482_s2 + $0x20] sm:$0xff]   ;;  %v2038_v29 = vld [vmem:[%s2482_s2 + $0x28] sm:$0xff]   ;;  %v2040_v31 = vld [vmem:[%s2482_s2 + $0x30] sm:$0xff]  }
   0xf   : > { %s1981_s9 = smul.u32 40, %s2490_s15  ;;  %v2037_v28 = vld [vmem:[%s2482_s2 + $0x20] sm:$0xff]   ;;  %v2039_v30 = vld [vmem:[%s2482_s2 + $0x28] sm:$0xff]   ;;  %v2041_v32 = vld [vmem:[%s2482_s2 + $0x30] sm:$0xff]   ;;  %s1701_s7 = sshll.u32 %s2490_s15, 5 }
  0x10   : > { %1810 = vmatpush3.bf16.msra.mxu0 %v2014_v5  ;;  %v2042_v33 = vld [vmem:[%s2482_s2 + $0x38] sm:$0xff]   ;;  %v2046_v37 = vld [vmem:[%s2482_s2 + $0x40] sm:$0xff]   ;;  %v2048_v39 = vld [vmem:[%s2482_s2 + $0x48] sm:$0xff]   ;;  %s2457_s12 = scalar_lea.vmem %s2483_s3, %s1701_s7 }
  0x11   : > { %1850 = vmatpush3.bf16.msra.mxu1 %v2015_v6  ;;  %1811 = vmatprep.subr.bf16.mxu0 %v2106_v1  ;;  %s2202_s20 = scalar_lea.vmem %s2480_s0, %s1981_s9  ;;  %s2280_s10 = sadd.s32 32, %s1981_s9  ;;  %v2043_v34 = vld [vmem:[%s2482_s2 + $0x38] sm:$0xff]   ;;  %v2047_v38 = vld [vmem:[%s2482_s2 + $0x40] sm:$0xff]   ;;  %v2049_v40 = vld [vmem:[%s2482_s2 + $0x48] sm:$0xff]  }
  0x12   : > { %1851 = vmatprep.subr.bf16.mxu1 %v2106_v1  ;;  %v2026_v17 = vld [vmem:[%s2202_s20 + $0x8] sm:$0xff]   ;;  %v2028_v19 = vld [vmem:[%s2202_s20 + $0x10] sm:$0xff]   ;;  %s313_s19 = scalar_lea.vmem %s2481_s1, %s2280_s10  ;;  %v2044_v35 = vld [vmem:[%s2202_s20] sm:$0xff]  }
  0x13   : > { %v2045_v36 = vld [vmem:[%s2202_s20 + $0x8] sm:$0xff]   ;;  %v2050_v41 = vld [vmem:[%s2482_s2 + $0x50] sm:$0xff]   ;;  %v2052_v43 = vld [vmem:[%s2482_s2 + $0x58] sm:$0xff]  }
  0x14   : > { %1812 = vmatpush3.bf16.msra.mxu0 %v2016_v7  ;;  %v2051_v42 = vld [vmem:[%s2482_s2 + $0x50] sm:$0xff]   ;;  %v2053_v44 = vld [vmem:[%s2482_s2 + $0x58] sm:$0xff]   ;;  %v2054_v45 = vld [vmem:[%s2482_s2 + $0x60] sm:$0xff]  }
  0x15   : > { %1852 = vmatpush3.bf16.msra.mxu1 %v2017_v8  ;;  %1813 = vmatprep.subr.bf16.mxu0 %v2106_v1  ;;  %v2055_v46 = vld [vmem:[%s2482_s2 + $0x60] sm:$0xff]   ;;  %v2056_v47 = vld [vmem:[%s2482_s2 + $0x68] sm:$0xff]   ;;  %v2058_v49 = vld [vmem:[%s2482_s2 + $0x70] sm:$0xff]  }
  0x16   : > { %1853 = vmatprep.subr.bf16.mxu1 %v2106_v1  ;;  %v2057_v48 = vld [vmem:[%s2482_s2 + $0x68] sm:$0xff]   ;;  %v2059_v50 = vld [vmem:[%s2482_s2 + $0x70] sm:$0xff]   ;;  %v2060_v51 = vld [vmem:[%s2482_s2 + $0x78] sm:$0xff]  }
  0x17   : > { %v2061_v52 = vld [vmem:[%s2482_s2 + $0x78] sm:$0xff]   ;;  %v2063_v54 = vld [vmem:[%s2482_s2] sm:$0xff]   ;;  %v2066_v57 = vld [vmem:[%s2482_s2 + $0x8] sm:$0xff]  }
  0x18   : > { %1814 = vmatpush3.bf16.msra.mxu0 %v2018_v9  ;;  %v2062_v53 = vld [vmem:[%s2202_s20 + $0x18] sm:$0xff]   ;;  %v2064_v55 = vld [vmem:[%s313_s19] sm:$0xff]   ;;  %v2067_v58 = vld [vmem:[%s2482_s2 + $0x8] sm:$0xff]  }
  0x19   : > { %1854 = vmatpush3.bf16.msra.mxu1 %v2019_v10  ;;  %1815 = vmatprep.subr.bf16.mxu0 %v2106_v1  ;;  %v2065_v56 = vld [vmem:[%s2482_s2] sm:$0xff]   ;;  %v2068_v59 = vld [vmem:[%s2482_s2 + $0x10] sm:$0xff]   ;;  %v2070_v61 = vld [vmem:[%s2482_s2 + $0x18] sm:$0xff]  }
  0x1a   : > { %1855 = vmatprep.subr.bf16.mxu1 %v2106_v1  ;;  %v2069_v60 = vld [vmem:[%s2482_s2 + $0x10] sm:$0xff]   ;;  %v2071_v62 = vld [vmem:[%s2482_s2 + $0x18] sm:$0xff]   ;;  %v2072_v63 = vld [vmem:[%s2482_s2 + $0x20] sm:$0xff]  }
  0x1b   : > { %v2073_v0 = vld [vmem:[%s2482_s2 + $0x20] sm:$0xff]   ;;  %v2074_v2 = vld [vmem:[%s2482_s2 + $0x28] sm:$0xff]   ;;  %v2076_v4 = vld [vmem:[%s2482_s2 + $0x30] sm:$0xff]  }
  0x1c   : > { %1816 = vmatpush3.bf16.msra.mxu0 %v2020_v11  ;;  %v2075_v3 = vld [vmem:[%s2482_s2 + $0x28] sm:$0xff]   ;;  %v2077_v5 = vld [vmem:[%s2482_s2 + $0x30] sm:$0xff]   ;;  %v2078_v6 = vld [vmem:[%s2482_s2 + $0x38] sm:$0xff]  }
  0x1d   : > { %1856 = vmatpush3.bf16.msra.mxu1 %v2021_v12  ;;  %1817 = vmatprep.subr.bf16.mxu0 %v2106_v1  ;;  %v2079_v7 = vld [vmem:[%s2482_s2 + $0x38] sm:$0xff]   ;;  %v2080_v8 = vld [vmem:[%s2202_s20 + $0x10] sm:$0xff]  }
  0x1e   : > { %1857 = vmatprep.subr.bf16.mxu1 %v2106_v1  ;;  %v2081_v9 = vld [vmem:[%s2202_s20 + $0x18] sm:$0xff]   ;;  %s1534_s20 = sshll.u32 %s2490_s15, 1 }
  0x1f   : > { %s2467_s21 = scalar_lea.vmem %s2484_s4, %s1534_s20 }
  0x20   : > { %1818 = vmatpush3.bf16.msra.mxu0 %v2022_v13 }
  0x21   : > { %1858 = vmatpush3.bf16.msra.mxu1 %v2023_v14  ;;  %1819 = vmatprep.subr.bf16.mxu0 %v2106_v1 }
  0x22   : > { %1859 = vmatprep.subr.bf16.mxu1 %v2106_v1 }
  0x24   : > { %1820 = vmatpush3.bf16.msra.mxu0 %v2024_v15 }
  0x25   : > { %1860 = vmatpush3.bf16.msra.mxu1 %v2025_v16  ;;  %1825 = vmatprep.subr.bf16.mxu0 %v2106_v1 }
  0x26   : > { %1865 = vmatprep.subr.bf16.mxu1 %v2106_v1 }
  0x27   : > { %1822 = vmatmul.mubr.bf16.vlgmr.msra.gmra.mrb[0].mxu0 %v2026_v17 }
  0x28   : > { %1826 = vmatpush3.bf16.msra.mxu0 %v2027_v18  ;;  %1862 = vmatmul.mubr.bf16.vlgmr.msra.gmra.mrb[0].mxu1 %v2028_v19 }
  0x29   : > { %1866 = vmatpush3.bf16.msra.mxu1 %v2029_v20  ;;  %1827 = vmatprep.subr.bf16.mxu0 %v2106_v1 }
  0x2a   : > { %1867 = vmatprep.subr.bf16.mxu1 %v2106_v1  ;;  %1841 = vmatprep.mubr.msk.bf16.mxu0 %vm2107_vm0, %v2106_v1 }
  0x2b   : > { %1881 = vmatprep.mubr.msk.bf16.mxu1 %vm2107_vm0, %v2106_v1 }
  0x2c   : > { %1828 = vmatpush3.bf16.msra.mxu0 %v2030_v21 }
  0x2d   : > { %1868 = vmatpush3.bf16.msra.mxu1 %v2031_v22  ;;  %1829 = vmatprep.subr.bf16.mxu0 %v2106_v1 }
  0x2e   : > { %1869 = vmatprep.subr.bf16.mxu1 %v2106_v1 }
  0x30   : > { %1830 = vmatpush3.bf16.msra.mxu0 %v2032_v23 }
  0x31   : > { %1870 = vmatpush3.bf16.msra.mxu1 %v2033_v24  ;;  %1831 = vmatprep.subr.bf16.mxu0 %v2106_v1 }
  0x32   : > { %1871 = vmatprep.subr.bf16.mxu1 %v2106_v1 }
  0x34   : > { %1832 = vmatpush3.bf16.msra.mxu0 %v2034_v25 }
  0x35   : > { %1872 = vmatpush3.bf16.msra.mxu1 %v2035_v26  ;;  %1833 = vmatprep.subr.bf16.mxu0 %v2106_v1 }
  0x36   : > { %1873 = vmatprep.subr.bf16.mxu1 %v2106_v1 }
  0x38   : > { %1834 = vmatpush3.bf16.msra.mxu0 %v2036_v27 }
  0x39   : > { %1874 = vmatpush3.bf16.msra.mxu1 %v2037_v28  ;;  %1835 = vmatprep.subr.bf16.mxu0 %v2106_v1 }
  0x3a   : > { %1875 = vmatprep.subr.bf16.mxu1 %v2106_v1 }
  0x3c   : > { %1836 = vmatpush3.bf16.msra.mxu0 %v2038_v29 }
  0x3d   : > { %1876 = vmatpush3.bf16.msra.mxu1 %v2039_v30  ;;  %1837 = vmatprep.subr.bf16.mxu0 %v2106_v1 }
  0x3e   : > { %1877 = vmatprep.subr.bf16.mxu1 %v2106_v1 }
  0x40   : > { %1838 = vmatpush3.bf16.msra.mxu0 %v2040_v31 }
  0x41   : > { %1878 = vmatpush3.bf16.msra.mxu1 %v2041_v32  ;;  %1839 = vmatprep.subr.bf16.mxu0 %v2106_v1 }
  0x42   : > { %1879 = vmatprep.subr.bf16.mxu1 %v2106_v1 }
  0x44   : > { %1840 = vmatpush3.bf16.msra.mxu0 %v2042_v33 }
  0x45   : > { %1880 = vmatpush3.bf16.msra.mxu1 %v2043_v34  ;;  %1885 = vmatprep.subr.bf16.mxu0 %v2106_v1 }
  0x46   : > { %1925 = vmatprep.subr.bf16.mxu1 %v2106_v1 }
  0x47   : > { %1842 = vmatmul.mubr.bf16.vlgmr.msra.gmra.mrb[0].mxu0 %v2044_v35 }
  0x48   : > { %1882 = vmatmul.mubr.bf16.vlgmr.msra.gmra.mrb[0].mxu1 %v2045_v36  ;;  %1886 = vmatpush3.bf16.msra.mxu0 %v2046_v37 }
  0x49   : > { %1926 = vmatpush3.bf16.msra.mxu1 %v2047_v38  ;;  %1887 = vmatprep.subr.bf16.mxu0 %v2106_v1 }
  0x4a   : > { %1927 = vmatprep.subr.bf16.mxu1 %v2106_v1  ;;  %1901 = vmatprep.mubr.msk.bf16.mxu0 %vm2107_vm0, %v2106_v1 }
  0x4b   : > { %1941 = vmatprep.mubr.msk.bf16.mxu1 %vm2107_vm0, %v2106_v1 }
  0x4c   : > { %1888 = vmatpush3.bf16.msra.mxu0 %v2048_v39 }
  0x4d   : > { %1928 = vmatpush3.bf16.msra.mxu1 %v2049_v40  ;;  %1889 = vmatprep.subr.bf16.mxu0 %v2106_v1 }
  0x4e   : > { %1929 = vmatprep.subr.bf16.mxu1 %v2106_v1 }
  0x50   : > { %1890 = vmatpush3.bf16.msra.mxu0 %v2050_v41 }
  0x51   : > { %1930 = vmatpush3.bf16.msra.mxu1 %v2051_v42  ;;  %1891 = vmatprep.subr.bf16.mxu0 %v2106_v1 }
  0x52   : > { %1931 = vmatprep.subr.bf16.mxu1 %v2106_v1 }
  0x54   : > { %1892 = vmatpush3.bf16.msra.mxu0 %v2052_v43 }
  0x55   : > { %1932 = vmatpush3.bf16.msra.mxu1 %v2053_v44  ;;  %1893 = vmatprep.subr.bf16.mxu0 %v2106_v1 }
  0x56   : > { %1933 = vmatprep.subr.bf16.mxu1 %v2106_v1 }
  0x58   : > { %1894 = vmatpush3.bf16.msra.mxu0 %v2054_v45 }
  0x59   : > { %1934 = vmatpush3.bf16.msra.mxu1 %v2055_v46  ;;  %1895 = vmatprep.subr.bf16.mxu0 %v2106_v1 }
  0x5a   : > { %1935 = vmatprep.subr.bf16.mxu1 %v2106_v1 }
  0x5c   : > { %1896 = vmatpush3.bf16.msra.mxu0 %v2056_v47 }
  0x5d   : > { %1936 = vmatpush3.bf16.msra.mxu1 %v2057_v48  ;;  %1897 = vmatprep.subr.bf16.mxu0 %v2106_v1 }
  0x5e   : > { %1937 = vmatprep.subr.bf16.mxu1 %v2106_v1 }
  0x60   : > { %1898 = vmatpush3.bf16.msra.mxu0 %v2058_v49 }
  0x61   : > { %1938 = vmatpush3.bf16.msra.mxu1 %v2059_v50  ;;  %1899 = vmatprep.subr.bf16.mxu0 %v2106_v1 }
  0x62   : > { %1939 = vmatprep.subr.bf16.mxu1 %v2106_v1 }
  0x64   : > { %1900 = vmatpush3.bf16.msra.mxu0 %v2060_v51 }
  0x65   : > { %1940 = vmatpush3.bf16.msra.mxu1 %v2061_v52  ;;  %1905 = vmatprep.subr.bf16.mxu0 %v2106_v1 }
  0x66   : > { %1945 = vmatprep.subr.bf16.mxu1 %v2106_v1 }
  0x67   : > { %1902 = vmatmul.mubr.bf16.vlgmr.msra.gmra.mrb[4].mxu0 %v2062_v53 }
  0x68   : > { %1906 = vmatpush3.bf16.msra.mxu0 %v2063_v54  ;;  %1942 = vmatmul.mubr.bf16.vlgmr.msra.gmra.mrb[4].mxu1 %v2064_v55 }
  0x69   : > { %1946 = vmatpush3.bf16.msra.mxu1 %v2065_v56  ;;  %1907 = vmatprep.subr.bf16.mxu0 %v2106_v1 }
  0x6a   : > { %1947 = vmatprep.subr.bf16.mxu1 %v2106_v1  ;;  %1921 = vmatprep.mubr.msk.bf16.mxu0 %vm2107_vm0, %v2106_v1 }
  0x6b   : > { %1961 = vmatprep.mubr.msk.bf16.mxu1 %vm2107_vm0, %v2106_v1 }
  0x6c   : > { %1908 = vmatpush3.bf16.msra.mxu0 %v2066_v57 }
  0x6d   : > { %1948 = vmatpush3.bf16.msra.mxu1 %v2067_v58  ;;  %1909 = vmatprep.subr.bf16.mxu0 %v2106_v1 }
  0x6e   : > { %1949 = vmatprep.subr.bf16.mxu1 %v2106_v1 }
  0x70   : > { %1910 = vmatpush3.bf16.msra.mxu0 %v2068_v59 }
  0x71   : > { %1950 = vmatpush3.bf16.msra.mxu1 %v2069_v60  ;;  %1911 = vmatprep.subr.bf16.mxu0 %v2106_v1 }
  0x72   : > { %1951 = vmatprep.subr.bf16.mxu1 %v2106_v1 }
  0x74   : > { %1912 = vmatpush3.bf16.msra.mxu0 %v2070_v61 }
  0x75   : > { %1952 = vmatpush3.bf16.msra.mxu1 %v2071_v62  ;;  %1913 = vmatprep.subr.bf16.mxu0 %v2106_v1 }
  0x76   : > { %1953 = vmatprep.subr.bf16.mxu1 %v2106_v1 }
  0x78   : > { %1914 = vmatpush3.bf16.msra.mxu0 %v2072_v63 }
  0x79   : > { %1954 = vmatpush3.bf16.msra.mxu1 %v2073_v0  ;;  %1915 = vmatprep.subr.bf16.mxu0 %v2106_v1 }
  0x7a   : > { %1955 = vmatprep.subr.bf16.mxu1 %v2106_v1 }
  0x7c   : > { %1916 = vmatpush3.bf16.msra.mxu0 %v2074_v2 }
  0x7d   : > { %1956 = vmatpush3.bf16.msra.mxu1 %v2075_v3  ;;  %1917 = vmatprep.subr.bf16.mxu0 %v2106_v1 }
  0x7e   : > { %1957 = vmatprep.subr.bf16.mxu1 %v2106_v1 }
  0x80   : > { %1918 = vmatpush3.bf16.msra.mxu0 %v2076_v4 }
  0x81   : > { %1958 = vmatpush3.bf16.msra.mxu1 %v2077_v5  ;;  %1919 = vmatprep.subr.bf16.mxu0 %v2106_v1 }
  0x82   : > { %1959 = vmatprep.subr.bf16.mxu1 %v2106_v1 }
  0x84   : > { %1920 = vmatpush3.bf16.msra.mxu0 %v2078_v6 }
  0x85   : > { %1960 = vmatpush3.bf16.msra.mxu1 %v2079_v7 }
  0x87   : > { %1922 = vmatmul.mubr.bf16.vlgmr.msra.gmra.mrb[4].mxu0 %v2080_v8 }
  0x88   : > { %1962 = vmatmul.mubr.bf16.vlgmr.msra.gmra.mrb[4].mxu1 %v2081_v9 }
 0x11a   : > { %v556_v10 = vpop.f32.mrb[0].mxu0 }
 0x11b   : > { %v800_v11 = vpop.f32.mrb[0].mxu1  ;;  %v1843_v12 = vpop.f32.mrb[1].mxu0 }
 0x11c   : > { %v1883_v13 = vpop.f32.mrb[1].mxu1  ;;  %v559_v14 = vpop.f32.mrb[2].mxu0 }
 0x11d   : > { %v1713_v1 = vpack.c.bf16 %v559_v14, %v556_v10  ;;  %v573_v15 = vadd.f32 %v559_v14, %v556_v10  ;;  %v803_v16 = vpop.f32.mrb[2].mxu1  ;;  %v1844_v17 = vpop.f32.mrb[3].mxu0 }
 0x11e   : > { %v1718_v18 = vpack.c.bf16 %v803_v16, %v800_v11  ;;  %v818_v19 = vadd.f32 %v803_v16, %v800_v11  ;;  %v1884_v20 = vpop.f32.mrb[3].mxu1 }
 0x11f   : > { %1714 = vst [vmem:[%s2457_s12] sm:$0xff] %v1713_v1   ;;  %v574_v21 = vrot.slane %v573_v15, 4 }
 0x120   : > { %1730 = vst [vmem:[%s2457_s12 + $0x8] sm:$0xff] %v1718_v18   ;;  %v819_v22 = vrot.slane %v818_v19, 4 }
 0x121   : > { %v575_v23 = vadd.f32 %v574_v21, %v573_v15 }
 0x122   : > { %v820_v24 = vadd.f32 %v819_v22, %v818_v19 }
 0x123   : > { %v576_v25 = vrot.slane %v575_v23, 2 }
 0x124   : > { %v821_v26 = vrot.slane %v820_v24, 2 }
 0x125   : > { %v577_v27 = vadd.f32 %v576_v25, %v575_v23 }
 0x126   : > { %v822_v28 = vadd.f32 %v821_v26, %v820_v24 }
 0x127   : > { %v578_v29 = vrot.slane %v577_v27, 1 }
 0x128   : > { %v823_v30 = vrot.slane %v822_v28, 1 }
 0x129   : > { %v579_v31 = vadd.f32 %v578_v29, %v577_v27 }
 0x12a   : > { %v824_v32 = vadd.f32 %v823_v30, %v822_v28 }
 0x12c   : > { %v825_v33 = vadd.f32 %v824_v32, %v579_v31 }
 0x15a   : > { %v1046_v34 = vpop.f32.mrb[4].mxu0 }
 0x15b   : > { %v1291_v35 = vpop.f32.mrb[4].mxu1  ;;  %v1923_v36 = vpop.f32.mrb[5].mxu0 }
 0x15c   : > { %v1963_v37 = vpop.f32.mrb[5].mxu1  ;;  %v1049_v38 = vpop.f32.mrb[6].mxu0 }
 0x15d   : > { %v1723_v39 = vpack.c.bf16 %v1049_v38, %v1046_v34  ;;  %v1064_v40 = vadd.f32 %v1049_v38, %v1046_v34  ;;  %v1294_v41 = vpop.f32.mrb[6].mxu1  ;;  %v1924_v42 = vpop.f32.mrb[7].mxu0 }
 0x15e   : > { %v1728_v43 = vpack.c.bf16 %v1294_v41, %v1291_v35  ;;  %v1309_v44 = vadd.f32 %v1294_v41, %v1291_v35  ;;  %v1964_v45 = vpop.f32.mrb[7].mxu1 }
 0x15f   : > { %1731 = vst [vmem:[%s2457_s12 + $0x10] sm:$0xff] %v1723_v39   ;;  %v1065_v46 = vrot.slane %v1064_v40, 4 }
 0x160   : > { %1732 = vst [vmem:[%s2457_s12 + $0x18] sm:$0xff] %v1728_v43   ;;  %v1310_v47 = vrot.slane %v1309_v44, 4 }
 0x161   : > { %v1066_v48 = vadd.f32 %v1065_v46, %v1064_v40 }
 0x162   : > { %v1311_v49 = vadd.f32 %v1310_v47, %v1309_v44 }
 0x163   : > { %v1067_v50 = vrot.slane %v1066_v48, 2 }
 0x164   : > { %v1312_v51 = vrot.slane %v1311_v49, 2 }
 0x165   : > { %v1068_v52 = vadd.f32 %v1067_v50, %v1066_v48 }
 0x166   : > { %v1313_v53 = vadd.f32 %v1312_v51, %v1311_v49 }
 0x167   : > { %v1069_v54 = vrot.slane %v1068_v52, 1 }
 0x168   : > { %v1314_v55 = vrot.slane %v1313_v53, 1 }
 0x169   : > { %v1070_v56 = vadd.f32 %v1069_v54, %v1068_v52 }
 0x16a   : > { %v1315_v58 = vadd.f32 %v1314_v55, %v1313_v53 }
 0x16b   : > { %v1071_v57 = vadd.f32 %v1070_v56, %v825_v33 }
 0x16d   : > { %v1316_v59 = vadd.f32 %v1315_v58, %v1071_v57 }
 0x16f   : > { %v1317_v60 = vmul.f32 0.015625, %v1316_v59  ;;  %1365 = vst [vmem:[%s2467_s21] sm:$0x1] %v1316_v59 }
 0x171   : > { %v1318_v61 = vsub.f32 %v556_v10, %v1317_v60  ;;  %v1319_v62 = vsub.f32 %v559_v14, %v1317_v60  ;;  %v1329_v63 = vsub.f32 %v800_v11, %v1317_v60  ;;  %v1330_v0 = vsub.f32 %v803_v16, %v1317_v60 }
 0x172   : > { %v1341_v2 = vsub.f32 %v1046_v34, %v1317_v60  ;;  %v1342_v3 = vsub.f32 %v1049_v38, %v1317_v60  ;;  %v1353_v4 = vsub.f32 %v1291_v35, %v1317_v60  ;;  %v1354_v5 = vsub.f32 %v1294_v41, %v1317_v60 }
 0x173   : > { %v1320_v6 = vmul.f32 %v1318_v61, %v1318_v61  ;;  %v1321_v7 = vmul.f32 %v1319_v62, %v1319_v62  ;;  %v1331_v8 = vmul.f32 %v1329_v63, %v1329_v63  ;;  %v1332_v9 = vmul.f32 %v1330_v0, %v1330_v0 }
 0x174   : > { %v1343_v12 = vmul.f32 %v1341_v2, %v1341_v2  ;;  %v1344_v13 = vmul.f32 %v1342_v3, %v1342_v3  ;;  %v1355_v1 = vmul.f32 %v1353_v4, %v1353_v4  ;;  %v1356_v15 = vmul.f32 %v1354_v5, %v1354_v5 }
 0x175   : > { %v1322_v17 = vadd.f32 %v1321_v7, %v1320_v6  ;;  %v1333_v18 = vadd.f32 %v1332_v9, %v1331_v8 }
 0x176   : > { %v1345_v19 = vadd.f32 %v1344_v13, %v1343_v12  ;;  %v1357_v20 = vadd.f32 %v1356_v15, %v1355_v1 }
 0x177   : > { %v1323_v10 = vrot.slane %v1322_v17, 4  ;;  %v1334_v14 = vrot.slane %v1333_v18, 4 }
 0x178   : > { %v1346_v11 = vrot.slane %v1345_v19, 4  ;;  %v1358_v16 = vrot.slane %v1357_v20, 4 }
 0x179   : > { %v1324_v21 = vadd.f32 %v1323_v10, %v1322_v17  ;;  %v1335_v22 = vadd.f32 %v1334_v14, %v1333_v18 }
 0x17a   : > { %v1347_v23 = vadd.f32 %v1346_v11, %v1345_v19  ;;  %v1359_v24 = vadd.f32 %v1358_v16, %v1357_v20 }
 0x17b   : > { %v1325_v25 = vrot.slane %v1324_v21, 2  ;;  %v1336_v26 = vrot.slane %v1335_v22, 2 }
 0x17c   : > { %v1348_v27 = vrot.slane %v1347_v23, 2  ;;  %v1360_v28 = vrot.slane %v1359_v24, 2 }
 0x17d   : > { %v1326_v29 = vadd.f32 %v1325_v25, %v1324_v21  ;;  %v1337_v30 = vadd.f32 %v1336_v26, %v1335_v22 }
 0x17e   : > { %v1349_v31 = vadd.f32 %v1348_v27, %v1347_v23  ;;  %v1361_v32 = vadd.f32 %v1360_v28, %v1359_v24 }
 0x17f   : > { %v1327_v33 = vrot.slane %v1326_v29, 1  ;;  %v1338_v34 = vrot.slane %v1337_v30, 1 }
 0x180   : > { %v1350_v35 = vrot.slane %v1349_v31, 1  ;;  %v1362_v38 = vrot.slane %v1361_v32, 1 }
 0x181   : > { %v1328_v36 = vadd.f32 %v1327_v33, %v1326_v29  ;;  %v1339_v37 = vadd.f32 %v1338_v34, %v1337_v30 }
 0x182   : > { %v1351_v40 = vadd.f32 %v1350_v35, %v1349_v31  ;;  %v1363_v42 = vadd.f32 %v1362_v38, %v1361_v32 }
 0x183   : > { %v1340_v39 = vadd.f32 %v1339_v37, %v1328_v36 }
 0x185   : > { %v1352_v41 = vadd.f32 %v1351_v40, %v1340_v39 }
 0x187   : > { %v1364_v43 = vadd.f32 %v1363_v42, %v1352_v41 }
 0x189   : > { %1366 = vst [vmem:[%s2467_s21 + $0x1] sm:$0x1] %v1364_v43 }
 0x18a PF: > { %s15_s17 = sadd.s32 1, %s2104_s17   ;;  %s2485_s15 = smov %s2100_s16 }
 0x18b   : > { %p12_p5 = scmp.ge.s32.totalorder %s15_s17, 4   ;;  %s2486_s16 = smov %s2488_s18 }
 0x18d   :  { %14 = sbr.rel (!%p12_p5) target bundleno = 2 (0x2), region = 84 }

// kernel: discriminator_forward.12
= control target key start
LH: loop header
LB: loop body
LE: loop exit
PB: predicated region body
PF: predicated region fallthrough
CT: control target
= control target key end

     0   :  { %s455_s0 = inlined_call_operand.vmem [shape: bf16[128,128], index: 0, kind: input, shape index: {}]   ;;  %s456_s1 = inlined_call_operand.vmem [shape: f32[1,128], index: 1, kind: input, shape index: {}]   ;;  %s457_s2 = inlined_call_operand.vmem [shape: f32[1,128], index: 2, kind: input, shape index: {}]   ;;  %s458_s3 = inlined_call_operand.vmem [shape: bf16[128,128], index: 3, kind: output, shape index: {}]  }
   0x1   :  { %v259_v0 = vld [vmem:[%s455_s0] sm:$0xff]   ;;  %v330_v4 = vld [vmem:[%s455_s0 + $0x8] sm:$0xff]   ;;  %v331_v5 = vld [vmem:[%s455_s0 + $0x10] sm:$0xff]  }
   0x2   :  { %v370_v1 = vld [vmem:[%s456_s1] ss:$0 sm:$0xff]  ;;  %v260_v2 = vunpack.c.l.bf16 %v259_v0  ;;  %v261_v3 = vunpack.c.h.bf16 %v259_v0  ;;  %v332_v6 = vld [vmem:[%s455_s0 + $0x18] sm:$0xff]   ;;  %v264_v8 = vunpack.c.l.bf16 %v330_v4  ;;  %v265_v9 = vunpack.c.h.bf16 %v330_v4  ;;  %v334_v35 = vld [vmem:[%s455_s0 + $0x28] sm:$0xff]  }
   0x3   :  { %v384_v7 = vld [vmem:[%s457_s2] ss:$0 sm:$0xff]  ;;  %v268_v10 = vunpack.c.l.bf16 %v331_v5  ;;  %v269_v11 = vunpack.c.h.bf16 %v331_v5  ;;  %v272_v14 = vunpack.c.l.bf16 %v332_v6  ;;  %v273_v15 = vunpack.c.h.bf16 %v332_v6  ;;  %v335_v48 = vld [vmem:[%s455_s0 + $0x30] sm:$0xff]   ;;  %v336_v4 = vld [vmem:[%s455_s0 + $0x38] sm:$0xff]  }
   0x4   :  { %v53_v12 = vmul.f32 %v260_v2, %v370_v1  ;;  %v54_v13 = vmul.f32 %v261_v3, %v370_v1  ;;  %v55_v16 = vmul.f32 %v264_v8, %v370_v1  ;;  %v56_v17 = vmul.f32 %v265_v9, %v370_v1  ;;  %v333_v34 = vld [vmem:[%s455_s0 + $0x20] sm:$0xff]  }
   0x5   :  { %v57_v18 = vmul.f32 %v268_v10, %v370_v1  ;;  %v58_v19 = vmul.f32 %v269_v11, %v370_v1  ;;  %v59_v22 = vmul.f32 %v272_v14, %v370_v1  ;;  %v60_v23 = vmul.f32 %v273_v15, %v370_v1 }
   0x6   :  { %v76_v20 = vadd.f32 %v384_v7, %v53_v12  ;;  %v77_v21 = vadd.f32 %v384_v7, %v54_v13  ;;  %v78_v24 = vadd.f32 %v384_v7, %v55_v16  ;;  %v79_v25 = vadd.f32 %v384_v7, %v56_v17 }
   0x7   :  { %v80_v26 = vadd.f32 %v384_v7, %v57_v18  ;;  %v81_v27 = vadd.f32 %v384_v7, %v58_v19  ;;  %v82_v42 = vadd.f32 %v384_v7, %v59_v22  ;;  %v83_v43 = vadd.f32 %v384_v7, %v60_v23 }
   0x8   :  { %vm92_vm0 = vcmp.ge.f32.partialorder %v76_v20, 0.0  ;;  %vm93_vm1 = vcmp.ge.f32.partialorder %v77_v21, 0.0  ;;  %v108_v28 = vmul.f32 0.2, %v76_v20  ;;  %v109_v29 = vmul.f32 0.2, %v77_v21 }
   0x9   :  { %vm94_vm2 = vcmp.ge.f32.partialorder %v78_v24, 0.0  ;;  %vm95_vm3 = vcmp.ge.f32.partialorder %v79_v25, 0.0  ;;  %v110_v30 = vmul.f32 0.2, %v78_v24  ;;  %v111_v31 = vmul.f32 0.2, %v79_v25 }
   0xa   :  { %v124_v32 = vsel %vm92_vm0, %v76_v20, %v108_v28  ;;  %v125_v33 = vsel %vm93_vm1, %v77_v21, %v109_v29  ;;  %vm96_vm4 = vcmp.ge.f32.partialorder %v80_v26, 0.0  ;;  %vm97_vm5 = vcmp.ge.f32.partialorder %v81_v27, 0.0 }
   0xb   :  { %v293_v36 = vpack.c.bf16 %v125_v33, %v124_v32  ;;  %v126_v37 = vsel %vm94_vm2, %v78_v24, %v110_v30  ;;  %v127_v38 = vsel %vm95_vm3, %v79_v25, %v111_v31  ;;  %v112_v39 = vmul.f32 0.2, %v80_v26 }
   0xc   :  { %v298_v40 = vpack.c.bf16 %v127_v38, %v126_v37  ;;  %v113_v41 = vmul.f32 0.2, %v81_v27  ;;  %v276_v45 = vunpack.c.l.bf16 %v333_v34  ;;  %v277_v46 = vunpack.c.h.bf16 %v333_v34 }
   0xd   :  { %294 = vst [vmem:[%s458_s3] sm:$0xff] %v293_v36   ;;  %v128_v44 = vsel %vm96_vm4, %v80_v26, %v112_v39  ;;  %v280_v47 = vunpack.c.l.bf16 %v334_v35  ;;  %vm98_vm6 = vcmp.ge.f32.partialorder %v82_v42, 0.0  ;;  %vm99_vm7 = vcmp.ge.f32.partialorder %v83_v43, 0.0 }
   0xe   :  { %337 = vst [vmem:[%s458_s3 + $0x8] sm:$0xff] %v298_v40   ;;  %v129_v49 = vsel %vm97_vm5, %v81_v27, %v113_v41  ;;  %v114_v50 = vmul.f32 0.2, %v82_v42  ;;  %v115_v52 = vmul.f32 0.2, %v83_v43  ;;  %v61_v53 = vmul.f32 %v276_v45, %v370_v1 }
   0xf   :  { %v303_v51 = vpack.c.bf16 %v129_v49, %v128_v44  ;;  %v62_v54 = vmul.f32 %v277_v46, %v370_v1  ;;  %v281_v56 = vunpack.c.h.bf16 %v334_v35  ;;  %v63_v57 = vmul.f32 %v280_v47, %v370_v1 }
  0x10   :  { %v130_v55 = vsel %vm98_vm6, %v82_v42, %v114_v50  ;;  %v284_v58 = vunpack.c.l.bf16 %v335_v48  ;;  %v131_v59 = vsel %vm99_vm7, %v83_v43, %v115_v52  ;;  %v84_v60 = vadd.f32 %v384_v7, %v61_v53 }
  0x11   :  { %338 = vst [vmem:[%s458_s3 + $0x10] sm:$0xff] %v303_v51   ;;  %v85_v61 = vadd.f32 %v384_v7, %v62_v54  ;;  %v285_v62 = vunpack.c.h.bf16 %v335_v48  ;;  %v308_v63 = vpack.c.bf16 %v131_v59, %v130_v55  ;;  %v64_v0 = vmul.f32 %v281_v56, %v370_v1 }
  0x12   :  { %v86_v2 = vadd.f32 %v384_v7, %v63_v57  ;;  %v65_v3 = vmul.f32 %v284_v58, %v370_v1  ;;  %vm100_vm8 = vcmp.ge.f32.partialorder %v84_v60, 0.0  ;;  %v116_v5 = vmul.f32 0.2, %v84_v60 }
  0x13   :  { %vm101_vm9 = vcmp.ge.f32.partialorder %v85_v61, 0.0  ;;  %v117_v6 = vmul.f32 0.2, %v85_v61  ;;  %339 = vst [vmem:[%s458_s3 + $0x18] sm:$0xff] %v308_v63   ;;  %v87_v8 = vadd.f32 %v384_v7, %v64_v0  ;;  %v66_v10 = vmul.f32 %v285_v62, %v370_v1 }
  0x14   :  { %vm102_vm10 = vcmp.ge.f32.partialorder %v86_v2, 0.0  ;;  %v118_v9 = vmul.f32 0.2, %v86_v2  ;;  %v132_v11 = vsel %vm100_vm8, %v84_v60, %v116_v5  ;;  %v88_v13 = vadd.f32 %v384_v7, %v65_v3 }
  0x15   :  { %v133_v12 = vsel %vm101_vm9, %v85_v61, %v117_v6  ;;  %v288_v14 = vunpack.c.l.bf16 %v336_v4  ;;  %vm103_vm11 = vcmp.ge.f32.partialorder %v87_v8, 0.0  ;;  %v119_v16 = vmul.f32 0.2, %v87_v8 }
  0x16   :  { %v313_v15 = vpack.c.bf16 %v133_v12, %v132_v11  ;;  %v134_v17 = vsel %vm102_vm10, %v86_v2, %v118_v9  ;;  %v89_v18 = vadd.f32 %v384_v7, %v66_v10  ;;  %vm104_vm12 = vcmp.ge.f32.partialorder %v88_v13, 0.0 }
  0x17   :  { %v120_v19 = vmul.f32 0.2, %v88_v13  ;;  %v289_v20 = vunpack.c.h.bf16 %v336_v4  ;;  %v135_v21 = vsel %vm103_vm11, %v87_v8, %v119_v16  ;;  %v67_v22 = vmul.f32 %v288_v14, %v370_v1 }
  0x18   :  { %340 = vst [vmem:[%s458_s3 + $0x20] sm:$0xff] %v313_v15   ;;  %v318_v23 = vpack.c.bf16 %v135_v21, %v134_v17  ;;  %vm105_vm13 = vcmp.ge.f32.partialorder %v89_v18, 0.0  ;;  %v121_v24 = vmul.f32 0.2, %v89_v18 }
  0x19   :  { %v136_v25 = vsel %vm104_vm12, %v88_v13, %v120_v19  ;;  %v68_v26 = vmul.f32 %v289_v20, %v370_v1  ;;  %v90_v27 = vadd.f32 %v384_v7, %v67_v22 }
  0x1a   :  { %341 = vst [vmem:[%s458_s3 + $0x28] sm:$0xff] %v318_v23   ;;  %v137_v28 = vsel %vm105_vm13, %v89_v18, %v121_v24 }
  0x1b   :  { %v323_v29 = vpack.c.bf16 %v137_v28, %v136_v25  ;;  %v91_v30 = vadd.f32 %v384_v7, %v68_v26  ;;  %vm106_vm14 = vcmp.ge.f32.partialorder %v90_v27, 0.0  ;;  %v122_v31 = vmul.f32 0.2, %v90_v27 }
  0x1d   :  { %342 = vst [vmem:[%s458_s3 + $0x30] sm:$0xff] %v323_v29   ;;  %vm107_vm15 = vcmp.ge.f32.partialorder %v91_v30, 0.0  ;;  %v123_v32 = vmul.f32 0.2, %v91_v30  ;;  %v138_v33 = vsel %vm106_vm14, %v90_v27, %v122_v31 }
  0x1f   :  { %v139_v1 = vsel %vm107_vm15, %v91_v30, %v123_v32 }
  0x20   :  { %v328_v34 = vpack.c.bf16 %v139_v1, %v138_v33 }
  0x22   :  { %343 = vst [vmem:[%s458_s3 + $0x38] sm:$0xff] %v328_v34  }

// kernel: discriminator_forward.13
= control target key start
LH: loop header
LB: loop body
LE: loop exit
PB: predicated region body
PF: predicated region fallthrough
CT: control target
= control target key end

     0   :  { %s1967_s15 = smov 0   ;;  %s1969_s16 = smov 0   ;;  %s2303_s0 = inlined_call_operand.vmem [shape: bf16[2,3,6,128], index: 0, kind: input, shape index: {}, may-alias: {0,1}]   ;;  %s2304_s1 = inlined_call_operand.vmem [shape: bf16[2,3,6,128], index: 1, kind: input, shape index: {}, may-alias: {0,1}]   ;;  %s2305_s2 = inlined_call_operand.vmem [shape: bf16[4,128,128], index: 2, kind: input, shape index: {}]   ;;  %s2306_s3 = inlined_call_operand.vmem [shape: bf16[2,2,4,128], index: 3, kind: output, shape index: {0}]   ;;  %s2307_s4 = inlined_call_operand.vmem [shape: f32[2,1,2,128], index: 4, kind: output, shape index: {1}]  }
   0x1   :  { %s1971_s17 = smov 0  }
   0x2 LB: > { %s27_s18 = sadd.s32 1, %s1934_s16  ;;  %p1383_p0 = scmp.ge.s32.totalorder %s1938_s17, 1  ;;  %s1938_s17 = sphi %s1971_s17, %s15_s17   ;;  %s1934_s16 = sphi %s1969_s16, %s2309_s16   ;;  %s1930_s15 = sphi %s1967_s15, %s2308_s15  }
   0x3   : > { %p29_p1 = scmp.ge.s32.totalorder %s27_s18, 2  ;;  %p219_p2 = scmp.lt.s32.totalorder %s1938_s17, 3 }
   0x5   : > { %s2311_s18 = smov (%p29_p1, %s27_s18), 0  ;;  %p220_p3 = pnand %p1383_p0, %p219_p2 }
   0x6   : > { %v1848_v0 = vld [vmem:[%s2305_s2 + $0x40] sm:$0xff] (!%p220_p3)   ;;  %v1940_v1 = vmov (!%p220_p3), 0.0   ;;  %v1850_v3 = vld [vmem:[%s2305_s2 + $0x48] sm:$0xff] (!%p220_p3)   ;;  %vm1941_vm0 = vmmov (!%p220_p3), 0   ;;  %p279_p4 = scmp.lt.s32.totalorder (!%p220_p3), %s1930_s15, 1  ;;  %v1852_v5 = vld [vmem:[%s2305_s2 + $0x50] sm:$0xff] (!%p220_p3)  }
   0x7   : > { %223 = sbr.rel (%p220_p3) target bundleno = 385 (0x181), region = 32  ;;  %1635 = vmatprep.subr.bf16.mxu0 (!%p220_p3), %v1940_v1  ;;  %1715 = vmatprep.subr.bf16.mxu1 (!%p220_p3), %v1940_v1  ;;  %v1849_v2 = vld [vmem:[%s2305_s2 + $0x40] sm:$0xff] (!%p220_p3)   ;;  %v1851_v4 = vld [vmem:[%s2305_s2 + $0x48] sm:$0xff] (!%p220_p3)   ;;  %v1853_v6 = vld [vmem:[%s2305_s2 + $0x50] sm:$0xff] (!%p220_p3)   ;;  %vm760_vm1 = vcmask (!%p220_p3), 1043456  }
   0x8   : > { %1636 = vmatpush3.bf16.msra.mxu0 (!%p220_p3), %v1848_v0  ;;  %1651 = vmatprep.mubr.msk.bf16.mxu0 (!%p220_p3), %vm1941_vm0, %v1940_v1  ;;  %v1854_v7 = vld [vmem:[%s2305_s2 + $0x58] sm:$0xff] (!%p220_p3)   ;;  %v1856_v9 = vld [vmem:[%s2305_s2 + $0x60] sm:$0xff] (!%p220_p3)   ;;  %v1858_v11 = vld [vmem:[%s2305_s2 + $0x68] sm:$0xff] (!%p220_p3)  }
   0x9   : > { %1716 = vmatpush3.bf16.msra.mxu1 (!%p220_p3), %v1849_v2  ;;  %1637 = vmatprep.subr.bf16.mxu0 (!%p220_p3), %v1940_v1  ;;  %v1855_v8 = vld [vmem:[%s2305_s2 + $0x58] sm:$0xff] (!%p220_p3)   ;;  %v1857_v10 = vld [vmem:[%s2305_s2 + $0x60] sm:$0xff] (!%p220_p3)   ;;  %v1859_v12 = vld [vmem:[%s2305_s2 + $0x68] sm:$0xff] (!%p220_p3)  }
   0xa   : > { %1717 = vmatprep.subr.bf16.mxu1 (!%p220_p3), %v1940_v1  ;;  %1731 = vmatprep.mubr.msk.bf16.mxu1 (!%p220_p3), %vm1941_vm0, %v1940_v1  ;;  %v1860_v13 = vld [vmem:[%s2305_s2 + $0x70] sm:$0xff] (!%p220_p3)   ;;  %v1862_v17 = vld [vmem:[%s2305_s2 + $0x78] sm:$0xff] (!%p220_p3)   ;;  %v1865_v20 = vld [vmem:[%s2305_s2] sm:$0xff] (!%p220_p3)  }
   0xb   : > { %v1861_v14 = vld [vmem:[%s2305_s2 + $0x70] sm:$0xff] (!%p220_p3)   ;;  %v1863_v18 = vld [vmem:[%s2305_s2 + $0x78] sm:$0xff] (!%p220_p3)   ;;  %v1867_v22 = vld [vmem:[%s2305_s2] sm:$0xff] (!%p220_p3)  }
   0xc   : > { %1638 = vmatpush3.bf16.msra.mxu0 (!%p220_p3), %v1850_v3  ;;  %v1868_v23 = vld [vmem:[%s2305_s2 + $0x8] sm:$0xff] (!%p220_p3)   ;;  %v1870_v25 = vld [vmem:[%s2305_s2 + $0x10] sm:$0xff] (!%p220_p3)   ;;  %v1872_v27 = vld [vmem:[%s2305_s2 + $0x18] sm:$0xff] (!%p220_p3)  }
   0xd   : > { %1718 = vmatpush3.bf16.msra.mxu1 (!%p220_p3), %v1851_v4  ;;  %1639 = vmatprep.subr.bf16.mxu0 (!%p220_p3), %v1940_v1  ;;  %v1869_v24 = vld [vmem:[%s2305_s2 + $0x8] sm:$0xff] (!%p220_p3)   ;;  %v1871_v26 = vld [vmem:[%s2305_s2 + $0x10] sm:$0xff] (!%p220_p3)   ;;  %v1873_v28 = vld [vmem:[%s2305_s2 + $0x18] sm:$0xff] (!%p220_p3)  }
   0xe   : > { %s2313_s15 = smov (!%p279_p4, %s1930_s15), 1  ;;  %1719 = vmatprep.subr.bf16.mxu1 %v1940_v1  ;;  %v1874_v29 = vld [vmem:[%s2305_s2 + $0x20] sm:$0xff]   ;;  %v1876_v31 = vld [vmem:[%s2305_s2 + $0x28] sm:$0xff]   ;;  %v1878_v33 = vld [vmem:[%s2305_s2 + $0x30] sm:$0xff]  }
   0xf   : > { %s1819_s9 = smul.u32 12, %s2313_s15  ;;  %v1875_v30 = vld [vmem:[%s2305_s2 + $0x20] sm:$0xff]   ;;  %v1877_v32 = vld [vmem:[%s2305_s2 + $0x28] sm:$0xff]   ;;  %v1879_v34 = vld [vmem:[%s2305_s2 + $0x30] sm:$0xff]   ;;  %s1388_s8 = sshll.u32 %s2313_s15, 1 }
  0x10   : > { %1640 = vmatpush3.bf16.msra.mxu0 %v1852_v5  ;;  %v1880_v35 = vld [vmem:[%s2305_s2 + $0x38] sm:$0xff]   ;;  %v1882_v38 = vld [vmem:[%s2305_s2 + $0x80] sm:$0xff]   ;;  %v1884_v41 = vld [vmem:[%s2305_s2 + $0x88] sm:$0xff]   ;;  %s320_s12 = scalar_lea.vmem %s2307_s4, %s1388_s8 }
  0x11   : > { %1720 = vmatpush3.bf16.msra.mxu1 %v1853_v6  ;;  %1641 = vmatprep.subr.bf16.mxu0 %v1940_v1  ;;  %s2036_s20 = scalar_lea.vmem %s2303_s0, %s1819_s9  ;;  %s1561_s7 = sadd.s32 8, %s1819_s9  ;;  %v1881_v36 = vld [vmem:[%s2305_s2 + $0x38] sm:$0xff]   ;;  %v1883_v40 = vld [vmem:[%s2305_s2 + $0x80] sm:$0xff]   ;;  %v1885_v42 = vld [vmem:[%s2305_s2 + $0x88] sm:$0xff]  }
  0x12   : > { %1721 = vmatprep.subr.bf16.mxu1 %v1940_v1  ;;  %v1864_v15 = vld [vmem:[%s2036_s20] ss:$0 sps:$4 sm:$0x66]   ;;  %v1866_v16 = vld [vmem:[%s2036_s20 + $0x4] ss:$0 sps:$4 sm:$0x66]   ;;  %s2121_s19 = scalar_lea.vmem %s2304_s1, %s1561_s7 }
  0x13   : > { %v360_v19 = vrot.slane %v1864_v15, 1  ;;  %v805_v21 = vrot.slane %v1866_v16, 1  ;;  %v322_v37 = vld [vmem:[%s2036_s20] sm:$0x3]  ;;  %v1473_v39 = vld [vmem:[%s2036_s20 + $0x4] sm:$0x3] }
  0x14   : > { %1642 = vmatpush3.bf16.msra.mxu0 %v1854_v7  ;;  %v1886_v43 = vld [vmem:[%s2305_s2 + $0x90] sm:$0xff]   ;;  %v1888_v45 = vld [vmem:[%s2305_s2 + $0x98] sm:$0xff]   ;;  %v1890_v47 = vld [vmem:[%s2305_s2 + $0xa0] sm:$0xff]  }
  0x15   : > { %1722 = vmatpush3.bf16.msra.mxu1 %v1855_v8  ;;  %1643 = vmatprep.subr.bf16.mxu0 %v1940_v1  ;;  %v1887_v44 = vld [vmem:[%s2305_s2 + $0x90] sm:$0xff]   ;;  %v1889_v46 = vld [vmem:[%s2305_s2 + $0x98] sm:$0xff]   ;;  %v1891_v48 = vld [vmem:[%s2305_s2 + $0xa0] sm:$0xff]  }
  0x16   : > { %1723 = vmatprep.subr.bf16.mxu1 %v1940_v1  ;;  %v1892_v49 = vld [vmem:[%s2305_s2 + $0xa8] sm:$0xff]   ;;  %v1894_v51 = vld [vmem:[%s2305_s2 + $0xb0] sm:$0xff]   ;;  %v1896_v53 = vld [vmem:[%s2305_s2 + $0xb8] sm:$0xff]  }
  0x17   : > { %v1893_v50 = vld [vmem:[%s2305_s2 + $0xa8] sm:$0xff]   ;;  %v1895_v52 = vld [vmem:[%s2305_s2 + $0xb0] sm:$0xff]   ;;  %v1897_v54 = vld [vmem:[%s2305_s2 + $0xb8] sm:$0xff]  }
  0x18   : > { %1644 = vmatpush3.bf16.msra.mxu0 %v1856_v9  ;;  %v1422_v55 = vld [vmem:[%s2036_s20 + $0x4] sm:$0x3]  ;;  %v983_v57 = vld [vmem:[%s2121_s19] sm:$0x3]  ;;  %v1901_v59 = vld [vmem:[%s2305_s2 + $0xc8] sm:$0xff]  }
  0x19   : > { %1724 = vmatpush3.bf16.msra.mxu1 %v1857_v10  ;;  %1645 = vmatprep.subr.bf16.mxu0 %v1940_v1  ;;  %v1898_v56 = vld [vmem:[%s2305_s2 + $0xc0] sm:$0xff]   ;;  %v1902_v60 = vld [vmem:[%s2305_s2 + $0xc8] sm:$0xff]   ;;  %v1903_v61 = vld [vmem:[%s2305_s2 + $0xd0] sm:$0xff]  }
  0x1a   : > { %1725 = vmatprep.subr.bf16.mxu1 %v1940_v1  ;;  %v1900_v58 = vld [vmem:[%s2305_s2 + $0xc0] sm:$0xff]   ;;  %v1904_v62 = vld [vmem:[%s2305_s2 + $0xd0] sm:$0xff]   ;;  %v1905_v63 = vld [vmem:[%s2305_s2 + $0xd8] sm:$0xff]  }
  0x1b   : > { %v1906_v0 = vld [vmem:[%s2305_s2 + $0xd8] sm:$0xff]   ;;  %v1907_v2 = vld [vmem:[%s2305_s2 + $0xe0] sm:$0xff]   ;;  %v1909_v4 = vld [vmem:[%s2305_s2 + $0xe8] sm:$0xff]  }
  0x1c   : > { %1646 = vmatpush3.bf16.msra.mxu0 %v1858_v11  ;;  %v1908_v3 = vld [vmem:[%s2305_s2 + $0xe0] sm:$0xff]   ;;  %v1910_v5 = vld [vmem:[%s2305_s2 + $0xe8] sm:$0xff]   ;;  %v1911_v6 = vld [vmem:[%s2305_s2 + $0xf0] sm:$0xff]  }
  0x1d   : > { %1726 = vmatpush3.bf16.msra.mxu1 %v1859_v12  ;;  %1647 = vmatprep.subr.bf16.mxu0 %v1940_v1  ;;  %v1912_v7 = vld [vmem:[%s2305_s2 + $0xf0] sm:$0xff]   ;;  %v1915_v8 = vld [vmem:[%s2036_s20 + $0x4] ss:$0 sps:$4 sm:$0x66]   ;;  %v1913_v10 = vld [vmem:[%s2305_s2 + $0xf8] sm:$0xff]   ;;  %s1562_s20 = sshll.u32 %s2313_s15, 2 }
  0x1e   : > { %1727 = vmatprep.subr.bf16.mxu1 %v1940_v1  ;;  %v1899_v9 = vld [vmem:[%s2121_s19] ss:$0 sps:$4 sm:$0x66]   ;;  %v1914_v11 = vld [vmem:[%s2305_s2 + $0xf8] sm:$0xff]   ;;  %v667_v12 = vrot.slane %v1915_v8, 1  ;;  %s312_s7 = scalar_lea.vmem %s2306_s3, %s1562_s20 }
  0x20   : > { %1648 = vmatpush3.bf16.msra.mxu0 %v1860_v13  ;;  %v1109_v13 = vrot.slane %v1899_v9, 1 }
  0x21   : > { %1728 = vmatpush3.bf16.msra.mxu1 %v1861_v14  ;;  %1649 = vmatprep.subr.bf16.mxu0 %v1940_v1 }
  0x22   : > { %1729 = vmatprep.subr.bf16.mxu1 %v1940_v1 }
  0x24   : > { %1650 = vmatpush3.bf16.msra.mxu0 %v1862_v17 }
  0x25   : > { %1730 = vmatpush3.bf16.msra.mxu1 %v1863_v18  ;;  %1655 = vmatprep.subr.bf16.mxu0 %v1940_v1 }
  0x26   : > { %1735 = vmatprep.subr.bf16.mxu1 %v1940_v1 }
  0x27   : > { %1652 = vmatmul.mubr.bf16.vlgmr.msra.gmra.mrb[0].mxu0 %v360_v19 }
  0x28   : > { %1656 = vmatpush3.bf16.msra.mxu0 %v1865_v20  ;;  %1732 = vmatmul.mubr.bf16.vlgmr.msra.gmra.mrb[0].mxu1 %v805_v21 }
  0x29   : > { %1736 = vmatpush3.bf16.msra.mxu1 %v1867_v22  ;;  %1657 = vmatprep.subr.bf16.mxu0 %v1940_v1 }
  0x2a   : > { %1737 = vmatprep.subr.bf16.mxu1 %v1940_v1  ;;  %1671 = vmatprep.mubr.msk.bf16.mxu0 %vm1941_vm0, %v1940_v1 }
  0x2b   : > { %1751 = vmatprep.mubr.msk.bf16.mxu1 %vm1941_vm0, %v1940_v1 }
  0x2c   : > { %1658 = vmatpush3.bf16.msra.mxu0 %v1868_v23 }
  0x2d   : > { %1738 = vmatpush3.bf16.msra.mxu1 %v1869_v24  ;;  %1659 = vmatprep.subr.bf16.mxu0 %v1940_v1 }
  0x2e   : > { %1739 = vmatprep.subr.bf16.mxu1 %v1940_v1 }
  0x30   : > { %1660 = vmatpush3.bf16.msra.mxu0 %v1870_v25 }
  0x31   : > { %1740 = vmatpush3.bf16.msra.mxu1 %v1871_v26  ;;  %1661 = vmatprep.subr.bf16.mxu0 %v1940_v1 }
  0x32   : > { %1741 = vmatprep.subr.bf16.mxu1 %v1940_v1 }
  0x34   : > { %1662 = vmatpush3.bf16.msra.mxu0 %v1872_v27 }
  0x35   : > { %1742 = vmatpush3.bf16.msra.mxu1 %v1873_v28  ;;  %1663 = vmatprep.subr.bf16.mxu0 %v1940_v1 }
  0x36   : > { %1743 = vmatprep.subr.bf16.mxu1 %v1940_v1 }
  0x38   : > { %1664 = vmatpush3.bf16.msra.mxu0 %v1874_v29 }
  0x39   : > { %1744 = vmatpush3.bf16.msra.mxu1 %v1875_v30  ;;  %1665 = vmatprep.subr.bf16.mxu0 %v1940_v1 }
  0x3a   : > { %1745 = vmatprep.subr.bf16.mxu1 %v1940_v1 }
  0x3c   : > { %1666 = vmatpush3.bf16.msra.mxu0 %v1876_v31 }
  0x3d   : > { %1746 = vmatpush3.bf16.msra.mxu1 %v1877_v32  ;;  %1667 = vmatprep.subr.bf16.mxu0 %v1940_v1 }
  0x3e   : > { %1747 = vmatprep.subr.bf16.mxu1 %v1940_v1 }
  0x40   : > { %1668 = vmatpush3.bf16.msra.mxu0 %v1878_v33 }
  0x41   : > { %1748 = vmatpush3.bf16.msra.mxu1 %v1879_v34  ;;  %1669 = vmatprep.subr.bf16.mxu0 %v1940_v1 }
  0x42   : > { %1749 = vmatprep.subr.bf16.mxu1 %v1940_v1 }
  0x44   : > { %1670 = vmatpush3.bf16.msra.mxu0 %v1880_v35 }
  0x45   : > { %1750 = vmatpush3.bf16.msra.mxu1 %v1881_v36  ;;  %1675 = vmatprep.subr.bf16.mxu0 %v1940_v1 }
  0x46   : > { %1755 = vmatprep.subr.bf16.mxu1 %v1940_v1 }
  0x47   : > { %1672 = vmatmul.mubr.bf16.vlgmr.msra.gmra.mrb[0].mxu0 %v322_v37 }
  0x48   : > { %1676 = vmatpush3.bf16.msra.mxu0 %v1882_v38  ;;  %1752 = vmatmul.mubr.bf16.vlgmr.msra.gmra.mrb[0].mxu1 %v1473_v39 }
  0x49   : > { %1756 = vmatpush3.bf16.msra.mxu1 %v1883_v40  ;;  %1677 = vmatprep.subr.bf16.mxu0 %v1940_v1 }
  0x4a   : > { %1757 = vmatprep.subr.bf16.mxu1 %v1940_v1  ;;  %1691 = vmatprep.mubr.msk.bf16.mxu0 %vm1941_vm0, %v1940_v1 }
  0x4b   : > { %1771 = vmatprep.mubr.msk.bf16.mxu1 %vm1941_vm0, %v1940_v1 }
  0x4c   : > { %1678 = vmatpush3.bf16.msra.mxu0 %v1884_v41 }
  0x4d   : > { %1758 = vmatpush3.bf16.msra.mxu1 %v1885_v42  ;;  %1679 = vmatprep.subr.bf16.mxu0 %v1940_v1 }
  0x4e   : > { %1759 = vmatprep.subr.bf16.mxu1 %v1940_v1 }
  0x50   : > { %1680 = vmatpush3.bf16.msra.mxu0 %v1886_v43 }
  0x51   : > { %1760 = vmatpush3.bf16.msra.mxu1 %v1887_v44  ;;  %1681 = vmatprep.subr.bf16.mxu0 %v1940_v1 }
  0x52   : > { %1761 = vmatprep.subr.bf16.mxu1 %v1940_v1 }
  0x54   : > { %1682 = vmatpush3.bf16.msra.mxu0 %v1888_v45 }
  0x55   : > { %1762 = vmatpush3.bf16.msra.mxu1 %v1889_v46  ;;  %1683 = vmatprep.subr.bf16.mxu0 %v1940_v1 }
  0x56   : > { %1763 = vmatprep.subr.bf16.mxu1 %v1940_v1 }
  0x58   : > { %1684 = vmatpush3.bf16.msra.mxu0 %v1890_v47 }
  0x59   : > { %1764 = vmatpush3.bf16.msra.mxu1 %v1891_v48  ;;  %1685 = vmatprep.subr.bf16.mxu0 %v1940_v1 }
  0x5a   : > { %1765 = vmatprep.subr.bf16.mxu1 %v1940_v1 }
  0x5c   : > { %1686 = vmatpush3.bf16.msra.mxu0 %v1892_v49 }
  0x5d   : > { %1766 = vmatpush3.bf16.msra.mxu1 %v1893_v50  ;;  %1687 = vmatprep.subr.bf16.mxu0 %v1940_v1 }
  0x5e   : > { %1767 = vmatprep.subr.bf16.mxu1 %v1940_v1 }
  0x60   : > { %1688 = vmatpush3.bf16.msra.mxu0 %v1894_v51 }
  0x61   : > { %1768 = vmatpush3.bf16.msra.mxu1 %v1895_v52  ;;  %1689 = vmatprep.subr.bf16.mxu0 %v1940_v1 }
  0x62   : > { %1769 = vmatprep.subr.bf16.mxu1 %v1940_v1 }
  0x64   : > { %1690 = vmatpush3.bf16.msra.mxu0 %v1896_v53 }
  0x65   : > { %1770 = vmatpush3.bf16.msra.mxu1 %v1897_v54  ;;  %1695 = vmatprep.subr.bf16.mxu0 %v1940_v1 }
  0x66   : > { %1775 = vmatprep.subr.bf16.mxu1 %v1940_v1 }
  0x67   : > { %1692 = vmatmul.mubr.bf16.vlgmr.msra.gmra.mrb[0].mxu0 %v1422_v55 }
  0x68   : > { %1696 = vmatpush3.bf16.msra.mxu0 %v1898_v56  ;;  %1772 = vmatmul.mubr.bf16.vlgmr.msra.gmra.mrb[0].mxu1 %v983_v57 }
  0x69   : > { %1776 = vmatpush3.bf16.msra.mxu1 %v1900_v58  ;;  %1697 = vmatprep.subr.bf16.mxu0 %v1940_v1 }
  0x6a   : > { %1777 = vmatprep.subr.bf16.mxu1 %v1940_v1  ;;  %1711 = vmatprep.mubr.msk.bf16.mxu0 %vm1941_vm0, %v1940_v1 }
  0x6b   : > { %1791 = vmatprep.mubr.msk.bf16.mxu1 %vm1941_vm0, %v1940_v1 }
  0x6c   : > { %1698 = vmatpush3.bf16.msra.mxu0 %v1901_v59 }
  0x6d   : > { %1778 = vmatpush3.bf16.msra.mxu1 %v1902_v60  ;;  %1699 = vmatprep.subr.bf16.mxu0 %v1940_v1 }
  0x6e   : > { %1779 = vmatprep.subr.bf16.mxu1 %v1940_v1 }
  0x70   : > { %1700 = vmatpush3.bf16.msra.mxu0 %v1903_v61 }
  0x71   : > { %1780 = vmatpush3.bf16.msra.mxu1 %v1904_v62  ;;  %1701 = vmatprep.subr.bf16.mxu0 %v1940_v1 }
  0x72   : > { %1781 = vmatprep.subr.bf16.mxu1 %v1940_v1 }
  0x74   : > { %1702 = vmatpush3.bf16.msra.mxu0 %v1905_v63 }
  0x75   : > { %1782 = vmatpush3.bf16.msra.mxu1 %v1906_v0  ;;  %1703 = vmatprep.subr.bf16.mxu0 %v1940_v1 }
  0x76   : > { %1783 = vmatprep.subr.bf16.mxu1 %v1940_v1 }
  0x78   : > { %1704 = vmatpush3.bf16.msra.mxu0 %v1907_v2 }
  0x79   : > { %1784 = vmatpush3.bf16.msra.mxu1 %v1908_v3  ;;  %1705 = vmatprep.subr.bf16.mxu0 %v1940_v1 }
  0x7a   : > { %1785 = vmatprep.subr.bf16.mxu1 %v1940_v1 }
  0x7c   : > { %1706 = vmatpush3.bf16.msra.mxu0 %v1909_v4 }
  0x7d   : > { %1786 = vmatpush3.bf16.msra.mxu1 %v1910_v5  ;;  %1707 = vmatprep.subr.bf16.mxu0 %v1940_v1 }
  0x7e   : > { %1787 = vmatprep.subr.bf16.mxu1 %v1940_v1 }
  0x80   : > { %1708 = vmatpush3.bf16.msra.mxu0 %v1911_v6 }
  0x81   : > { %1788 = vmatpush3.bf16.msra.mxu1 %v1912_v7  ;;  %1709 = vmatprep.subr.bf16.mxu0 %v1940_v1 }
  0x82   : > { %1789 = vmatprep.subr.bf16.mxu1 %v1940_v1 }
  0x84   : > { %1710 = vmatpush3.bf16.msra.mxu0 %v1913_v10 }
  0x85   : > { %1790 = vmatpush3.bf16.msra.mxu1 %v1914_v11 }
  0x87   : > { %1712 = vmatmul.mubr.bf16.vlgmr.msra.gmra.mrb[0].mxu0 %v667_v12 }
  0x88   : > { %1792 = vmatmul.mubr.bf16.vlgmr.msra.gmra.mrb[0].mxu1 %v1109_v13 }
 0x15a   : > { %v751_v14 = vpop.f32.mrb[0].mxu0 }
 0x15b   : > { %v758_v15 = vpack.c.bf16 %v751_v14, %v751_v14  ;;  %v761_v16 = vsel %vm760_vm1, %v751_v14, 0.0  ;;  %v1193_v17 = vpop.f32.mrb[0].mxu1  ;;  %v1713_v18 = vpop.f32.mrb[1].mxu0 }
 0x15c   : > { %v762_v19 = vrot.slane %v761_v16, 4  ;;  %v1200_v1 = vpack.c.bf16 %v1193_v17, %v1193_v17  ;;  %v1203_v20 = vsel %vm760_vm1, %v1193_v17, 0.0  ;;  %v1793_v21 = vpop.f32.mrb[1].mxu1  ;;  %v754_v22 = vpop.f32.mrb[2].mxu0 }
 0x15d   : > { %759 = vst [vmem:[%s312_s7] sm:$0x3] %v758_v15  ;;  %v1204_v23 = vrot.slane %v1203_v20, 4  ;;  %v1196_v24 = vpop.f32.mrb[2].mxu1  ;;  %v1714_v25 = vpop.f32.mrb[3].mxu0 }
 0x15e   : > { %v763_v26 = vadd.f32 %v762_v19, %v761_v16  ;;  %1557 = vst [vmem:[%s312_s7 + $0x2] sm:$0x3] %v1200_v1  ;;  %v1794_v27 = vpop.f32.mrb[3].mxu1 }
 0x15f   : > { %v1205_v28 = vadd.f32 %v1204_v23, %v1203_v20 }
 0x160   : > { %v764_v29 = vrot.slane %v763_v26, 2 }
 0x161   : > { %v1206_v30 = vrot.slane %v1205_v28, 2 }
 0x162   : > { %v765_v31 = vadd.f32 %v764_v29, %v763_v26 }
 0x163   : > { %v1207_v32 = vadd.f32 %v1206_v30, %v1205_v28 }
 0x164   : > { %v766_v33 = vrot.slane %v765_v31, 1 }
 0x165   : > { %v1208_v34 = vrot.slane %v1207_v32, 1 }
 0x166   : > { %v767_v35 = vadd.f32 %v766_v33, %v765_v31 }
 0x167   : > { %v1209_v36 = vadd.f32 %v1208_v34, %v1207_v32 }
 0x169   : > { %v1210_v37 = vadd.f32 %v1209_v36, %v767_v35 }
 0x16b   : > { %v1211_v38 = vmul.f32 0.125, %v1210_v37  ;;  %1231 = vst [vmem:[%s320_s12] sm:$0x1] %v1210_v37 }
 0x16d   : > { %v1212_v39 = vsub.f32 %v751_v14, %v1211_v38  ;;  %v1221_v40 = vsub.f32 %v1193_v17, %v1211_v38 }
 0x16f   : > { %v1213_v41 = vmul.f32 %v1212_v39, %v1212_v39  ;;  %v1222_v42 = vmul.f32 %v1221_v40, %v1221_v40 }
 0x171   : > { %v1214_v43 = vsel %vm760_vm1, %v1213_v41, 0.0  ;;  %v1223_v44 = vsel %vm760_vm1, %v1222_v42, 0.0 }
 0x172   : > { %v1215_v45 = vrot.slane %v1214_v43, 4  ;;  %v1224_v46 = vrot.slane %v1223_v44, 4 }
 0x174   : > { %v1216_v47 = vadd.f32 %v1215_v45, %v1214_v43  ;;  %v1225_v48 = vadd.f32 %v1224_v46, %v1223_v44 }
 0x176   : > { %v1217_v49 = vrot.slane %v1216_v47, 2  ;;  %v1226_v50 = vrot.slane %v1225_v48, 2 }
 0x178   : > { %v1218_v51 = vadd.f32 %v1217_v49, %v1216_v47  ;;  %v1227_v52 = vadd.f32 %v1226_v50, %v1225_v48 }
 0x17a   : > { %v1219_v53 = vrot.slane %v1218_v51, 1  ;;  %v1228_v54 = vrot.slane %v1227_v52, 1 }
 0x17c   : > { %v1220_v55 = vadd.f32 %v1219_v53, %v1218_v51  ;;  %v1229_v56 = vadd.f32 %v1228_v54, %v1227_v52 }
 0x17e   : > { %v1230_v57 = vadd.f32 %v1229_v56, %v1220_v55 }
 0x180   : > { %1232 = vst [vmem:[%s320_s12 + $0x1] sm:$0x1] %v1230_v57 }
 0x181 PF: > { %s15_s17 = sadd.s32 1, %s1938_s17   ;;  %s2308_s15 = smov %s1934_s16 }
 0x182   : > { %p12_p5 = scmp.ge.s32.totalorder %s15_s17, 4   ;;  %s2309_s16 = smov %s2311_s18 }
 0x184   :  { %14 = sbr.rel (!%p12_p5) target bundleno = 2 (0x2), region = 82 }

// kernel: discriminator_forward.14
= control target key start
LH: loop header
LB: loop body
LE: loop exit
PB: predicated region body
PF: predicated region fallthrough
CT: control target
= control target key end

     0   :  { %s103_s0 = inlined_call_operand.vmem [shape: bf16[16,128], index: 0, kind: input, shape index: {}]   ;;  %s104_s1 = inlined_call_operand.vmem [shape: f32[1,128], index: 1, kind: input, shape index: {}]   ;;  %s105_s2 = inlined_call_operand.vmem [shape: f32[1,128], index: 2, kind: input, shape index: {}]   ;;  %s106_s3 = inlined_call_operand.vmem [shape: bf16[16,128], index: 3, kind: output, shape index: {}]  }
   0x1   :  { %v63_v0 = vld [vmem:[%s103_s0] sm:$0xff]  }
   0x2   :  { %v56_v1 = vld [vmem:[%s104_s1] ss:$0 sm:$0xff]  ;;  %v64_v2 = vunpack.c.l.bf16 %v63_v0  ;;  %v65_v3 = vunpack.c.h.bf16 %v63_v0 }
   0x3   :  { %v57_v4 = vld [vmem:[%s105_s2] ss:$0 sm:$0xff] }
   0x4   :  { %v25_v5 = vmul.f32 %v64_v2, %v56_v1  ;;  %v26_v6 = vmul.f32 %v65_v3, %v56_v1 }
   0x6   :  { %v34_v7 = vadd.f32 %v57_v4, %v25_v5  ;;  %v35_v8 = vadd.f32 %v57_v4, %v26_v6 }
   0x8   :  { %vm36_vm0 = vcmp.ge.f32.partialorder %v34_v7, 0.0  ;;  %vm37_vm1 = vcmp.ge.f32.partialorder %v35_v8, 0.0  ;;  %v38_v9 = vmul.f32 0.2, %v34_v7  ;;  %v39_v10 = vmul.f32 0.2, %v35_v8 }
   0xa   :  { %v40_v11 = vsel %vm36_vm0, %v34_v7, %v38_v9  ;;  %v41_v12 = vsel %vm37_vm1, %v35_v8, %v39_v10 }
   0xb   :  { %v69_v13 = vpack.c.bf16 %v41_v12, %v40_v11 }
   0xd   :  { %70 = vst [vmem:[%s106_s3] sm:$0xff] %v69_v13  }

// kernel: discriminator_forward.15
= control target key start
LH: loop header
LB: loop body
LE: loop exit
PB: predicated region body
PF: predicated region fallthrough
CT: control target
= control target key end

     0   :  { %s1595_s15 = smov 0   ;;  %s1597_s16 = smov 0   ;;  %s1845_s0 = inlined_call_operand.vmem [shape: bf16[2,2,2,256], index: 0, kind: input, shape index: {}, may-alias: {0,1}]   ;;  %s1846_s1 = inlined_call_operand.vmem [shape: bf16[2,2,2,256], index: 1, kind: input, shape index: {}, may-alias: {0,1}]   ;;  %s1847_s2 = inlined_call_operand.vmem [shape: bf16[4,256,128], index: 2, kind: input, shape index: {}]   ;;  %s1848_s3 = inlined_call_operand.vmem [shape: bf16[2,1,1,128], index: 3, kind: output, shape index: {0}]   ;;  %s1849_s4 = inlined_call_operand.vmem [shape: f32[2,1,2,128], index: 4, kind: output, shape index: {1}]  }
   0x1   :  { %s1599_s17 = smov 0  }
   0x2 LB: > { %s27_s18 = sadd.s32 1, %s1563_s16  ;;  %p1199_p0 = scmp.ge.s32.totalorder %s1567_s17, 1  ;;  %s1567_s17 = sphi %s1599_s17, %s15_s17   ;;  %s1563_s16 = sphi %s1597_s16, %s1851_s16   ;;  %s1559_s15 = sphi %s1595_s15, %s1850_s15  }
   0x3   : > { %p29_p1 = scmp.ge.s32.totalorder %s27_s18, 2  ;;  %p205_p2 = scmp.lt.s32.totalorder %s1567_s17, 3 }
   0x5   : > { %s1853_s18 = smov (%p29_p1, %s27_s18), 0  ;;  %p206_p3 = pnand %p1199_p0, %p205_p2 }
   0x6   : > { %v1481_v0 = vld [vmem:[%s1847_s2 + $0xc0] sm:$0xff] (!%p206_p3)   ;;  %v1485_v4 = vld [vmem:[%s1847_s2 + $0xc8] sm:$0xff] (!%p206_p3)   ;;  %v1489_v8 = vld [vmem:[%s1847_s2 + $0xd0] sm:$0xff] (!%p206_p3)   ;;  %p251_p4 = scmp.lt.s32.totalorder (!%p206_p3), %s1559_s15, 1  ;;  %v361_v30 = vlaneseq (!%p206_p3)  ;;  %v1569_v34 = vmov (!%p206_p3), 1966171168  }
   0x7   : > { %209 = sbr.rel (%p206_p3) target bundleno = 296 (0x128), region = 32  ;;  %v1482_v1 = vld [vmem:[%s1847_s2 + $0x40] sm:$0xff] (!%p206_p3)   ;;  %1368 = vmatprep.subr.bf16.mxu0 (!%p206_p3), %v1481_v0  ;;  %v1486_v5 = vld [vmem:[%s1847_s2 + $0x48] sm:$0xff] (!%p206_p3)   ;;  %v1490_v9 = vld [vmem:[%s1847_s2 + $0x50] sm:$0xff] (!%p206_p3)   ;;  %v359_v35 = vunpack.c.l.s4 (!%p206_p3), %v1569_v34  ;;  %vm1053_vm0 = vcmask (!%p206_p3), 1040384  }
   0x8   : > { %v1483_v2 = vld [vmem:[%s1847_s2 + $0x80] sm:$0xff] (!%p206_p3)   ;;  %1390 = vmatprep.subr.bf16.mxu1 (!%p206_p3), %v1482_v1  ;;  %v1487_v6 = vld [vmem:[%s1847_s2 + $0x88] sm:$0xff] (!%p206_p3)   ;;  %v1491_v10 = vld [vmem:[%s1847_s2 + $0x90] sm:$0xff] (!%p206_p3)   ;;  %v362_v36 = vshrl.u32 (!%p206_p3), %v361_v30, 7  ;;  %vm1054_vm1 = vsmask.f32 (!%p206_p3), 256 }
   0x9   : > { %v1484_v3 = vld [vmem:[%s1847_s2] sm:$0xff] (!%p206_p3)   ;;  %1369 = vmatpush3.bf16.msra.mxu0 (!%p206_p3), %v1483_v2  ;;  %v1488_v7 = vld [vmem:[%s1847_s2 + $0x8] sm:$0xff] (!%p206_p3)   ;;  %v1492_v11 = vld [vmem:[%s1847_s2 + $0x10] sm:$0xff] (!%p206_p3)   ;;  %v360_v40 = vunpack.c.0.s8 (!%p206_p3), %v359_v35 }
   0xa   : > { %1391 = vmatpush3.bf16.msra.mxu1 (!%p206_p3), %v1484_v3  ;;  %1370 = vmatprep.subr.bf16.mxu0 (!%p206_p3), %v1485_v4  ;;  %v1493_v12 = vld [vmem:[%s1847_s2 + $0xd8] sm:$0xff] (!%p206_p3)   ;;  %v1497_v16 = vld [vmem:[%s1847_s2 + $0xe0] sm:$0xff] (!%p206_p3)   ;;  %v1501_v20 = vld [vmem:[%s1847_s2 + $0xe8] sm:$0xff] (!%p206_p3)  }
   0xb   : > { %1392 = vmatprep.subr.bf16.mxu1 (!%p206_p3), %v1486_v5  ;;  %v1494_v13 = vld [vmem:[%s1847_s2 + $0x58] sm:$0xff] (!%p206_p3)   ;;  %v1498_v17 = vld [vmem:[%s1847_s2 + $0x60] sm:$0xff] (!%p206_p3)   ;;  %v1502_v21 = vld [vmem:[%s1847_s2 + $0x68] sm:$0xff] (!%p206_p3)   ;;  %v1727_v41 = vsub.s32 (!%p206_p3), %v360_v40, %v362_v36 }
   0xc   : > { %v1495_v14 = vld [vmem:[%s1847_s2 + $0x98] sm:$0xff] (!%p206_p3)   ;;  %v1499_v18 = vld [vmem:[%s1847_s2 + $0xa0] sm:$0xff] (!%p206_p3)   ;;  %v1503_v22 = vld [vmem:[%s1847_s2 + $0xa8] sm:$0xff] (!%p206_p3)  }
   0xd   : > { %1371 = vmatpush3.bf16.msra.mxu0 (!%p206_p3), %v1487_v6  ;;  %v1496_v15 = vld [vmem:[%s1847_s2 + $0x18] sm:$0xff] (!%p206_p3)   ;;  %v1500_v19 = vld [vmem:[%s1847_s2 + $0x20] sm:$0xff] (!%p206_p3)   ;;  %v1504_v23 = vld [vmem:[%s1847_s2 + $0x28] sm:$0xff] (!%p206_p3)  }
   0xe   : > { %1393 = vmatpush3.bf16.msra.mxu1 %v1488_v7  ;;  %1372 = vmatprep.subr.bf16.mxu0 %v1489_v8  ;;  %s1855_s15 = smov (!%p251_p4, %s1559_s15), 1  ;;  %v1505_v24 = vld [vmem:[%s1847_s2 + $0xf0] sm:$0xff]   ;;  %v1509_v28 = vld [vmem:[%s1847_s2 + $0xf8] sm:$0xff]   ;;  %v1513_v37 = vld [vmem:[%s1847_s2 + $0x140] sm:$0xff]  }
   0xf   : > { %1394 = vmatprep.subr.bf16.mxu1 %v1490_v9  ;;  %v1506_v25 = vld [vmem:[%s1847_s2 + $0x70] sm:$0xff]   ;;  %s1200_s29 = sshll.u32 %s1855_s15, 2  ;;  %v1510_v29 = vld [vmem:[%s1847_s2 + $0x78] sm:$0xff]   ;;  %v1514_v38 = vld [vmem:[%s1847_s2 + $0x1c0] sm:$0xff]   ;;  %s1202_s25 = sshll.u32 %s1855_s15, 1 }
  0x10   : > { %v1507_v26 = vld [vmem:[%s1847_s2 + $0xb0] sm:$0xff]   ;;  %s258_s12 = scalar_lea.vmem %s1845_s0, %s1200_s29  ;;  %v1511_v31 = vld [vmem:[%s1847_s2 + $0xb8] sm:$0xff]   ;;  %v1515_v44 = vld [vmem:[%s1847_s2 + $0x100] sm:$0xff]   ;;  %s266_s23 = sadd.s32 2, %s1200_s29 }
  0x11   : > { %1373 = vmatpush3.bf16.msra.mxu0 %v1491_v10  ;;  %v1508_v27 = vld [vmem:[%s1847_s2 + $0x30] sm:$0xff]   ;;  %v1512_v32 = vld [vmem:[%s1847_s2 + $0x38] sm:$0xff]   ;;  %v1235_v33 = vld.sshfl [vmem:[%s258_s12] sm:$0x11 pattern:$0x75316420]  ;;  %s267_s7 = scalar_lea.vmem %s1846_s1, %s266_s23  ;;  %s274_s28 = scalar_lea.vmem %s1848_s3, %s1855_s15 }
  0x12   : > { %1395 = vmatpush3.bf16.msra.mxu1 %v1492_v11  ;;  %1374 = vmatprep.subr.bf16.mxu0 %v1493_v12  ;;  %v357_v39 = vcombine.high %v1235_v33, %v1235_v33  ;;  %v364_v43 = vrot.slane %v1235_v33, %v1727_v41  ;;  %v1516_v45 = vld [vmem:[%s1847_s2 + $0x180] sm:$0xff]   ;;  %v1518_v46 = vld [vmem:[%s1847_s2 + $0x1c8] sm:$0xff]   ;;  %v1522_v51 = vld [vmem:[%s1847_s2 + $0x1d0] sm:$0xff]   ;;  %s281_s6 = scalar_lea.vmem %s1849_s4, %s1202_s25 }
  0x13   : > { %1396 = vmatprep.subr.bf16.mxu1 %v1494_v13  ;;  %v1517_v49 = vld [vmem:[%s1847_s2 + $0x148] sm:$0xff]   ;;  %v1521_v53 = vld [vmem:[%s1847_s2 + $0x150] sm:$0xff]   ;;  %v1526_v55 = vld [vmem:[%s1847_s2 + $0x1d8] sm:$0xff]  }
  0x14   : > { %v371_v42 = vrot.slane %v357_v39, %v1727_v41  ;;  %v373_v48 = vshrl.u32 %v364_v43, 16  ;;  %v1520_v50 = vld [vmem:[%s1847_s2 + $0x188] sm:$0xff]   ;;  %v1524_v54 = vld [vmem:[%s1847_s2 + $0x190] sm:$0xff]   ;;  %v1525_v57 = vld [vmem:[%s1847_s2 + $0x158] sm:$0xff]  }
  0x15   : > { %1375 = vmatpush3.bf16.msra.mxu0 %v1495_v14  ;;  %v1519_v52 = vld [vmem:[%s1847_s2 + $0x108] sm:$0xff]   ;;  %v1523_v56 = vld [vmem:[%s1847_s2 + $0x110] sm:$0xff]   ;;  %v1528_v58 = vld [vmem:[%s1847_s2 + $0x198] sm:$0xff]  }
  0x16   : > { %1397 = vmatpush3.bf16.msra.mxu1 %v1496_v15  ;;  %1376 = vmatprep.subr.bf16.mxu0 %v1497_v16  ;;  %v376_v47 = vshrl.u32 %v371_v42, 16  ;;  %v1530_v59 = vld [vmem:[%s1847_s2 + $0x1e0] sm:$0xff]   ;;  %v1527_v60 = vld [vmem:[%s1847_s2 + $0x118] sm:$0xff]   ;;  %v1534_v63 = vld [vmem:[%s1847_s2 + $0x1e8] sm:$0xff]  }
  0x17   : > { %1398 = vmatprep.subr.bf16.mxu1 %v1498_v17  ;;  %646 = vmatprep.mubr.bf16.mxu1 %v371_v42  ;;  %v1529_v61 = vld [vmem:[%s1847_s2 + $0x160] sm:$0xff]   ;;  %v1533_v1 = vld [vmem:[%s1847_s2 + $0x168] sm:$0xff]   ;;  %v1538_v3 = vld [vmem:[%s1847_s2 + $0x1f0] sm:$0xff]  }
  0x18   : > { %508 = vmatprep.mubr.bf16.mxu0 %v376_v47  ;;  %v1532_v62 = vld [vmem:[%s1847_s2 + $0x1a0] sm:$0xff]   ;;  %v1536_v2 = vld [vmem:[%s1847_s2 + $0x1a8] sm:$0xff]   ;;  %v1537_v5 = vld [vmem:[%s1847_s2 + $0x170] sm:$0xff]  }
  0x19   : > { %1377 = vmatpush3.bf16.msra.mxu0 %v1499_v18  ;;  %v1531_v0 = vld [vmem:[%s1847_s2 + $0x120] sm:$0xff]   ;;  %v1535_v4 = vld [vmem:[%s1847_s2 + $0x128] sm:$0xff]   ;;  %v1540_v6 = vld [vmem:[%s1847_s2 + $0x1b0] sm:$0xff]  }
  0x1a   : > { %1399 = vmatpush3.bf16.msra.mxu1 %v1500_v19  ;;  %1378 = vmatprep.subr.bf16.mxu0 %v1501_v20  ;;  %v1542_v7 = vld [vmem:[%s1847_s2 + $0x1f8] sm:$0xff]   ;;  %v1539_v8 = vld [vmem:[%s1847_s2 + $0x130] sm:$0xff]   ;;  %v1300_v9 = vld.sshfl [vmem:[%s267_s7] sm:$0x11 pattern:$0x75316420] }
  0x1b   : > { %1400 = vmatprep.subr.bf16.mxu1 %v1502_v21  ;;  %v1541_v10 = vld [vmem:[%s1847_s2 + $0x178] sm:$0xff]   ;;  %v696_v11 = vcombine.high %v1300_v9, %v1300_v9  ;;  %v703_v12 = vrot.slane %v1300_v9, %v1727_v41  ;;  %vm1055_vm2 = vmand %vm1053_vm0, %vm1054_vm1 }
  0x1c   : > { %v1544_v13 = vld [vmem:[%s1847_s2 + $0x1b8] sm:$0xff]  }
  0x1d   : > { %1379 = vmatpush3.bf16.msra.mxu0 %v1503_v22  ;;  %v710_v14 = vrot.slane %v696_v11, %v1727_v41  ;;  %v1543_v15 = vld [vmem:[%s1847_s2 + $0x138] sm:$0xff]   ;;  %v908_v17 = vshrl.u32 %v703_v12, 16  ;;  %v1056_v41 = vld [vmem:[%s274_s28] sm:$0x1] }
  0x1e   : > { %1401 = vmatpush3.bf16.msra.mxu1 %v1504_v23  ;;  %1380 = vmatprep.subr.bf16.mxu0 %v1505_v24 }
  0x1f   : > { %1402 = vmatprep.subr.bf16.mxu1 %v1506_v25  ;;  %v911_v16 = vshrl.u32 %v710_v14, 16 }
  0x21   : > { %1381 = vmatpush3.bf16.msra.mxu0 %v1507_v26 }
  0x22   : > { %1403 = vmatpush3.bf16.msra.mxu1 %v1508_v27  ;;  %1382 = vmatprep.subr.bf16.mxu0 %v1509_v28 }
  0x23   : > { %1404 = vmatprep.subr.bf16.mxu1 %v1510_v29 }
  0x25   : > { %1383 = vmatpush3.bf16.msra.mxu0 %v1511_v31 }
  0x26   : > { %1405 = vmatpush3.bf16.msra.mxu1 %v1512_v32  ;;  %1412 = vmatprep.subr.bf16.mxu0 %v1513_v37 }
  0x27   : > { %1434 = vmatprep.subr.bf16.mxu1 %v1514_v38 }
  0x28   : > { %509 = vmatmul.mubr.bf16.vlgmr.msra.gmra.mrb[0].mxu0 %v373_v48 }
  0x29   : > { %647 = vmatmul.mubr.bf16.vlgmr.msra.gmra.mrb[0].mxu1 %v364_v43  ;;  %1413 = vmatpush3.bf16.msra.mxu0 %v1515_v44 }
  0x2a   : > { %1435 = vmatpush3.bf16.msra.mxu1 %v1516_v45  ;;  %1414 = vmatprep.subr.bf16.mxu0 %v1517_v49 }
  0x2b   : > { %1436 = vmatprep.subr.bf16.mxu1 %v1518_v46  ;;  %841 = vmatprep.mubr.bf16.mxu0 %v710_v14 }
  0x2c   : > { %1043 = vmatprep.mubr.bf16.mxu1 %v911_v16 }
  0x2d   : > { %1415 = vmatpush3.bf16.msra.mxu0 %v1519_v52 }
  0x2e   : > { %1437 = vmatpush3.bf16.msra.mxu1 %v1520_v50  ;;  %1416 = vmatprep.subr.bf16.mxu0 %v1521_v53 }
  0x2f   : > { %1438 = vmatprep.subr.bf16.mxu1 %v1522_v51 }
  0x31   : > { %1417 = vmatpush3.bf16.msra.mxu0 %v1523_v56 }
  0x32   : > { %1439 = vmatpush3.bf16.msra.mxu1 %v1524_v54  ;;  %1418 = vmatprep.subr.bf16.mxu0 %v1525_v57 }
  0x33   : > { %1440 = vmatprep.subr.bf16.mxu1 %v1526_v55 }
  0x35   : > { %1419 = vmatpush3.bf16.msra.mxu0 %v1527_v60 }
  0x36   : > { %1441 = vmatpush3.bf16.msra.mxu1 %v1528_v58  ;;  %1420 = vmatprep.subr.bf16.mxu0 %v1529_v61 }
  0x37   : > { %1442 = vmatprep.subr.bf16.mxu1 %v1530_v59 }
  0x39   : > { %1421 = vmatpush3.bf16.msra.mxu0 %v1531_v0 }
  0x3a   : > { %1443 = vmatpush3.bf16.msra.mxu1 %v1532_v62  ;;  %1422 = vmatprep.subr.bf16.mxu0 %v1533_v1 }
  0x3b   : > { %1444 = vmatprep.subr.bf16.mxu1 %v1534_v63 }
  0x3d   : > { %1423 = vmatpush3.bf16.msra.mxu0 %v1535_v4 }
  0x3e   : > { %1445 = vmatpush3.bf16.msra.mxu1 %v1536_v2  ;;  %1424 = vmatprep.subr.bf16.mxu0 %v1537_v5 }
  0x3f   : > { %1446 = vmatprep.subr.bf16.mxu1 %v1538_v3 }
  0x41   : > { %1425 = vmatpush3.bf16.msra.mxu0 %v1539_v8 }
  0x42   : > { %1447 = vmatpush3.bf16.msra.mxu1 %v1540_v6  ;;  %1426 = vmatprep.subr.bf16.mxu0 %v1541_v10 }
  0x43   : > { %1448 = vmatprep.subr.bf16.mxu1 %v1542_v7 }
  0x45   : > { %1427 = vmatpush3.bf16.msra.mxu0 %v1543_v15 }
  0x46   : > { %1449 = vmatpush3.bf16.msra.mxu1 %v1544_v13 }
  0x48   : > { %842 = vmatmul.mubr.bf16.vlgmr.msra.gmra.mrb[4].mxu0 %v703_v12 }
  0x49   : > { %1044 = vmatmul.mubr.bf16.vlgmr.msra.gmra.mrb[4].mxu1 %v908_v17 }
  0xfb   : > { %v1384_v20 = vpop.f32.mrb[0].mxu0 }
  0xfc   : > { %v1406_v18 = vpop.f32.mrb[0].mxu1  ;;  %v1385_v23 = vpop.f32.mrb[1].mxu0 }
  0xfd   : > { %v1407_v19 = vpop.f32.mrb[1].mxu1  ;;  %v1386_v25 = vadd.f32 %v1385_v23, %v1384_v20  ;;  %v1387_v26 = vpop.f32.mrb[2].mxu0 }
  0xfe   : > { %v1408_v21 = vadd.f32 %v1407_v19, %v1406_v18  ;;  %v1409_v22 = vpop.f32.mrb[2].mxu1  ;;  %v1388_v27 = vpop.f32.mrb[3].mxu0 }
  0xff   : > { %v1410_v24 = vpop.f32.mrb[3].mxu1 }
 0x100   : > { %v649_v28 = vadd.f32 %v1408_v21, %v1386_v25 }
 0x11b   : > { %v1428_v31 = vpop.f32.mrb[4].mxu0 }
 0x11c   : > { %v1450_v29 = vpop.f32.mrb[4].mxu1  ;;  %v1429_v34 = vpop.f32.mrb[5].mxu0 }
 0x11d   : > { %v1451_v30 = vpop.f32.mrb[5].mxu1  ;;  %v1430_v36 = vadd.f32 %v1429_v34, %v1428_v31  ;;  %v1431_v37 = vpop.f32.mrb[6].mxu0 }
 0x11e   : > { %v1452_v32 = vadd.f32 %v1451_v30, %v1450_v29  ;;  %v1453_v33 = vpop.f32.mrb[6].mxu1  ;;  %v1432_v38 = vpop.f32.mrb[7].mxu0 }
 0x11f   : > { %v1454_v35 = vpop.f32.mrb[7].mxu1  ;;  %v849_v39 = vadd.f32 %v1430_v36, %v649_v28 }
 0x121   : > { %v1051_v40 = vadd.f32 %v1452_v32, %v849_v39 }
 0x123   : > { %v1052_v42 = vpack.c.bf16 %v1051_v40, %v1051_v40  ;;  %v1060_v43 = vsub.f32 %v1051_v40, %v1051_v40  ;;  %1063 = vst [vmem:[%s281_s6] sm:$0x1] %v1051_v40 }
 0x125   : > { %v1057_v44 = vsel %vm1055_vm2, %v1052_v42, %v1056_v41  ;;  %v1061_v45 = vmul.f32 %v1060_v43, %v1060_v43 }
 0x126   : > { %1058 = vst [vmem:[%s274_s28] sm:$0x1] %v1057_v44 }
 0x127   : > { %1064 = vst [vmem:[%s281_s6 + $0x1] sm:$0x1] %v1061_v45 }
 0x128 PF: > { %s15_s17 = sadd.s32 1, %s1567_s17   ;;  %s1850_s15 = smov %s1563_s16 }
 0x129   : > { %p12_p5 = scmp.ge.s32.totalorder %s15_s17, 4   ;;  %s1851_s16 = smov %s1853_s18 }
 0x12b   :  { %14 = sbr.rel (!%p12_p5) target bundleno = 2 (0x2), region = 80 }

// kernel: discriminator_forward.16
= control target key start
LH: loop header
LB: loop body
LE: loop exit
PB: predicated region body
PF: predicated region fallthrough
CT: control target
= control target key end

     0   :  { %s75_s0 = inlined_call_operand.vmem [shape: bf16[2,128], index: 0, kind: input, shape index: {}]   ;;  %s76_s1 = inlined_call_operand.vmem [shape: f32[1,128], index: 1, kind: input, shape index: {}]   ;;  %s77_s2 = inlined_call_operand.vmem [shape: f32[1,128], index: 2, kind: input, shape index: {}]   ;;  %s78_s3 = inlined_call_operand.vmem [shape: bf16[2,128], index: 3, kind: output, shape index: {}]  }
   0x1   :  { %v14_v0 = vld [vmem:[%s75_s0] sm:$0x1] }
   0x2   :  { %v41_v1 = vld [vmem:[%s76_s1] ss:$0 sm:$0xff]  ;;  %v15_v2 = vunpack.c.l.bf16 %v14_v0 }
   0x3   :  { %v42_v3 = vld [vmem:[%s77_s2] ss:$0 sm:$0xff] }
   0x4   :  { %v23_v4 = vmul.f32 %v41_v1, %v15_v2 }
   0x6   :  { %v31_v5 = vadd.f32 %v42_v3, %v23_v4 }
   0x8   :  { %vm32_vm0 = vcmp.ge.f32.partialorder %v31_v5, 0.0  ;;  %v33_v6 = vmul.f32 0.2, %v31_v5 }
   0xa   :  { %v34_v7 = vsel %vm32_vm0, %v31_v5, %v33_v6 }
   0xb   :  { %v35_v8 = vpack.c.bf16 %v34_v7, %v34_v7 }
   0xd   :  { %36 = vst [vmem:[%s78_s3] sm:$0x1] %v35_v8 }

// kernel: discriminator_forward.17
= control target key start
LH: loop header
LB: loop body
LE: loop exit
PB: predicated region body
PF: predicated region fallthrough
CT: control target
= control target key end

     0   :  { %v20_v0 = vlaneseq  ;;  %vm25_vm0 = vcmask 254976   ;;  %vm43_vm1 = vcmask 1024   ;;  %s86_s0 = inlined_call_operand.vmem [shape: bf16[2,32], index: 0, kind: input, shape index: {}]   ;;  %s87_s1 = inlined_call_operand.vmem [shape: bf16[1,32], index: 1, kind: input, shape index: {}]   ;;  %s88_s2 = inlined_call_operand.<no memory space> [shape: f32[1,1], index: 2, kind: input, shape index: {}]   ;;  %s89_s3 = inlined_call_operand.vmem [shape: f32[2,1], index: 3, kind: output, shape index: {}]  }
   0x1   :  { %v16_v1 = vld [vmem:[%s86_s0] sm:$0x1]  ;;  %v8_v3 = vstv %s88_s2 }
   0x2   :  { %v18_v2 = vld [vmem:[%s87_s1] sm:$0x1]  ;;  %v21_v5 = vshrl.u32 %v20_v0, 7  ;;  %9 = vst [vmem:[#allocation2] sm:$0x1] %v8_v3  ;;  %v17_v6 = vunpack.c.l.bf16 %v16_v1 }
   0x3   :  { %v19_v4 = vunpack.c.l.bf16 %v18_v2 }
   0x4   :  { %v22_v7 = vsub.s32 0, %v21_v5 }
   0x6   :  { %v23_v8 = vrot.slane %v19_v4, %v22_v7 }
   0x8   :  { %v24_v9 = vmul.f32 %v23_v8, %v17_v6 }
   0x9   :  { %v49_v11 = vld [vmem:[#allocation2] ss:$0 sm:$0xff] }
   0xa   :  { %v26_v10 = vsel %vm25_vm0, %v24_v9, 0.0 }
   0xb   :  { %27 = vadd.xlane.f32.xlu0 %v26_v10 }
  0x98   :  { %v28_v12 = vpop.xlane.xlu0 %27 }
  0x99   :  { %v36_v13 = vadd.f32 %v49_v11, %v28_v12 }
  0x9b   :  { %v37_v14 = vsub.f32 0.0, %v36_v13 }
  0x9d   :  { %v38_v15 = vmul.f32 1.442695, %v37_v14 }
  0x9f   :  { %50 = vpow2.f32 %v38_v15 }
  0xa9   :  { %v51_v16 = vpop.eup %50 }
  0xaa   :  { %v40_v17 = vadd.f32 1.0, %v51_v16 }
  0xac   :  { %52 = vrcp.f32 %v40_v17 }
  0xb6   :  { %v53_v18 = vpop.eup %52 }
  0xb7   :  { %44 = vst.msk [vmem:[%s89_s3] sm:$0x3] %vm43_vm1, %v53_v18 }

</bundles_post_ra>
